<compile_context>
chip_gen: v7x
topology: tpu7x:2x2x1
jax: 0.10.0
libtpu: 0.0.40
codegen_flags: <defaults>
</compile_context>

<pallas_src>
import functools

import jax
import jax.numpy as jnp
from jax.experimental import pallas as pl
from jax.experimental.pallas import tpu as pltpu


# ----------------------------------------------------------------------------
# Pass 1: per-core partial sums  part[c, m, h] = sum_{n in core c's tiles}
#         tanh(z[n,m,:] @ W1^T + b1)[h] * w2[h]
# ----------------------------------------------------------------------------
def score_partials_kernel(z_ref, w1_ref, b1_ref, w2_ref, part_ref,
                          *, n_total, tile_n, n_views, d_in, tail_possible):
    c = pl.program_id(0)                     # core split
    i = pl.program_id(1)                     # N-tile within this split
    t = c * pl.num_programs(1) + i           # global N-tile index

    @pl.when(i == 0)
    def _init():
        part_ref[...] = jnp.zeros_like(part_ref)

    w1 = w1_ref[...]                         # (D, H)  bf16 MXU feed
    b1 = b1_ref[...]                         # (1, H)  f32
    w2 = w2_ref[...]                         # (1, H)  f32

    def _accumulate(apply_mask):
        if apply_mask:
            rows = jax.lax.broadcasted_iota(jnp.int32, (tile_n, 1), 0) + t * tile_n
            valid = rows < n_total           # (tile_n, 1)
        parts = []
        for m in range(n_views):             # tiny, unrolled view loop
            zm = z_ref[:, m * d_in:(m + 1) * d_in]            # lane-aligned (tile_n, D)
            h = jnp.tanh(jnp.dot(zm.astype(w1.dtype), w1,
                                 preferred_element_type=jnp.float32) + b1)  # (tile_n,H)
            hw = h * w2
            if apply_mask:
                hw = jnp.where(valid, hw, 0.0)                # padded rows contribute 0
            parts.append(jnp.sum(hw, axis=0, keepdims=True))  # (1, H)
        # single full-tile update of the resident (1, M, H) output block
        part_ref[0, :, :] += jnp.concatenate(parts, axis=0)

    if tail_possible:
        full_tiles = n_total // tile_n       # tiles guaranteed fully in range

        @pl.when(t < full_tiles)
        def _full():
            _accumulate(False)

        @pl.when(t >= full_tiles)
        def _tail():
            _accumulate(True)
    else:
        _accumulate(False)


# ----------------------------------------------------------------------------
# Pass 2: out_tile = sum_m beta[m] * z_tile[:, m*D:(m+1)*D]   (beta in SMEM)
# ----------------------------------------------------------------------------
def apply_kernel(beta_ref, z_ref, out_ref, *, n_views, d_in):
    acc = beta_ref[0, 0] * z_ref[:, 0:d_in]
    for m in range(1, n_views):
        acc = acc + beta_ref[m, 0] * z_ref[:, m * d_in:(m + 1) * d_in]
    out_ref[...] = acc.astype(out_ref.dtype)


def attention_forward(z, w1, b1, w2, *, block_n=None, mxu_dtype=jnp.bfloat16):
    """z: (N, M, D); w1: (H, D); b1: (H,); w2: (1, H)  -> (N, D)."""
    N, M, D = z.shape
    H = w1.shape[0]

    z2 = z.astype(jnp.float32).reshape(N, M * D)     # free contiguous flatten
    w1t = w1.T.astype(mxu_dtype)                     # (D, H) bf16 MXU feed
    b1r = b1.reshape(1, H).astype(jnp.float32)
    w2r = w2.reshape(1, H).astype(jnp.float32)

    # ---- tile size: large lane-dense tiles, 8-aligned, VMEM-budgeted --------
    if block_n is None:
        block_n = 1024
    block_n = min(block_n, N)
    if block_n < N:
        block_n = max(8, (block_n // 8) * 8)
    # keep double-buffered footprint well under v7x's 64 MiB physical VMEM
    bytes_per_row = 4 * (2 * M * D + 2 * D)          # z (2 bufs) + out (2 bufs)
    max_rows = max(8, ((40 << 20) // bytes_per_row) // 8 * 8)
    block_n = min(block_n, max_rows)
    num_tiles = pl.cdiv(N, block_n)

    vmem_limit = int(min(max(2 * block_n * M * D * 4 + 2 * block_n * D * 4
                             + (2 << 20), 8 << 20), 48 << 20))

    # ---- pass 1: per-core (M, H) partial score sums --------------------------
    n_split = 2 if num_tiles >= 2 else 1             # v7x: one slice per TC
    tiles_per_split = pl.cdiv(num_tiles, n_split)
    tail_possible = (N % block_n != 0) or (n_split * tiles_per_split > num_tiles)

    def z_map_p1(c, i):
        # clamp so padded split tiles never DMA out of bounds (they are masked)
        return (jnp.minimum(c * tiles_per_split + i, num_tiles - 1), 0)

    score_fn = functools.partial(
        score_partials_kernel, n_total=N, tile_n=block_n, n_views=M, d_in=D,
        tail_possible=tail_possible)

    partials = pl.pallas_call(
        score_fn,
        out_shape=jax.ShapeDtypeStruct((n_split, M, H), jnp.float32),
        grid_spec=pltpu.PrefetchScalarGridSpec(
            num_scalar_prefetch=0,
            grid=(n_split, tiles_per_split),
            in_specs=[
                pl.BlockSpec((block_n, M * D), z_map_p1),
                pl.BlockSpec((D, H), lambda c, i: (0, 0)),   # resident weights
                pl.BlockSpec((1, H), lambda c, i: (0, 0)),
                pl.BlockSpec((1, H), lambda c, i: (0, 0)),
            ],
            out_specs=pl.BlockSpec((1, M, H), lambda c, i: (c, 0, 0)),
        ),
        compiler_params=pltpu.CompilerParams(
            dimension_semantics=("parallel", "arbitrary"),
            vmem_limit_bytes=vmem_limit),
    )(z2, w1t, b1r, w2r)

    # Tiny finalize (M*H = a few hundred values): mean over nodes, softmax over
    # the M views.  Done in plain JAX so pass 1 can stay 2-core-parallel on v7x.
    w = jnp.sum(partials, axis=(0, 2)) / N            # (M,)
    beta = jax.nn.softmax(w).astype(jnp.float32)
    beta_smem = beta.reshape(M, 1)

    # ---- pass 2: out = sum_m beta[m] * z[:, m, :] -----------------------------
    apply_fn = functools.partial(apply_kernel, n_views=M, d_in=D)
    if block_n <= 256:
        # small tiles expose DMA latency behind a handful of VPU FMAs
        z_spec = pl.BlockSpec((block_n, M * D), lambda i: (i, 0),
                              pipeline_mode=pl.Buffered(3))
    else:
        z_spec = pl.BlockSpec((block_n, M * D), lambda i: (i, 0))

    out = pl.pallas_call(
        apply_fn,
        out_shape=jax.ShapeDtypeStruct((N, D), jnp.float32),
        grid_spec=pltpu.PrefetchScalarGridSpec(
            num_scalar_prefetch=0,
            grid=(num_tiles,),
            in_specs=[
                pl.BlockSpec(memory_space=pltpu.MemorySpace.SMEM),   # beta scalars
                z_spec,
            ],
            out_specs=pl.BlockSpec((block_n, D), lambda i: (i, 0)),
        ),
        compiler_params=pltpu.CompilerParams(
            dimension_semantics=("parallel",),        # independent N-tiles (megacore)
            vmem_limit_bytes=vmem_limit),
    )(beta_smem, z2)
    return out


def attention_ref(z, w1, b1, w2):
    """Pure-JAX reference mirroring the PyTorch module exactly (all f32)."""
    h = jnp.tanh(jnp.einsum('nmd,hd->nmh', z, w1) + b1)       # (N, M, H)
    s = jnp.einsum('nmh,kh->nmk', h, w2)                      # (N, M, 1)
    w = s.mean(0)                                             # (M, 1)
    beta = jax.nn.softmax(w, axis=0)                          # (M, 1)
    return (beta[None] * z).sum(1)                            # (N, D)


if __name__ == "__main__":
    # nodes, views, in_size, hidden_size (module default hidden=128).
    # N is deliberately NOT divisible by the 512-row tile so the tail-mask,
    # padded-split and partial-output-block paths are all exercised.
    N, M, D, H = 1152, 4, 128, 128

    key = jax.random.PRNGKey(0)
    kz, k1, k2, k3 = jax.random.split(key, 4)
    z = jax.random.normal(kz, (N, M, D), dtype=jnp.float32)

    # PyTorch-style uniform(-1/sqrt(fan_in), +1/sqrt(fan_in)) init.
    lim1 = 1.0 / (D ** 0.5)
    w1 = jax.random.uniform(k1, (H, D), minval=-lim1, maxval=lim1, dtype=jnp.float32)
    b1 = jax.random.uniform(k2, (H,), minval=-lim1, maxval=lim1, dtype=jnp.float32)
    lim2 = 1.0 / (H ** 0.5)
    w2 = jax.random.uniform(k3, (1, H), minval=-lim2, maxval=lim2, dtype=jnp.float32)

    out = attention_forward(z, w1, b1, w2, block_n=512)
    jax.block_until_ready(out)

    ref = attention_ref(z, w1, b1, w2)
    assert out.shape == (N, D), out.shape
    max_err = float(jnp.max(jnp.abs(out - ref)))
    # bf16 MXU feed shifts the (mean + softmax over 4 views) scores by ~1e-4,
    # so the output stays well inside this tolerance.
    assert jnp.allclose(out, ref, atol=3e-3, rtol=3e-3), max_err

    print("KERNEL_OK")
</pallas_src>

<mosaic_0001>
module attributes {stable_mosaic.version = 11 : i64} {
  func.func @score_partials_kernel(%arg0: i32, %arg1: i32, %arg2: memref<512x512xf32, #tpu.memory_space<vmem>>, %arg3: memref<128x128xbf16, #tpu.memory_space<vmem>>, %arg4: memref<1x128xf32, #tpu.memory_space<vmem>>, %arg5: memref<1x128xf32, #tpu.memory_space<vmem>>, %arg6: memref<1x4x128xf32, #tpu.memory_space<vmem>>) attributes {dimension_semantics = [#tpu.dimension_semantics<parallel>, #tpu.dimension_semantics<arbitrary>], iteration_bounds = array<i64: 2, 2>, scalar_prefetch = 0 : i64, scratch_operands = 0 : i64, tpu.core_type = #tpu.core_type<tc>, window_params = [{transform_indices = @transform_0, window_bounds = array<i64: 512, 512>}, {pipeline_mode = #tpu.pipeline_mode<synchronous>, transform_indices = @transform_1, window_bounds = array<i64: 128, 128>}, {pipeline_mode = #tpu.pipeline_mode<synchronous>, transform_indices = @transform_2, window_bounds = array<i64: 1, 128>}, {pipeline_mode = #tpu.pipeline_mode<synchronous>, transform_indices = @transform_3, window_bounds = array<i64: 1, 128>}, {transform_indices = @transform_4, window_bounds = array<i64: 1, 4, 128>}]} {
    %c2_i32 = arith.constant 2 : i32
    %0 = arith.muli %arg0, %c2_i32 : i32
    %1 = arith.addi %0, %arg1 : i32
    %c0_i32 = arith.constant 0 : i32
    %2 = arith.cmpi eq, %arg1, %c0_i32 : i32
    %3 = arith.extui %2 : i1 to i32
    %c0_i32_0 = arith.constant 0 : i32
    %4 = arith.cmpi ne, %3, %c0_i32_0 : i32
    scf.if %4 {
      %cst = arith.constant 0.000000e+00 : f32
      %14 = vector.broadcast %cst : f32 to vector<1x4x128xf32>
      %c0_10 = arith.constant 0 : index
      %c0_11 = arith.constant 0 : index
      %c0_12 = arith.constant 0 : index
      %15 = vector.load %arg6[%c0_10, %c0_11, %c0_12] : memref<1x4x128xf32, #tpu.memory_space<vmem>>, vector<1x4x128xf32>
      tpu.vector_store %arg6[%c0_10, %c0_11, %c0_12], %14 {strides = array<i32>} : memref<1x4x128xf32, #tpu.memory_space<vmem>>, vector<1x4x128xf32>,
    } else {
    }
    %c0 = arith.constant 0 : index
    %c0_1 = arith.constant 0 : index
    %5 = vector.load %arg3[%c0, %c0_1] : memref<128x128xbf16, #tpu.memory_space<vmem>>, vector<128x128xbf16>
    %c0_2 = arith.constant 0 : index
    %c0_3 = arith.constant 0 : index
    %6 = vector.load %arg4[%c0_2, %c0_3] : memref<1x128xf32, #tpu.memory_space<vmem>>, vector<1x128xf32>
    %c0_4 = arith.constant 0 : index
    %c0_5 = arith.constant 0 : index
    %7 = vector.load %arg5[%c0_4, %c0_5] : memref<1x128xf32, #tpu.memory_space<vmem>>, vector<1x128xf32>
    %c2_i32_6 = arith.constant 2 : i32
    %8 = arith.cmpi slt, %1, %c2_i32_6 : i32
    %9 = arith.extui %8 : i1 to i32
    %c0_i32_7 = arith.constant 0 : i32
    %10 = arith.cmpi ne, %9, %c0_i32_7 : i32
    scf.if %10 {
      %c0_10 = arith.constant 0 : index
      %c0_11 = arith.constant 0 : index
      %14 = vector.load %arg2[%c0_10, %c0_11] : memref<512x512xf32, #tpu.memory_space<vmem>>, vector<512x128xf32>
      %15 = arith.truncf %14 : vector<512x128xf32> to vector<512x128xbf16>
      %cst = arith.constant dense<0.000000e+00> : vector<512x128xf32>
      %16 = tpu.matmul %15, %5, %cst {dimension_numbers = #tpu.dot_dimension_numbers<[1], [0], [0], [1], [0, 0, 1, 1], [], []>} : vector<512x128xbf16>, vector<128x128xbf16>, vector<512x128xf32> -> vector<512x128xf32>
      %17 = vector.broadcast %6 : vector<1x128xf32> to vector<512x128xf32>
      %18 = arith.addf %16, %17 : vector<512x128xf32>
      %19 = math.tanh %18 : vector<512x128xf32>
      %20 = vector.broadcast %7 : vector<1x128xf32> to vector<512x128xf32>
      %21 = arith.mulf %19, %20 : vector<512x128xf32>
      %cst_12 = arith.constant dense<0.000000e+00> : vector<128xf32>
      %22 = vector.multi_reduction <add>, %21, %cst_12 [0] : vector<512x128xf32> to vector<128xf32>
      %23 = vector.shape_cast %22 : vector<128xf32> to vector<1x128xf32>
      %c0_13 = arith.constant 0 : index
      %c128 = arith.constant 128 : index
      %24 = vector.load %arg2[%c0_13, %c128] : memref<512x512xf32, #tpu.memory_space<vmem>>, vector<512x128xf32>
      %25 = arith.truncf %24 : vector<512x128xf32> to vector<512x128xbf16>
      %cst_14 = arith.constant dense<0.000000e+00> : vector<512x128xf32>
      %26 = tpu.matmul %25, %5, %cst_14 {dimension_numbers = #tpu.dot_dimension_numbers<[1], [0], [0], [1], [0, 0, 1, 1], [], []>} : vector<512x128xbf16>, vector<128x128xbf16>, vector<512x128xf32> -> vector<512x128xf32>
      %27 = vector.broadcast %6 : vector<1x128xf32> to vector<512x128xf32>
      %28 = arith.addf %26, %27 : vector<512x128xf32>
      %29 = math.tanh %28 : vector<512x128xf32>
      %30 = vector.broadcast %7 : vector<1x128xf32> to vector<512x128xf32>
      %31 = arith.mulf %29, %30 : vector<512x128xf32>
      %cst_15 = arith.constant dense<0.000000e+00> : vector<128xf32>
      %32 = vector.multi_reduction <add>, %31, %cst_15 [0] : vector<512x128xf32> to vector<128xf32>
      %33 = vector.shape_cast %32 : vector<128xf32> to vector<1x128xf32>
      %c0_16 = arith.constant 0 : index
      %c256 = arith.constant 256 : index
      %34 = vector.load %arg2[%c0_16, %c256] : memref<512x512xf32, #tpu.memory_space<vmem>>, vector<512x128xf32>
      %35 = arith.truncf %34 : vector<512x128xf32> to vector<512x128xbf16>
      %cst_17 = arith.constant dense<0.000000e+00> : vector<512x128xf32>
      %36 = tpu.matmul %35, %5, %cst_17 {dimension_numbers = #tpu.dot_dimension_numbers<[1], [0], [0], [1], [0, 0, 1, 1], [], []>} : vector<512x128xbf16>, vector<128x128xbf16>, vector<512x128xf32> -> vector<512x128xf32>
      %37 = vector.broadcast %6 : vector<1x128xf32> to vector<512x128xf32>
      %38 = arith.addf %36, %37 : vector<512x128xf32>
      %39 = math.tanh %38 : vector<512x128xf32>
      %40 = vector.broadcast %7 : vector<1x128xf32> to vector<512x128xf32>
      %41 = arith.mulf %39, %40 : vector<512x128xf32>
      %cst_18 = arith.constant dense<0.000000e+00> : vector<128xf32>
      %42 = vector.multi_reduction <add>, %41, %cst_18 [0] : vector<512x128xf32> to vector<128xf32>
      %43 = vector.shape_cast %42 : vector<128xf32> to vector<1x128xf32>
      %c0_19 = arith.constant 0 : index
      %c384 = arith.constant 384 : index
      %44 = vector.load %arg2[%c0_19, %c384] : memref<512x512xf32, #tpu.memory_space<vmem>>, vector<512x128xf32>
      %45 = arith.truncf %44 : vector<512x128xf32> to vector<512x128xbf16>
      %cst_20 = arith.constant dense<0.000000e+00> : vector<512x128xf32>
      %46 = tpu.matmul %45, %5, %cst_20 {dimension_numbers = #tpu.dot_dimension_numbers<[1], [0], [0], [1], [0, 0, 1, 1], [], []>} : vector<512x128xbf16>, vector<128x128xbf16>, vector<512x128xf32> -> vector<512x128xf32>
      %47 = vector.broadcast %6 : vector<1x128xf32> to vector<512x128xf32>
      %48 = arith.addf %46, %47 : vector<512x128xf32>
      %49 = math.tanh %48 : vector<512x128xf32>
      %50 = vector.broadcast %7 : vector<1x128xf32> to vector<512x128xf32>
      %51 = arith.mulf %49, %50 : vector<512x128xf32>
      %cst_21 = arith.constant dense<0.000000e+00> : vector<128xf32>
      %52 = vector.multi_reduction <add>, %51, %cst_21 [0] : vector<512x128xf32> to vector<128xf32>
      %53 = vector.shape_cast %52 : vector<128xf32> to vector<1x128xf32>
      %c0_22 = arith.constant 0 : index
      %c0_23 = arith.constant 0 : index
      %c0_24 = arith.constant 0 : index
      %54 = vector.load %arg6[%c0_22, %c0_23, %c0_24] : memref<1x4x128xf32, #tpu.memory_space<vmem>>, vector<1x4x128xf32>
      %55 = vector.shape_cast %54 : vector<1x4x128xf32> to vector<4x128xf32>
      %56 = tpu.concatenate %23, %33, %43, %53 in 0 : vector<1x128xf32>, vector<1x128xf32>, vector<1x128xf32>, vector<1x128xf32> -> vector<4x128xf32>
      %57 = arith.addf %55, %56 : vector<4x128xf32>
      %c0_25 = arith.constant 0 : index
      %c0_26 = arith.constant 0 : index
      %c0_27 = arith.constant 0 : index
      %58 = vector.load %arg6[%c0_25, %c0_26, %c0_27] : memref<1x4x128xf32, #tpu.memory_space<vmem>>, vector<1x4x128xf32>
      %59 = vector.shape_cast %58 : vector<1x4x128xf32> to vector<4x128xf32>
      %60 = vector.shape_cast %57 : vector<4x128xf32> to vector<1x4x128xf32>
      tpu.vector_store %arg6[%c0_25, %c0_26, %c0_27], %60 {strides = array<i32>} : memref<1x4x128xf32, #tpu.memory_space<vmem>>, vector<1x4x128xf32>,
    } else {
    }
    %c2_i32_8 = arith.constant 2 : i32
    %11 = arith.cmpi sge, %1, %c2_i32_8 : i32
    %12 = arith.extui %11 : i1 to i32
    %c0_i32_9 = arith.constant 0 : i32
    %13 = arith.cmpi ne, %12, %c0_i32_9 : i32
    scf.if %13 {
      %14 = tpu.iota {dimensions = array<i32: 0>} : vector<512x1xi32>
      %c512_i32 = arith.constant 512 : i32
      %15 = arith.muli %1, %c512_i32 : i32
      %16 = vector.broadcast %15 : i32 to vector<512x1xi32>
      %17 = arith.addi %14, %16 : vector<512x1xi32>
      %c1152_i32 = arith.constant 1152 : i32
      %18 = vector.broadcast %c1152_i32 : i32 to vector<512x1xi32>
      %19 = arith.cmpi slt, %17, %18 : vector<512x1xi32>
      %c0_10 = arith.constant 0 : index
      %c0_11 = arith.constant 0 : index
      %20 = vector.load %arg2[%c0_10, %c0_11] : memref<512x512xf32, #tpu.memory_space<vmem>>, vector<512x128xf32>
      %21 = arith.truncf %20 : vector<512x128xf32> to vector<512x128xbf16>
      %cst = arith.constant dense<0.000000e+00> : vector<512x128xf32>
      %22 = tpu.matmul %21, %5, %cst {dimension_numbers = #tpu.dot_dimension_numbers<[1], [0], [0], [1], [0, 0, 1, 1], [], []>} : vector<512x128xbf16>, vector<128x128xbf16>, vector<512x128xf32> -> vector<512x128xf32>
      %23 = vector.broadcast %6 : vector<1x128xf32> to vector<512x128xf32>
      %24 = arith.addf %22, %23 : vector<512x128xf32>
      %25 = math.tanh %24 : vector<512x128xf32>
      %26 = vector.broadcast %7 : vector<1x128xf32> to vector<512x128xf32>
      %27 = arith.mulf %25, %26 : vector<512x128xf32>
      %cst_12 = arith.constant 0.000000e+00 : f32
      %28 = vector.shape_cast %19 : vector<512x1xi1> to vector<512x1xi1>
      %29 = vector.broadcast %28 : vector<512x1xi1> to vector<512x128xi1>
      %30 = vector.broadcast %cst_12 : f32 to vector<512x128xf32>
      %31 = arith.select %29, %27, %30 : vector<512x128xi1>, vector<512x128xf32>
      %cst_13 = arith.constant dense<0.000000e+00> : vector<128xf32>
      %32 = vector.multi_reduction <add>, %31, %cst_13 [0] : vector<512x128xf32> to vector<128xf32>
      %33 = vector.shape_cast %32 : vector<128xf32> to vector<1x128xf32>
      %c0_14 = arith.constant 0 : index
      %c128 = arith.constant 128 : index
      %34 = vector.load %arg2[%c0_14, %c128] : memref<512x512xf32, #tpu.memory_space<vmem>>, vector<512x128xf32>
      %35 = arith.truncf %34 : vector<512x128xf32> to vector<512x128xbf16>
      %cst_15 = arith.constant dense<0.000000e+00> : vector<512x128xf32>
      %36 = tpu.matmul %35, %5, %cst_15 {dimension_numbers = #tpu.dot_dimension_numbers<[1], [0], [0], [1], [0, 0, 1, 1], [], []>} : vector<512x128xbf16>, vector<128x128xbf16>, vector<512x128xf32> -> vector<512x128xf32>
      %37 = vector.broadcast %6 : vector<1x128xf32> to vector<512x128xf32>
      %38 = arith.addf %36, %37 : vector<512x128xf32>
      %39 = math.tanh %38 : vector<512x128xf32>
      %40 = vector.broadcast %7 : vector<1x128xf32> to vector<512x128xf32>
      %41 = arith.mulf %39, %40 : vector<512x128xf32>
      %cst_16 = arith.constant 0.000000e+00 : f32
      %42 = vector.shape_cast %19 : vector<512x1xi1> to vector<512x1xi1>
      %43 = vector.broadcast %42 : vector<512x1xi1> to vector<512x128xi1>
      %44 = vector.broadcast %cst_16 : f32 to vector<512x128xf32>
      %45 = arith.select %43, %41, %44 : vector<512x128xi1>, vector<512x128xf32>
      %cst_17 = arith.constant dense<0.000000e+00> : vector<128xf32>
      %46 = vector.multi_reduction <add>, %45, %cst_17 [0] : vector<512x128xf32> to vector<128xf32>
      %47 = vector.shape_cast %46 : vector<128xf32> to vector<1x128xf32>
      %c0_18 = arith.constant 0 : index
      %c256 = arith.constant 256 : index
      %48 = vector.load %arg2[%c0_18, %c256] : memref<512x512xf32, #tpu.memory_space<vmem>>, vector<512x128xf32>
      %49 = arith.truncf %48 : vector<512x128xf32> to vector<512x128xbf16>
      %cst_19 = arith.constant dense<0.000000e+00> : vector<512x128xf32>
      %50 = tpu.matmul %49, %5, %cst_19 {dimension_numbers = #tpu.dot_dimension_numbers<[1], [0], [0], [1], [0, 0, 1, 1], [], []>} : vector<512x128xbf16>, vector<128x128xbf16>, vector<512x128xf32> -> vector<512x128xf32>
      %51 = vector.broadcast %6 : vector<1x128xf32> to vector<512x128xf32>
      %52 = arith.addf %50, %51 : vector<512x128xf32>
      %53 = math.tanh %52 : vector<512x128xf32>
      %54 = vector.broadcast %7 : vector<1x128xf32> to vector<512x128xf32>
      %55 = arith.mulf %53, %54 : vector<512x128xf32>
      %cst_20 = arith.constant 0.000000e+00 : f32
      %56 = vector.shape_cast %19 : vector<512x1xi1> to vector<512x1xi1>
      %57 = vector.broadcast %56 : vector<512x1xi1> to vector<512x128xi1>
      %58 = vector.broadcast %cst_20 : f32 to vector<512x128xf32>
      %59 = arith.select %57, %55, %58 : vector<512x128xi1>, vector<512x128xf32>
      %cst_21 = arith.constant dense<0.000000e+00> : vector<128xf32>
      %60 = vector.multi_reduction <add>, %59, %cst_21 [0] : vector<512x128xf32> to vector<128xf32>
      %61 = vector.shape_cast %60 : vector<128xf32> to vector<1x128xf32>
      %c0_22 = arith.constant 0 : index
      %c384 = arith.constant 384 : index
      %62 = vector.load %arg2[%c0_22, %c384] : memref<512x512xf32, #tpu.memory_space<vmem>>, vector<512x128xf32>
      %63 = arith.truncf %62 : vector<512x128xf32> to vector<512x128xbf16>
      %cst_23 = arith.constant dense<0.000000e+00> : vector<512x128xf32>
      %64 = tpu.matmul %63, %5, %cst_23 {dimension_numbers = #tpu.dot_dimension_numbers<[1], [0], [0], [1], [0, 0, 1, 1], [], []>} : vector<512x128xbf16>, vector<128x128xbf16>, vector<512x128xf32> -> vector<512x128xf32>
      %65 = vector.broadcast %6 : vector<1x128xf32> to vector<512x128xf32>
      %66 = arith.addf %64, %65 : vector<512x128xf32>
      %67 = math.tanh %66 : vector<512x128xf32>
      %68 = vector.broadcast %7 : vector<1x128xf32> to vector<512x128xf32>
      %69 = arith.mulf %67, %68 : vector<512x128xf32>
      %cst_24 = arith.constant 0.000000e+00 : f32
      %70 = vector.shape_cast %19 : vector<512x1xi1> to vector<512x1xi1>
      %71 = vector.broadcast %70 : vector<512x1xi1> to vector<512x128xi1>
      %72 = vector.broadcast %cst_24 : f32 to vector<512x128xf32>
      %73 = arith.select %71, %69, %72 : vector<512x128xi1>, vector<512x128xf32>
      %cst_25 = arith.constant dense<0.000000e+00> : vector<128xf32>
      %74 = vector.multi_reduction <add>, %73, %cst_25 [0] : vector<512x128xf32> to vector<128xf32>
      %75 = vector.shape_cast %74 : vector<128xf32> to vector<1x128xf32>
      %c0_26 = arith.constant 0 : index
      %c0_27 = arith.constant 0 : index
      %c0_28 = arith.constant 0 : index
      %76 = vector.load %arg6[%c0_26, %c0_27, %c0_28] : memref<1x4x128xf32, #tpu.memory_space<vmem>>, vector<1x4x128xf32>
      %77 = vector.shape_cast %76 : vector<1x4x128xf32> to vector<4x128xf32>
      %78 = tpu.concatenate %33, %47, %61, %75 in 0 : vector<1x128xf32>, vector<1x128xf32>, vector<1x128xf32>, vector<1x128xf32> -> vector<4x128xf32>
      %79 = arith.addf %77, %78 : vector<4x128xf32>
      %c0_29 = arith.constant 0 : index
      %c0_30 = arith.constant 0 : index
      %c0_31 = arith.constant 0 : index
      %80 = vector.load %arg6[%c0_29, %c0_30, %c0_31] : memref<1x4x128xf32, #tpu.memory_space<vmem>>, vector<1x4x128xf32>
      %81 = vector.shape_cast %80 : vector<1x4x128xf32> to vector<4x128xf32>
      %82 = vector.shape_cast %79 : vector<4x128xf32> to vector<1x4x128xf32>
      tpu.vector_store %arg6[%c0_29, %c0_30, %c0_31], %82 {strides = array<i32>} : memref<1x4x128xf32, #tpu.memory_space<vmem>>, vector<1x4x128xf32>,
    } else {
    }
    return
  }
  func.func @transform_0(%arg0: i32, %arg1: i32) -> (i32, i32) {
    %c2_i32 = arith.constant 2 : i32
    %0 = arith.muli %arg0, %c2_i32 : i32
    %1 = arith.addi %0, %arg1 : i32
    %c2_i32_0 = arith.constant 2 : i32
    %2 = arith.minsi %1, %c2_i32_0 : i32
    %c0_i32 = arith.constant 0 : i32
    %c0_i32_1 = arith.constant 0 : i32
    return %2, %c0_i32 : i32, i32
  }
  func.func @transform_1(%arg0: i32, %arg1: i32) -> (i32, i32) {
    %c0_i32 = arith.constant 0 : i32
    %c0_i32_0 = arith.constant 0 : i32
    %c0_i32_1 = arith.constant 0 : i32
    return %c0_i32, %c0_i32_0 : i32, i32
  }
  func.func @transform_2(%arg0: i32, %arg1: i32) -> (i32, i32) {
    %c0_i32 = arith.constant 0 : i32
    %c0_i32_0 = arith.constant 0 : i32
    %c0_i32_1 = arith.constant 0 : i32
    return %c0_i32, %c0_i32_0 : i32, i32
  }
  func.func @transform_3(%arg0: i32, %arg1: i32) -> (i32, i32) {
    %c0_i32 = arith.constant 0 : i32
    %c0_i32_0 = arith.constant 0 : i32
    %c0_i32_1 = arith.constant 0 : i32
    return %c0_i32, %c0_i32_0 : i32, i32
  }
  func.func @transform_4(%arg0: i32, %arg1: i32) -> (i32, i32, i32) {
    %c0_i32 = arith.constant 0 : i32
    %c0_i32_0 = arith.constant 0 : i32
    %c0_i32_1 = arith.constant 0 : i32
    return %arg0, %c0_i32, %c0_i32_0 : i32, i32, i32
  }
}

</mosaic_0001>

<bundles_post_ra>
// kernel: tpu_custom_call.1
= control target key start
LH: loop header
LB: loop body
LE: loop exit
PB: predicated region body
PF: predicated region fallthrough
CT: control target
= control target key end

     0   :  { %s12349_s0 = inlined_call_operand.hbm [shape: f32[1152,512], index: 0, kind: input, shape index: {}]   ;;  %s12350_s1 = inlined_call_operand.hbm [shape: bf16[128,128], index: 1, kind: input, shape index: {}]   ;;  %s12351_s2 = inlined_call_operand.hbm [shape: f32[1,128], index: 2, kind: input, shape index: {}]   ;;  %s12352_s3 = inlined_call_operand.hbm [shape: f32[1,128], index: 3, kind: input, shape index: {}]   ;;  %s12353_s4 = inlined_call_operand.hbm [shape: f32[2,4,128], index: 4, kind: output, shape index: {}]  }
   0x1   :  { %12555 = sst [smem:[#allocation105_spill]] %s12353_s4 }
   0x2   :  { %9 = vsyncpa [#allocation3], 0 }
   0x3   :  { %11 = vsyncpa [#allocation3 + $0x1], 0 }
   0x4   :  { %12 = vsyncpa [#allocation6], 0 }
   0x5   :  { %13 = vsyncpa [#allocation9], 0 }
   0x6   :  { %14 = vsyncpa [#allocation4], 0 }
   0x7   :  { %16 = vsyncpa [#allocation4 + $0x1], 0  ;;  %s8277_s15 = smov 0   ;;  %s8279_s16 = smov 0  }
   0x8   :  { %s8281_s17 = smov 0   ;;  %s8283_s18 = smov 0  }
   0x9   :  { %s8285_s19 = smov 0   ;;  %s8287_s20 = smov 0  }
   0xa   :  { %s8289_s21 = smov 0   ;;  %s8291_s22 = smov 0  }
   0xb   :  { %s8293_s23 = smov 0   ;;  %s8295_s24 = smov 0  }
   0xc   :  { %s8297_s25 = smov 0  }
   0xd LB: > { %12556 = sst [smem:[#allocation15_spill]] %s8200_s15  ;;  %s5829_s26 = sadd.s32 4294967295, %s8240_s25   ;;  %s8240_s25 = sphi %s8297_s25, %s22_s25   ;;  %s8236_s24 = sphi %s8295_s24, %s12984_s24   ;;  %s8232_s23 = sphi %s8293_s23, %s12983_s23   ;;  %s8228_s22 = sphi %s8291_s22, %s12982_s22   ;;  %s8224_s21 = sphi %s8289_s21, %s12990_s21   ;;  %s8220_s20 = sphi %s8287_s20, %s12989_s20   ;;  %s8216_s19 = sphi %s8285_s19, %s12988_s19   ;;  %s8212_s18 = sphi %s8283_s18, %s12987_s18   ;;  %s8208_s17 = sphi %s8281_s17, %s12979_s17   ;;  %s8204_s16 = sphi %s8279_s16, %s12986_s16   ;;  %s8200_s15 = sphi %s8277_s15, %s12985_s15  }
   0xe   : > { %12557 = sst [smem:[#allocation16_spill]] %s8208_s17  ;;  %s5830_s27 = sadd.s32 4294967294, %s8240_s25  }
   0xf   : > { %12558 = sst [smem:[#allocation17_spill]] %s8232_s23  ;;  %s31_s28 = sadd.s32 1, %s8232_s23 }
  0x10   : > { %12559 = sst [smem:[#allocation18_spill]] %s8236_s24  ;;  %s34_s29 = sadd.s32 1, %s8236_s24 }
  0x11   : > { %p32_p0 = scmp.ge.s32.totalorder %s31_s28, 2  ;;  %s5831_s30 = sshll.u32 %s8236_s24, 1 }
  0x12   : > { %s39_s5 = sadd.s32 %s8232_s23, %s5831_s30  ;;  %s49_s6 = sadd.s32 1, %s8220_s20 }
  0x13   : > { %s12992_s28 = smov (%p32_p0, %s31_s28), 0  ;;  %s12994_s29 = smov (!%p32_p0, %s34_s29), %s8236_s24 }
  0x14   : > { %12560 = sst [smem:[#allocation19_spill]] %s12992_s28  ;;  %p40_p1 = scmp.lt.s32.totalorder %s39_s5, 2 }
  0x15   : > { %p56_p2 = scmp.ne.s32.totalorder %s8220_s20, %s8216_s19  ;;  %p36_p3 = scmp.ge.s32.totalorder %s12994_s29, 2 }
  0x16   : > { %p57_p4 = scmp.eq.s32.totalorder %s8240_s25, 0  ;;  %s12996_s5 = smov (!%p40_p1, %s39_s5), 2 }
  0x17   : > { %s12998_s29 = smov (%p36_p3, %s12994_s29), 0  ;;  %p62_p6 = scmp.ne.s32.totalorder %s8216_s19, %s8212_s18 }
  0x18   : > { %12561 = sst [smem:[#allocation20_spill]] %s12998_s29  ;;  %p8349_p5 = por %p57_p4, %p56_p2 }
  0x19   : > { %s5832_s8 = sshll.u32 %s12998_s29, 1  ;;  %p8358_p7 = scmp.eq.s32.totalorder %s5829_s26, 0 }
  0x1a   : > { %s43_s10 = sadd.s32 %s5832_s8, %s12992_s28  ;;  %s135_s11 = ssub.s32 %s8236_s24, %s12998_s29 }
  0x1b   : > { %s12563_s9 = scalar_select %p8358_p7, 1, 0 }
  0x1c   : > { %p44_p8 = scmp.lt.s32.totalorder %s43_s10, 2  ;;  %p8367_p9 = por %p8358_p7, %p62_p6 }
  0x1d   : > { %p136_p10 = scmp.eq.s32.totalorder %s135_s11, 0  ;;  %s138_s13 = sadd.s32 1, %s8208_s17 }
  0x1e   : > { %s12564_s12 = scalar_select %p8367_p9, 1, 0 }
  0x1f   : > { %s13000_s10 = smov (!%p44_p8, %s43_s10), 2  ;;  %p148_p11 = scmp.ne.s32.totalorder %s8208_s17, %s8204_s16 }
  0x20   : > { %s8373_s14 = scalar_select %p136_p10, %s8208_s17, %s138_s13  }
  0x21   : > { %s46_s18 = ssub.s32 %s12996_s5, %s13000_s10  ;;  %p149_p13 = scmp.eq.s32.totalorder %s5829_s26, 3 }
  0x22   : > { %12565 = sst [smem:[#allocation21_spill]] %s8373_s14  ;;  %p47_p12 = scmp.eq.s32.totalorder %s46_s18, 0 }
  0x23   : > { %p154_p0 = scmp.ne.s32.totalorder %s8204_s16, %s8200_s15  ;;  %p155_p1 = scmp.eq.s32.totalorder %s5830_s27, 3 }
  0x24   : > { %s8385_s30 = scalar_select %p47_p12, %s8220_s20, %s49_s6  }
  0x25   : > { %p8387_p2 = por %p149_p13, %p148_p11  ;;  %p8391_p3 = por %p155_p1, %p154_p0 }
  0x26   : > { %12566 = sst [smem:[#allocation22_spill]] %s8385_s30  ;;  %p5833_p4 = scmp.ge.s32.totalorder %s8240_s25, 1 }
  0x27   : > { %s12567_s8 = scalar_select %p8387_p2, 1, 0 }
  0x28   : > { %s12569_s11 = scalar_select %p8391_p3, 1, 0 }
  0x29   : > { %12568 = sst [smem:[#allocation23_spill]] %s12567_s8  ;;  %p162_p6 = scmp.lt.s32.totalorder %s8240_s25, 5 }
  0x2a   : > { %12570 = sst [smem:[#allocation24_spill]] %s12569_s11  ;;  %s8242_s26 = smov [#allocation5]  }
  0x2b   : > { %p8397_p8 = pnand %p5833_p4, %p162_p6  ;;  %s174_s13 = sshll.u32 %s8242_s26, 4  ;;  %s8401_s13 = int_to_ptr.vmem [resolvable:$true] %s174_s13 }
  0x2c   : > { %s8243_s6 = smov [#allocation7]   ;;  %s8244_s29 = smov [#allocation8]  }
  0x2d   : > { %p6857_p10 = pneg %p8397_p8  ;;  %s188_s18 = sshll.u32 %s8243_s6, 4  ;;  %s8411_s18 = int_to_ptr.vmem [resolvable:$true] %s188_s18 }
  0x2e   : > { %s199_s28 = sshll.u32 %s8244_s29, 4  ;;  %s7998_s23 = scalar_lea.hbm %s12350_s1, 1024  ;;  %s8413_s28 = int_to_ptr.vmem [resolvable:$true] %s199_s28 }
  0x2f   : > { %p8407_p11 = pnand %p6857_p10, %p8358_p7  ;;  %p7999_p12 = scmp.ne.s32.totalorder %s12350_s1, %s7998_s23 }
  0x30   : > { %p8005_p4 = scmp.lt.u32.totalorder %s7998_s23, %s12350_s1 }
  0x31   : > { %p8423_p13 = pneg %p8407_p11 }
  0x33   : > { %p8001_p0 = pnand %p8423_p13, %p7999_p12 }
  0x35   : > { %p8002_p1 = pneg %p8001_p0 }
  0x37   : > { %p8007_p6 = pnand %p8005_p4, %p8002_p1 }
  0x39   : > { %8010 = shalt.err (!%p8007_p6)
}
  0x3a   : > { %s8011_s24 = scalar_lea.vmem %s8401_s13, 1024  ;;  %p8019_p7 = scmp.lt.s32.totalorder %s8401_s13, %s8401_s13 }
  0x3b   : > { %p8012_p10 = scmp.ne.s32.totalorder %s8401_s13, %s8011_s24  ;;  %p8020_p9 = scmp.lt.s32.totalorder %s8011_s24, %s8011_s24 }
  0x3d   : > { %p8014_p3 = pnand %p8012_p10, %p8423_p13  ;;  %p8021_p12 = por %p8020_p9, %p8019_p7 }
  0x3f   : > { %p8015_p2 = pneg %p8014_p3 }
  0x41   : > { %p8022_p0 = pnand %p8021_p12, %p8015_p2 }
  0x43   : > { %8025 = shalt.err (!%p8022_p0)
}
  0x44   : > { %s8245_s14 = smov 64   ;;  %s8246_s23 = smov 4  }
  0x45   : > { %6860 = dma.hbm_to_vmem [thread:$0]  (!%p8407_p11), %s12350_s1, 1024, %s8401_s13, [#allocation6], %s8245_s14, %s8245_s14, %s8246_s23  }
  0x46   : > { %s8026_s11 = scalar_lea.hbm %s12351_s2, 16 }
  0x47   : > { %p8027_p7 = scmp.ne.s32.totalorder %s12351_s2, %s8026_s11  ;;  %p8033_p3 = scmp.lt.u32.totalorder %s8026_s11, %s12351_s2 }
  0x49   : > { %p8029_p9 = pnand %p8027_p7, %p8423_p13 }
  0x4b   : > { %p8030_p2 = pneg %p8029_p9 }
  0x4d   : > { %p8035_p1 = pnand %p8033_p3, %p8030_p2 }
  0x4f   : > { %8038 = shalt.err (!%p8035_p1)
}
  0x50   : > { %s8039_s13 = scalar_lea.vmem %s8411_s18, 16  ;;  %s8046_s4 = scalar_lea.vmem %s8411_s18, 32 }
  0x51   : > { %p8040_p4 = scmp.ne.s32.totalorder %s8411_s18, %s8039_s13  ;;  %p8047_p12 = scmp.lt.s32.totalorder %s8411_s18, %s8411_s18 }
  0x52   : > { %p8048_p0 = scmp.lt.s32.totalorder %s8046_s4, %s8039_s13 }
  0x53   : > { %p8042_p6 = pnand %p8040_p4, %p8423_p13 }
  0x54   : > { %p8049_p7 = por %p8048_p0, %p8047_p12 }
  0x55   : > { %p8043_p10 = pneg %p8042_p6 }
  0x57   : > { %p8050_p9 = pnand %p8049_p7, %p8043_p10 }
  0x59   : > { %8053 = shalt.err (!%p8050_p9)
}
  0x5a   : > { %6863 = dma.hbm_to_vmem [thread:$0]  (!%p8407_p11), %s12351_s2, 16, %s8411_s18, [#allocation6]  }
  0x5b   : > { %s8054_s23 = scalar_lea.hbm %s12352_s3, 16 }
  0x5c   : > { %p8055_p2 = scmp.ne.s32.totalorder %s12352_s3, %s8054_s23  ;;  %p8061_p4 = scmp.lt.u32.totalorder %s8054_s23, %s12352_s3 }
  0x5e   : > { %p8057_p3 = pnand %p8055_p2, %p8423_p13 }
  0x60   : > { %p8058_p1 = pneg %p8057_p3 }
  0x62   : > { %p8063_p6 = pnand %p8061_p4, %p8058_p1 }
  0x64   : > { %8066 = shalt.err (!%p8063_p6)
}
  0x65   : > { %s8067_s18 = scalar_lea.vmem %s8413_s28, 16  ;;  %s8074_s24 = scalar_lea.vmem %s8413_s28, 32 }
  0x66   : > { %p8068_p10 = scmp.ne.s32.totalorder %s8413_s28, %s8067_s18  ;;  %p8075_p7 = scmp.lt.s32.totalorder %s8413_s28, %s8413_s28 }
  0x67   : > { %p8076_p9 = scmp.lt.s32.totalorder %s8074_s24, %s8067_s18 }
  0x68   : > { %p8070_p12 = pnand %p8068_p10, %p8423_p13 }
  0x69   : > { %p8077_p2 = por %p8076_p9, %p8075_p7 }
  0x6a   : > { %p8071_p0 = pneg %p8070_p12 }
  0x6c   : > { %p8078_p3 = pnand %p8077_p2, %p8071_p0 }
  0x6e   : > { %8081 = shalt.err (!%p8078_p3)
}
  0x6f   : > { %6866 = dma.hbm_to_vmem [thread:$0]  (!%p8407_p11), %s12352_s3, 16, %s8413_s28, [#allocation9]  }
  0x70   : > { %p5837_p1 = scmp.ge.s32.totalorder %s8240_s25, 4 }
  0x72   : > { %206 = sbr.rel (%p5837_p1) target bundleno = 156 (0x9c), region = 28 }
  0x79   : > { %209 = sbr.rel (!%p8349_p5) target bundleno = 156 (0x9c), region = 32  ;;  %s210_s17 = sand.u32 (%p8349_p5), 1, %s8220_s20  }
  0x7a   : > { %s5840_s15 = sshll.u32 (%p8349_p5), %s12996_s5, 6  ;;  %s5838_s8 = sshll.u32 (%p8349_p5), %s210_s17, 11 }
  0x7b   : > { %s220_s11 = ssub.s32 (%p8349_p5), 144, %s5840_s15  ;;  %s8500_s23 = scalar_lea.sflag (%p8349_p5), [#allocation3], %s210_s17 }
  0x7c   : > { %p221_p13 = scmp.lt.s32.totalorder (%p8349_p5), %s220_s11, 64  ;;  %s214_s28 = scalar_lea.vmem (%p8349_p5), [#allocation2], %s5838_s8 }
  0x80   : > { %s13002_s11 = smov (!%p221_p13, %s220_s11), 64 }
  0x81   : > { %s8497_s27 = sshll.u32 %s13002_s11, 9 }
  0x82   : > { %s226_s14 = ssub.s32 32768, %s8497_s27 }
  0x83   : > { %227 = vsyncadd %s8500_s23, %s226_s14  ;;  %p5843_p5 = scmp.ne.s32.totalorder %s8497_s27, 0  ;;  %s5881_s7 = sshll.u32 %s12996_s5, 15 }
  0x84   : > { %s8508_s29 = scalar_lea.hbm %s12349_s0, %s5881_s7  ;;  %s233_s6 = sshll.u32 %s214_s28, 4  ;;  %s8510_s6 = int_to_ptr.vmem [resolvable:$true] %s233_s6 }
  0x85   : > { %s8082_s18 = scalar_lea.hbm %s8508_s29, %s8497_s27  ;;  %s8086_s5 = scalar_lea.hbm %s12349_s0, 73728 }
  0x86   : > { %p8083_p11 = scmp.ne.s32.totalorder %s8508_s29, %s8082_s18  ;;  %p8087_p10 = scmp.lt.u32.totalorder %s8508_s29, %s12349_s0 }
  0x87   : > { %p8088_p12 = scmp.lt.u32.totalorder %s8086_s5, %s8082_s18  ;;  %p8090_p7 = scmp.lt.u32.totalorder %s8082_s18, %s8508_s29 }
  0x88   : > { %p8084_p4 = pnand %p8083_p11, %p5843_p5 }
  0x89   : > { %p8089_p0 = por %p8088_p12, %p8087_p10 }
  0x8a   : > { %p8085_p6 = pneg %p8084_p4 }
  0x8b   : > { %p8091_p9 = por %p8090_p7, %p8089_p0 }
  0x8d   : > { %p8092_p2 = pnand %p8091_p9, %p8085_p6 }
  0x8f   : > { %8095 = shalt.err (!%p8092_p2)
}
  0x90   : > { %s8096_s15 = scalar_lea.vmem %s8510_s6, %s8497_s27  ;;  %s8247_s8 = smov [#allocation2]  }
  0x91   : > { %p8097_p3 = scmp.ne.s32.totalorder %s8510_s6, %s8096_s15  ;;  %s8100_s11 = sshll.u32 %s8247_s8, 4  ;;  %s8101_s11 = int_to_ptr.vmem [resolvable:$false] %s8100_s11 }
  0x92   : > { %s8102_s14 = scalar_lea.vmem %s8101_s11, 65536  ;;  %p8103_p11 = scmp.lt.s32.totalorder %s8510_s6, %s8101_s11 }
  0x93   : > { %p8098_p1 = pnand %p8097_p3, %p5843_p5  ;;  %p8104_p4 = scmp.lt.s32.totalorder %s8102_s14, %s8096_s15 }
  0x95   : > { %p8099_p13 = pneg %p8098_p1  ;;  %p8105_p10 = por %p8104_p4, %p8103_p11 }
  0x97   : > { %p8106_p12 = pnand %p8105_p10, %p8099_p13 }
  0x99   : > { %8109 = shalt.err (!%p8106_p12)
}
  0x9a   : > { %s8248_s28 = smov 512   ;;  %s8249_s7 = smov 32  }
  0x9b   : > { %239 = dma.hbm_to_vmem [thread:$0]  (%p5843_p5), %s8508_s29, %s8497_s27, %s8510_s6, %s8500_s23, %s8248_s28, %s8248_s28, %s8249_s7  }
  0x9c PF: > { %245 = sbr.rel (%p8397_p8) target bundleno = 1406 (0x57e), region = 36  ;;  %s247_s30 = sand.u32 (!%p8397_p8), 1, %s8216_s19  }
  0x9d   : > { %s5849_s26 = sshll.u32 (!%p8397_p8), %s247_s30, 11  ;;  %s248_s18 = scalar_lea.sflag (!%p8397_p8), [#allocation3], %s247_s30 }
  0x9e   : > { %s8540_s24 = scalar_lea.vmem (!%p8397_p8), [#allocation2], %s5849_s26  ;;  %p12574_p6 = scmp.ne.s32.totalorder (!%p8397_p8), %s12564_s12, 0 }
  0xa3   : > { %8183 = dma.done.wait (%p12574_p6), %s248_s18, 32768  }
  0xa4   : > { %8185 = vsyncadd (%p12574_p6), %s248_s18, 4294934528  ;;  %p12575_p0 = scmp.ne.s32.totalorder %s12563_s9, 0 }
  0xa6   : > { %8187 = dma.done.wait (%p12575_p0), [#allocation6], 1040  }
  0xa7   : > { %8189 = vsyncadd (%p12575_p0), [#allocation6], 4294966256 }
  0xa8   : > { %8191 = dma.done.wait (%p12575_p0), [#allocation9], 16  }
  0xa9   : > { %8193 = vsyncadd (%p12575_p0), [#allocation9], 4294967280  ;;  %s285_s10 = sand.u32 1, %s8204_s16   ;;  %s5854_s27 = sshll.u32 %s8228_s22, 1 }
  0xaa   : > { %s5853_s12 = sshll.u32 %s285_s10, 2  ;;  %s8559_s23 = sadd.s32 %s8224_s21, %s5854_s27 }
  0xab   : > { %s8561_s29 = scalar_lea.vmem [#allocation10], %s5853_s12  ;;  %p5855_p8 = scmp.ne.s32.totalorder %s8224_s21, 0 }
  0xac   : > { %v8250_v0 = vmov (!%p5855_p8), 0.0  }
  0xad   : > { %304 = sbr.rel (%p5855_p8) target bundleno = 180 (0xb4), region = 56  ;;  %305 = vst [vmem:[%s8561_s29] sm:$0xf] (!%p5855_p8), %v8250_v0 }
  0xb4 PF: > { %v8565_v1 = vld [vmem:[#allocation5] sm:$0xf]  ;;  %v8567_v2 = vld [vmem:[#allocation5 + $0x4] sm:$0xf]  ;;  %v8569_v3 = vld [vmem:[#allocation5 + $0x8] sm:$0xf] }
  0xb5   : > { %v8571_v4 = vld [vmem:[#allocation5 + $0xc] sm:$0xf]  ;;  %v8573_v5 = vld [vmem:[#allocation5 + $0x10] sm:$0xf]  ;;  %v8575_v6 = vld [vmem:[#allocation5 + $0x14] sm:$0xf] }
  0xb6   : > { %v8577_v7 = vld [vmem:[#allocation5 + $0x18] sm:$0xf]  ;;  %v8579_v8 = vld [vmem:[#allocation5 + $0x1c] sm:$0xf]  ;;  %v8581_v9 = vld [vmem:[#allocation5 + $0x20] sm:$0xf] }
  0xb7   : > { %v8583_v10 = vld [vmem:[#allocation5 + $0x24] sm:$0xf]  ;;  %v8585_v11 = vld [vmem:[#allocation5 + $0x28] sm:$0xf]  ;;  %v8587_v12 = vld [vmem:[#allocation5 + $0x2c] sm:$0xf] }
  0xb8   : > { %v8589_v13 = vld [vmem:[#allocation5 + $0x30] sm:$0xf]  ;;  %v8591_v14 = vld [vmem:[#allocation5 + $0x34] sm:$0xf]  ;;  %v8593_v15 = vld [vmem:[#allocation5 + $0x38] sm:$0xf] }
  0xb9   : > { %v8595_v16 = vld [vmem:[#allocation5 + $0x3c] sm:$0xf]  ;;  %v8597_v17 = vld [vmem:[#allocation7] sm:$0x1]  ;;  %v8599_v18 = vld [vmem:[#allocation8] sm:$0x1] }
  0xba   : > { %p5856_p5 = scmp.ge.s32.totalorder %s8559_s23, 2 }
  0xbb   : > { %v8604_v19 = vcombine.low (!%p5856_p5), %v8565_v1, %v8567_v2  ;;  %v8608_v20 = vcombine.low (!%p5856_p5), %v8569_v3, %v8571_v4  ;;  %v328_v21 = vld [vmem:[%s8540_s24] sm:$0xff] (!%p5856_p5)  ;;  %v970_v23 = vld [vmem:[%s8540_s24 + $0x8] sm:$0xff] (!%p5856_p5)  ;;  %v8622_v27 = vcombine.low (!%p5856_p5), %v8573_v5, %v8575_v6  ;;  %v8630_v28 = vcombine.low (!%p5856_p5), %v8577_v7, %v8579_v8 }
  0xbc   : > { %327 = sbr.rel (%p5856_p5) target bundleno = 734 (0x2de), region = 60  ;;  %v329_v22 = vld [vmem:[%s8540_s24 + $0x20] sm:$0xff] (!%p5856_p5)  ;;  %v971_v24 = vld [vmem:[%s8540_s24 + $0x28] sm:$0xff] (!%p5856_p5)  ;;  %v8638_v29 = vcombine.low (!%p5856_p5), %v8581_v9, %v8583_v10  ;;  %v8646_v30 = vcombine.low (!%p5856_p5), %v8585_v11, %v8587_v12  ;;  %v8654_v31 = vcombine.low (!%p5856_p5), %v8589_v13, %v8591_v14  ;;  %v8662_v32 = vcombine.low (!%p5856_p5), %v8593_v15, %v8595_v16 }
  0xbd   : > { %6202 = vmatprep.subr.bf16.mxu0 (!%p5856_p5), %v8604_v19  ;;  %6282 = vmatprep.subr.bf16.mxu1 (!%p5856_p5), %v8604_v19  ;;  %v392_v25 = vpack.c.bf16 (!%p5856_p5), %v329_v22, %v328_v21  ;;  %v1034_v26 = vpack.c.bf16 (!%p5856_p5), %v971_v24, %v970_v23  ;;  %v330_v33 = vld [vmem:[%s8540_s24 + $0x40] sm:$0xff] (!%p5856_p5)  ;;  %v972_v35 = vld [vmem:[%s8540_s24 + $0x48] sm:$0xff] (!%p5856_p5)  ;;  %vm2717_vm0 = vcmask (!%p5856_p5), 1040384   ;;  %vm2719_vm1 = vcmask (!%p5856_p5), 1041408  }
  0xbe   : > { %6203 = vmatpush3.bf16.msra.mxu0 (!%p5856_p5), %v8604_v19  ;;  %6283 = vmatpush3.bf16.msra.mxu1 (!%p5856_p5), %v8604_v19  ;;  %v331_v34 = vld [vmem:[%s8540_s24 + $0x60] sm:$0xff] (!%p5856_p5)  ;;  %v973_v36 = vld [vmem:[%s8540_s24 + $0x68] sm:$0xff] (!%p5856_p5)  ;;  %vm2721_vm2 = vcmask (!%p5856_p5), 1042432  }
  0xbf   : > { %6204 = vmatprep.subr.bf16.mxu0 (!%p5856_p5), %v8608_v20  ;;  %6284 = vmatprep.subr.bf16.mxu1 (!%p5856_p5), %v8608_v20  ;;  %v332_v37 = vld [vmem:[%s8540_s24 + $0x80] sm:$0xff] (!%p5856_p5)  ;;  %v974_v39 = vld [vmem:[%s8540_s24 + $0x88] sm:$0xff] (!%p5856_p5)  ;;  %v393_v41 = vpack.c.bf16 (!%p5856_p5), %v331_v34, %v330_v33  ;;  %v1035_v42 = vpack.c.bf16 (!%p5856_p5), %v973_v36, %v972_v35 }
  0xc0   : > { %6218 = vmatprep.mubr.bf16.mxu0 (!%p5856_p5), %v392_v25  ;;  %6298 = vmatprep.mubr.bf16.mxu1 (!%p5856_p5), %v1034_v26  ;;  %v333_v38 = vld [vmem:[%s8540_s24 + $0xa0] sm:$0xff] (!%p5856_p5)  ;;  %v975_v40 = vld [vmem:[%s8540_s24 + $0xa8] sm:$0xff] (!%p5856_p5) }
  0xc1   : > { %v394_v43 = vpack.c.bf16 (!%p5856_p5), %v333_v38, %v332_v37  ;;  %v1036_v44 = vpack.c.bf16 (!%p5856_p5), %v975_v40, %v974_v39  ;;  %v334_v45 = vld [vmem:[%s8540_s24 + $0xc0] sm:$0xff] (!%p5856_p5)  ;;  %v976_v47 = vld [vmem:[%s8540_s24 + $0xc8] sm:$0xff] (!%p5856_p5) }
  0xc2   : > { %6205 = vmatpush3.bf16.msra.mxu0 (!%p5856_p5), %v8608_v20  ;;  %6285 = vmatpush3.bf16.msra.mxu1 (!%p5856_p5), %v8608_v20  ;;  %v335_v46 = vld [vmem:[%s8540_s24 + $0xe0] sm:$0xff] (!%p5856_p5)  ;;  %v977_v48 = vld [vmem:[%s8540_s24 + $0xe8] sm:$0xff] (!%p5856_p5) }
  0xc3   : > { %6206 = vmatprep.subr.bf16.mxu0 %v8622_v27  ;;  %6286 = vmatprep.subr.bf16.mxu1 %v8622_v27  ;;  %v336_v49 = vld [vmem:[%s8540_s24 + $0x100] sm:$0xff]  ;;  %v978_v51 = vld [vmem:[%s8540_s24 + $0x108] sm:$0xff]  ;;  %v395_v53 = vpack.c.bf16 %v335_v46, %v334_v45  ;;  %v1037_v54 = vpack.c.bf16 %v977_v48, %v976_v47 }
  0xc4   : > { %v337_v50 = vld [vmem:[%s8540_s24 + $0x120] sm:$0xff]  ;;  %v979_v52 = vld [vmem:[%s8540_s24 + $0x128] sm:$0xff] }
  0xc5   : > { %v396_v55 = vpack.c.bf16 %v337_v50, %v336_v49  ;;  %v1038_v56 = vpack.c.bf16 %v979_v52, %v978_v51  ;;  %v338_v57 = vld [vmem:[%s8540_s24 + $0x140] sm:$0xff]  ;;  %v980_v59 = vld [vmem:[%s8540_s24 + $0x148] sm:$0xff] }
  0xc6   : > { %6207 = vmatpush3.bf16.msra.mxu0 %v8622_v27  ;;  %6287 = vmatpush3.bf16.msra.mxu1 %v8622_v27  ;;  %v339_v58 = vld [vmem:[%s8540_s24 + $0x160] sm:$0xff]  ;;  %v981_v60 = vld [vmem:[%s8540_s24 + $0x168] sm:$0xff] }
  0xc7   : > { %6208 = vmatprep.subr.bf16.mxu0 %v8630_v28  ;;  %6288 = vmatprep.subr.bf16.mxu1 %v8630_v28  ;;  %v340_v61 = vld [vmem:[%s8540_s24 + $0x180] sm:$0xff]  ;;  %v982_v63 = vld [vmem:[%s8540_s24 + $0x188] sm:$0xff] }
  0xc8   : > { %v341_v62 = vld [vmem:[%s8540_s24 + $0x1a0] sm:$0xff]  ;;  %v983_v0 = vld [vmem:[%s8540_s24 + $0x1a8] sm:$0xff] }
  0xc9   : > { %v398_v21 = vpack.c.bf16 %v341_v62, %v340_v61  ;;  %v1040_v22 = vpack.c.bf16 %v983_v0, %v982_v63  ;;  %v342_v23 = vld [vmem:[%s8540_s24 + $0x1c0] sm:$0xff]  ;;  %v984_v25 = vld [vmem:[%s8540_s24 + $0x1c8] sm:$0xff] }
  0xca   : > { %6209 = vmatpush3.bf16.msra.mxu0 %v8630_v28  ;;  %6289 = vmatpush3.bf16.msra.mxu1 %v8630_v28  ;;  %v343_v24 = vld [vmem:[%s8540_s24 + $0x1e0] sm:$0xff]  ;;  %v985_v26 = vld [vmem:[%s8540_s24 + $0x1e8] sm:$0xff] }
  0xcb   : > { %6210 = vmatprep.subr.bf16.mxu0 %v8638_v29  ;;  %6290 = vmatprep.subr.bf16.mxu1 %v8638_v29  ;;  %v345_v33 = vld [vmem:[%s8540_s24 + $0x220] sm:$0xff]  ;;  %v986_v34 = vld [vmem:[%s8540_s24 + $0x208] sm:$0xff]  ;;  %v1041_v36 = vpack.c.bf16 %v985_v26, %v984_v25 }
  0xcc   : > { %v987_v35 = vld [vmem:[%s8540_s24 + $0x228] sm:$0xff]  ;;  %v347_v39 = vld [vmem:[%s8540_s24 + $0x260] sm:$0xff] }
  0xcd   : > { %v1042_v38 = vpack.c.bf16 %v987_v35, %v986_v34  ;;  %v988_v40 = vld [vmem:[%s8540_s24 + $0x248] sm:$0xff]  ;;  %v351_v49 = vld [vmem:[%s8540_s24 + $0x2e0] sm:$0xff] }
  0xce   : > { %6211 = vmatpush3.bf16.msra.mxu0 %v8638_v29  ;;  %6291 = vmatpush3.bf16.msra.mxu1 %v8638_v29  ;;  %v991_v45 = vld [vmem:[%s8540_s24 + $0x2a8] sm:$0xff]  ;;  %v352_v52 = vld [vmem:[%s8540_s24 + $0x300] sm:$0xff] }
  0xcf   : > { %6212 = vmatprep.subr.bf16.mxu0 %v8646_v30  ;;  %6292 = vmatprep.subr.bf16.mxu1 %v8646_v30  ;;  %v992_v50 = vld [vmem:[%s8540_s24 + $0x2c8] sm:$0xff]  ;;  %v356_v63 = vld [vmem:[%s8540_s24 + $0x380] sm:$0xff] }
  0xd0   : > { %v993_v51 = vld [vmem:[%s8540_s24 + $0x2e8] sm:$0xff]  ;;  %v357_v0 = vld [vmem:[%s8540_s24 + $0x3a0] sm:$0xff] }
  0xd1   : > { %v996_v61 = vld [vmem:[%s8540_s24 + $0x348] sm:$0xff]  ;;  %v358_v25 = vld [vmem:[%s8540_s24 + $0x3c0] sm:$0xff] }
  0xd2   : > { %6213 = vmatpush3.bf16.msra.mxu0 %v8646_v30  ;;  %6293 = vmatpush3.bf16.msra.mxu1 %v8646_v30  ;;  %v997_v62 = vld [vmem:[%s8540_s24 + $0x368] sm:$0xff]  ;;  %v359_v26 = vld [vmem:[%s8540_s24 + $0x3e0] sm:$0xff] }
  0xd3   : > { %6214 = vmatprep.subr.bf16.mxu0 %v8654_v31  ;;  %6294 = vmatprep.subr.bf16.mxu1 %v8654_v31  ;;  %v360_v34 = vld [vmem:[%s8540_s24 + $0x400] sm:$0xff] }
  0xd4   : > { %v361_v35 = vld [vmem:[%s8540_s24 + $0x420] sm:$0xff] }
  0xd6   : > { %6215 = vmatpush3.bf16.msra.mxu0 %v8654_v31  ;;  %6295 = vmatpush3.bf16.msra.mxu1 %v8654_v31 }
  0xd7   : > { %6216 = vmatprep.subr.bf16.mxu0 %v8662_v32  ;;  %6296 = vmatprep.subr.bf16.mxu1 %v8662_v32 }
  0xda   : > { %6217 = vmatpush3.bf16.msra.mxu0 %v8662_v32  ;;  %6297 = vmatpush3.bf16.msra.mxu1 %v8662_v32 }
  0xdb   : > { %6362 = vmatprep.subr.bf16.mxu0 %v8604_v19  ;;  %6442 = vmatprep.subr.bf16.mxu1 %v8604_v19 }
  0xdd   : > { %6219 = vmatmul.mubr.bf16.vlgmr.msra.gmra.mrb[0].mxu0 %v393_v41  ;;  %6299 = vmatmul.mubr.bf16.vlgmr.msra.gmra.mrb[0].mxu1 %v1035_v42  ;;  %v989_v41 = vld [vmem:[%s8540_s24 + $0x268] sm:$0xff]  ;;  %v348_v42 = vld [vmem:[%s8540_s24 + $0x280] sm:$0xff] }
  0xde   : > { %6363 = vmatpush3.bf16.msra.mxu0 %v8604_v19  ;;  %6443 = vmatpush3.bf16.msra.mxu1 %v8604_v19  ;;  %v397_v19 = vpack.c.bf16 %v339_v58, %v338_v57  ;;  %v1043_v46 = vpack.c.bf16 %v989_v41, %v988_v40  ;;  %v362_v40 = vld [vmem:[%s8540_s24 + $0x440] sm:$0xff] }
  0xdf   : > { %6222 = vmatprep.mubr.bf16.mxu0 %v394_v43  ;;  %6302 = vmatprep.mubr.bf16.mxu1 %v1036_v44  ;;  %v349_v43 = vld [vmem:[%s8540_s24 + $0x2a0] sm:$0xff]  ;;  %v990_v44 = vld [vmem:[%s8540_s24 + $0x288] sm:$0xff] }
  0xe0   : > { %6364 = vmatprep.subr.bf16.mxu0 %v8608_v20  ;;  %6444 = vmatprep.subr.bf16.mxu1 %v8608_v20  ;;  %v402_v47 = vpack.c.bf16 %v349_v43, %v348_v42  ;;  %v1044_v48 = vpack.c.bf16 %v991_v45, %v990_v44  ;;  %v363_v41 = vld [vmem:[%s8540_s24 + $0x460] sm:$0xff]  ;;  %v1004_v42 = vld [vmem:[%s8540_s24 + $0x448] sm:$0xff] }
  0xe1   : > { %v1005_v43 = vld [vmem:[%s8540_s24 + $0x468] sm:$0xff]  ;;  %v364_v44 = vld [vmem:[%s8540_s24 + $0x480] sm:$0xff] }
  0xe2   : > { %6365 = vmatpush3.bf16.msra.mxu0 %v8608_v20  ;;  %6445 = vmatpush3.bf16.msra.mxu1 %v8608_v20  ;;  %v1039_v20 = vpack.c.bf16 %v981_v60, %v980_v59  ;;  %v354_v59 = vld [vmem:[%s8540_s24 + $0x340] sm:$0xff] }
  0xe3   : > { %6366 = vmatprep.subr.bf16.mxu0 %v8622_v27  ;;  %6446 = vmatprep.subr.bf16.mxu1 %v8622_v27  ;;  %v355_v60 = vld [vmem:[%s8540_s24 + $0x360] sm:$0xff] }
  0xe4   : > { %v365_v45 = vld [vmem:[%s8540_s24 + $0x4a0] sm:$0xff] }
  0xe5   : > { %6223 = vmatmul.mubr.bf16.gmra.mrb[4].mxu0 %v395_v53  ;;  %6303 = vmatmul.mubr.bf16.gmra.mrb[4].mxu1 %v1037_v54  ;;  %v353_v53 = vld [vmem:[%s8540_s24 + $0x320] sm:$0xff]  ;;  %v994_v54 = vld [vmem:[%s8540_s24 + $0x308] sm:$0xff] }
  0xe6   : > { %6226 = vmatprep.mubr.bf16.mxu0 %v396_v55  ;;  %6306 = vmatprep.mubr.bf16.mxu1 %v1038_v56  ;;  %v995_v55 = vld [vmem:[%s8540_s24 + $0x328] sm:$0xff]  ;;  %v1045_v56 = vpack.c.bf16 %v993_v51, %v992_v50  ;;  %v404_v57 = vpack.c.bf16 %v353_v53, %v352_v52  ;;  %v366_v50 = vld [vmem:[%s8540_s24 + $0x4c0] sm:$0xff] }
  0xe7   : > { %6367 = vmatpush3.bf16.msra.mxu0 %v8622_v27  ;;  %6447 = vmatpush3.bf16.msra.mxu1 %v8622_v27  ;;  %v344_v27 = vld [vmem:[%s8540_s24 + $0x200] sm:$0xff]  ;;  %v1046_v58 = vpack.c.bf16 %v995_v55, %v994_v54  ;;  %v1008_v52 = vld [vmem:[%s8540_s24 + $0x4c8] sm:$0xff] }
  0xe8   : > { %6368 = vmatprep.subr.bf16.mxu0 %v8630_v28  ;;  %6448 = vmatprep.subr.bf16.mxu1 %v8630_v28  ;;  %v400_v37 = vpack.c.bf16 %v345_v33, %v344_v27  ;;  %v1000_v27 = vld [vmem:[%s8540_s24 + $0x3c8] sm:$0xff]  ;;  %v367_v51 = vld [vmem:[%s8540_s24 + $0x4e0] sm:$0xff] }
  0xe9   : > { %v1001_v33 = vld [vmem:[%s8540_s24 + $0x3e8] sm:$0xff]  ;;  %v368_v54 = vld [vmem:[%s8540_s24 + $0x500] sm:$0xff] }
  0xea   : > { %v1009_v53 = vld [vmem:[%s8540_s24 + $0x4e8] sm:$0xff]  ;;  %v369_v55 = vld [vmem:[%s8540_s24 + $0x520] sm:$0xff] }
  0xeb   : > { %6369 = vmatpush3.bf16.msra.mxu0 %v8630_v28  ;;  %6449 = vmatpush3.bf16.msra.mxu1 %v8630_v28  ;;  %v399_v28 = vpack.c.bf16 %v343_v24, %v342_v23  ;;  %v406_v23 = vpack.c.bf16 %v357_v0, %v356_v63  ;;  %v1012_v63 = vld [vmem:[%s8540_s24 + $0x548] sm:$0xff] }
  0xec   : > { %6370 = vmatprep.subr.bf16.mxu0 %v8638_v29  ;;  %6450 = vmatprep.subr.bf16.mxu1 %v8638_v29  ;;  %v1013_v0 = vld [vmem:[%s8540_s24 + $0x568] sm:$0xff] }
  0xed   : > { %6227 = vmatmul.mubr.bf16.gmra.mrb[8].mxu0 %v397_v19  ;;  %6307 = vmatmul.mubr.bf16.gmra.mrb[8].mxu1 %v1039_v20  ;;  %v998_v19 = vld [vmem:[%s8540_s24 + $0x388] sm:$0xff] }
  0xee   : > { %6230 = vmatprep.mubr.bf16.mxu0 %v398_v21  ;;  %6310 = vmatprep.mubr.bf16.mxu1 %v1040_v22  ;;  %v999_v20 = vld [vmem:[%s8540_s24 + $0x3a8] sm:$0xff]  ;;  %v405_v21 = vpack.c.bf16 %v355_v60, %v354_v59  ;;  %v1047_v22 = vpack.c.bf16 %v997_v62, %v996_v61  ;;  %v412_v59 = vpack.c.bf16 %v369_v55, %v368_v54  ;;  %v370_v61 = vld [vmem:[%s8540_s24 + $0x540] sm:$0xff] }
  0xef   : > { %6371 = vmatpush3.bf16.msra.mxu0 %v8638_v29  ;;  %6451 = vmatpush3.bf16.msra.mxu1 %v8638_v29  ;;  %v346_v29 = vld [vmem:[%s8540_s24 + $0x240] sm:$0xff]  ;;  %v1048_v24 = vpack.c.bf16 %v999_v20, %v998_v19  ;;  %v1024_v54 = vld [vmem:[%s8540_s24 + $0x6c8] sm:$0xff] }
  0xf0   : > { %6372 = vmatprep.subr.bf16.mxu0 %v8646_v30  ;;  %6452 = vmatprep.subr.bf16.mxu1 %v8646_v30  ;;  %v371_v62 = vld [vmem:[%s8540_s24 + $0x560] sm:$0xff]  ;;  %v1025_v55 = vld [vmem:[%s8540_s24 + $0x6e8] sm:$0xff] }
  0xf1   : > { %v372_v19 = vld [vmem:[%s8540_s24 + $0x580] sm:$0xff] }
  0xf2   : > { %v373_v20 = vld [vmem:[%s8540_s24 + $0x5a0] sm:$0xff] }
  0xf3   : > { %6373 = vmatpush3.bf16.msra.mxu0 %v8646_v30  ;;  %6453 = vmatpush3.bf16.msra.mxu1 %v8646_v30  ;;  %v401_v30 = vpack.c.bf16 %v347_v39, %v346_v29  ;;  %v408_v29 = vpack.c.bf16 %v361_v35, %v360_v34  ;;  %v1016_v34 = vld [vmem:[%s8540_s24 + $0x5c8] sm:$0xff] }
  0xf4   : > { %6374 = vmatprep.subr.bf16.mxu0 %v8654_v31  ;;  %6454 = vmatprep.subr.bf16.mxu1 %v8654_v31  ;;  %v1017_v35 = vld [vmem:[%s8540_s24 + $0x5e8] sm:$0xff] }
  0xf5   : > { %6231 = vmatmul.mubr.bf16.gmra.mrb[12].mxu0 %v399_v28  ;;  %6311 = vmatmul.mubr.bf16.gmra.mrb[12].mxu1 %v1041_v36  ;;  %v1002_v28 = vld [vmem:[%s8540_s24 + $0x408] sm:$0xff] }
  0xf6   : > { %6234 = vmatprep.mubr.bf16.mxu0 %v400_v37  ;;  %6314 = vmatprep.mubr.bf16.mxu1 %v1042_v38  ;;  %v1003_v36 = vld [vmem:[%s8540_s24 + $0x428] sm:$0xff]  ;;  %v407_v37 = vpack.c.bf16 %v359_v26, %v358_v25  ;;  %v1049_v38 = vpack.c.bf16 %v1001_v33, %v1000_v27  ;;  %v414_v25 = vpack.c.bf16 %v373_v20, %v372_v19  ;;  %v374_v27 = vld [vmem:[%s8540_s24 + $0x5c0] sm:$0xff] }
  0xf7   : > { %6375 = vmatpush3.bf16.msra.mxu0 %v8654_v31  ;;  %6455 = vmatpush3.bf16.msra.mxu1 %v8654_v31  ;;  %v350_v31 = vld [vmem:[%s8540_s24 + $0x2c0] sm:$0xff]  ;;  %v1050_v39 = vpack.c.bf16 %v1003_v36, %v1002_v28  ;;  %v1028_v19 = vld [vmem:[%s8540_s24 + $0x748] sm:$0xff] }
  0xf8   : > { %6376 = vmatprep.subr.bf16.mxu0 %v8662_v32  ;;  %6456 = vmatprep.subr.bf16.mxu1 %v8662_v32  ;;  %v375_v33 = vld [vmem:[%s8540_s24 + $0x5e0] sm:$0xff]  ;;  %v1029_v20 = vld [vmem:[%s8540_s24 + $0x768] sm:$0xff] }
  0xf9   : > { %v376_v28 = vld [vmem:[%s8540_s24 + $0x600] sm:$0xff] }
  0xfa   : > { %v377_v36 = vld [vmem:[%s8540_s24 + $0x620] sm:$0xff] }
  0xfb   : > { %6377 = vmatpush3.bf16.msra.mxu0 %v8662_v32  ;;  %6457 = vmatpush3.bf16.msra.mxu1 %v8662_v32  ;;  %v403_v32 = vpack.c.bf16 %v351_v49, %v350_v31  ;;  %v410_v31 = vpack.c.bf16 %v365_v45, %v364_v44  ;;  %v1020_v44 = vld [vmem:[%s8540_s24 + $0x648] sm:$0xff] }
  0xfc   : > { %v1021_v45 = vld [vmem:[%s8540_s24 + $0x668] sm:$0xff] }
  0xfd   : > { %6235 = vmatmul.mubr.bf16.gmra.mrb[16].mxu0 %v401_v30  ;;  %6315 = vmatmul.mubr.bf16.gmra.mrb[16].mxu1 %v1043_v46  ;;  %v1006_v30 = vld [vmem:[%s8540_s24 + $0x488] sm:$0xff] }
  0xfe   : > { %6238 = vmatprep.mubr.bf16.mxu0 %v402_v47  ;;  %6318 = vmatprep.mubr.bf16.mxu1 %v1044_v48  ;;  %v1007_v46 = vld [vmem:[%s8540_s24 + $0x4a8] sm:$0xff]  ;;  %v409_v47 = vpack.c.bf16 %v363_v41, %v362_v40  ;;  %v1051_v48 = vpack.c.bf16 %v1005_v43, %v1004_v42  ;;  %v416_v40 = vpack.c.bf16 %v377_v36, %v376_v28  ;;  %v378_v42 = vld [vmem:[%s8540_s24 + $0x640] sm:$0xff] }
  0xff   : > { %v1052_v49 = vpack.c.bf16 %v1007_v46, %v1006_v30  ;;  %v379_v43 = vld [vmem:[%s8540_s24 + $0x660] sm:$0xff]  ;;  %v1032_v28 = vld [vmem:[%s8540_s24 + $0x7c8] sm:$0xff] }
 0x100   : > { %v380_v30 = vld [vmem:[%s8540_s24 + $0x680] sm:$0xff]  ;;  %v1033_v36 = vld [vmem:[%s8540_s24 + $0x7e8] sm:$0xff] }
 0x101   : > { %v381_v46 = vld [vmem:[%s8540_s24 + $0x6a0] sm:$0xff] }
 0x105   : > { %6239 = vmatmul.mubr.bf16.gmra.mrb[20].mxu0 %v403_v32  ;;  %6319 = vmatmul.mubr.bf16.gmra.mrb[20].mxu1 %v1045_v56  ;;  %v1010_v32 = vld [vmem:[%s8540_s24 + $0x508] sm:$0xff] }
 0x106   : > { %6242 = vmatprep.mubr.bf16.mxu0 %v404_v57  ;;  %6322 = vmatprep.mubr.bf16.mxu1 %v1046_v58  ;;  %v1011_v56 = vld [vmem:[%s8540_s24 + $0x528] sm:$0xff]  ;;  %v411_v57 = vpack.c.bf16 %v367_v51, %v366_v50  ;;  %v1053_v58 = vpack.c.bf16 %v1009_v53, %v1008_v52  ;;  %v418_v50 = vpack.c.bf16 %v381_v46, %v380_v30  ;;  %v382_v52 = vld [vmem:[%s8540_s24 + $0x6c0] sm:$0xff]  ;;  %v2136_v30 = vld [vmem:[%s8540_s24 + $0x58] sm:$0xff] }
 0x107   : > { %v1054_v60 = vpack.c.bf16 %v1011_v56, %v1010_v32  ;;  %v383_v53 = vld [vmem:[%s8540_s24 + $0x6e0] sm:$0xff]  ;;  %v2137_v46 = vld [vmem:[%s8540_s24 + $0x78] sm:$0xff] }
 0x108   : > { %v384_v32 = vld [vmem:[%s8540_s24 + $0x700] sm:$0xff] }
 0x109   : > { %v385_v56 = vld [vmem:[%s8540_s24 + $0x720] sm:$0xff] }
 0x10d   : > { %6243 = vmatmul.mubr.bf16.gmra.mrb[24].mxu0 %v405_v21  ;;  %6323 = vmatmul.mubr.bf16.gmra.mrb[24].mxu1 %v1047_v22  ;;  %v1014_v21 = vld [vmem:[%s8540_s24 + $0x588] sm:$0xff] }
 0x10e   : > { %6246 = vmatprep.mubr.bf16.mxu0 %v406_v23  ;;  %6326 = vmatprep.mubr.bf16.mxu1 %v1048_v24  ;;  %v1015_v22 = vld [vmem:[%s8540_s24 + $0x5a8] sm:$0xff]  ;;  %v413_v23 = vpack.c.bf16 %v371_v62, %v370_v61  ;;  %v1055_v24 = vpack.c.bf16 %v1013_v0, %v1012_v63  ;;  %v420_v61 = vpack.c.bf16 %v385_v56, %v384_v32  ;;  %v386_v63 = vld [vmem:[%s8540_s24 + $0x740] sm:$0xff]  ;;  %v2140_v32 = vld [vmem:[%s8540_s24 + $0xd8] sm:$0xff] }
 0x10f   : > { %v1056_v26 = vpack.c.bf16 %v1015_v22, %v1014_v21  ;;  %v387_v0 = vld [vmem:[%s8540_s24 + $0x760] sm:$0xff]  ;;  %v2141_v56 = vld [vmem:[%s8540_s24 + $0xf8] sm:$0xff] }
 0x110   : > { %v388_v21 = vld [vmem:[%s8540_s24 + $0x780] sm:$0xff] }
 0x111   : > { %v389_v22 = vld [vmem:[%s8540_s24 + $0x7a0] sm:$0xff] }
 0x115   : > { %6247 = vmatmul.mubr.bf16.gmra.mrb[28].mxu0 %v407_v37  ;;  %6327 = vmatmul.mubr.bf16.gmra.mrb[28].mxu1 %v1049_v38  ;;  %v1018_v37 = vld [vmem:[%s8540_s24 + $0x608] sm:$0xff] }
 0x116   : > { %6250 = vmatprep.mubr.bf16.mxu0 %v408_v29  ;;  %6330 = vmatprep.mubr.bf16.mxu1 %v1050_v39  ;;  %v1019_v38 = vld [vmem:[%s8540_s24 + $0x628] sm:$0xff]  ;;  %v415_v29 = vpack.c.bf16 %v375_v33, %v374_v27  ;;  %v1057_v39 = vpack.c.bf16 %v1017_v35, %v1016_v34  ;;  %v422_v27 = vpack.c.bf16 %v389_v22, %v388_v21  ;;  %v390_v34 = vld [vmem:[%s8540_s24 + $0x7c0] sm:$0xff]  ;;  %v2144_v21 = vld [vmem:[%s8540_s24 + $0x158] sm:$0xff] }
 0x117   : > { %v1058_v41 = vpack.c.bf16 %v1019_v38, %v1018_v37  ;;  %v391_v35 = vld [vmem:[%s8540_s24 + $0x7e0] sm:$0xff]  ;;  %v1552_v37 = vld [vmem:[%s8540_s24 + $0x10] sm:$0xff]  ;;  %v2145_v22 = vld [vmem:[%s8540_s24 + $0x178] sm:$0xff] }
 0x118   : > { %v1553_v38 = vld [vmem:[%s8540_s24 + $0x30] sm:$0xff] }
 0x11d   : > { %6251 = vmatmul.mubr.bf16.gmra.mrb[32].mxu0 %v409_v47  ;;  %6331 = vmatmul.mubr.bf16.gmra.mrb[32].mxu1 %v1051_v48  ;;  %v1022_v47 = vld [vmem:[%s8540_s24 + $0x688] sm:$0xff] }
 0x11e   : > { %6254 = vmatprep.mubr.bf16.mxu0 %v410_v31  ;;  %6334 = vmatprep.mubr.bf16.mxu1 %v1052_v49  ;;  %v1023_v48 = vld [vmem:[%s8540_s24 + $0x6a8] sm:$0xff]  ;;  %v417_v31 = vpack.c.bf16 %v379_v43, %v378_v42  ;;  %v1059_v49 = vpack.c.bf16 %v1021_v45, %v1020_v44  ;;  %v1616_v42 = vpack.c.bf16 %v1553_v38, %v1552_v37  ;;  %v1554_v44 = vld [vmem:[%s8540_s24 + $0x50] sm:$0xff]  ;;  %v2148_v37 = vld [vmem:[%s8540_s24 + $0x1d8] sm:$0xff] }
 0x11f   : > { %v1060_v51 = vpack.c.bf16 %v1023_v48, %v1022_v47  ;;  %v1555_v45 = vld [vmem:[%s8540_s24 + $0x70] sm:$0xff]  ;;  %v2149_v38 = vld [vmem:[%s8540_s24 + $0x1f8] sm:$0xff] }
 0x120   : > { %v1556_v47 = vld [vmem:[%s8540_s24 + $0x90] sm:$0xff] }
 0x121   : > { %v1557_v48 = vld [vmem:[%s8540_s24 + $0xb0] sm:$0xff] }
 0x125   : > { %6255 = vmatmul.mubr.bf16.gmra.mrb[36].mxu0 %v411_v57  ;;  %6335 = vmatmul.mubr.bf16.gmra.mrb[36].mxu1 %v1053_v58  ;;  %v1026_v57 = vld [vmem:[%s8540_s24 + $0x708] sm:$0xff] }
 0x126   : > { %6258 = vmatprep.mubr.bf16.mxu0 %v412_v59  ;;  %6338 = vmatprep.mubr.bf16.mxu1 %v1054_v60  ;;  %v1027_v58 = vld [vmem:[%s8540_s24 + $0x728] sm:$0xff]  ;;  %v419_v59 = vpack.c.bf16 %v383_v53, %v382_v52  ;;  %v1061_v60 = vpack.c.bf16 %v1025_v55, %v1024_v54  ;;  %v1618_v52 = vpack.c.bf16 %v1557_v48, %v1556_v47  ;;  %v1558_v54 = vld [vmem:[%s8540_s24 + $0xd0] sm:$0xff]  ;;  %v2152_v47 = vld [vmem:[%s8540_s24 + $0x258] sm:$0xff] }
 0x127   : > { %v1062_v62 = vpack.c.bf16 %v1027_v58, %v1026_v57  ;;  %v1559_v55 = vld [vmem:[%s8540_s24 + $0xf0] sm:$0xff]  ;;  %v2153_v48 = vld [vmem:[%s8540_s24 + $0x278] sm:$0xff] }
 0x128   : > { %v1560_v57 = vld [vmem:[%s8540_s24 + $0x110] sm:$0xff] }
 0x129   : > { %v1561_v58 = vld [vmem:[%s8540_s24 + $0x130] sm:$0xff] }
 0x12d   : > { %6259 = vmatmul.mubr.bf16.gmra.mrb[40].mxu0 %v413_v23  ;;  %6339 = vmatmul.mubr.bf16.gmra.mrb[40].mxu1 %v1055_v24  ;;  %v1030_v23 = vld [vmem:[%s8540_s24 + $0x788] sm:$0xff] }
 0x12e   : > { %6262 = vmatprep.mubr.bf16.mxu0 %v414_v25  ;;  %6342 = vmatprep.mubr.bf16.mxu1 %v1056_v26  ;;  %v1031_v24 = vld [vmem:[%s8540_s24 + $0x7a8] sm:$0xff]  ;;  %v421_v25 = vpack.c.bf16 %v387_v0, %v386_v63  ;;  %v1063_v26 = vpack.c.bf16 %v1029_v20, %v1028_v19  ;;  %v1620_v63 = vpack.c.bf16 %v1561_v58, %v1560_v57  ;;  %v1562_v19 = vld [vmem:[%s8540_s24 + $0x150] sm:$0xff]  ;;  %v2156_v57 = vld [vmem:[%s8540_s24 + $0x2d8] sm:$0xff] }
 0x12f   : > { %v1064_v33 = vpack.c.bf16 %v1031_v24, %v1030_v23  ;;  %v1563_v20 = vld [vmem:[%s8540_s24 + $0x170] sm:$0xff]  ;;  %v2157_v58 = vld [vmem:[%s8540_s24 + $0x2f8] sm:$0xff] }
 0x130   : > { %v1564_v23 = vld [vmem:[%s8540_s24 + $0x190] sm:$0xff] }
 0x131   : > { %v1565_v24 = vld [vmem:[%s8540_s24 + $0x1b0] sm:$0xff] }
 0x135   : > { %6263 = vmatmul.mubr.bf16.gmra.mrb[44].mxu0 %v415_v29  ;;  %6343 = vmatmul.mubr.bf16.gmra.mrb[44].mxu1 %v1057_v39  ;;  %v2134_v29 = vld [vmem:[%s8540_s24 + $0x18] sm:$0xff] }
 0x136   : > { %6266 = vmatprep.mubr.bf16.mxu0 %v416_v40  ;;  %6346 = vmatprep.mubr.bf16.mxu1 %v1058_v41  ;;  %v2135_v39 = vld [vmem:[%s8540_s24 + $0x38] sm:$0xff]  ;;  %v423_v40 = vpack.c.bf16 %v391_v35, %v390_v34  ;;  %v1065_v41 = vpack.c.bf16 %v1033_v36, %v1032_v28  ;;  %v1622_v34 = vpack.c.bf16 %v1565_v24, %v1564_v23  ;;  %v1566_v28 = vld [vmem:[%s8540_s24 + $0x1d0] sm:$0xff] }
 0x137   : > { %v2198_v43 = vpack.c.bf16 %v2135_v39, %v2134_v29  ;;  %v1567_v36 = vld [vmem:[%s8540_s24 + $0x1f0] sm:$0xff]  ;;  %v2160_v23 = vld [vmem:[%s8540_s24 + $0x358] sm:$0xff] }
 0x138   : > { %v1568_v29 = vld [vmem:[%s8540_s24 + $0x210] sm:$0xff]  ;;  %v2161_v24 = vld [vmem:[%s8540_s24 + $0x378] sm:$0xff] }
 0x139   : > { %v1569_v39 = vld [vmem:[%s8540_s24 + $0x230] sm:$0xff] }
 0x13d   : > { %6267 = vmatmul.mubr.bf16.gmra.mrb[48].mxu0 %v417_v31  ;;  %6347 = vmatmul.mubr.bf16.gmra.mrb[48].mxu1 %v1059_v49  ;;  %v2138_v31 = vld [vmem:[%s8540_s24 + $0x98] sm:$0xff] }
 0x13e   : > { %6270 = vmatprep.mubr.bf16.mxu0 %v418_v50  ;;  %6350 = vmatprep.mubr.bf16.mxu1 %v1060_v51  ;;  %v2139_v49 = vld [vmem:[%s8540_s24 + $0xb8] sm:$0xff]  ;;  %v1617_v50 = vpack.c.bf16 %v1555_v45, %v1554_v44  ;;  %v2199_v51 = vpack.c.bf16 %v2137_v46, %v2136_v30  ;;  %v1624_v44 = vpack.c.bf16 %v1569_v39, %v1568_v29  ;;  %v1570_v30 = vld [vmem:[%s8540_s24 + $0x250] sm:$0xff] }
 0x13f   : > { %v2200_v53 = vpack.c.bf16 %v2139_v49, %v2138_v31  ;;  %v1571_v46 = vld [vmem:[%s8540_s24 + $0x270] sm:$0xff]  ;;  %v2164_v29 = vld [vmem:[%s8540_s24 + $0x3d8] sm:$0xff] }
 0x140   : > { %v1572_v31 = vld [vmem:[%s8540_s24 + $0x290] sm:$0xff]  ;;  %v2165_v39 = vld [vmem:[%s8540_s24 + $0x3f8] sm:$0xff] }
 0x141   : > { %v1573_v49 = vld [vmem:[%s8540_s24 + $0x2b0] sm:$0xff] }
 0x145   : > { %6271 = vmatmul.mubr.bf16.gmra.mrb[52].mxu0 %v419_v59  ;;  %6351 = vmatmul.mubr.bf16.gmra.mrb[52].mxu1 %v1061_v60  ;;  %v2142_v59 = vld [vmem:[%s8540_s24 + $0x118] sm:$0xff] }
 0x146   : > { %6274 = vmatprep.mubr.bf16.mxu0 %v420_v61  ;;  %6354 = vmatprep.mubr.bf16.mxu1 %v1062_v62  ;;  %v2143_v60 = vld [vmem:[%s8540_s24 + $0x138] sm:$0xff]  ;;  %v1619_v61 = vpack.c.bf16 %v1559_v55, %v1558_v54  ;;  %v2201_v62 = vpack.c.bf16 %v2141_v56, %v2140_v32  ;;  %v1626_v54 = vpack.c.bf16 %v1573_v49, %v1572_v31  ;;  %v1574_v32 = vld [vmem:[%s8540_s24 + $0x2d0] sm:$0xff] }
 0x147   : > { %v2202_v0 = vpack.c.bf16 %v2143_v60, %v2142_v59  ;;  %v1575_v56 = vld [vmem:[%s8540_s24 + $0x2f0] sm:$0xff]  ;;  %v2168_v31 = vld [vmem:[%s8540_s24 + $0x458] sm:$0xff] }
 0x148   : > { %v1576_v59 = vld [vmem:[%s8540_s24 + $0x310] sm:$0xff]  ;;  %v2169_v49 = vld [vmem:[%s8540_s24 + $0x478] sm:$0xff] }
 0x149   : > { %v1577_v60 = vld [vmem:[%s8540_s24 + $0x330] sm:$0xff] }
 0x14d   : > { %6275 = vmatmul.mubr.bf16.gmra.mrb[56].mxu0 %v421_v25  ;;  %6355 = vmatmul.mubr.bf16.gmra.mrb[56].mxu1 %v1063_v26  ;;  %v2146_v25 = vld [vmem:[%s8540_s24 + $0x198] sm:$0xff] }
 0x14e   : > { %6278 = vmatprep.mubr.bf16.mxu0 %v422_v27  ;;  %6358 = vmatprep.mubr.bf16.mxu1 %v1064_v33  ;;  %v2147_v26 = vld [vmem:[%s8540_s24 + $0x1b8] sm:$0xff]  ;;  %v1621_v27 = vpack.c.bf16 %v1563_v20, %v1562_v19  ;;  %v2203_v33 = vpack.c.bf16 %v2145_v22, %v2144_v21  ;;  %v1628_v19 = vpack.c.bf16 %v1577_v60, %v1576_v59  ;;  %v1578_v21 = vld [vmem:[%s8540_s24 + $0x350] sm:$0xff] }
 0x14f   : > { %v2204_v35 = vpack.c.bf16 %v2147_v26, %v2146_v25  ;;  %v1579_v22 = vld [vmem:[%s8540_s24 + $0x370] sm:$0xff]  ;;  %v2172_v59 = vld [vmem:[%s8540_s24 + $0x4d8] sm:$0xff] }
 0x150   : > { %v1580_v25 = vld [vmem:[%s8540_s24 + $0x390] sm:$0xff]  ;;  %v2173_v60 = vld [vmem:[%s8540_s24 + $0x4f8] sm:$0xff] }
 0x151   : > { %v1581_v26 = vld [vmem:[%s8540_s24 + $0x3b0] sm:$0xff] }
 0x155   : > { %6279 = vmatmul.mubr.bf16.gmra.mrb[60].mxu0 %v423_v40  ;;  %6359 = vmatmul.mubr.bf16.gmra.mrb[60].mxu1 %v1065_v41  ;;  %v2150_v40 = vld [vmem:[%s8540_s24 + $0x218] sm:$0xff] }
 0x156   : > { %6378 = vmatprep.mubr.bf16.mxu0 %v1616_v42  ;;  %6458 = vmatprep.mubr.bf16.mxu1 %v2198_v43  ;;  %v2151_v41 = vld [vmem:[%s8540_s24 + $0x238] sm:$0xff]  ;;  %v1623_v42 = vpack.c.bf16 %v1567_v36, %v1566_v28  ;;  %v2205_v43 = vpack.c.bf16 %v2149_v38, %v2148_v37  ;;  %v1630_v28 = vpack.c.bf16 %v1581_v26, %v1580_v25  ;;  %v1582_v37 = vld [vmem:[%s8540_s24 + $0x3d0] sm:$0xff] }
 0x157   : > { %v2206_v45 = vpack.c.bf16 %v2151_v41, %v2150_v40  ;;  %v1583_v38 = vld [vmem:[%s8540_s24 + $0x3f0] sm:$0xff] }
 0x158   : > { %v1584_v40 = vld [vmem:[%s8540_s24 + $0x410] sm:$0xff] }
 0x159   : > { %v1585_v41 = vld [vmem:[%s8540_s24 + $0x430] sm:$0xff] }
 0x15a   : > { %v1595_v25 = vld [vmem:[%s8540_s24 + $0x570] sm:$0xff] }
 0x15d   : > { %6379 = vmatmul.mubr.bf16.vlgmr.msra.gmra.mrb[64].mxu0 %v1617_v50  ;;  %6459 = vmatmul.mubr.bf16.vlgmr.msra.gmra.mrb[64].mxu1 %v2199_v51  ;;  %v2154_v50 = vld [vmem:[%s8540_s24 + $0x298] sm:$0xff] }
 0x15e   : > { %6382 = vmatprep.mubr.bf16.mxu0 %v1618_v52  ;;  %6462 = vmatprep.mubr.bf16.mxu1 %v2200_v53  ;;  %v2155_v51 = vld [vmem:[%s8540_s24 + $0x2b8] sm:$0xff]  ;;  %v1625_v52 = vpack.c.bf16 %v1571_v46, %v1570_v30  ;;  %v2207_v53 = vpack.c.bf16 %v2153_v48, %v2152_v47  ;;  %v1632_v30 = vpack.c.bf16 %v1585_v41, %v1584_v40  ;;  %v1586_v47 = vld [vmem:[%s8540_s24 + $0x450] sm:$0xff] }
 0x15f   : > { %v2208_v55 = vpack.c.bf16 %v2155_v51, %v2154_v50  ;;  %v1587_v48 = vld [vmem:[%s8540_s24 + $0x470] sm:$0xff] }
 0x160   : > { %v1588_v50 = vld [vmem:[%s8540_s24 + $0x490] sm:$0xff] }
 0x161   : > { %v1589_v51 = vld [vmem:[%s8540_s24 + $0x4b0] sm:$0xff] }
 0x165   : > { %6383 = vmatmul.mubr.bf16.gmra.mrb[68].mxu0 %v1619_v61  ;;  %6463 = vmatmul.mubr.bf16.gmra.mrb[68].mxu1 %v2201_v62  ;;  %v2158_v61 = vld [vmem:[%s8540_s24 + $0x318] sm:$0xff] }
 0x166   : > { %6386 = vmatprep.mubr.bf16.mxu0 %v1620_v63  ;;  %6466 = vmatprep.mubr.bf16.mxu1 %v2202_v0  ;;  %v2159_v62 = vld [vmem:[%s8540_s24 + $0x338] sm:$0xff]  ;;  %v1627_v63 = vpack.c.bf16 %v1575_v56, %v1574_v32  ;;  %v2209_v0 = vpack.c.bf16 %v2157_v58, %v2156_v57  ;;  %v1634_v32 = vpack.c.bf16 %v1589_v51, %v1588_v50  ;;  %v1590_v57 = vld [vmem:[%s8540_s24 + $0x4d0] sm:$0xff] }
 0x167   : > { %v2210_v20 = vpack.c.bf16 %v2159_v62, %v2158_v61  ;;  %v1591_v58 = vld [vmem:[%s8540_s24 + $0x4f0] sm:$0xff] }
 0x168   : > { %v1592_v61 = vld [vmem:[%s8540_s24 + $0x510] sm:$0xff] }
 0x169   : > { %v1593_v62 = vld [vmem:[%s8540_s24 + $0x530] sm:$0xff] }
 0x16d   : > { %6387 = vmatmul.mubr.bf16.gmra.mrb[72].mxu0 %v1621_v27  ;;  %6467 = vmatmul.mubr.bf16.gmra.mrb[72].mxu1 %v2203_v33  ;;  %v2162_v27 = vld [vmem:[%s8540_s24 + $0x398] sm:$0xff] }
 0x16e   : > { %6390 = vmatprep.mubr.bf16.mxu0 %v1622_v34  ;;  %6470 = vmatprep.mubr.bf16.mxu1 %v2204_v35  ;;  %v2163_v33 = vld [vmem:[%s8540_s24 + $0x3b8] sm:$0xff]  ;;  %v1629_v34 = vpack.c.bf16 %v1579_v22, %v1578_v21  ;;  %v2211_v35 = vpack.c.bf16 %v2161_v24, %v2160_v23  ;;  %v425_v21 = vlaneseq  ;;  %v1636_v22 = vpack.c.bf16 %v1593_v62, %v1592_v61  ;;  %v1594_v24 = vld [vmem:[%s8540_s24 + $0x550] sm:$0xff] }
 0x16f   : > { %v2212_v36 = vpack.c.bf16 %v2163_v33, %v2162_v27  ;;  %v2176_v27 = vld [vmem:[%s8540_s24 + $0x558] sm:$0xff] }
 0x170   : > { %v8912_v26 = vshrl.u32 %v425_v21, 7  ;;  %v2177_v33 = vld [vmem:[%s8540_s24 + $0x578] sm:$0xff]  ;;  %v1603_v21 = vld [vmem:[%s8540_s24 + $0x670] sm:$0xff] }
 0x175   : > { %6391 = vmatmul.mubr.bf16.gmra.mrb[76].mxu0 %v1623_v42  ;;  %6471 = vmatmul.mubr.bf16.gmra.mrb[76].mxu1 %v2205_v43  ;;  %v2166_v42 = vld [vmem:[%s8540_s24 + $0x418] sm:$0xff] }
 0x176   : > { %6394 = vmatprep.mubr.bf16.mxu0 %v1624_v44  ;;  %6474 = vmatprep.mubr.bf16.mxu1 %v2206_v45  ;;  %v2167_v43 = vld [vmem:[%s8540_s24 + $0x438] sm:$0xff]  ;;  %v1631_v44 = vpack.c.bf16 %v1583_v38, %v1582_v37  ;;  %v2213_v45 = vpack.c.bf16 %v2165_v39, %v2164_v29  ;;  %v1637_v37 = vpack.c.bf16 %v1595_v25, %v1594_v24  ;;  %v427_v29 = vsub.s32 0, %v8912_v26  ;;  %v1604_v25 = vld [vmem:[%s8540_s24 + $0x690] sm:$0xff] }
 0x177   : > { %v2214_v46 = vpack.c.bf16 %v2167_v43, %v2166_v42  ;;  %v2219_v38 = vpack.c.bf16 %v2177_v33, %v2176_v27  ;;  %v1598_v42 = vld [vmem:[%s8540_s24 + $0x5d0] sm:$0xff]  ;;  %v2186_v33 = vld [vmem:[%s8540_s24 + $0x698] sm:$0xff] }
 0x178   : > { %v8924_v41 = vrot.slane %v8597_v17, %v427_v29  ;;  %v1599_v43 = vld [vmem:[%s8540_s24 + $0x5f0] sm:$0xff] }
 0x179   : > { %v1605_v27 = vld [vmem:[%s8540_s24 + $0x6b0] sm:$0xff] }
 0x17d   : > { %6395 = vmatmul.mubr.bf16.gmra.mrb[80].mxu0 %v1625_v52  ;;  %6475 = vmatmul.mubr.bf16.gmra.mrb[80].mxu1 %v2207_v53  ;;  %v2170_v52 = vld [vmem:[%s8540_s24 + $0x498] sm:$0xff] }
 0x17e   : > { %6398 = vmatprep.mubr.bf16.mxu0 %v1626_v54  ;;  %6478 = vmatprep.mubr.bf16.mxu1 %v2208_v55  ;;  %v2171_v53 = vld [vmem:[%s8540_s24 + $0x4b8] sm:$0xff]  ;;  %v1633_v54 = vpack.c.bf16 %v1587_v48, %v1586_v47  ;;  %v2215_v55 = vpack.c.bf16 %v2169_v49, %v2168_v31 }
 0x17f   : > { %v2216_v56 = vpack.c.bf16 %v2171_v53, %v2170_v52  ;;  %v2182_v47 = vld [vmem:[%s8540_s24 + $0x618] sm:$0xff] }
 0x180   : > { %v2183_v48 = vld [vmem:[%s8540_s24 + $0x638] sm:$0xff] }
 0x185   : > { %6399 = vmatmul.mubr.bf16.gmra.mrb[84].mxu0 %v1627_v63  ;;  %6479 = vmatmul.mubr.bf16.gmra.mrb[84].mxu1 %v2209_v0  ;;  %v2174_v63 = vld [vmem:[%s8540_s24 + $0x518] sm:$0xff] }
 0x186   : > { %6402 = vmatprep.mubr.bf16.mxu0 %v1628_v19  ;;  %6482 = vmatprep.mubr.bf16.mxu1 %v2210_v20  ;;  %v2175_v0 = vld [vmem:[%s8540_s24 + $0x538] sm:$0xff]  ;;  %v1635_v19 = vpack.c.bf16 %v1591_v58, %v1590_v57  ;;  %v2217_v20 = vpack.c.bf16 %v2173_v60, %v2172_v59  ;;  %v2222_v60 = vpack.c.bf16 %v2183_v48, %v2182_v47  ;;  %v8955_v48 = vld [vmem:[%s8540_s24 + $0x6d0] sm:$0xff] }
 0x187   : > { %v2218_v23 = vpack.c.bf16 %v2175_v0, %v2174_v63 }
 0x18d   : > { %6403 = vmatmul.mubr.bf16.gmra.mrb[88].mxu0 %v1629_v34  ;;  %6483 = vmatmul.mubr.bf16.gmra.mrb[88].mxu1 %v2211_v35  ;;  %v1596_v34 = vld [vmem:[%s8540_s24 + $0x590] sm:$0xff] }
 0x18e   : > { %6406 = vmatprep.mubr.bf16.mxu0 %v1630_v28  ;;  %6486 = vmatprep.mubr.bf16.mxu1 %v2212_v36  ;;  %v1597_v35 = vld [vmem:[%s8540_s24 + $0x5b0] sm:$0xff]  ;;  %v2178_v28 = vld [vmem:[%s8540_s24 + $0x598] sm:$0xff] }
 0x18f   : > { %v2179_v36 = vld [vmem:[%s8540_s24 + $0x5b8] sm:$0xff]  ;;  %v1638_v39 = vpack.c.bf16 %v1597_v35, %v1596_v34 }
 0x190   : > { %v2220_v40 = vpack.c.bf16 %v2179_v36, %v2178_v28  ;;  %v2187_v34 = vld [vmem:[%s8540_s24 + $0x6b8] sm:$0xff] }
 0x191   : > { %v2224_v47 = vpack.c.bf16 %v2187_v34, %v2186_v33  ;;  %v9022_v33 = vld [vmem:[%s8540_s24 + $0x7d0] sm:$0xff] }
 0x195   : > { %6407 = vmatmul.mubr.bf16.gmra.mrb[92].mxu0 %v1631_v44  ;;  %6487 = vmatmul.mubr.bf16.gmra.mrb[92].mxu1 %v2213_v45  ;;  %v2180_v44 = vld [vmem:[%s8540_s24 + $0x5d8] sm:$0xff] }
 0x196   : > { %6410 = vmatprep.mubr.bf16.mxu0 %v1632_v30  ;;  %6490 = vmatprep.mubr.bf16.mxu1 %v2214_v46  ;;  %v2181_v45 = vld [vmem:[%s8540_s24 + $0x5f8] sm:$0xff]  ;;  %v1600_v30 = vld [vmem:[%s8540_s24 + $0x610] sm:$0xff] }
 0x197   : > { %v1601_v46 = vld [vmem:[%s8540_s24 + $0x630] sm:$0xff] }
 0x198   : > { %v1640_v59 = vpack.c.bf16 %v1601_v46, %v1600_v30 }
 0x19d   : > { %6411 = vmatmul.mubr.bf16.gmra.mrb[96].mxu0 %v1633_v54  ;;  %6491 = vmatmul.mubr.bf16.gmra.mrb[96].mxu1 %v2215_v55  ;;  %v1639_v54 = vpack.c.bf16 %v1599_v43, %v1598_v42  ;;  %v2221_v55 = vpack.c.bf16 %v2181_v45, %v2180_v44  ;;  %v1642_v43 = vpack.c.bf16 %v1605_v27, %v1604_v25  ;;  %v9016_v25 = vld [vmem:[%s8540_s24 + $0x798] sm:$0xff] }
 0x19e   : > { %6414 = vmatprep.mubr.bf16.mxu0 %v1634_v32  ;;  %6494 = vmatprep.mubr.bf16.mxu1 %v2216_v56  ;;  %v9019_v27 = vld [vmem:[%s8540_s24 + $0x7b8] sm:$0xff] }
 0x1a5   : > { %6415 = vmatmul.mubr.bf16.gmra.mrb[100].mxu0 %v1635_v19  ;;  %6495 = vmatmul.mubr.bf16.gmra.mrb[100].mxu1 %v2217_v20  ;;  %v1602_v19 = vld [vmem:[%s8540_s24 + $0x650] sm:$0xff] }
 0x1a6   : > { %6418 = vmatprep.mubr.bf16.mxu0 %v1636_v22  ;;  %6498 = vmatprep.mubr.bf16.mxu1 %v2218_v23  ;;  %v2184_v22 = vld [vmem:[%s8540_s24 + $0x658] sm:$0xff]  ;;  %v1641_v36 = vpack.c.bf16 %v1603_v21, %v1602_v19  ;;  %v9000_v19 = vrot.slane %v8599_v18, %v427_v29  ;;  %v9004_v21 = vld [vmem:[%s8540_s24 + $0x790] sm:$0xff] }
 0x1a7   : > { %v2185_v23 = vld [vmem:[%s8540_s24 + $0x678] sm:$0xff] }
 0x1ad   : > { %6419 = vmatmul.mubr.bf16.gmra.mrb[104].mxu0 %v1637_v37  ;;  %6499 = vmatmul.mubr.bf16.gmra.mrb[104].mxu1 %v2219_v38  ;;  %v2223_v37 = vpack.c.bf16 %v2185_v23, %v2184_v22  ;;  %v9007_v22 = vld [vmem:[%s8540_s24 + $0x7b0] sm:$0xff] }
 0x1ae   : > { %6422 = vmatprep.mubr.bf16.mxu0 %v1638_v39  ;;  %6502 = vmatprep.mubr.bf16.mxu1 %v2220_v40 }
 0x1b0   : > { %v6220_v31 = vpop.f32.mrb[0].mxu0  ;;  %v6300_v49 = vpop.f32.mrb[0].mxu1 }
 0x1b1   : > { %v521_v50 = vadd.f32 %v6220_v31, %v8924_v41  ;;  %v1109_v51 = vadd.f32 %v6300_v49, %v8924_v41  ;;  %v512_v52 = vpop.f32.mrb[1].mxu0  ;;  %v1100_v53 = vpop.f32.mrb[1].mxu1  ;;  %v8958_v31 = vld [vmem:[%s8540_s24 + $0x6f0] sm:$0xff]  ;;  %v8961_v49 = vld [vmem:[%s8540_s24 + $0x6d8] sm:$0xff] }
 0x1b2   : > { %v513_v32 = vadd.f32 %v512_v52, %v8924_v41  ;;  %v1101_v56 = vadd.f32 %v1100_v53, %v8924_v41  ;;  %v6221_v57 = vpop.f32.mrb[2].mxu0  ;;  %v6301_v58 = vpop.f32.mrb[2].mxu1  ;;  %v8965_v53 = vld [vmem:[%s8540_s24 + $0x6f8] sm:$0xff]  ;;  %v1643_v26 = vpack.c.bf16 %v8958_v31, %v8955_v48 }
 0x1b3   : > { %6974 = vtanh.f32 %v521_v50  ;;  %v524_v61 = vadd.f32 %v6221_v57, %v8924_v41  ;;  %v515_v62 = vpop.f32.mrb[3].mxu0  ;;  %v1103_v63 = vpop.f32.mrb[3].mxu1  ;;  %v1112_v0 = vadd.f32 %v6301_v58, %v8924_v41  ;;  %v8978_v57 = vld [vmem:[%s8540_s24 + $0x738] sm:$0xff]  ;;  %v8981_v58 = vld [vmem:[%s8540_s24 + $0x750] sm:$0xff]  ;;  %v2225_v29 = vpack.c.bf16 %v8965_v53, %v8961_v49 }
 0x1b4   : > { %6976 = vtanh.f32 %v1109_v51  ;;  %v516_v20 = vadd.f32 %v515_v62, %v8924_v41  ;;  %v1104_v24 = vadd.f32 %v1103_v63, %v8924_v41  ;;  %v8990_v62 = vld [vmem:[%s8540_s24 + $0x758] sm:$0xff] }
 0x1b5   : > { %6978 = vtanh.f32 %v513_v32  ;;  %6423 = vmatmul.mubr.bf16.gmra.mrb[108].mxu0 %v1639_v54  ;;  %6503 = vmatmul.mubr.bf16.gmra.mrb[108].mxu1 %v2221_v55  ;;  %v8968_v54 = vld [vmem:[%s8540_s24 + $0x710] sm:$0xff]  ;;  %v8993_v63 = vld [vmem:[%s8540_s24 + $0x778] sm:$0xff] }
 0x1b6   : > { %6980 = vtanh.f32 %v1101_v56  ;;  %6426 = vmatprep.mubr.bf16.mxu0 %v1640_v59  ;;  %6506 = vmatprep.mubr.bf16.mxu1 %v2222_v60  ;;  %v8971_v55 = vld [vmem:[%s8540_s24 + $0x730] sm:$0xff]  ;;  %v8975_v56 = vld [vmem:[%s8540_s24 + $0x718] sm:$0xff] }
 0x1b7   : > { %6982 = vtanh.f32 %v524_v61  ;;  %v8987_v61 = vld [vmem:[%s8540_s24 + $0x770] sm:$0xff] }
 0x1b8   : > { %6984 = vtanh.f32 %v1112_v0  ;;  %v6224_v35 = vpop.f32.mrb[4].mxu0  ;;  %v6304_v28 = vpop.f32.mrb[4].mxu1 }
 0x1b9   : > { %6986 = vtanh.f32 %v516_v20  ;;  %v537_v38 = vadd.f32 %v6224_v35, %v8924_v41  ;;  %v1125_v39 = vadd.f32 %v6304_v28, %v8924_v41  ;;  %v528_v40 = vpop.f32.mrb[5].mxu0  ;;  %v1116_v42 = vpop.f32.mrb[5].mxu1 }
 0x1ba   : > { %6988 = vtanh.f32 %v1104_v24  ;;  %v529_v44 = vadd.f32 %v528_v40, %v8924_v41  ;;  %v1117_v45 = vadd.f32 %v1116_v42, %v8924_v41  ;;  %v6225_v30 = vpop.f32.mrb[6].mxu0  ;;  %v6305_v46 = vpop.f32.mrb[6].mxu1  ;;  %v1644_v24 = vpack.c.bf16 %v8971_v55, %v8968_v54  ;;  %v9034_v40 = vld [vmem:[%s8540_s24 + $0x7d8] sm:$0xff] }
 0x1bb   : > { %6990 = vtanh.f32 %v537_v38  ;;  %v540_v50 = vadd.f32 %v6225_v30, %v8924_v41  ;;  %v531_v51 = vpop.f32.mrb[7].mxu0  ;;  %v1119_v52 = vpop.f32.mrb[7].mxu1  ;;  %v1128_v32 = vadd.f32 %v6305_v46, %v8924_v41  ;;  %v2227_v38 = vpack.c.bf16 %v8993_v63, %v8990_v62  ;;  %v9037_v42 = vld [vmem:[%s8540_s24 + $0x7f8] sm:$0xff] }
 0x1bc   : > { %6992 = vtanh.f32 %v1125_v39  ;;  %v532_v60 = vadd.f32 %v531_v51, %v8924_v41  ;;  %v1120_v20 = vadd.f32 %v1119_v52, %v8924_v41  ;;  %v9031_v39 = vld [vmem:[%s8540_s24 + $0x7f0] sm:$0xff] }
 0x1bd   : > { %v8983_v59 = vpop.eup %6974  ;;  %6994 = vtanh.f32 %v529_v44  ;;  %6427 = vmatmul.mubr.bf16.gmra.mrb[112].mxu0 %v1641_v36  ;;  %6507 = vmatmul.mubr.bf16.gmra.mrb[112].mxu1 %v2223_v37  ;;  %v2226_v36 = vpack.c.bf16 %v8978_v57, %v8975_v56  ;;  %v1645_v37 = vpack.c.bf16 %v8987_v61, %v8981_v58 }
 0x1be   : > { %v8995_v0 = vpop.eup %6976  ;;  %6996 = vtanh.f32 %v1117_v45  ;;  %6430 = vmatprep.mubr.bf16.mxu0 %v1642_v43  ;;  %6510 = vmatprep.mubr.bf16.mxu1 %v2224_v47  ;;  %v1646_v47 = vpack.c.bf16 %v9007_v22, %v9004_v21  ;;  %v839_v57 = vmul.f32 %v8983_v59, %v9000_v19 }
 0x1bf   : > { %v6979_v23 = vpop.eup %6978  ;;  %6998 = vtanh.f32 %v540_v50 }
 0x1c0   : > { %v6981_v34 = vpop.eup %6980  ;;  %7000 = vtanh.f32 %v1128_v32  ;;  %v6228_v35 = vpop.f32.mrb[8].mxu0 }
 0x1c1   : > { %v6308_v28 = vpop.f32.mrb[8].mxu1  ;;  %v6983_v43 = vpop.eup %6982  ;;  %7002 = vtanh.f32 %v532_v60  ;;  %v553_v44 = vadd.f32 %v6228_v35, %v8924_v41 }
 0x1c2   : > { %v1141_v45 = vadd.f32 %v6308_v28, %v8924_v41  ;;  %v544_v30 = vpop.f32.mrb[9].mxu0  ;;  %v1132_v46 = vpop.f32.mrb[9].mxu1  ;;  %7004 = vtanh.f32 %v1120_v20  ;;  %v837_v20 = vmul.f32 %v6979_v23, %v9000_v19 }
 0x1c3   : > { %v6985_v48 = vpop.eup %6984  ;;  %v545_v31 = vadd.f32 %v544_v30, %v8924_v41  ;;  %v1133_v49 = vadd.f32 %v1132_v46, %v8924_v41  ;;  %v6229_v50 = vpop.f32.mrb[10].mxu0  ;;  %7006 = vtanh.f32 %v553_v44  ;;  %v1419_v44 = vmul.f32 %v6981_v34, %v9000_v19 }
 0x1c4   : > { %v6309_v51 = vpop.f32.mrb[10].mxu1  ;;  %v6987_v53 = vpop.eup %6986  ;;  %v556_v54 = vadd.f32 %v6229_v50, %v8924_v41  ;;  %7008 = vtanh.f32 %v1141_v45  ;;  %v1421_v34 = vmul.f32 %v8995_v0, %v9000_v19 }
 0x1c5   : > { %v547_v55 = vpop.f32.mrb[11].mxu0  ;;  %v1135_v32 = vpop.f32.mrb[11].mxu1  ;;  %v838_v35 = vmul.f32 %v6987_v53, %v9000_v19  ;;  %v1144_v28 = vadd.f32 %v6309_v51, %v8924_v41  ;;  %7010 = vtanh.f32 %v545_v31  ;;  %6431 = vmatmul.mubr.bf16.gmra.mrb[116].mxu0 %v1643_v26  ;;  %6511 = vmatmul.mubr.bf16.gmra.mrb[116].mxu1 %v2225_v29  ;;  %v840_v31 = vmul.f32 %v6983_v43, %v9000_v19 }
 0x1c6   : > { %v6989_v60 = vpop.eup %6988  ;;  %v548_v50 = vadd.f32 %v547_v55, %v8924_v41  ;;  %7012 = vtanh.f32 %v1133_v49  ;;  %v1136_v45 = vadd.f32 %v1135_v32, %v8924_v41  ;;  %6434 = vmatprep.mubr.bf16.mxu0 %v1644_v24  ;;  %6514 = vmatprep.mubr.bf16.mxu1 %v2226_v36  ;;  %v1422_v29 = vmul.f32 %v6985_v48, %v9000_v19 }
 0x1c7   : > { %v6991_v30 = vpop.eup %6990  ;;  %v1420_v46 = vmul.f32 %v6989_v60, %v9000_v19  ;;  %v901_v23 = vadd.f32 %v838_v35, %v837_v20  ;;  %7014 = vtanh.f32 %v556_v54 }
 0x1c8   : > { %v6993_v56 = vpop.eup %6992  ;;  %7016 = vtanh.f32 %v1144_v28  ;;  %v6232_v49 = vpop.f32.mrb[12].mxu0  ;;  %v843_v54 = vmul.f32 %v6991_v30, %v9000_v19 }
 0x1c9   : > { %v6995_v51 = vpop.eup %6994  ;;  %v1483_v53 = vadd.f32 %v1420_v46, %v1419_v44  ;;  %v902_v55 = vadd.f32 %v901_v23, %v839_v57  ;;  %v6312_v60 = vpop.f32.mrb[12].mxu1  ;;  %7018 = vtanh.f32 %v548_v50  ;;  %v569_v0 = vadd.f32 %v6232_v49, %v8924_v41 }
 0x1ca   : > { %v6997_v26 = vpop.eup %6996  ;;  %v841_v59 = vmul.f32 %v6995_v51, %v9000_v19  ;;  %v560_v20 = vpop.f32.mrb[13].mxu0  ;;  %7020 = vtanh.f32 %v1136_v45  ;;  %v1157_v48 = vadd.f32 %v6312_v60, %v8924_v41  ;;  %v1425_v23 = vmul.f32 %v6993_v56, %v9000_v19 }
 0x1cb   : > { %v6999_v32 = vpop.eup %6998  ;;  %v1484_v24 = vadd.f32 %v1483_v53, %v1421_v34  ;;  %v1423_v36 = vmul.f32 %v6997_v26, %v9000_v19  ;;  %v1148_v43 = vpop.f32.mrb[13].mxu1  ;;  %v903_v44 = vadd.f32 %v902_v55, %v840_v31  ;;  %7022 = vtanh.f32 %v569_v0 }
 0x1cc   : > { %v7001_v35 = vpop.eup %7000  ;;  %v6233_v57 = vpop.f32.mrb[14].mxu0  ;;  %v561_v50 = vadd.f32 %v560_v20, %v8924_v41  ;;  %7024 = vtanh.f32 %v1157_v48  ;;  %v1149_v30 = vadd.f32 %v1148_v43, %v8924_v41 }
 0x1cd   : > { %v6313_v28 = vpop.f32.mrb[14].mxu1  ;;  %v7003_v46 = vpop.eup %7002  ;;  %v1485_v51 = vadd.f32 %v1484_v24, %v1422_v29  ;;  %v904_v49 = vadd.f32 %v903_v44, %v841_v59  ;;  %v572_v56 = vadd.f32 %v6233_v57, %v8924_v41  ;;  %6435 = vmatmul.mubr.bf16.gmra.mrb[120].mxu0 %v1645_v37  ;;  %6515 = vmatmul.mubr.bf16.gmra.mrb[120].mxu1 %v2227_v38 }
 0x1ce   : > { %v563_v34 = vpop.f32.mrb[15].mxu0  ;;  %v1151_v53 = vpop.f32.mrb[15].mxu1  ;;  %v842_v52 = vmul.f32 %v7003_v46, %v9000_v19  ;;  %7026 = vtanh.f32 %v561_v50  ;;  %v844_v59 = vmul.f32 %v6999_v32, %v9000_v19  ;;  %v1160_v24 = vadd.f32 %v6313_v28, %v8924_v41  ;;  %6438 = vmatprep.mubr.bf16.mxu0 %v1646_v47 }
 0x1cf   : > { %v7005_v26 = vpop.eup %7004  ;;  %v1486_v31 = vadd.f32 %v1485_v51, %v1423_v36  ;;  %7028 = vtanh.f32 %v1149_v30  ;;  %v12576_v36 = vpack.c.bf16 %v9019_v27, %v9016_v25  ;;  %v1426_v61 = vmul.f32 %v7001_v35, %v9000_v19 }
 0x1d0   : > { %v7007_v45 = vpop.eup %7006  ;;  %v1424_v55 = vmul.f32 %v7005_v26, %v9000_v19  ;;  %v905_v60 = vadd.f32 %v904_v49, %v842_v52  ;;  %7030 = vtanh.f32 %v572_v56  ;;  %v564_v63 = vadd.f32 %v563_v34, %v8924_v41  ;;  %v6236_v21 = vpop.f32.mrb[16].mxu0 }
 0x1d1   : > { %v7009_v29 = vpop.eup %7008  ;;  %6518 = vmatprep.mubr.bf16.mxu1 %v12576_v36  ;;  %7032 = vtanh.f32 %v1160_v24  ;;  %v1152_v32 = vadd.f32 %v1151_v53, %v8924_v41  ;;  %v6316_v22 = vpop.f32.mrb[16].mxu1  ;;  %v585_v27 = vadd.f32 %v6236_v21, %v8924_v41  ;;  %v847_v44 = vmul.f32 %v7007_v45, %v9000_v19 }
 0x1d2   : > { %v7011_v58 = vpop.eup %7010  ;;  %v1487_v62 = vadd.f32 %v1486_v31, %v1424_v55  ;;  %v906_v38 = vadd.f32 %v905_v60, %v843_v54  ;;  %7034 = vtanh.f32 %v564_v63  ;;  %v576_v20 = vpop.f32.mrb[17].mxu0  ;;  %v1173_v48 = vadd.f32 %v6316_v22, %v8924_v41 }
 0x1d3   : > { %v7013_v37 = vpop.eup %7012  ;;  %v845_v52 = vmul.f32 %v7011_v58, %v9000_v19  ;;  %v1164_v43 = vpop.f32.mrb[17].mxu1  ;;  %7036 = vtanh.f32 %v1152_v32  ;;  %v1429_v51 = vmul.f32 %v7009_v29, %v9000_v19  ;;  %v577_v50 = vadd.f32 %v576_v20, %v8924_v41 }
 0x1d4   : > { %v7015_v47 = vpop.eup %7014  ;;  %v1488_v0 = vadd.f32 %v1487_v62, %v1425_v23  ;;  %v1427_v25 = vmul.f32 %v7013_v37, %v9000_v19  ;;  %v907_v54 = vadd.f32 %v906_v38, %v844_v59  ;;  %v6237_v57 = vpop.f32.mrb[18].mxu0  ;;  %7038 = vtanh.f32 %v585_v27 }
 0x1d5   : > { %v7017_v35 = vpop.eup %7016  ;;  %v6317_v28 = vpop.f32.mrb[18].mxu1  ;;  %7040 = vtanh.f32 %v1173_v48  ;;  %v1165_v45 = vadd.f32 %v1164_v43, %v8924_v41  ;;  %v588_v29 = vadd.f32 %v6237_v57, %v8924_v41  ;;  %v12577_v59 = vpack.c.bf16 %v9031_v39, %v9022_v33 }
 0x1d6   : > { %v7019_v46 = vpop.eup %7018  ;;  %v1489_v23 = vadd.f32 %v1488_v0, %v1426_v61  ;;  %v579_v34 = vpop.f32.mrb[19].mxu0  ;;  %v908_v49 = vadd.f32 %v907_v54, %v845_v52  ;;  %7042 = vtanh.f32 %v577_v50  ;;  %v12578_v60 = vpack.c.bf16 %v9037_v42, %v9034_v40 }
 0x1d7   : > { %v1167_v53 = vpop.f32.mrb[19].mxu1  ;;  %v7021_v26 = vpop.eup %7020  ;;  %v846_v30 = vmul.f32 %v7019_v46, %v9000_v19  ;;  %6439 = vmatmul.mubr.bf16.gmra.mrb[124].mxu0 %v12577_v59  ;;  %v848_v36 = vmul.f32 %v7015_v47, %v9000_v19  ;;  %7044 = vtanh.f32 %v1165_v45  ;;  %v1176_v61 = vadd.f32 %v6317_v28, %v8924_v41 }
 0x1d8   : > { %v7023_v31 = vpop.eup %7022  ;;  %v1490_v55 = vadd.f32 %v1489_v23, %v1427_v25  ;;  %v1428_v56 = vmul.f32 %v7021_v26, %v9000_v19  ;;  %6519 = vmatmul.mubr.bf16.gmra.mrb[124].mxu1 %v12578_v60  ;;  %v1430_v63 = vmul.f32 %v7017_v35, %v9000_v19  ;;  %7046 = vtanh.f32 %v588_v29  ;;  %v6240_v42 = vpop.f32.mrb[20].mxu0 }
 0x1d9   : > { %v7025_v24 = vpop.eup %7024  ;;  %v909_v58 = vadd.f32 %v908_v49, %v846_v30  ;;  %v580_v38 = vadd.f32 %v579_v34, %v8924_v41  ;;  %7048 = vtanh.f32 %v1176_v61  ;;  %v1168_v40 = vadd.f32 %v1167_v53, %v8924_v41  ;;  %v6320_v32 = vpop.f32.mrb[20].mxu1 }
 0x1da   : > { %v7027_v62 = vpop.eup %7026  ;;  %v1491_v37 = vadd.f32 %v1490_v55, %v1428_v56  ;;  %v601_v0 = vadd.f32 %v6240_v42, %v8924_v41  ;;  %v592_v25 = vpop.f32.mrb[21].mxu0  ;;  %v851_v43 = vmul.f32 %v7023_v31, %v9000_v19  ;;  %v1433_v28 = vmul.f32 %v7025_v24, %v9000_v19 }
 0x1db   : > { %v7029_v33 = vpop.eup %7028  ;;  %v910_v39 = vadd.f32 %v909_v58, %v847_v44  ;;  %v849_v52 = vmul.f32 %v7027_v62, %v9000_v19  ;;  %7050 = vtanh.f32 %v580_v38  ;;  %v1180_v27 = vpop.f32.mrb[21].mxu1  ;;  %v1189_v44 = vadd.f32 %v6320_v32, %v8924_v41 }
 0x1dc   : > { %v7031_v21 = vpop.eup %7030  ;;  %v1492_v22 = vadd.f32 %v1491_v37, %v1429_v51  ;;  %v1431_v47 = vmul.f32 %v7029_v33, %v9000_v19  ;;  %7052 = vtanh.f32 %v1168_v40  ;;  %v6241_v54 = vpop.f32.mrb[22].mxu0  ;;  %v593_v51 = vadd.f32 %v592_v25, %v8924_v41 }
 0x1dd   : > { %v7033_v20 = vpop.eup %7032  ;;  %v911_v35 = vadd.f32 %v910_v39, %v848_v36  ;;  %v6321_v48 = vpop.f32.mrb[22].mxu1  ;;  %7054 = vtanh.f32 %v601_v0  ;;  %v1181_v49 = vadd.f32 %v1180_v27, %v8924_v41  ;;  %v604_v55 = vadd.f32 %v6241_v54, %v8924_v41 }
 0x1de   : > { %v7035_v57 = vpop.eup %7034  ;;  %v1493_v46 = vadd.f32 %v1492_v22, %v1430_v63  ;;  %v595_v23 = vpop.f32.mrb[23].mxu0  ;;  %7056 = vtanh.f32 %v1189_v44  ;;  %v852_v29 = vmul.f32 %v7031_v21, %v9000_v19  ;;  %v1192_v60 = vadd.f32 %v6321_v48, %v8924_v41 }
 0x1df   : > { %v1183_v50 = vpop.f32.mrb[23].mxu1  ;;  %v7037_v34 = vpop.eup %7036  ;;  %v912_v53 = vadd.f32 %v911_v35, %v849_v52  ;;  %v850_v26 = vmul.f32 %v7035_v57, %v9000_v19  ;;  %7058 = vtanh.f32 %v593_v51  ;;  %v1434_v36 = vmul.f32 %v7033_v20, %v9000_v19 }
 0x1e0   : > { %v7039_v30 = vpop.eup %7038  ;;  %v1494_v45 = vadd.f32 %v1493_v46, %v1431_v47  ;;  %v1432_v31 = vmul.f32 %v7037_v34, %v9000_v19  ;;  %7060 = vtanh.f32 %v1181_v49  ;;  %v596_v61 = vadd.f32 %v595_v23, %v8924_v41  ;;  %v6244_v33 = vpop.f32.mrb[24].mxu0 }
 0x1e1   : > { %v7041_v56 = vpop.eup %7040  ;;  %v913_v59 = vadd.f32 %v912_v53, %v850_v26  ;;  %7062 = vtanh.f32 %v604_v55  ;;  %v1184_v38 = vadd.f32 %v1183_v50, %v8924_v41  ;;  %v6324_v39 = vpop.f32.mrb[24].mxu1  ;;  %v617_v32 = vadd.f32 %v6244_v33, %v8924_v41 }
 0x1e2   : > { %v7043_v24 = vpop.eup %7042  ;;  %v1495_v58 = vadd.f32 %v1494_v45, %v1432_v31  ;;  %7064 = vtanh.f32 %v1192_v60  ;;  %v608_v21 = vpop.f32.mrb[25].mxu0  ;;  %v855_v0 = vmul.f32 %v7039_v30, %v9000_v19  ;;  %v1205_v27 = vadd.f32 %v6324_v39, %v8924_v41 }
 0x1e3   : > { %v7045_v62 = vpop.eup %7044  ;;  %v914_v63 = vadd.f32 %v913_v59, %v851_v43  ;;  %v853_v37 = vmul.f32 %v7043_v24, %v9000_v19  ;;  %7066 = vtanh.f32 %v596_v61  ;;  %v1196_v22 = vpop.f32.mrb[25].mxu1  ;;  %v1437_v44 = vmul.f32 %v7041_v56, %v9000_v19 }
 0x1e4   : > { %v7047_v52 = vpop.eup %7046  ;;  %v1496_v40 = vadd.f32 %v1495_v58, %v1433_v28  ;;  %v1435_v42 = vmul.f32 %v7045_v62, %v9000_v19  ;;  %7068 = vtanh.f32 %v1184_v38  ;;  %v6245_v20 = vpop.f32.mrb[26].mxu0  ;;  %v609_v48 = vadd.f32 %v608_v21, %v8924_v41 }
 0x1e5   : > { %v7049_v47 = vpop.eup %7048  ;;  %v915_v25 = vadd.f32 %v914_v63, %v852_v29  ;;  %v6325_v43 = vpop.f32.mrb[26].mxu1  ;;  %7070 = vtanh.f32 %v617_v32  ;;  %v1197_v50 = vadd.f32 %v1196_v22, %v8924_v41  ;;  %v620_v49 = vadd.f32 %v6245_v20, %v8924_v41 }
 0x1e6   : > { %v7051_v35 = vpop.eup %7050  ;;  %v1497_v54 = vadd.f32 %v1496_v40, %v1434_v36  ;;  %v611_v57 = vpop.f32.mrb[27].mxu0  ;;  %7072 = vtanh.f32 %v1205_v27  ;;  %v856_v45 = vmul.f32 %v7047_v52, %v9000_v19  ;;  %v1208_v55 = vadd.f32 %v6325_v43, %v8924_v41 }
 0x1e7   : > { %v1199_v28 = vpop.f32.mrb[27].mxu1  ;;  %v7053_v46 = vpop.eup %7052  ;;  %v916_v51 = vadd.f32 %v915_v25, %v853_v37  ;;  %v854_v23 = vmul.f32 %v7051_v35, %v9000_v19  ;;  %7074 = vtanh.f32 %v609_v48  ;;  %v1438_v29 = vmul.f32 %v7049_v47, %v9000_v19 }
 0x1e8   : > { %v7055_v34 = vpop.eup %7054  ;;  %v1498_v53 = vadd.f32 %v1497_v54, %v1435_v42  ;;  %v1436_v26 = vmul.f32 %v7053_v46, %v9000_v19  ;;  %7076 = vtanh.f32 %v1197_v50  ;;  %v612_v60 = vadd.f32 %v611_v57, %v8924_v41  ;;  %v6248_v62 = vpop.f32.mrb[28].mxu0 }
 0x1e9   : > { %v7057_v30 = vpop.eup %7056  ;;  %v917_v31 = vadd.f32 %v916_v51, %v854_v23  ;;  %7078 = vtanh.f32 %v620_v49  ;;  %v1200_v61 = vadd.f32 %v1199_v28, %v8924_v41  ;;  %v6328_v63 = vpop.f32.mrb[28].mxu1  ;;  %v633_v39 = vadd.f32 %v6248_v62, %v8924_v41 }
 0x1ea   : > { %v7059_v56 = vpop.eup %7058  ;;  %v1499_v59 = vadd.f32 %v1498_v53, %v1436_v26  ;;  %7080 = vtanh.f32 %v1208_v55  ;;  %v624_v52 = vpop.f32.mrb[29].mxu0  ;;  %v859_v32 = vmul.f32 %v7055_v34, %v9000_v19  ;;  %v1221_v22 = vadd.f32 %v6328_v63, %v8924_v41 }
 0x1eb   : > { %v7061_v24 = vpop.eup %7060  ;;  %v918_v36 = vadd.f32 %v917_v31, %v855_v0  ;;  %v857_v58 = vmul.f32 %v7059_v56, %v9000_v19  ;;  %7082 = vtanh.f32 %v612_v60  ;;  %v1212_v40 = vpop.f32.mrb[29].mxu1  ;;  %v1441_v27 = vmul.f32 %v7057_v30, %v9000_v19 }
 0x1ec   : > { %v7063_v37 = vpop.eup %7062  ;;  %v1500_v38 = vadd.f32 %v1499_v59, %v1437_v44  ;;  %v1439_v33 = vmul.f32 %v7061_v24, %v9000_v19  ;;  %7084 = vtanh.f32 %v1200_v61  ;;  %v6249_v47 = vpop.f32.mrb[30].mxu0  ;;  %v625_v43 = vadd.f32 %v624_v52, %v8924_v41 }
 0x1ed   : > { %v7065_v42 = vpop.eup %7064  ;;  %v919_v21 = vadd.f32 %v918_v36, %v856_v45  ;;  %v6329_v0 = vpop.f32.mrb[30].mxu1  ;;  %7086 = vtanh.f32 %v633_v39  ;;  %v1213_v28 = vadd.f32 %v1212_v40, %v8924_v41  ;;  %v636_v50 = vadd.f32 %v6249_v47, %v8924_v41 }
 0x1ee   : > { %v7067_v25 = vpop.eup %7066  ;;  %v1501_v20 = vadd.f32 %v1500_v38, %v1438_v29  ;;  %v627_v35 = vpop.f32.mrb[31].mxu0  ;;  %7088 = vtanh.f32 %v1221_v22  ;;  %v860_v53 = vmul.f32 %v7063_v37, %v9000_v19  ;;  %v1224_v49 = vadd.f32 %v6329_v0, %v8924_v41 }
 0x1ef   : > { %v1215_v44 = vpop.f32.mrb[31].mxu1  ;;  %v7069_v54 = vpop.eup %7068  ;;  %v920_v48 = vadd.f32 %v919_v21, %v857_v58  ;;  %v858_v57 = vmul.f32 %v7067_v25, %v9000_v19  ;;  %7090 = vtanh.f32 %v625_v43  ;;  %v1442_v45 = vmul.f32 %v7065_v42, %v9000_v19 }
 0x1f0   : > { %v7071_v46 = vpop.eup %7070  ;;  %v1502_v51 = vadd.f32 %v1501_v20, %v1439_v33  ;;  %v1440_v23 = vmul.f32 %v7069_v54, %v9000_v19  ;;  %7092 = vtanh.f32 %v1213_v28  ;;  %v628_v55 = vadd.f32 %v627_v35, %v8924_v41  ;;  %v6252_v24 = vpop.f32.mrb[32].mxu0 }
 0x1f1   : > { %v7073_v34 = vpop.eup %7072  ;;  %v921_v26 = vadd.f32 %v920_v48, %v858_v57  ;;  %7094 = vtanh.f32 %v636_v50  ;;  %v1216_v60 = vadd.f32 %v1215_v44, %v8924_v41  ;;  %v6332_v36 = vpop.f32.mrb[32].mxu1  ;;  %v649_v63 = vadd.f32 %v6252_v24, %v8924_v41 }
 0x1f2   : > { %v7075_v30 = vpop.eup %7074  ;;  %v1503_v31 = vadd.f32 %v1502_v51, %v1440_v23  ;;  %7096 = vtanh.f32 %v1224_v49  ;;  %v640_v37 = vpop.f32.mrb[33].mxu0  ;;  %v863_v39 = vmul.f32 %v7071_v46, %v9000_v19  ;;  %v1237_v40 = vadd.f32 %v6332_v36, %v8924_v41 }
 0x1f3   : > { %v7077_v56 = vpop.eup %7076  ;;  %v922_v29 = vadd.f32 %v921_v26, %v859_v32  ;;  %v861_v59 = vmul.f32 %v7075_v30, %v9000_v19  ;;  %7098 = vtanh.f32 %v628_v55  ;;  %v1228_v38 = vpop.f32.mrb[33].mxu1  ;;  %v1445_v22 = vmul.f32 %v7073_v34, %v9000_v19 }
 0x1f4   : > { %v7079_v58 = vpop.eup %7078  ;;  %v1504_v61 = vadd.f32 %v1503_v31, %v1441_v27  ;;  %v1443_v62 = vmul.f32 %v7077_v56, %v9000_v19  ;;  %7100 = vtanh.f32 %v1216_v60  ;;  %v6253_v42 = vpop.f32.mrb[34].mxu0  ;;  %v641_v0 = vadd.f32 %v640_v37, %v8924_v41 }
 0x1f5   : > { %v7081_v33 = vpop.eup %7080  ;;  %v923_v52 = vadd.f32 %v922_v29, %v860_v53  ;;  %v6333_v32 = vpop.f32.mrb[34].mxu1  ;;  %7102 = vtanh.f32 %v649_v63  ;;  %v1229_v44 = vadd.f32 %v1228_v38, %v8924_v41  ;;  %v652_v28 = vadd.f32 %v6253_v42, %v8924_v41 }
 0x1f6   : > { %v7083_v21 = vpop.eup %7082  ;;  %v1505_v47 = vadd.f32 %v1504_v61, %v1442_v45  ;;  %v643_v25 = vpop.f32.mrb[35].mxu0  ;;  %7104 = vtanh.f32 %v1237_v40  ;;  %v864_v51 = vmul.f32 %v7079_v58, %v9000_v19  ;;  %v1240_v50 = vadd.f32 %v6333_v32, %v8924_v41 }
 0x1f7   : > { %v1231_v27 = vpop.f32.mrb[35].mxu1  ;;  %v7085_v20 = vpop.eup %7084  ;;  %v924_v43 = vadd.f32 %v923_v52, %v861_v59  ;;  %v862_v35 = vmul.f32 %v7083_v21, %v9000_v19  ;;  %7106 = vtanh.f32 %v641_v0  ;;  %v1446_v53 = vmul.f32 %v7081_v33, %v9000_v19 }
 0x1f8   : > { %v7087_v54 = vpop.eup %7086  ;;  %v1506_v48 = vadd.f32 %v1505_v47, %v1443_v62  ;;  %v1444_v57 = vmul.f32 %v7085_v20, %v9000_v19  ;;  %7108 = vtanh.f32 %v1229_v44  ;;  %v644_v49 = vadd.f32 %v643_v25, %v8924_v41  ;;  %v6256_v56 = vpop.f32.mrb[36].mxu0 }
 0x1f9   : > { %v7089_v46 = vpop.eup %7088  ;;  %v925_v23 = vadd.f32 %v924_v43, %v862_v35  ;;  %7110 = vtanh.f32 %v652_v28  ;;  %v1232_v55 = vadd.f32 %v1231_v27, %v8924_v41  ;;  %v6336_v29 = vpop.f32.mrb[36].mxu1  ;;  %v665_v36 = vadd.f32 %v6256_v56, %v8924_v41 }
 0x1fa   : > { %v7091_v34 = vpop.eup %7090  ;;  %v1507_v26 = vadd.f32 %v1506_v48, %v1444_v57  ;;  %7112 = vtanh.f32 %v1240_v50  ;;  %v656_v58 = vpop.f32.mrb[37].mxu0  ;;  %v867_v63 = vmul.f32 %v7087_v54, %v9000_v19  ;;  %v1253_v38 = vadd.f32 %v6336_v29, %v8924_v41 }
 0x1fb   : > { %v7093_v30 = vpop.eup %7092  ;;  %v926_v45 = vadd.f32 %v925_v23, %v863_v39  ;;  %v865_v31 = vmul.f32 %v7091_v34, %v9000_v19  ;;  %7114 = vtanh.f32 %v644_v49  ;;  %v1244_v61 = vpop.f32.mrb[37].mxu1  ;;  %v1449_v40 = vmul.f32 %v7089_v46, %v9000_v19 }
 0x1fc   : > { %v7095_v59 = vpop.eup %7094  ;;  %v1508_v60 = vadd.f32 %v1507_v26, %v1445_v22  ;;  %v1447_v24 = vmul.f32 %v7093_v30, %v9000_v19  ;;  %7116 = vtanh.f32 %v1232_v55  ;;  %v6257_v33 = vpop.f32.mrb[38].mxu0  ;;  %v657_v32 = vadd.f32 %v656_v58, %v8924_v41 }
 0x1fd   : > { %v7097_v62 = vpop.eup %7096  ;;  %v927_v37 = vadd.f32 %v926_v45, %v864_v51  ;;  %v6337_v39 = vpop.f32.mrb[38].mxu1  ;;  %7118 = vtanh.f32 %v665_v36  ;;  %v1245_v27 = vadd.f32 %v1244_v61, %v8924_v41  ;;  %v668_v44 = vadd.f32 %v6257_v33, %v8924_v41 }
 0x1fe   : > { %v7099_v52 = vpop.eup %7098  ;;  %v1509_v42 = vadd.f32 %v1508_v60, %v1446_v53  ;;  %v659_v21 = vpop.f32.mrb[39].mxu0  ;;  %7120 = vtanh.f32 %v1253_v38  ;;  %v868_v48 = vmul.f32 %v7095_v59, %v9000_v19  ;;  %v1256_v28 = vadd.f32 %v6337_v39, %v8924_v41 }
 0x1ff   : > { %v1247_v22 = vpop.f32.mrb[39].mxu1  ;;  %v7101_v47 = vpop.eup %7100  ;;  %v928_v0 = vadd.f32 %v927_v37, %v865_v31  ;;  %v866_v25 = vmul.f32 %v7099_v52, %v9000_v19  ;;  %7122 = vtanh.f32 %v657_v32  ;;  %v1450_v51 = vmul.f32 %v7097_v62, %v9000_v19 }
 0x200   : > { %v7103_v20 = vpop.eup %7102  ;;  %v1510_v43 = vadd.f32 %v1509_v42, %v1447_v24  ;;  %v1448_v35 = vmul.f32 %v7101_v47, %v9000_v19  ;;  %7124 = vtanh.f32 %v1245_v27  ;;  %v660_v50 = vadd.f32 %v659_v21, %v8924_v41  ;;  %v6260_v30 = vpop.f32.mrb[40].mxu0 }
 0x201   : > { %v7105_v54 = vpop.eup %7104  ;;  %v929_v57 = vadd.f32 %v928_v0, %v866_v25  ;;  %7126 = vtanh.f32 %v668_v44  ;;  %v1248_v49 = vadd.f32 %v1247_v22, %v8924_v41  ;;  %v6340_v45 = vpop.f32.mrb[40].mxu1  ;;  %v681_v29 = vadd.f32 %v6260_v30, %v8924_v41 }
 0x202   : > { %v7107_v46 = vpop.eup %7106  ;;  %v1511_v23 = vadd.f32 %v1510_v43, %v1448_v35  ;;  %7128 = vtanh.f32 %v1256_v28  ;;  %v672_v59 = vpop.f32.mrb[41].mxu0  ;;  %v871_v36 = vmul.f32 %v7103_v20, %v9000_v19  ;;  %v1269_v61 = vadd.f32 %v6340_v45, %v8924_v41 }
 0x203   : > { %v7109_v34 = vpop.eup %7108  ;;  %v930_v53 = vadd.f32 %v929_v57, %v867_v63  ;;  %v869_v26 = vmul.f32 %v7107_v46, %v9000_v19  ;;  %7130 = vtanh.f32 %v660_v50  ;;  %v1260_v60 = vpop.f32.mrb[41].mxu1  ;;  %v1453_v38 = vmul.f32 %v7105_v54, %v9000_v19 }
 0x204   : > { %v7111_v31 = vpop.eup %7110  ;;  %v1512_v55 = vadd.f32 %v1511_v23, %v1449_v40  ;;  %v1451_v56 = vmul.f32 %v7109_v34, %v9000_v19  ;;  %7132 = vtanh.f32 %v1248_v49  ;;  %v6261_v62 = vpop.f32.mrb[42].mxu0  ;;  %v673_v39 = vadd.f32 %v672_v59, %v8924_v41 }
 0x205   : > { %v7113_v24 = vpop.eup %7112  ;;  %v931_v58 = vadd.f32 %v930_v53, %v868_v48  ;;  %v6341_v63 = vpop.f32.mrb[42].mxu1  ;;  %7134 = vtanh.f32 %v681_v29  ;;  %v1261_v22 = vadd.f32 %v1260_v60, %v8924_v41  ;;  %v684_v27 = vadd.f32 %v6261_v62, %v8924_v41 }
 0x206   : > { %v7115_v37 = vpop.eup %7114  ;;  %v1513_v33 = vadd.f32 %v1512_v55, %v1450_v51  ;;  %v675_v52 = vpop.f32.mrb[43].mxu0  ;;  %7136 = vtanh.f32 %v1269_v61  ;;  %v872_v43 = vmul.f32 %v7111_v31, %v9000_v19  ;;  %v1272_v44 = vadd.f32 %v6341_v63, %v8924_v41 }
 0x207   : > { %v1263_v40 = vpop.f32.mrb[43].mxu1  ;;  %v7117_v42 = vpop.eup %7116  ;;  %v932_v32 = vadd.f32 %v931_v58, %v869_v26  ;;  %v870_v21 = vmul.f32 %v7115_v37, %v9000_v19  ;;  %7138 = vtanh.f32 %v673_v39  ;;  %v1454_v48 = vmul.f32 %v7113_v24, %v9000_v19 }
 0x208   : > { %v7119_v47 = vpop.eup %7118  ;;  %v1514_v0 = vadd.f32 %v1513_v33, %v1451_v56  ;;  %v1452_v25 = vmul.f32 %v7117_v42, %v9000_v19  ;;  %7140 = vtanh.f32 %v1261_v22  ;;  %v676_v28 = vadd.f32 %v675_v52, %v8924_v41  ;;  %v6264_v34 = vpop.f32.mrb[44].mxu0 }
 0x209   : > { %v7121_v20 = vpop.eup %7120  ;;  %v933_v35 = vadd.f32 %v932_v32, %v870_v21  ;;  %7142 = vtanh.f32 %v684_v27  ;;  %v1264_v50 = vadd.f32 %v1263_v40, %v8924_v41  ;;  %v6344_v53 = vpop.f32.mrb[44].mxu1  ;;  %v697_v45 = vadd.f32 %v6264_v34, %v8924_v41 }
 0x20a   : > { %v7123_v54 = vpop.eup %7122  ;;  %v1515_v57 = vadd.f32 %v1514_v0, %v1452_v25  ;;  %7144 = vtanh.f32 %v1272_v44  ;;  %v688_v31 = vpop.f32.mrb[45].mxu0  ;;  %v875_v29 = vmul.f32 %v7119_v47, %v9000_v19  ;;  %v1285_v60 = vadd.f32 %v6344_v53, %v8924_v41 }
 0x20b   : > { %v7125_v46 = vpop.eup %7124  ;;  %v934_v51 = vadd.f32 %v933_v35, %v871_v36  ;;  %v873_v23 = vmul.f32 %v7123_v54, %v9000_v19  ;;  %7146 = vtanh.f32 %v676_v28  ;;  %v1276_v55 = vpop.f32.mrb[45].mxu1  ;;  %v1457_v61 = vmul.f32 %v7121_v20, %v9000_v19 }
 0x20c   : > { %v7127_v26 = vpop.eup %7126  ;;  %v1516_v49 = vadd.f32 %v1515_v57, %v1453_v38  ;;  %v1455_v30 = vmul.f32 %v7125_v46, %v9000_v19  ;;  %7148 = vtanh.f32 %v1264_v50  ;;  %v6265_v24 = vpop.f32.mrb[46].mxu0  ;;  %v689_v63 = vadd.f32 %v688_v31, %v8924_v41 }
 0x20d   : > { %v7129_v56 = vpop.eup %7128  ;;  %v935_v59 = vadd.f32 %v934_v51, %v872_v43  ;;  %v6345_v36 = vpop.f32.mrb[46].mxu1  ;;  %7150 = vtanh.f32 %v697_v45  ;;  %v1277_v40 = vadd.f32 %v1276_v55, %v8924_v41  ;;  %v700_v22 = vadd.f32 %v6265_v24, %v8924_v41 }
 0x20e   : > { %v7131_v58 = vpop.eup %7130  ;;  %v1517_v62 = vadd.f32 %v1516_v49, %v1454_v48  ;;  %v691_v37 = vpop.f32.mrb[47].mxu0  ;;  %7152 = vtanh.f32 %v1285_v60  ;;  %v876_v0 = vmul.f32 %v7127_v26, %v9000_v19  ;;  %v1288_v27 = vadd.f32 %v6345_v36, %v8924_v41 }
 0x20f   : > { %v1279_v38 = vpop.f32.mrb[47].mxu1  ;;  %v7133_v33 = vpop.eup %7132  ;;  %v936_v39 = vadd.f32 %v935_v59, %v873_v23  ;;  %v874_v52 = vmul.f32 %v7131_v58, %v9000_v19  ;;  %7154 = vtanh.f32 %v689_v63  ;;  %v1458_v43 = vmul.f32 %v7129_v56, %v9000_v19 }
 0x210   : > { %v7135_v42 = vpop.eup %7134  ;;  %v1518_v32 = vadd.f32 %v1517_v62, %v1455_v30  ;;  %v1456_v21 = vmul.f32 %v7133_v33, %v9000_v19  ;;  %7156 = vtanh.f32 %v1277_v40  ;;  %v692_v44 = vadd.f32 %v691_v37, %v8924_v41  ;;  %v6268_v46 = vpop.f32.mrb[48].mxu0 }
 0x211   : > { %v7137_v47 = vpop.eup %7136  ;;  %v937_v25 = vadd.f32 %v936_v39, %v874_v52  ;;  %7158 = vtanh.f32 %v700_v22  ;;  %v1280_v28 = vadd.f32 %v1279_v38, %v8924_v41  ;;  %v6348_v51 = vpop.f32.mrb[48].mxu1  ;;  %v713_v53 = vadd.f32 %v6268_v46, %v8924_v41 }
 0x212   : > { %v7139_v20 = vpop.eup %7138  ;;  %v1519_v35 = vadd.f32 %v1518_v32, %v1456_v21  ;;  %7160 = vtanh.f32 %v1288_v27  ;;  %v704_v26 = vpop.f32.mrb[49].mxu0  ;;  %v879_v45 = vmul.f32 %v7135_v42, %v9000_v19  ;;  %v1301_v55 = vadd.f32 %v6348_v51, %v8924_v41 }
 0x213   : > { %v7141_v54 = vpop.eup %7140  ;;  %v938_v48 = vadd.f32 %v937_v25, %v875_v29  ;;  %v877_v57 = vmul.f32 %v7139_v20, %v9000_v19  ;;  %7162 = vtanh.f32 %v692_v44  ;;  %v1292_v49 = vpop.f32.mrb[49].mxu1  ;;  %v1461_v60 = vmul.f32 %v7137_v47, %v9000_v19 }
 0x214   : > { %v7143_v23 = vpop.eup %7142  ;;  %v1520_v50 = vadd.f32 %v1519_v35, %v1457_v61  ;;  %v1459_v34 = vmul.f32 %v7141_v54, %v9000_v19  ;;  %7164 = vtanh.f32 %v1280_v28  ;;  %v6269_v56 = vpop.f32.mrb[50].mxu0  ;;  %v705_v36 = vadd.f32 %v704_v26, %v8924_v41 }
 0x215   : > { %v7145_v30 = vpop.eup %7144  ;;  %v939_v31 = vadd.f32 %v938_v48, %v876_v0  ;;  %v6349_v29 = vpop.f32.mrb[50].mxu1  ;;  %7166 = vtanh.f32 %v713_v53  ;;  %v1293_v38 = vadd.f32 %v1292_v49, %v8924_v41  ;;  %v716_v40 = vadd.f32 %v6269_v56, %v8924_v41 }
 0x216   : > { %v7147_v59 = vpop.eup %7146  ;;  %v1521_v24 = vadd.f32 %v1520_v50, %v1458_v43  ;;  %v707_v58 = vpop.f32.mrb[51].mxu0  ;;  %7168 = vtanh.f32 %v1301_v55  ;;  %v880_v32 = vmul.f32 %v7143_v23, %v9000_v19  ;;  %v1304_v22 = vadd.f32 %v6349_v29, %v8924_v41 }
 0x217   : > { %v1295_v61 = vpop.f32.mrb[51].mxu1  ;;  %v7149_v62 = vpop.eup %7148  ;;  %v940_v63 = vadd.f32 %v939_v31, %v877_v57  ;;  %v878_v37 = vmul.f32 %v7147_v59, %v9000_v19  ;;  %7170 = vtanh.f32 %v705_v36  ;;  %v1462_v0 = vmul.f32 %v7145_v30, %v9000_v19 }
 0x218   : > { %v7151_v33 = vpop.eup %7150  ;;  %v1522_v39 = vadd.f32 %v1521_v24, %v1459_v34  ;;  %v1460_v52 = vmul.f32 %v7149_v62, %v9000_v19  ;;  %7172 = vtanh.f32 %v1293_v38  ;;  %v708_v27 = vadd.f32 %v707_v58, %v8924_v41  ;;  %v6272_v54 = vpop.f32.mrb[52].mxu0 }
 0x219   : > { %v7153_v42 = vpop.eup %7152  ;;  %v941_v21 = vadd.f32 %v940_v63, %v878_v37  ;;  %7174 = vtanh.f32 %v716_v40  ;;  %v1296_v44 = vadd.f32 %v1295_v61, %v8924_v41  ;;  %v6352_v48 = vpop.f32.mrb[52].mxu1  ;;  %v729_v51 = vadd.f32 %v6272_v54, %v8924_v41 }
 0x21a   : > { %v7155_v47 = vpop.eup %7154  ;;  %v1523_v25 = vadd.f32 %v1522_v39, %v1460_v52  ;;  %7176 = vtanh.f32 %v1304_v22  ;;  %v720_v23 = vpop.f32.mrb[53].mxu0  ;;  %v883_v53 = vmul.f32 %v7151_v33, %v9000_v19  ;;  %v1317_v49 = vadd.f32 %v6352_v48, %v8924_v41 }
 0x21b   : > { %v7157_v20 = vpop.eup %7156  ;;  %v942_v43 = vadd.f32 %v941_v21, %v879_v45  ;;  %v881_v35 = vmul.f32 %v7155_v47, %v9000_v19  ;;  %7178 = vtanh.f32 %v708_v27  ;;  %v1308_v50 = vpop.f32.mrb[53].mxu1  ;;  %v1465_v55 = vmul.f32 %v7153_v42, %v9000_v19 }
 0x21c   : > { %v7159_v57 = vpop.eup %7158  ;;  %v1524_v28 = vadd.f32 %v1523_v25, %v1461_v60  ;;  %v1463_v46 = vmul.f32 %v7157_v20, %v9000_v19  ;;  %7180 = vtanh.f32 %v1296_v44  ;;  %v6273_v30 = vpop.f32.mrb[54].mxu0  ;;  %v721_v29 = vadd.f32 %v720_v23, %v8924_v41 }
 0x21d   : > { %v7161_v34 = vpop.eup %7160  ;;  %v943_v26 = vadd.f32 %v942_v43, %v880_v32  ;;  %v6353_v45 = vpop.f32.mrb[54].mxu1  ;;  %7182 = vtanh.f32 %v729_v51  ;;  %v1309_v61 = vadd.f32 %v1308_v50, %v8924_v41  ;;  %v732_v38 = vadd.f32 %v6273_v30, %v8924_v41 }
 0x21e   : > { %v7163_v31 = vpop.eup %7162  ;;  %v1525_v56 = vadd.f32 %v1524_v28, %v1462_v0  ;;  %v723_v59 = vpop.f32.mrb[55].mxu0  ;;  %7184 = vtanh.f32 %v1317_v49  ;;  %v884_v39 = vmul.f32 %v7159_v57, %v9000_v19  ;;  %v1320_v40 = vadd.f32 %v6353_v45, %v8924_v41 }
 0x21f   : > { %v1311_v60 = vpop.f32.mrb[55].mxu1  ;;  %v7165_v24 = vpop.eup %7164  ;;  %v944_v36 = vadd.f32 %v943_v26, %v881_v35  ;;  %v882_v58 = vmul.f32 %v7163_v31, %v9000_v19  ;;  %7186 = vtanh.f32 %v721_v29  ;;  %v1466_v32 = vmul.f32 %v7161_v34, %v9000_v19 }
 0x220   : > { %v7167_v62 = vpop.eup %7166  ;;  %v1526_v63 = vadd.f32 %v1525_v56, %v1463_v46  ;;  %v1464_v37 = vmul.f32 %v7165_v24, %v9000_v19  ;;  %7188 = vtanh.f32 %v1309_v61  ;;  %v724_v22 = vadd.f32 %v723_v59, %v8924_v41  ;;  %v6276_v20 = vpop.f32.mrb[56].mxu0 }
 0x221   : > { %v7169_v33 = vpop.eup %7168  ;;  %v945_v52 = vadd.f32 %v944_v36, %v882_v58  ;;  %7190 = vtanh.f32 %v732_v38  ;;  %v1312_v27 = vadd.f32 %v1311_v60, %v8924_v41  ;;  %v6356_v43 = vpop.f32.mrb[56].mxu1  ;;  %v745_v48 = vadd.f32 %v6276_v20, %v8924_v41 }
 0x222   : > { %v7171_v42 = vpop.eup %7170  ;;  %v1527_v21 = vadd.f32 %v1526_v63, %v1464_v37  ;;  %7192 = vtanh.f32 %v1320_v40  ;;  %v736_v57 = vpop.f32.mrb[57].mxu0  ;;  %v887_v51 = vmul.f32 %v7167_v62, %v9000_v19  ;;  %v1333_v50 = vadd.f32 %v6356_v43, %v8924_v41 }
 0x223   : > { %v7173_v47 = vpop.eup %7172  ;;  %v946_v0 = vadd.f32 %v945_v52, %v883_v53  ;;  %v885_v25 = vmul.f32 %v7171_v42, %v9000_v19  ;;  %7194 = vtanh.f32 %v724_v22  ;;  %v1324_v28 = vpop.f32.mrb[57].mxu1  ;;  %v1469_v49 = vmul.f32 %v7169_v33, %v9000_v19 }
 0x224   : > { %v7175_v35 = vpop.eup %7174  ;;  %v1528_v44 = vadd.f32 %v1527_v21, %v1465_v55  ;;  %v1467_v54 = vmul.f32 %v7173_v47, %v9000_v19  ;;  %7196 = vtanh.f32 %v1312_v27  ;;  %v6277_v34 = vpop.f32.mrb[58].mxu0  ;;  %v737_v45 = vadd.f32 %v736_v57, %v8924_v41 }
 0x225   : > { %v7177_v46 = vpop.eup %7176  ;;  %v947_v23 = vadd.f32 %v946_v0, %v884_v39  ;;  %v6357_v53 = vpop.f32.mrb[58].mxu1  ;;  %7198 = vtanh.f32 %v745_v48  ;;  %v1325_v60 = vadd.f32 %v1324_v28, %v8924_v41  ;;  %v748_v61 = vadd.f32 %v6277_v34, %v8924_v41 }
 0x226   : > { %v7179_v26 = vpop.eup %7178  ;;  %v1529_v30 = vadd.f32 %v1528_v44, %v1466_v32  ;;  %v739_v31 = vpop.f32.mrb[59].mxu0  ;;  %7200 = vtanh.f32 %v1333_v50  ;;  %v888_v63 = vmul.f32 %v7175_v35, %v9000_v19  ;;  %v1336_v38 = vadd.f32 %v6357_v53, %v8924_v41 }
 0x227   : > { %v1327_v55 = vpop.f32.mrb[59].mxu1  ;;  %v7181_v56 = vpop.eup %7180  ;;  %v948_v29 = vadd.f32 %v947_v23, %v885_v25  ;;  %v886_v59 = vmul.f32 %v7179_v26, %v9000_v19  ;;  %7202 = vtanh.f32 %v737_v45  ;;  %v1470_v39 = vmul.f32 %v7177_v46, %v9000_v19 }
 0x228   : > { %v7183_v24 = vpop.eup %7182  ;;  %v1530_v36 = vadd.f32 %v1529_v30, %v1467_v54  ;;  %v1468_v58 = vmul.f32 %v7181_v56, %v9000_v19  ;;  %7204 = vtanh.f32 %v1325_v60  ;;  %v740_v40 = vadd.f32 %v739_v31, %v8924_v41  ;;  %v6280_v47 = vpop.f32.mrb[60].mxu0 }
 0x229   : > { %v7185_v62 = vpop.eup %7184  ;;  %v949_v37 = vadd.f32 %v948_v29, %v886_v59  ;;  %7206 = vtanh.f32 %v748_v61  ;;  %v1328_v22 = vadd.f32 %v1327_v55, %v8924_v41  ;;  %v6360_v0 = vpop.f32.mrb[60].mxu1  ;;  %v761_v43 = vadd.f32 %v6280_v47, %v8924_v41 }
 0x22a   : > { %v7187_v33 = vpop.eup %7186  ;;  %v1531_v52 = vadd.f32 %v1530_v36, %v1468_v58  ;;  %7208 = vtanh.f32 %v1336_v38  ;;  %v752_v35 = vpop.f32.mrb[61].mxu0  ;;  %v891_v48 = vmul.f32 %v7183_v24, %v9000_v19  ;;  %v1473_v23 = vmul.f32 %v7185_v62, %v9000_v19 }
 0x22b   : > { %v7189_v42 = vpop.eup %7188  ;;  %v950_v32 = vadd.f32 %v949_v37, %v887_v51  ;;  %v889_v21 = vmul.f32 %v7187_v33, %v9000_v19  ;;  %7210 = vtanh.f32 %v740_v40  ;;  %v1340_v44 = vpop.f32.mrb[61].mxu1  ;;  %v1349_v34 = vadd.f32 %v6360_v0, %v8924_v41 }
 0x22c   : > { %v7191_v25 = vpop.eup %7190  ;;  %v1532_v27 = vadd.f32 %v1531_v52, %v1469_v49  ;;  %v1471_v20 = vmul.f32 %v7189_v42, %v9000_v19  ;;  %7212 = vtanh.f32 %v1328_v22  ;;  %v6281_v28 = vpop.f32.mrb[62].mxu0  ;;  %v753_v53 = vadd.f32 %v752_v35, %v8924_v41 }
 0x22d   : > { %v7193_v54 = vpop.eup %7192  ;;  %v951_v57 = vadd.f32 %v950_v32, %v888_v63  ;;  %v6361_v46 = vpop.f32.mrb[62].mxu1  ;;  %7214 = vtanh.f32 %v761_v43  ;;  %v1341_v55 = vadd.f32 %v1340_v44, %v8924_v41  ;;  %v764_v60 = vadd.f32 %v6281_v28, %v8924_v41 }
 0x22e   : > { %v7195_v51 = vpop.eup %7194  ;;  %v1533_v50 = vadd.f32 %v1532_v27, %v1470_v39  ;;  %v755_v26 = vpop.f32.mrb[63].mxu0  ;;  %7216 = vtanh.f32 %v753_v53  ;;  %v892_v36 = vmul.f32 %v7191_v25, %v9000_v19  ;;  %v1474_v58 = vmul.f32 %v7193_v54, %v9000_v19 }
 0x22f   : > { %v1343_v49 = vpop.f32.mrb[63].mxu1  ;;  %v7197_v30 = vpop.eup %7196  ;;  %v952_v45 = vadd.f32 %v951_v57, %v889_v21  ;;  %v890_v31 = vmul.f32 %v7195_v51, %v9000_v19  ;;  %7218 = vtanh.f32 %v1341_v55  ;;  %v1352_v37 = vadd.f32 %v6361_v46, %v8924_v41 }
 0x230   : > { %v7199_v56 = vpop.eup %7198  ;;  %v1534_v29 = vadd.f32 %v1533_v50, %v1471_v20  ;;  %v1472_v59 = vmul.f32 %v7197_v30, %v9000_v19  ;;  %7220 = vtanh.f32 %v1349_v34  ;;  %v756_v38 = vadd.f32 %v755_v26, %v8924_v41  ;;  %v6380_v42 = vpop.f32.mrb[64].mxu0 }
 0x231   : > { %v7201_v24 = vpop.eup %7200  ;;  %v953_v61 = vadd.f32 %v952_v45, %v890_v31  ;;  %7222 = vtanh.f32 %v764_v60  ;;  %v1344_v40 = vadd.f32 %v1343_v49, %v8924_v41  ;;  %v6460_v32 = vpop.f32.mrb[64].mxu1  ;;  %v895_v47 = vmul.f32 %v7199_v56, %v9000_v19 }
 0x232   : > { %v7203_v62 = vpop.eup %7202  ;;  %v1535_v63 = vadd.f32 %v1534_v29, %v1472_v59  ;;  %7224 = vtanh.f32 %v756_v38  ;;  %v1682_v25 = vpop.f32.mrb[65].mxu0  ;;  %v1477_v43 = vmul.f32 %v7201_v24, %v9000_v19  ;;  %v1691_v44 = vadd.f32 %v6380_v42, %v8924_v41 }
 0x233   : > { %v7205_v33 = vpop.eup %7204  ;;  %v954_v39 = vadd.f32 %v953_v61, %v891_v48  ;;  %v893_v52 = vmul.f32 %v7203_v62, %v9000_v19  ;;  %v2264_v27 = vpop.f32.mrb[65].mxu1  ;;  %7226 = vtanh.f32 %v1344_v40  ;;  %v2273_v46 = vadd.f32 %v6460_v32, %v8924_v41 }
 0x234   : > { %v7207_v21 = vpop.eup %7206  ;;  %v1536_v22 = vadd.f32 %v1535_v63, %v1473_v23  ;;  %v1475_v0 = vmul.f32 %v7205_v33, %v9000_v19  ;;  %v6381_v54 = vpop.f32.mrb[66].mxu0  ;;  %7228 = vtanh.f32 %v1352_v37  ;;  %v1683_v51 = vadd.f32 %v1682_v25, %v8924_v41 }
 0x235   : > { %v7209_v20 = vpop.eup %7208  ;;  %v955_v35 = vadd.f32 %v954_v39, %v892_v36  ;;  %v6461_v48 = vpop.f32.mrb[66].mxu1  ;;  %7230 = vtanh.f32 %v1691_v44  ;;  %v2265_v49 = vadd.f32 %v2264_v27, %v8924_v41  ;;  %v1694_v31 = vadd.f32 %v6381_v54, %v8924_v41 }
 0x236   : > { %v7211_v57 = vpop.eup %7210  ;;  %v1537_v28 = vadd.f32 %v1536_v22, %v1474_v58  ;;  %v1685_v23 = vpop.f32.mrb[67].mxu0  ;;  %7232 = vtanh.f32 %v2273_v46  ;;  %v896_v56 = vmul.f32 %v7207_v21, %v9000_v19  ;;  %v2276_v59 = vadd.f32 %v6461_v48, %v8924_v41 }
 0x237   : > { %v2267_v50 = vpop.f32.mrb[67].mxu1  ;;  %v7213_v34 = vpop.eup %7212  ;;  %v956_v53 = vadd.f32 %v955_v35, %v893_v52  ;;  %v894_v26 = vmul.f32 %v7211_v57, %v9000_v19  ;;  %7234 = vtanh.f32 %v1683_v51  ;;  %v1478_v24 = vmul.f32 %v7209_v20, %v9000_v19 }
 0x238   : > { %v1538_v30 = vadd.f32 %v1537_v28, %v1475_v0  ;;  %v1476_v45 = vmul.f32 %v7213_v34, %v9000_v19  ;;  %v7215_v55 = vpop.eup %7214  ;;  %7236 = vtanh.f32 %v2265_v49  ;;  %v1686_v58 = vadd.f32 %v1685_v23, %v8924_v41  ;;  %v6384_v38 = vpop.f32.mrb[68].mxu0 }
 0x239   : > { %v957_v29 = vadd.f32 %v956_v53, %v894_v26  ;;  %v7217_v60 = vpop.eup %7216  ;;  %7238 = vtanh.f32 %v1694_v31  ;;  %v2268_v37 = vadd.f32 %v2267_v50, %v8924_v41  ;;  %v6464_v33 = vpop.f32.mrb[68].mxu1  ;;  %v1707_v42 = vadd.f32 %v6384_v38, %v8924_v41 }
 0x23a   : > { %v1539_v36 = vadd.f32 %v1538_v30, %v1476_v45  ;;  %v7219_v61 = vpop.eup %7218  ;;  %v897_v63 = vmul.f32 %v7217_v60, %v9000_v19  ;;  %7240 = vtanh.f32 %v2276_v59  ;;  %v1698_v32 = vpop.f32.mrb[69].mxu0  ;;  %v899_v35 = vmul.f32 %v7215_v55, %v9000_v19 }
 0x23b   : > { %v958_v62 = vadd.f32 %v957_v29, %v895_v47  ;;  %v7221_v39 = vpop.eup %7220  ;;  %v1479_v40 = vmul.f32 %v7219_v61, %v9000_v19  ;;  %v2280_v21 = vpop.f32.mrb[69].mxu1  ;;  %7242 = vtanh.f32 %v1686_v58  ;;  %v2289_v47 = vadd.f32 %v6464_v33, %v8924_v41 }
 0x23c   : > { %v1540_v52 = vadd.f32 %v1539_v36, %v1477_v43  ;;  %v7223_v22 = vpop.eup %7222  ;;  %v6385_v25 = vpop.f32.mrb[70].mxu0  ;;  %7244 = vtanh.f32 %v2268_v37  ;;  %v1699_v43 = vadd.f32 %v1698_v32, %v8924_v41  ;;  %v2281_v51 = vadd.f32 %v2280_v21, %v8924_v41 }
 0x23d   : > { %v959_v0 = vadd.f32 %v958_v62, %v896_v56  ;;  %v6465_v27 = vpop.f32.mrb[70].mxu1  ;;  %v7225_v20 = vpop.eup %7224  ;;  %7246 = vtanh.f32 %v1707_v42  ;;  %v1710_v53 = vadd.f32 %v6385_v25, %v8924_v41  ;;  %v1481_v55 = vmul.f32 %v7221_v39, %v9000_v19 }
 0x23e   : > { %v1541_v44 = vadd.f32 %v1540_v52, %v1478_v24  ;;  %v1701_v54 = vpop.f32.mrb[71].mxu0  ;;  %v2283_v48 = vpop.f32.mrb[71].mxu1  ;;  %v898_v46 = vmul.f32 %v7225_v20, %v9000_v19  ;;  %7248 = vtanh.f32 %v2289_v47  ;;  %v2292_v30 = vadd.f32 %v6465_v27, %v8924_v41 }
 0x23f   : > { %v7227_v57 = vpop.eup %7226  ;;  %v960_v28 = vadd.f32 %v959_v0, %v897_v63  ;;  %7250 = vtanh.f32 %v1699_v43  ;;  %v1702_v45 = vadd.f32 %v1701_v54, %v8924_v41  ;;  %v2284_v29 = vadd.f32 %v2283_v48, %v8924_v41 }
 0x240   : > { %v7229_v23 = vpop.eup %7228  ;;  %v1542_v50 = vadd.f32 %v1541_v44, %v1479_v40  ;;  %v1480_v34 = vmul.f32 %v7227_v57, %v9000_v19  ;;  %7252 = vtanh.f32 %v2281_v51  ;;  %v900_v60 = vmul.f32 %v7223_v22, %v9000_v19  ;;  %v6388_v36 = vpop.f32.mrb[72].mxu0 }
 0x241   : > { %v7231_v26 = vpop.eup %7230  ;;  %v961_v49 = vadd.f32 %v960_v28, %v898_v46  ;;  %7254 = vtanh.f32 %v1710_v53  ;;  %v6468_v58 = vpop.f32.mrb[72].mxu1  ;;  %v1482_v62 = vmul.f32 %v7229_v23, %v9000_v19  ;;  %v1723_v37 = vadd.f32 %v6388_v36, %v8924_v41 }
 0x242   : > { %v7233_v31 = vpop.eup %7232  ;;  %v1543_v56 = vadd.f32 %v1542_v50, %v1480_v34  ;;  %7256 = vtanh.f32 %v2292_v30  ;;  %v1714_v38 = vpop.f32.mrb[73].mxu0  ;;  %v2003_v40 = vmul.f32 %v7231_v26, %v9000_v19  ;;  %v2305_v54 = vadd.f32 %v6468_v58, %v8924_v41 }
 0x243   : > { %v7235_v59 = vpop.eup %7234  ;;  %v962_v24 = vadd.f32 %v961_v49, %v899_v35  ;;  %v2296_v33 = vpop.f32.mrb[73].mxu1  ;;  %v2585_v42 = vmul.f32 %v7233_v31, %v9000_v19  ;;  %7258 = vtanh.f32 %v1702_v45  ;;  %v1715_v25 = vadd.f32 %v1714_v38, %v8924_v41 }
 0x244   : > { %v7237_v61 = vpop.eup %7236  ;;  %v1544_v63 = vadd.f32 %v1543_v56, %v1481_v55  ;;  %v6389_v32 = vpop.f32.mrb[74].mxu0  ;;  %v2001_v47 = vmul.f32 %v7235_v59, %v9000_v19  ;;  %7260 = vtanh.f32 %v2284_v29  ;;  %v2297_v48 = vadd.f32 %v2296_v33, %v8924_v41 }
 0x245   : > { %v7239_v39 = vpop.eup %7238  ;;  %v963_v52 = vadd.f32 %v962_v24, %v900_v60  ;;  %v6469_v21 = vpop.f32.mrb[74].mxu1  ;;  %v2583_v43 = vmul.f32 %v7237_v61, %v9000_v19  ;;  %7262 = vtanh.f32 %v1723_v37  ;;  %v1726_v45 = vadd.f32 %v6389_v32, %v8924_v41 }
 0x246   : > { %v7241_v22 = vpop.eup %7240  ;;  %v1545_v0 = vadd.f32 %v1544_v63, %v1482_v62  ;;  %v1717_v27 = vpop.f32.mrb[75].mxu0  ;;  %v2004_v46 = vmul.f32 %v7239_v39, %v9000_v19  ;;  %7264 = vtanh.f32 %v1715_v25  ;;  %v2308_v29 = vadd.f32 %v6469_v21, %v8924_v41 }
 0x247   : > { %v2299_v20 = vpop.f32.mrb[75].mxu1  ;;  %v7243_v35 = vpop.eup %7242  ;;  %v964_v44 = vrot.slane %v963_v52, 4  ;;  %v2586_v34 = vmul.f32 %v7241_v22, %v9000_v19  ;;  %7266 = vtanh.f32 %v2297_v48  ;;  %v1718_v32 = vadd.f32 %v1717_v27, %v8924_v41 }
 0x248   : > { %v7245_v57 = vpop.eup %7244  ;;  %v1546_v28 = vrot.slane %v1545_v0, 4  ;;  %v2002_v51 = vmul.f32 %v7243_v35, %v9000_v19  ;;  %7268 = vtanh.f32 %v2305_v54  ;;  %v6392_v59 = vpop.f32.mrb[76].mxu0 }
 0x249   : > { %v7247_v23 = vpop.eup %7246  ;;  %v965_v50 = vadd.f32 %v964_v44, %v963_v52  ;;  %v2584_v53 = vmul.f32 %v7245_v57, %v9000_v19  ;;  %v6472_v60 = vpop.f32.mrb[76].mxu1  ;;  %7270 = vtanh.f32 %v1726_v45 }
 0x24a   : > { %v7249_v26 = vpop.eup %7248  ;;  %v1547_v49 = vadd.f32 %v1546_v28, %v1545_v0  ;;  %v2065_v30 = vadd.f32 %v2002_v51, %v2001_v47  ;;  %v2007_v61 = vmul.f32 %v7247_v23, %v9000_v19  ;;  %v1730_v63 = vpop.f32.mrb[77].mxu0  ;;  %7272 = vtanh.f32 %v1718_v32 }
 0x24b   : > { %v7251_v31 = vpop.eup %7250  ;;  %v966_v55 = vrot.slane %v965_v50, 2  ;;  %v2647_v56 = vadd.f32 %v2584_v53, %v2583_v43  ;;  %v2312_v37 = vpop.f32.mrb[77].mxu1  ;;  %v2589_v48 = vmul.f32 %v7249_v26, %v9000_v19  ;;  %v2321_v26 = vadd.f32 %v6472_v60, %v8924_v41 }
 0x24c   : > { %v7253_v24 = vpop.eup %7252  ;;  %v1548_v36 = vrot.slane %v1547_v49, 2  ;;  %v2066_v58 = vadd.f32 %v2065_v30, %v2003_v40  ;;  %v2005_v62 = vmul.f32 %v7251_v31, %v9000_v19  ;;  %v6393_v22 = vpop.f32.mrb[78].mxu0  ;;  %v2300_v40 = vadd.f32 %v2299_v20, %v8924_v41 }
 0x24d   : > { %v7255_v38 = vpop.eup %7254  ;;  %v967_v33 = vadd.f32 %v966_v55, %v965_v50  ;;  %v2648_v39 = vadd.f32 %v2647_v56, %v2585_v42  ;;  %v2587_v52 = vmul.f32 %v7253_v24, %v9000_v19  ;;  %v6473_v21 = vpop.f32.mrb[78].mxu1  ;;  %v1739_v20 = vadd.f32 %v6392_v59, %v8924_v41 }
 0x24e   : > { %v7257_v0 = vpop.eup %7256  ;;  %v1549_v47 = vadd.f32 %v1548_v36, %v1547_v49  ;;  %v2067_v25 = vadd.f32 %v2066_v58, %v2004_v46  ;;  %v1733_v35 = vpop.f32.mrb[79].mxu0  ;;  %7274 = vtanh.f32 %v2300_v40  ;;  %v2008_v45 = vmul.f32 %v7255_v38, %v9000_v19 }
 0x24f   : > { %v2315_v44 = vpop.f32.mrb[79].mxu1  ;;  %v7259_v43 = vpop.eup %7258  ;;  %v968_v54 = vrot.slane %v967_v33, 1  ;;  %v2649_v57 = vadd.f32 %v2648_v39, %v2586_v34  ;;  %7276 = vtanh.f32 %v2308_v29  ;;  %v2590_v31 = vmul.f32 %v7257_v0, %v9000_v19 }
 0x250   : > { %v7261_v42 = vpop.eup %7260  ;;  %v1550_v28 = vrot.slane %v1549_v47, 1  ;;  %v2068_v51 = vadd.f32 %v2067_v25, %v2005_v62  ;;  %v2006_v27 = vmul.f32 %v7259_v43, %v9000_v19  ;;  %v1731_v56 = vadd.f32 %v1730_v63, %v8924_v41  ;;  %v6396_v24 = vpop.f32.mrb[80].mxu0 }
 0x251   : > { %v969_v23 = vadd.f32 %v968_v54, %v967_v33  ;;  %v2650_v50 = vadd.f32 %v2649_v57, %v2587_v52  ;;  %v2588_v46 = vmul.f32 %v7261_v42, %v9000_v19  ;;  %v7263_v53 = vpop.eup %7262  ;;  %v6476_v36 = vpop.f32.mrb[80].mxu1  ;;  %7278 = vtanh.f32 %v1739_v20 }
 0x252   : > { %v1551_v49 = vadd.f32 %v1550_v28, %v1549_v47  ;;  %v2069_v30 = vadd.f32 %v2068_v51, %v2006_v27  ;;  %v7265_v34 = vpop.eup %7264  ;;  %v1746_v29 = vpop.f32.mrb[81].mxu0  ;;  %7280 = vtanh.f32 %v1731_v56  ;;  %v2313_v32 = vadd.f32 %v2312_v37, %v8924_v41 }
 0x253   : > { %v2651_v55 = vadd.f32 %v2650_v50, %v2588_v46  ;;  %v7267_v58 = vpop.eup %7266  ;;  %v2009_v33 = vmul.f32 %v7265_v34, %v9000_v19  ;;  %v2328_v60 = vpop.f32.mrb[81].mxu1  ;;  %7282 = vtanh.f32 %v2321_v26  ;;  %v1742_v25 = vadd.f32 %v6393_v22, %v8924_v41 }
 0x254   : > { %v9351_v62 = vsel %vm2717_vm0, %v969_v23, %v1551_v49  ;;  %v2070_v59 = vadd.f32 %v2069_v30, %v2007_v61  ;;  %v7269_v39 = vpop.eup %7268  ;;  %v2591_v38 = vmul.f32 %v7267_v58, %v9000_v19  ;;  %v6397_v63 = vpop.f32.mrb[82].mxu0  ;;  %v2324_v61 = vadd.f32 %v6473_v21, %v8924_v41 }
 0x255   : > { %v2652_v52 = vadd.f32 %v2651_v55, %v2589_v48  ;;  %v6477_v0 = vpop.f32.mrb[82].mxu1  ;;  %v1749_v40 = vpop.f32.mrb[83].mxu0  ;;  %7284 = vtanh.f32 %v2313_v32  ;;  %v1734_v57 = vadd.f32 %v1733_v35, %v8924_v41  ;;  %v2316_v28 = vadd.f32 %v2315_v44, %v8924_v41 }
 0x256   : > { %v2071_v47 = vadd.f32 %v2070_v59, %v2008_v45  ;;  %v2331_v43 = vpop.f32.mrb[83].mxu1  ;;  %v7271_v48 = vpop.eup %7270  ;;  %7286 = vtanh.f32 %v1742_v25  ;;  %v1755_v37 = vadd.f32 %v6396_v24, %v8924_v41  ;;  %v2337_v22 = vadd.f32 %v6476_v36, %v8924_v41 }
 0x257   : > { %v2653_v54 = vadd.f32 %v2652_v52, %v2590_v31  ;;  %v7273_v51 = vpop.eup %7272  ;;  %7288 = vtanh.f32 %v2324_v61  ;;  %v1747_v50 = vadd.f32 %v1746_v29, %v8924_v41  ;;  %v2329_v46 = vadd.f32 %v2328_v60, %v8924_v41 }
 0x258   : > { %v2072_v42 = vadd.f32 %v2071_v47, %v2009_v33  ;;  %v7275_v23 = vpop.eup %7274  ;;  %v2010_v21 = vmul.f32 %v7273_v51, %v9000_v19  ;;  %7290 = vtanh.f32 %v1734_v57  ;;  %v6400_v20 = vpop.f32.mrb[84].mxu0  ;;  %v2011_v30 = vmul.f32 %v7263_v53, %v9000_v19 }
 0x259   : > { %v2654_v27 = vadd.f32 %v2653_v54, %v2591_v38  ;;  %v2592_v35 = vmul.f32 %v7275_v23, %v9000_v19  ;;  %7292 = vtanh.f32 %v2316_v28  ;;  %v6480_v44 = vpop.f32.mrb[84].mxu1  ;;  %v7277_v49 = vpop.eup %7276  ;;  %v1758_v34 = vadd.f32 %v6397_v63, %v8924_v41 }
 0x25a   : > { %v2073_v26 = vadd.f32 %v2072_v42, %v2010_v21  ;;  %7294 = vtanh.f32 %v1755_v37  ;;  %v1762_v45 = vpop.f32.mrb[85].mxu0  ;;  %v2344_v31 = vpop.f32.mrb[85].mxu1  ;;  %v2593_v55 = vmul.f32 %v7269_v39, %v9000_v19  ;;  %v2340_v24 = vadd.f32 %v6477_v0, %v8924_v41 }
 0x25b   : > { %v2655_v56 = vadd.f32 %v2654_v27, %v2592_v35  ;;  %7296 = vtanh.f32 %v2337_v22  ;;  %v6401_v36 = vpop.f32.mrb[86].mxu0  ;;  %v6481_v58 = vpop.f32.mrb[86].mxu1  ;;  %v2012_v33 = vmul.f32 %v7271_v48, %v9000_v19  ;;  %v1750_v53 = vadd.f32 %v1749_v40, %v8924_v41 }
 0x25c   : > { %v7279_v59 = vpop.eup %7278  ;;  %v2074_v29 = vadd.f32 %v2073_v26, %v2011_v30  ;;  %7298 = vtanh.f32 %v1747_v50  ;;  %v1765_v60 = vpop.f32.mrb[87].mxu0  ;;  %v2594_v32 = vmul.f32 %v7277_v49, %v9000_v19  ;;  %v2332_v39 = vadd.f32 %v2331_v43, %v8924_v41 }
 0x25d   : > { %v2347_v52 = vpop.f32.mrb[87].mxu1  ;;  %v7281_v38 = vpop.eup %7280  ;;  %v2656_v63 = vadd.f32 %v2655_v56, %v2593_v55  ;;  %7300 = vtanh.f32 %v2329_v46  ;;  %v1771_v61 = vadd.f32 %v6400_v20, %v8924_v41  ;;  %v2353_v40 = vadd.f32 %v6480_v44, %v8924_v41 }
 0x25e   : > { %v7283_v47 = vpop.eup %7282  ;;  %v2013_v0 = vmul.f32 %v7281_v38, %v9000_v19  ;;  %v2075_v25 = vadd.f32 %v2074_v29, %v2012_v33  ;;  %7302 = vtanh.f32 %v1758_v34  ;;  %v1763_v37 = vadd.f32 %v1762_v45, %v8924_v41 }
 0x25f   : > { %v7285_v54 = vpop.eup %7284  ;;  %v2657_v57 = vadd.f32 %v2656_v63, %v2594_v32  ;;  %7304 = vtanh.f32 %v2340_v24  ;;  %v2345_v51 = vadd.f32 %v2344_v31, %v8924_v41  ;;  %v1774_v50 = vadd.f32 %v6401_v36, %v8924_v41 }
 0x260   : > { %v7287_v48 = vpop.eup %7286  ;;  %v2076_v42 = vadd.f32 %v2075_v25, %v2013_v0  ;;  %v2595_v28 = vmul.f32 %v7285_v54, %v9000_v19  ;;  %7306 = vtanh.f32 %v1750_v53  ;;  %v6404_v27 = vpop.f32.mrb[88].mxu0  ;;  %v2015_v44 = vmul.f32 %v7279_v59, %v9000_v19 }
 0x261   : > { %v7289_v43 = vpop.eup %7288  ;;  %7308 = vtanh.f32 %v2332_v39  ;;  %v6484_v22 = vpop.f32.mrb[88].mxu1  ;;  %v2356_v30 = vadd.f32 %v6481_v58, %v8924_v41  ;;  %v2597_v31 = vmul.f32 %v7283_v47, %v9000_v19  ;;  %v1766_v56 = vadd.f32 %v1765_v60, %v8924_v41 }
 0x262   : > { %v7291_v23 = vpop.eup %7290  ;;  %v2658_v21 = vadd.f32 %v2657_v57, %v2595_v28  ;;  %7310 = vtanh.f32 %v1771_v61  ;;  %v1778_v35 = vpop.f32.mrb[89].mxu0  ;;  %v2016_v59 = vmul.f32 %v7287_v48, %v9000_v19  ;;  %v2348_v53 = vadd.f32 %v2347_v52, %v8924_v41 }
 0x263   : > { %v2360_v46 = vpop.f32.mrb[89].mxu1  ;;  %v7293_v20 = vpop.eup %7292  ;;  %v2014_v49 = vmul.f32 %v7291_v23, %v9000_v19  ;;  %7312 = vtanh.f32 %v2353_v40  ;;  %v2598_v38 = vmul.f32 %v7289_v43, %v9000_v19  ;;  %v1787_v63 = vadd.f32 %v6404_v27, %v8924_v41 }
 0x264   : > { %v6405_v26 = vpop.f32.mrb[90].mxu0  ;;  %v6485_v34 = vpop.f32.mrb[90].mxu1  ;;  %v2596_v55 = vmul.f32 %v7293_v20, %v9000_v19  ;;  %7314 = vtanh.f32 %v1763_v37  ;;  %v2369_v0 = vadd.f32 %v6484_v22, %v8924_v41  ;;  %v1779_v52 = vadd.f32 %v1778_v35, %v8924_v41 }
 0x265   : > { %v7295_v45 = vpop.eup %7294  ;;  %v1781_v24 = vpop.f32.mrb[91].mxu0  ;;  %v2077_v29 = vadd.f32 %v2076_v42, %v2014_v49  ;;  %7316 = vtanh.f32 %v2345_v51  ;;  %v2361_v48 = vadd.f32 %v2360_v46, %v8924_v41  ;;  %v1790_v42 = vadd.f32 %v6405_v26, %v8924_v41 }
 0x266   : > { %v2363_v36 = vpop.f32.mrb[91].mxu1  ;;  %v7297_v33 = vpop.eup %7296  ;;  %v2659_v32 = vadd.f32 %v2658_v21, %v2596_v55  ;;  %7318 = vtanh.f32 %v1774_v50  ;;  %v2019_v51 = vmul.f32 %v7295_v45, %v9000_v19  ;;  %v2372_v22 = vadd.f32 %v6485_v34, %v8924_v41 }
 0x267   : > { %v7299_v58 = vpop.eup %7298  ;;  %v2078_v47 = vadd.f32 %v2077_v29, %v2015_v44  ;;  %7320 = vtanh.f32 %v2356_v30  ;;  %v2601_v35 = vmul.f32 %v7297_v33, %v9000_v19  ;;  %v1782_v45 = vadd.f32 %v1781_v24, %v8924_v41 }
 0x268   : > { %v7301_v39 = vpop.eup %7300  ;;  %v2017_v60 = vmul.f32 %v7299_v58, %v9000_v19  ;;  %v2660_v61 = vadd.f32 %v2659_v32, %v2597_v31  ;;  %7322 = vtanh.f32 %v1766_v56  ;;  %v6408_v28 = vpop.f32.mrb[92].mxu0  ;;  %v2364_v33 = vadd.f32 %v2363_v36, %v8924_v41 }
 0x269   : > { %v7303_v25 = vpop.eup %7302  ;;  %v2599_v54 = vmul.f32 %v7301_v39, %v9000_v19  ;;  %v2079_v40 = vadd.f32 %v2078_v47, %v2016_v59  ;;  %7324 = vtanh.f32 %v2348_v53  ;;  %v6488_v37 = vpop.f32.mrb[92].mxu1  ;;  %v1803_v32 = vadd.f32 %v6408_v28, %v8924_v41 }
 0x26a   : > { %v7305_v57 = vpop.eup %7304  ;;  %v2661_v27 = vadd.f32 %v2660_v61, %v2598_v38  ;;  %7326 = vtanh.f32 %v1787_v63  ;;  %v1794_v23 = vpop.f32.mrb[93].mxu0  ;;  %v2020_v59 = vmul.f32 %v7303_v25, %v9000_v19  ;;  %v2385_v47 = vadd.f32 %v6488_v37, %v8924_v41 }
 0x26b   : > { %v7307_v43 = vpop.eup %7306  ;;  %v2376_v21 = vpop.f32.mrb[93].mxu1  ;;  %v2080_v20 = vadd.f32 %v2079_v40, %v2017_v60  ;;  %7328 = vtanh.f32 %v2369_v0  ;;  %v2602_v58 = vmul.f32 %v7305_v57, %v9000_v19  ;;  %v1795_v36 = vadd.f32 %v1794_v23, %v8924_v41 }
 0x26c   : > { %v7309_v50 = vpop.eup %7308  ;;  %v2018_v44 = vmul.f32 %v7307_v43, %v9000_v19  ;;  %v6409_v46 = vpop.f32.mrb[94].mxu0  ;;  %v2662_v26 = vadd.f32 %v2661_v27, %v2599_v54  ;;  %7330 = vtanh.f32 %v1779_v52  ;;  %v2377_v57 = vadd.f32 %v2376_v21, %v8924_v41 }
 0x26d   : > { %v6489_v49 = vpop.f32.mrb[94].mxu1  ;;  %v7311_v30 = vpop.eup %7310  ;;  %v2600_v31 = vmul.f32 %v7309_v50, %v9000_v19  ;;  %7332 = vtanh.f32 %v2361_v48  ;;  %v1806_v43 = vadd.f32 %v6409_v46, %v8924_v41 }
 0x26e   : > { %v1797_v55 = vpop.f32.mrb[95].mxu0  ;;  %v2379_v34 = vpop.f32.mrb[95].mxu1  ;;  %v2081_v29 = vadd.f32 %v2080_v20, %v2018_v44  ;;  %7334 = vtanh.f32 %v1790_v42  ;;  %v2023_v54 = vmul.f32 %v7311_v30, %v9000_v19 }
 0x26f   : > { %v7313_v56 = vpop.eup %7312  ;;  %v2663_v38 = vadd.f32 %v2662_v26, %v2600_v31  ;;  %7336 = vtanh.f32 %v2372_v22  ;;  %v1798_v31 = vadd.f32 %v1797_v55, %v8924_v41 }
 0x270   : > { %v7315_v53 = vpop.eup %7314  ;;  %v2082_v39 = vadd.f32 %v2081_v29, %v2019_v51  ;;  %7338 = vtanh.f32 %v1782_v45  ;;  %v6412_v40 = vpop.f32.mrb[96].mxu0  ;;  %v2605_v28 = vmul.f32 %v7313_v56, %v9000_v19 }
 0x271   : > { %v7317_v63 = vpop.eup %7316  ;;  %v2021_v24 = vmul.f32 %v7315_v53, %v9000_v19  ;;  %v2664_v0 = vadd.f32 %v2663_v38, %v2601_v35  ;;  %7340 = vtanh.f32 %v2364_v33  ;;  %v6492_v48 = vpop.f32.mrb[96].mxu1  ;;  %v2388_v35 = vadd.f32 %v6489_v49, %v8924_v41 }
 0x272   : > { %v7319_v60 = vpop.eup %7318  ;;  %v2603_v25 = vmul.f32 %v7317_v63, %v9000_v19  ;;  %v2083_v52 = vadd.f32 %v2082_v39, %v2020_v59  ;;  %7342 = vtanh.f32 %v1803_v32  ;;  %v1810_v51 = vpop.f32.mrb[97].mxu0  ;;  %v2380_v33 = vadd.f32 %v2379_v34, %v8924_v41 }
 0x273   : > { %v7321_v61 = vpop.eup %7320  ;;  %v2665_v37 = vadd.f32 %v2664_v0, %v2602_v58  ;;  %v2392_v27 = vpop.f32.mrb[97].mxu1  ;;  %7344 = vtanh.f32 %v2385_v47  ;;  %v2024_v59 = vmul.f32 %v7319_v60, %v9000_v19  ;;  %v1819_v38 = vadd.f32 %v6412_v40, %v8924_v41 }
 0x274   : > { %v7323_v42 = vpop.eup %7322  ;;  %v2084_v23 = vadd.f32 %v2083_v52, %v2021_v24  ;;  %v6413_v20 = vpop.f32.mrb[98].mxu0  ;;  %7346 = vtanh.f32 %v1795_v36  ;;  %v2606_v49 = vmul.f32 %v7321_v61, %v9000_v19  ;;  %v2401_v39 = vadd.f32 %v6492_v48, %v8924_v41 }
 0x275   : > { %v7325_v22 = vpop.eup %7324  ;;  %v2022_v50 = vmul.f32 %v7323_v42, %v9000_v19  ;;  %v6493_v21 = vpop.f32.mrb[98].mxu1  ;;  %v2666_v30 = vadd.f32 %v2665_v37, %v2603_v25  ;;  %7348 = vtanh.f32 %v2377_v57  ;;  %v1811_v34 = vadd.f32 %v1810_v51, %v8924_v41 }
 0x276   : > { %v7327_v44 = vpop.eup %7326  ;;  %v2604_v26 = vmul.f32 %v7325_v22, %v9000_v19  ;;  %v1813_v45 = vpop.f32.mrb[99].mxu0  ;;  %7350 = vtanh.f32 %v1806_v43  ;;  %v2393_v61 = vadd.f32 %v2392_v27, %v8924_v41  ;;  %v1822_v42 = vadd.f32 %v6413_v20, %v8924_v41 }
 0x277   : > { %v2395_v46 = vpop.f32.mrb[99].mxu1  ;;  %v7329_v56 = vpop.eup %7328  ;;  %v2085_v29 = vadd.f32 %v2084_v23, %v2022_v50  ;;  %7352 = vtanh.f32 %v2388_v35  ;;  %v2027_v25 = vmul.f32 %v7327_v44, %v9000_v19  ;;  %v2404_v23 = vadd.f32 %v6493_v21, %v8924_v41 }
 0x278   : > { %v7331_v53 = vpop.eup %7330  ;;  %v2667_v58 = vadd.f32 %v2666_v30, %v2604_v26  ;;  %7354 = vtanh.f32 %v1798_v31  ;;  %v6496_v52 = vpop.f32.mrb[100].mxu1  ;;  %v2609_v40 = vmul.f32 %v7329_v56, %v9000_v19  ;;  %v1814_v26 = vadd.f32 %v1813_v45, %v8924_v41 }
 0x279   : > { %v7333_v32 = vpop.eup %7332  ;;  %v2086_v63 = vadd.f32 %v2085_v29, %v2023_v54  ;;  %v2025_v55 = vmul.f32 %v7331_v53, %v9000_v19  ;;  %7356 = vtanh.f32 %v2380_v33  ;;  %v6416_v54 = vpop.f32.mrb[100].mxu0  ;;  %v2396_v33 = vadd.f32 %v2395_v46, %v8924_v41 }
 0x27a   : > { %v7335_v24 = vpop.eup %7334  ;;  %v2668_v47 = vadd.f32 %v2667_v58, %v2605_v28  ;;  %v2607_v60 = vmul.f32 %v7333_v32, %v9000_v19  ;;  %7358 = vtanh.f32 %v1819_v38  ;;  %v1826_v28 = vpop.f32.mrb[101].mxu0  ;;  %v1835_v58 = vadd.f32 %v6416_v54, %v8924_v41 }
 0x27b   : > { %v7337_v0 = vpop.eup %7336  ;;  %v2087_v36 = vadd.f32 %v2086_v63, %v2024_v59  ;;  %v2408_v37 = vpop.f32.mrb[101].mxu1  ;;  %7360 = vtanh.f32 %v2401_v39  ;;  %v2028_v59 = vmul.f32 %v7335_v24, %v9000_v19  ;;  %v2417_v63 = vadd.f32 %v6496_v52, %v8924_v41 }
 0x27c   : > { %v7339_v57 = vpop.eup %7338  ;;  %v2669_v48 = vadd.f32 %v2668_v47, %v2606_v49  ;;  %v6417_v50 = vpop.f32.mrb[102].mxu0  ;;  %7362 = vtanh.f32 %v1811_v34  ;;  %v2610_v21 = vmul.f32 %v7337_v0, %v9000_v19  ;;  %v1827_v46 = vadd.f32 %v1826_v28, %v8924_v41 }
 0x27d   : > { %v7341_v43 = vpop.eup %7340  ;;  %v2088_v51 = vadd.f32 %v2087_v36, %v2025_v55  ;;  %v2026_v22 = vmul.f32 %v7339_v57, %v9000_v19  ;;  %v6497_v27 = vpop.f32.mrb[102].mxu1  ;;  %7364 = vtanh.f32 %v2393_v61  ;;  %v2409_v34 = vadd.f32 %v2408_v37, %v8924_v41 }
 0x27e   : > { %v7343_v35 = vpop.eup %7342  ;;  %v2670_v44 = vadd.f32 %v2669_v48, %v2607_v60  ;;  %v2608_v30 = vmul.f32 %v7341_v43, %v9000_v19  ;;  %v1829_v31 = vpop.f32.mrb[103].mxu0  ;;  %7366 = vtanh.f32 %v1822_v42  ;;  %v1838_v52 = vadd.f32 %v6417_v50, %v8924_v41 }
 0x27f   : > { %v2411_v20 = vpop.f32.mrb[103].mxu1  ;;  %v7345_v56 = vpop.eup %7344  ;;  %v2089_v29 = vadd.f32 %v2088_v51, %v2026_v22  ;;  %7368 = vtanh.f32 %v2404_v23  ;;  %v2031_v61 = vmul.f32 %v7343_v35, %v9000_v19  ;;  %v2420_v43 = vadd.f32 %v6497_v27, %v8924_v41 }
 0x280   : > { %v7347_v53 = vpop.eup %7346  ;;  %v2671_v49 = vadd.f32 %v2670_v44, %v2608_v30  ;;  %7370 = vtanh.f32 %v1814_v26  ;;  %v6420_v0 = vpop.f32.mrb[104].mxu0  ;;  %v1830_v35 = vadd.f32 %v1829_v31, %v8924_v41 }
 0x281   : > { %v7349_v38 = vpop.eup %7348  ;;  %v2090_v32 = vadd.f32 %v2089_v29, %v2027_v25  ;;  %v2029_v45 = vmul.f32 %v7347_v53, %v9000_v19  ;;  %7372 = vtanh.f32 %v2396_v33  ;;  %v6500_v36 = vpop.f32.mrb[104].mxu1  ;;  %v2412_v33 = vadd.f32 %v2411_v20, %v8924_v41 }
 0x282   : > { %v7351_v55 = vpop.eup %7350  ;;  %v2672_v39 = vadd.f32 %v2671_v49, %v2609_v40  ;;  %v2611_v24 = vmul.f32 %v7349_v38, %v9000_v19  ;;  %7374 = vtanh.f32 %v1835_v58  ;;  %v1842_v57 = vpop.f32.mrb[105].mxu0 }
 0x283   : > { %v7353_v47 = vpop.eup %7352  ;;  %v2091_v60 = vadd.f32 %v2090_v32, %v2028_v59  ;;  %v2424_v40 = vpop.f32.mrb[105].mxu1  ;;  %7376 = vtanh.f32 %v2417_v63  ;;  %v2613_v59 = vmul.f32 %v7345_v56, %v9000_v19  ;;  %v2032_v27 = vmul.f32 %v7351_v55, %v9000_v19 }
 0x284   : > { %v7355_v25 = vpop.eup %7354  ;;  %v2673_v54 = vadd.f32 %v2672_v39, %v2610_v21  ;;  %v6421_v51 = vpop.f32.mrb[106].mxu0  ;;  %7378 = vtanh.f32 %v1827_v46  ;;  %v2614_v21 = vmul.f32 %v7353_v47, %v9000_v19  ;;  %v1851_v32 = vadd.f32 %v6420_v0, %v8924_v41 }
 0x285   : > { %v7357_v48 = vpop.eup %7356  ;;  %v2092_v42 = vadd.f32 %v2091_v60, %v2029_v45  ;;  %v2030_v28 = vmul.f32 %v7355_v25, %v9000_v19  ;;  %v6501_v37 = vpop.f32.mrb[106].mxu1  ;;  %7380 = vtanh.f32 %v2409_v34  ;;  %v1843_v20 = vadd.f32 %v1842_v57, %v8924_v41 }
 0x286   : > { %v7359_v22 = vpop.eup %7358  ;;  %v2674_v23 = vadd.f32 %v2673_v54, %v2611_v24  ;;  %v2612_v44 = vmul.f32 %v7357_v48, %v9000_v19  ;;  %v1845_v30 = vpop.f32.mrb[107].mxu0  ;;  %7382 = vtanh.f32 %v1838_v52  ;;  %v2425_v24 = vadd.f32 %v2424_v40, %v8924_v41 }
 0x287   : > { %v2427_v50 = vpop.f32.mrb[107].mxu1  ;;  %v7361_v26 = vpop.eup %7360  ;;  %v2093_v29 = vadd.f32 %v2092_v42, %v2030_v28  ;;  %7384 = vtanh.f32 %v2420_v43  ;;  %v2035_v34 = vmul.f32 %v7359_v22, %v9000_v19  ;;  %v1854_v28 = vadd.f32 %v6421_v51, %v8924_v41 }
 0x288   : > { %v7363_v53 = vpop.eup %7362  ;;  %v2675_v49 = vadd.f32 %v2674_v23, %v2612_v44  ;;  %7386 = vtanh.f32 %v1830_v35  ;;  %v6424_v46 = vpop.f32.mrb[108].mxu0  ;;  %v2617_v25 = vmul.f32 %v7361_v26, %v9000_v19  ;;  %v1846_v35 = vadd.f32 %v1845_v30, %v8924_v41 }
 0x289   : > { %v7365_v58 = vpop.eup %7364  ;;  %v2094_v38 = vadd.f32 %v2093_v29, %v2031_v61  ;;  %v2033_v31 = vmul.f32 %v7363_v53, %v9000_v19  ;;  %7388 = vtanh.f32 %v2412_v33  ;;  %v6504_v47 = vpop.f32.mrb[108].mxu1  ;;  %v2433_v61 = vadd.f32 %v6500_v36, %v8924_v41 }
 0x28a   : > { %v7367_v45 = vpop.eup %7366  ;;  %v2676_v56 = vadd.f32 %v2675_v49, %v2613_v59  ;;  %v2615_v63 = vmul.f32 %v7365_v58, %v9000_v19  ;;  %v1858_v54 = vpop.f32.mrb[109].mxu0  ;;  %7390 = vtanh.f32 %v1851_v32  ;;  %v2436_v33 = vadd.f32 %v6501_v37, %v8924_v41 }
 0x28b   : > { %v7369_v39 = vpop.eup %7368  ;;  %v2095_v55 = vadd.f32 %v2094_v38, %v2032_v27  ;;  %v2440_v52 = vpop.f32.mrb[109].mxu1  ;;  %7392 = vtanh.f32 %v1843_v20  ;;  %v2428_v53 = vadd.f32 %v2427_v50, %v8924_v41  ;;  %v2036_v51 = vmul.f32 %v7367_v45, %v9000_v19 }
 0x28c   : > { %v7371_v60 = vpop.eup %7370  ;;  %v2677_v0 = vadd.f32 %v2676_v56, %v2614_v21  ;;  %v6425_v40 = vpop.f32.mrb[110].mxu0  ;;  %7394 = vtanh.f32 %v2425_v24  ;;  %v2618_v21 = vmul.f32 %v7369_v39, %v9000_v19  ;;  %v1859_v50 = vadd.f32 %v1858_v54, %v8924_v41 }
 0x28d   : > { %v7373_v48 = vpop.eup %7372  ;;  %v2096_v42 = vadd.f32 %v2095_v55, %v2033_v31  ;;  %v2034_v57 = vmul.f32 %v7371_v60, %v9000_v19  ;;  %v6505_v43 = vpop.f32.mrb[110].mxu1  ;;  %7396 = vtanh.f32 %v2433_v61  ;;  %v1867_v31 = vadd.f32 %v6424_v46, %v8924_v41 }
 0x28e   : > { %v7375_v23 = vpop.eup %7374  ;;  %v2678_v44 = vadd.f32 %v2677_v0, %v2615_v63  ;;  %v2616_v22 = vmul.f32 %v7373_v48, %v9000_v19  ;;  %v1861_v26 = vpop.f32.mrb[111].mxu0  ;;  %7398 = vtanh.f32 %v1854_v28  ;;  %v2449_v20 = vadd.f32 %v6504_v47, %v8924_v41 }
 0x28f   : > { %v2443_v36 = vpop.f32.mrb[111].mxu1  ;;  %v7377_v59 = vpop.eup %7376  ;;  %v2097_v29 = vadd.f32 %v2096_v42, %v2034_v57  ;;  %7400 = vtanh.f32 %v1846_v35  ;;  %v2441_v39 = vadd.f32 %v2440_v52, %v8924_v41  ;;  %v1870_v47 = vadd.f32 %v6425_v40, %v8924_v41 }
 0x290   : > { %v7379_v27 = vpop.eup %7378  ;;  %v2679_v49 = vadd.f32 %v2678_v44, %v2616_v22  ;;  %7402 = vtanh.f32 %v2428_v53  ;;  %v6428_v55 = vpop.f32.mrb[112].mxu0  ;;  %v2621_v46 = vmul.f32 %v7377_v59, %v9000_v19  ;;  %v2444_v53 = vadd.f32 %v2443_v36, %v8924_v41 }
 0x291   : > { %v7381_v58 = vpop.eup %7380  ;;  %v2098_v38 = vadd.f32 %v2097_v29, %v2035_v34  ;;  %v2037_v30 = vmul.f32 %v7379_v27, %v9000_v19  ;;  %v6508_v24 = vpop.f32.mrb[112].mxu1  ;;  %v2039_v34 = vmul.f32 %v7375_v23, %v9000_v19  ;;  %7404 = vtanh.f32 %v2436_v33 }
 0x292   : > { %v7383_v32 = vpop.eup %7382  ;;  %v2680_v56 = vadd.f32 %v2679_v49, %v2617_v25  ;;  %v2619_v37 = vmul.f32 %v7381_v58, %v9000_v19  ;;  %v1874_v0 = vpop.f32.mrb[113].mxu0  ;;  %7406 = vtanh.f32 %v1867_v31  ;;  %v1862_v23 = vadd.f32 %v1861_v26, %v8924_v41 }
 0x293   : > { %v7385_v63 = vpop.eup %7384  ;;  %v2099_v45 = vadd.f32 %v2098_v38, %v2036_v51  ;;  %v2456_v61 = vpop.f32.mrb[113].mxu1  ;;  %7408 = vtanh.f32 %v1859_v50  ;;  %v2452_v33 = vadd.f32 %v6505_v43, %v8924_v41  ;;  %v2040_v40 = vmul.f32 %v7383_v32, %v9000_v19 }
 0x294   : > { %v7387_v60 = vpop.eup %7386  ;;  %v2681_v25 = vadd.f32 %v2680_v56, %v2618_v21  ;;  %v6429_v57 = vpop.f32.mrb[114].mxu0  ;;  %7410 = vtanh.f32 %v2441_v39  ;;  %v2622_v51 = vmul.f32 %v7385_v63, %v9000_v19  ;;  %v1883_v38 = vadd.f32 %v6428_v55, %v8924_v41 }
 0x295   : > { %v7389_v48 = vpop.eup %7388  ;;  %v2100_v54 = vadd.f32 %v2099_v45, %v2037_v30  ;;  %v2038_v42 = vmul.f32 %v7387_v60, %v9000_v19  ;;  %v9480_v52 = vpop.f32.mrb[114].mxu1  ;;  %7412 = vtanh.f32 %v2449_v20  ;;  %v1875_v36 = vadd.f32 %v1874_v0, %v8924_v41 }
 0x296   : > { %v2682_v28 = vadd.f32 %v2681_v25, %v2619_v37  ;;  %v2620_v44 = vmul.f32 %v7389_v48, %v9000_v19  ;;  %v1877_v22 = vpop.f32.mrb[115].mxu0  ;;  %v2459_v35 = vpop.f32.mrb[115].mxu1  ;;  %7414 = vtanh.f32 %v1870_v47  ;;  %v2457_v37 = vadd.f32 %v2456_v61, %v8924_v41 }
 0x297   : > { %v7391_v59 = vpop.eup %7390  ;;  %v2101_v29 = vadd.f32 %v2100_v54, %v2038_v42  ;;  %7416 = vtanh.f32 %v1862_v23  ;;  %v2465_v55 = vadd.f32 %v6508_v24, %v8924_v41  ;;  %v1886_v48 = vadd.f32 %v6429_v57, %v8924_v41 }
 0x298   : > { %v7393_v27 = vpop.eup %7392  ;;  %v2683_v21 = vadd.f32 %v2682_v28, %v2620_v44  ;;  %7418 = vtanh.f32 %v2444_v53  ;;  %v6432_v50 = vpop.f32.mrb[116].mxu0  ;;  %v2043_v20 = vmul.f32 %v7391_v59, %v9000_v19  ;;  %v1878_v44 = vadd.f32 %v1877_v22, %v8924_v41 }
 0x299   : > { %v7395_v49 = vpop.eup %7394  ;;  %v2102_v58 = vadd.f32 %v2101_v29, %v2039_v34  ;;  %v2041_v26 = vmul.f32 %v7393_v27, %v9000_v19  ;;  %v6512_v63 = vpop.f32.mrb[116].mxu1  ;;  %7420 = vtanh.f32 %v2452_v33  ;;  %v2460_v53 = vadd.f32 %v2459_v35, %v8924_v41 }
 0x29a   : > { %v7397_v30 = vpop.eup %7396  ;;  %v2684_v31 = vadd.f32 %v2683_v21, %v2621_v46  ;;  %v2623_v43 = vmul.f32 %v7395_v49, %v9000_v19  ;;  %v1890_v60 = vpop.f32.mrb[117].mxu0  ;;  %7422 = vtanh.f32 %v1883_v38 }
 0x29b   : > { %v7399_v56 = vpop.eup %7398  ;;  %v2103_v32 = vadd.f32 %v2102_v58, %v2040_v40  ;;  %v2472_v34 = vpop.f32.mrb[117].mxu1  ;;  %7424 = vtanh.f32 %v1875_v36  ;;  %v2625_v29 = vmul.f32 %v7397_v30, %v9000_v19  ;;  %v1891_v35 = vadd.f32 %v1890_v60, %v8924_v41 }
 0x29c   : > { %v7401_v45 = vpop.eup %7400  ;;  %v2685_v39 = vadd.f32 %v2684_v31, %v2622_v51  ;;  %v6433_v54 = vpop.f32.mrb[118].mxu0  ;;  %7426 = vtanh.f32 %v2457_v37  ;;  %v2044_v27 = vmul.f32 %v7399_v56, %v9000_v19  ;;  %v2468_v51 = vadd.f32 %v9480_v52, %v8924_v41 }
 0x29d   : > { %v7403_v46 = vpop.eup %7402  ;;  %v2104_v25 = vadd.f32 %v2103_v32, %v2041_v26  ;;  %v2042_v0 = vmul.f32 %v7401_v45, %v9000_v19  ;;  %v9497_v61 = vpop.f32.mrb[118].mxu1  ;;  %7428 = vtanh.f32 %v2465_v55  ;;  %v2473_v36 = vadd.f32 %v2472_v34, %v8924_v41 }
 0x29e   : > { %v7405_v42 = vpop.eup %7404  ;;  %v2686_v47 = vadd.f32 %v2685_v39, %v2623_v43  ;;  %v2624_v28 = vmul.f32 %v7403_v46, %v9000_v19  ;;  %v1893_v24 = vpop.f32.mrb[119].mxu0  ;;  %7430 = vtanh.f32 %v1886_v48  ;;  %v1899_v45 = vadd.f32 %v6432_v50, %v8924_v41 }
 0x29f   : > { %v2475_v23 = vpop.f32.mrb[119].mxu1  ;;  %v7407_v59 = vpop.eup %7406  ;;  %v2105_v33 = vadd.f32 %v2104_v25, %v2042_v0  ;;  %v2626_v22 = vmul.f32 %v7405_v42, %v9000_v19  ;;  %7432 = vtanh.f32 %v1878_v44  ;;  %v1894_v50 = vadd.f32 %v1893_v24, %v8924_v41 }
 0x2a0   : > { %v7409_v57 = vpop.eup %7408  ;;  %v2687_v40 = vadd.f32 %v2686_v47, %v2624_v28  ;;  %7434 = vtanh.f32 %v2460_v53  ;;  %v6436_v52 = vpop.f32.mrb[120].mxu0  ;;  %v2047_v25 = vmul.f32 %v7407_v59, %v9000_v19  ;;  %v1902_v59 = vadd.f32 %v6433_v54, %v8924_v41 }
 0x2a1   : > { %v7411_v21 = vpop.eup %7410  ;;  %v2106_v49 = vadd.f32 %v2105_v33, %v2043_v20  ;;  %v2045_v58 = vmul.f32 %v7409_v57, %v9000_v19  ;;  %v6516_v56 = vpop.f32.mrb[120].mxu1  ;;  %7436 = vtanh.f32 %v2468_v51  ;;  %v2481_v20 = vadd.f32 %v6512_v63, %v8924_v41 }
 0x2a2   : > { %v7413_v26 = vpop.eup %7412  ;;  %v2688_v38 = vadd.f32 %v2687_v40, %v2625_v29  ;;  %v2627_v30 = vmul.f32 %v7411_v21, %v9000_v19  ;;  %v1906_v39 = vpop.f32.mrb[121].mxu0  ;;  %7438 = vtanh.f32 %v1891_v35  ;;  %v2476_v57 = vadd.f32 %v2475_v23, %v8924_v41 }
 0x2a3   : > { %v7415_v31 = vpop.eup %7414  ;;  %v2107_v43 = vadd.f32 %v2106_v49, %v2044_v27  ;;  %v2488_v55 = vpop.f32.mrb[121].mxu1  ;;  %v2629_v60 = vmul.f32 %v7413_v26, %v9000_v19  ;;  %7440 = vtanh.f32 %v2473_v36  ;;  %v2484_v21 = vadd.f32 %v9497_v61, %v8924_v41 }
 0x2a4   : > { %v7417_v32 = vpop.eup %7416  ;;  %v2689_v37 = vadd.f32 %v2688_v38, %v2626_v22  ;;  %v6437_v34 = vpop.f32.mrb[122].mxu0  ;;  %v2048_v40 = vmul.f32 %v7415_v31, %v9000_v19  ;;  %7442 = vtanh.f32 %v1899_v45  ;;  %v1907_v23 = vadd.f32 %v1906_v39, %v8924_v41 }
 0x2a5   : > { %v7419_v46 = vpop.eup %7418  ;;  %v2108_v0 = vadd.f32 %v2107_v43, %v2045_v58  ;;  %v2046_v48 = vmul.f32 %v7417_v32, %v9000_v19  ;;  %v9516_v42 = vpop.f32.mrb[122].mxu1  ;;  %7444 = vtanh.f32 %v2481_v20  ;;  %v1915_v31 = vadd.f32 %v6436_v52, %v8924_v41 }
 0x2a6   : > { %v7421_v47 = vpop.eup %7420  ;;  %v2690_v28 = vadd.f32 %v2689_v37, %v2627_v30  ;;  %v2628_v44 = vmul.f32 %v7419_v46, %v9000_v19  ;;  %v1909_v63 = vpop.f32.mrb[123].mxu0  ;;  %7446 = vtanh.f32 %v1894_v50  ;;  %v2489_v61 = vadd.f32 %v2488_v55, %v8924_v41 }
 0x2a7   : > { %v2491_v29 = vpop.f32.mrb[123].mxu1  ;;  %v7423_v33 = vpop.eup %7422  ;;  %v2109_v53 = vadd.f32 %v2108_v0, %v2046_v48  ;;  %v2630_v24 = vmul.f32 %v7421_v47, %v9000_v19  ;;  %7448 = vtanh.f32 %v2476_v57  ;;  %v2497_v20 = vadd.f32 %v6516_v56, %v8924_v41 }
 0x2a8   : > { %v7425_v27 = vpop.eup %7424  ;;  %v2691_v51 = vadd.f32 %v2690_v28, %v2628_v44  ;;  %v2051_v37 = vmul.f32 %v7423_v33, %v9000_v19  ;;  %7450 = vtanh.f32 %v1902_v59  ;;  %v1910_v50 = vadd.f32 %v1909_v63, %v8924_v41 }
 0x2a9   : > { %v7427_v22 = vpop.eup %7426  ;;  %v2110_v49 = vadd.f32 %v2109_v53, %v2047_v25  ;;  %v2049_v58 = vmul.f32 %v7425_v27, %v9000_v19  ;;  %7452 = vtanh.f32 %v2484_v21  ;;  %v1918_v59 = vadd.f32 %v6437_v34, %v8924_v41 }
 0x2aa   : > { %v7429_v26 = vpop.eup %7428  ;;  %v2692_v38 = vadd.f32 %v2691_v51, %v2629_v60  ;;  %v2631_v54 = vmul.f32 %v7427_v22, %v9000_v19  ;;  %v6440_v43 = vpop.f32.mrb[124].mxu0  ;;  %7454 = vtanh.f32 %v1907_v23  ;;  %v2492_v57 = vadd.f32 %v2491_v29, %v8924_v41 }
 0x2ab   : > { %v7431_v30 = vpop.eup %7430  ;;  %v2111_v35 = vadd.f32 %v2110_v49, %v2048_v40  ;;  %v6520_v36 = vpop.f32.mrb[124].mxu1  ;;  %v2633_v39 = vmul.f32 %v7429_v26, %v9000_v19  ;;  %7456 = vtanh.f32 %v2489_v61  ;;  %v2500_v21 = vadd.f32 %v9516_v42, %v8924_v41 }
 0x2ac   : > { %v7433_v32 = vpop.eup %7432  ;;  %v2693_v45 = vadd.f32 %v2692_v38, %v2630_v24  ;;  %v1922_v46 = vpop.f32.mrb[125].mxu0  ;;  %v2052_v40 = vmul.f32 %v7431_v30, %v9000_v19  ;;  %7458 = vtanh.f32 %v1915_v31  ;;  %v2513_v31 = vadd.f32 %v6520_v36, %v8924_v41 }
 0x2ad   : > { %v2504_v25 = vpop.f32.mrb[125].mxu1  ;;  %v7435_v60 = vpop.eup %7434  ;;  %v2112_v0 = vadd.f32 %v2111_v35, %v2049_v58  ;;  %v2050_v48 = vmul.f32 %v7433_v32, %v9000_v19  ;;  %7460 = vtanh.f32 %v2497_v20  ;;  %v1923_v29 = vadd.f32 %v1922_v46, %v8924_v41 }
 0x2ae   : > { %v6441_v52 = vpop.f32.mrb[126].mxu0  ;;  %v6521_v55 = vpop.f32.mrb[126].mxu1  ;;  %v2694_v28 = vadd.f32 %v2693_v45, %v2631_v54  ;;  %v2632_v44 = vmul.f32 %v7435_v60, %v9000_v19  ;;  %7462 = vtanh.f32 %v1910_v50  ;;  %v2505_v23 = vadd.f32 %v2504_v25, %v8924_v41 }
 0x2af   : > { %v7437_v47 = vpop.eup %7436  ;;  %v1925_v33 = vpop.f32.mrb[127].mxu0  ;;  %v2113_v53 = vadd.f32 %v2112_v0, %v2050_v48  ;;  %7464 = vtanh.f32 %v2492_v57  ;;  %v1931_v35 = vadd.f32 %v6440_v43, %v8924_v41 }
 0x2b0   : > { %v2507_v56 = vpop.f32.mrb[127].mxu1  ;;  %v7439_v27 = vpop.eup %7438  ;;  %v2695_v51 = vadd.f32 %v2694_v28, %v2632_v44  ;;  %v2634_v24 = vmul.f32 %v7437_v47, %v9000_v19  ;;  %7466 = vtanh.f32 %v1918_v59  ;;  %v1926_v25 = vadd.f32 %v1925_v33, %v8924_v41 }
 0x2b1   : > { %v7441_v22 = vpop.eup %7440  ;;  %v2114_v63 = vadd.f32 %v2113_v53, %v2051_v37  ;;  %v2053_v49 = vmul.f32 %v7439_v27, %v9000_v19  ;;  %7468 = vtanh.f32 %v2500_v21  ;;  %v2508_v36 = vadd.f32 %v2507_v56, %v8924_v41 }
 0x2b2   : > { %v7443_v58 = vpop.eup %7442  ;;  %v2696_v26 = vadd.f32 %v2695_v51, %v2633_v39  ;;  %v2635_v34 = vmul.f32 %v7441_v22, %v9000_v19  ;;  %7470 = vtanh.f32 %v1923_v29  ;;  %v1934_v28 = vadd.f32 %v6441_v52, %v8924_v41 }
 0x2b3   : > { %v7445_v38 = vpop.eup %7444  ;;  %v2115_v54 = vadd.f32 %v2114_v63, %v2052_v40  ;;  %v2055_v32 = vmul.f32 %v7443_v58, %v9000_v19  ;;  %7472 = vtanh.f32 %v2505_v23  ;;  %v2516_v44 = vadd.f32 %v6521_v55, %v8924_v41 }
 0x2b4   : > { %v7447_v42 = vpop.eup %7446  ;;  %v2697_v30 = vadd.f32 %v2696_v26, %v2634_v24  ;;  %v2637_v0 = vmul.f32 %v7445_v38, %v9000_v19  ;;  %7474 = vtanh.f32 %v1931_v35 }
 0x2b5   : > { %v7449_v61 = vpop.eup %7448  ;;  %v2116_v37 = vadd.f32 %v2115_v54, %v2053_v49  ;;  %v2054_v45 = vmul.f32 %v7447_v42, %v9000_v19  ;;  %7476 = vtanh.f32 %v2513_v31 }
 0x2b6   : > { %v7451_v20 = vpop.eup %7450  ;;  %v2698_v46 = vadd.f32 %v2697_v30, %v2635_v34  ;;  %v2636_v60 = vmul.f32 %v7449_v61, %v9000_v19  ;;  %7478 = vtanh.f32 %v1926_v25 }
 0x2b7   : > { %v7453_v39 = vpop.eup %7452  ;;  %v2117_v43 = vadd.f32 %v2116_v37, %v2054_v45  ;;  %v2056_v53 = vmul.f32 %v7451_v20, %v9000_v19  ;;  %7480 = vtanh.f32 %v2508_v36 }
 0x2b8   : > { %v7455_v48 = vpop.eup %7454  ;;  %v2699_v47 = vadd.f32 %v2698_v46, %v2636_v60  ;;  %v2638_v27 = vmul.f32 %v7453_v39, %v9000_v19  ;;  %7482 = vtanh.f32 %v1934_v28 }
 0x2b9   : > { %v7457_v50 = vpop.eup %7456  ;;  %v2118_v59 = vadd.f32 %v2117_v43, %v2055_v32  ;;  %v2057_v33 = vmul.f32 %v7455_v48, %v9000_v19  ;;  %7484 = vtanh.f32 %v2516_v44 }
 0x2ba   : > { %v7459_v57 = vpop.eup %7458  ;;  %v2700_v40 = vadd.f32 %v2699_v47, %v2637_v0  ;;  %v2639_v56 = vmul.f32 %v7457_v50, %v9000_v19 }
 0x2bb   : > { %v7461_v51 = vpop.eup %7460  ;;  %v2119_v21 = vadd.f32 %v2118_v59, %v2056_v53  ;;  %v2059_v34 = vmul.f32 %v7459_v57, %v9000_v19 }
 0x2bc   : > { %v7463_v52 = vpop.eup %7462  ;;  %v2701_v22 = vadd.f32 %v2700_v40, %v2638_v27  ;;  %v2641_v54 = vmul.f32 %v7461_v51, %v9000_v19 }
 0x2bd   : > { %v7465_v41 = vpop.eup %7464  ;;  %v2120_v55 = vadd.f32 %v2119_v21, %v2057_v33  ;;  %v2058_v24 = vmul.f32 %v7463_v52, %v9000_v19 }
 0x2be   : > { %v7467_v63 = vpop.eup %7466  ;;  %v2702_v49 = vadd.f32 %v2701_v22, %v2639_v56  ;;  %v2640_v58 = vmul.f32 %v7465_v41, %v9000_v19 }
 0x2bf   : > { %v7469_v26 = vpop.eup %7468  ;;  %v2121_v29 = vadd.f32 %v2120_v55, %v2058_v24  ;;  %v2060_v30 = vmul.f32 %v7467_v63, %v9000_v19 }
 0x2c0   : > { %v7471_v38 = vpop.eup %7470  ;;  %v2703_v23 = vadd.f32 %v2702_v49, %v2640_v58  ;;  %v2642_v32 = vmul.f32 %v7469_v26, %v9000_v19 }
 0x2c1   : > { %v7473_v42 = vpop.eup %7472  ;;  %v2122_v35 = vadd.f32 %v2121_v29, %v2059_v34  ;;  %v2061_v31 = vmul.f32 %v7471_v38, %v9000_v19 }
 0x2c2   : > { %v7475_v61 = vpop.eup %7474  ;;  %v2704_v37 = vadd.f32 %v2703_v23, %v2641_v54  ;;  %v2643_v45 = vmul.f32 %v7473_v42, %v9000_v19 }
 0x2c3   : > { %v7477_v20 = vpop.eup %7476  ;;  %v2123_v46 = vadd.f32 %v2122_v35, %v2060_v30  ;;  %v2063_v44 = vmul.f32 %v7475_v61, %v9000_v19 }
 0x2c4   : > { %v7479_v60 = vpop.eup %7478  ;;  %v2705_v25 = vadd.f32 %v2704_v37, %v2642_v32  ;;  %v2645_v53 = vmul.f32 %v7477_v20, %v9000_v19 }
 0x2c5   : > { %v7481_v39 = vpop.eup %7480  ;;  %v2124_v0 = vadd.f32 %v2123_v46, %v2061_v31  ;;  %v2062_v43 = vmul.f32 %v7479_v60, %v9000_v19 }
 0x2c6   : > { %v7483_v36 = vpop.eup %7482  ;;  %v2706_v48 = vadd.f32 %v2705_v25, %v2643_v45  ;;  %v2644_v47 = vmul.f32 %v7481_v39, %v9000_v19 }
 0x2c7   : > { %v7485_v28 = vpop.eup %7484  ;;  %v2125_v50 = vadd.f32 %v2124_v0, %v2062_v43  ;;  %v2064_v33 = vmul.f32 %v7483_v36, %v9000_v19 }
 0x2c8   : > { %v2707_v59 = vadd.f32 %v2706_v48, %v2644_v47  ;;  %v2646_v27 = vmul.f32 %v7485_v28, %v9000_v19  ;;  %v2716_v19 = vld [vmem:[%s8561_s29] sm:$0xf] }
 0x2c9   : > { %v2126_v57 = vadd.f32 %v2125_v50, %v2063_v44 }
 0x2ca   : > { %v2708_v40 = vadd.f32 %v2707_v59, %v2645_v53 }
 0x2cb   : > { %v2127_v56 = vadd.f32 %v2126_v57, %v2064_v33 }
 0x2cc   : > { %v2709_v51 = vadd.f32 %v2708_v40, %v2646_v27 }
 0x2cd   : > { %v2128_v21 = vrot.slane %v2127_v56, 4 }
 0x2ce   : > { %v2710_v52 = vrot.slane %v2709_v51, 4 }
 0x2cf   : > { %v2129_v22 = vadd.f32 %v2128_v21, %v2127_v56 }
 0x2d0   : > { %v2711_v41 = vadd.f32 %v2710_v52, %v2709_v51 }
 0x2d1   : > { %v2130_v55 = vrot.slane %v2129_v22, 2 }
 0x2d2   : > { %v2712_v24 = vrot.slane %v2711_v41, 2 }
 0x2d3   : > { %v2131_v63 = vadd.f32 %v2130_v55, %v2129_v22 }
 0x2d4   : > { %v2713_v49 = vadd.f32 %v2712_v24, %v2711_v41 }
 0x2d5   : > { %v2132_v58 = vrot.slane %v2131_v63, 1 }
 0x2d6   : > { %v2714_v26 = vrot.slane %v2713_v49, 1 }
 0x2d7   : > { %v2133_v34 = vadd.f32 %v2132_v58, %v2131_v63 }
 0x2d8   : > { %v2715_v29 = vadd.f32 %v2714_v26, %v2713_v49 }
 0x2d9   : > { %v2720_v38 = vsel %vm2719_vm1, %v9351_v62, %v2133_v34 }
 0x2da   : > { %v2722_v54 = vsel %vm2721_vm2, %v2720_v38, %v2715_v29 }
 0x2db   : > { %v2723_v23 = vadd.f32 %v2722_v54, %v2716_v19 }
 0x2dd   : > { %2724 = vst [vmem:[%s8561_s29] sm:$0xf] %v2723_v23 }
 0x2de PF: > { %p5865_p7 = scmp.lt.s32.totalorder %s8559_s23, 2 }
 0x2e0   : > { %2728 = sbr.rel (%p5865_p7) target bundleno = 1379 (0x563), region = 64 }
 0x2e7   : > { %v9581_v42 = vcombine.low %v8565_v1, %v8567_v2  ;;  %v9585_v30 = vcombine.low %v8569_v3, %v8571_v4  ;;  %v2924_v62 = vld [vmem:[%s8540_s24] sm:$0xff]  ;;  %v3758_v31 = vld [vmem:[%s8540_s24 + $0x8] sm:$0xff]  ;;  %v9599_v1 = vcombine.low %v8573_v5, %v8575_v6  ;;  %v9607_v2 = vcombine.low %v8577_v7, %v8579_v8  ;;  %s5866_s21 = sshll.u32 %s8559_s23, 9 }
 0x2e8   : > { %v2925_v35 = vld [vmem:[%s8540_s24 + $0x20] sm:$0xff]  ;;  %v3759_v61 = vld [vmem:[%s8540_s24 + $0x28] sm:$0xff]  ;;  %v9615_v3 = vcombine.low %v8581_v9, %v8583_v10  ;;  %v9623_v4 = vcombine.low %v8585_v11, %v8587_v12  ;;  %v9631_v5 = vcombine.low %v8589_v13, %v8591_v14  ;;  %v9639_v6 = vcombine.low %v8593_v15, %v8595_v16 }
 0x2e9   : > { %6522 = vmatprep.subr.bf16.mxu0 %v9581_v42  ;;  %6602 = vmatprep.subr.bf16.mxu1 %v9581_v42  ;;  %v2988_v32 = vpack.c.bf16 %v2925_v35, %v2924_v62  ;;  %v3822_v37 = vpack.c.bf16 %v3759_v61, %v3758_v31  ;;  %v2926_v7 = vld [vmem:[%s8540_s24 + $0x40] sm:$0xff]  ;;  %v3760_v9 = vld [vmem:[%s8540_s24 + $0x48] sm:$0xff] }
 0x2ea   : > { %6523 = vmatpush3.bf16.msra.mxu0 %v9581_v42  ;;  %6603 = vmatpush3.bf16.msra.mxu1 %v9581_v42  ;;  %v2927_v8 = vld [vmem:[%s8540_s24 + $0x60] sm:$0xff]  ;;  %v3761_v10 = vld [vmem:[%s8540_s24 + $0x68] sm:$0xff] }
 0x2eb   : > { %6524 = vmatprep.subr.bf16.mxu0 %v9585_v30  ;;  %6604 = vmatprep.subr.bf16.mxu1 %v9585_v30  ;;  %v2928_v11 = vld [vmem:[%s8540_s24 + $0x80] sm:$0xff]  ;;  %v3762_v13 = vld [vmem:[%s8540_s24 + $0x88] sm:$0xff]  ;;  %v2989_v15 = vpack.c.bf16 %v2927_v8, %v2926_v7  ;;  %v3823_v16 = vpack.c.bf16 %v3761_v10, %v3760_v9 }
 0x2ec   : > { %6538 = vmatprep.mubr.bf16.mxu0 %v2988_v32  ;;  %6618 = vmatprep.mubr.bf16.mxu1 %v3822_v37  ;;  %v2929_v12 = vld [vmem:[%s8540_s24 + $0xa0] sm:$0xff]  ;;  %v3763_v14 = vld [vmem:[%s8540_s24 + $0xa8] sm:$0xff] }
 0x2ed   : > { %v2990_v45 = vpack.c.bf16 %v2929_v12, %v2928_v11  ;;  %v3824_v20 = vpack.c.bf16 %v3763_v14, %v3762_v13  ;;  %v2930_v46 = vld [vmem:[%s8540_s24 + $0xc0] sm:$0xff]  ;;  %v3764_v25 = vld [vmem:[%s8540_s24 + $0xc8] sm:$0xff] }
 0x2ee   : > { %6525 = vmatpush3.bf16.msra.mxu0 %v9585_v30  ;;  %6605 = vmatpush3.bf16.msra.mxu1 %v9585_v30  ;;  %v2931_v60 = vld [vmem:[%s8540_s24 + $0xe0] sm:$0xff]  ;;  %v3765_v39 = vld [vmem:[%s8540_s24 + $0xe8] sm:$0xff] }
 0x2ef   : > { %6526 = vmatprep.subr.bf16.mxu0 %v9599_v1  ;;  %6606 = vmatprep.subr.bf16.mxu1 %v9599_v1  ;;  %v2932_v0 = vld [vmem:[%s8540_s24 + $0x100] sm:$0xff]  ;;  %v3766_v36 = vld [vmem:[%s8540_s24 + $0x108] sm:$0xff]  ;;  %v2991_v47 = vpack.c.bf16 %v2931_v60, %v2930_v46  ;;  %v3825_v28 = vpack.c.bf16 %v3765_v39, %v3764_v25 }
 0x2f0   : > { %v2933_v43 = vld [vmem:[%s8540_s24 + $0x120] sm:$0xff]  ;;  %v3767_v48 = vld [vmem:[%s8540_s24 + $0x128] sm:$0xff] }
 0x2f1   : > { %v2992_v44 = vpack.c.bf16 %v2933_v43, %v2932_v0  ;;  %v3826_v50 = vpack.c.bf16 %v3767_v48, %v3766_v36  ;;  %v2934_v53 = vld [vmem:[%s8540_s24 + $0x140] sm:$0xff]  ;;  %v3768_v33 = vld [vmem:[%s8540_s24 + $0x148] sm:$0xff] }
 0x2f2   : > { %6527 = vmatpush3.bf16.msra.mxu0 %v9599_v1  ;;  %6607 = vmatpush3.bf16.msra.mxu1 %v9599_v1  ;;  %v2935_v59 = vld [vmem:[%s8540_s24 + $0x160] sm:$0xff]  ;;  %v3769_v57 = vld [vmem:[%s8540_s24 + $0x168] sm:$0xff] }
 0x2f3   : > { %6528 = vmatprep.subr.bf16.mxu0 %v9607_v2  ;;  %6608 = vmatprep.subr.bf16.mxu1 %v9607_v2  ;;  %v2936_v27 = vld [vmem:[%s8540_s24 + $0x180] sm:$0xff]  ;;  %v3770_v56 = vld [vmem:[%s8540_s24 + $0x188] sm:$0xff]  ;;  %v2993_v21 = vpack.c.bf16 %v2935_v59, %v2934_v53  ;;  %v3827_v52 = vpack.c.bf16 %v3769_v57, %v3768_v33 }
 0x2f4   : > { %v2937_v40 = vld [vmem:[%s8540_s24 + $0x1a0] sm:$0xff]  ;;  %v3771_v51 = vld [vmem:[%s8540_s24 + $0x1a8] sm:$0xff] }
 0x2f5   : > { %v2994_v22 = vpack.c.bf16 %v2937_v40, %v2936_v27  ;;  %v3828_v41 = vpack.c.bf16 %v3771_v51, %v3770_v56  ;;  %v2938_v55 = vld [vmem:[%s8540_s24 + $0x1c0] sm:$0xff]  ;;  %v3772_v63 = vld [vmem:[%s8540_s24 + $0x1c8] sm:$0xff] }
 0x2f6   : > { %6529 = vmatpush3.bf16.msra.mxu0 %v9607_v2  ;;  %6609 = vmatpush3.bf16.msra.mxu1 %v9607_v2  ;;  %v2939_v24 = vld [vmem:[%s8540_s24 + $0x1e0] sm:$0xff]  ;;  %v3773_v49 = vld [vmem:[%s8540_s24 + $0x1e8] sm:$0xff] }
 0x2f7   : > { %6530 = vmatprep.subr.bf16.mxu0 %v9615_v3  ;;  %6610 = vmatprep.subr.bf16.mxu1 %v9615_v3  ;;  %v2940_v58 = vld [vmem:[%s8540_s24 + $0x200] sm:$0xff]  ;;  %v3774_v34 = vld [vmem:[%s8540_s24 + $0x208] sm:$0xff]  ;;  %v2995_v19 = vpack.c.bf16 %v2939_v24, %v2938_v55  ;;  %v3829_v38 = vpack.c.bf16 %v3773_v49, %v3772_v63 }
 0x2f8   : > { %v2941_v26 = vld [vmem:[%s8540_s24 + $0x220] sm:$0xff]  ;;  %v3775_v29 = vld [vmem:[%s8540_s24 + $0x228] sm:$0xff] }
 0x2f9   : > { %v2996_v54 = vpack.c.bf16 %v2941_v26, %v2940_v58  ;;  %v3830_v23 = vpack.c.bf16 %v3775_v29, %v3774_v34  ;;  %v3776_v62 = vld [vmem:[%s8540_s24 + $0x248] sm:$0xff]  ;;  %v2944_v31 = vld [vmem:[%s8540_s24 + $0x280] sm:$0xff] }
 0x2fa   : > { %6531 = vmatpush3.bf16.msra.mxu0 %v9615_v3  ;;  %6611 = vmatpush3.bf16.msra.mxu1 %v9615_v3  ;;  %v3777_v35 = vld [vmem:[%s8540_s24 + $0x268] sm:$0xff]  ;;  %v2945_v61 = vld [vmem:[%s8540_s24 + $0x2a0] sm:$0xff] }
 0x2fb   : > { %6532 = vmatprep.subr.bf16.mxu0 %v9623_v4  ;;  %6612 = vmatprep.subr.bf16.mxu1 %v9623_v4  ;;  %v3778_v32 = vld [vmem:[%s8540_s24 + $0x288] sm:$0xff]  ;;  %v2947_v7 = vld [vmem:[%s8540_s24 + $0x2e0] sm:$0xff] }
 0x2fc   : > { %v3779_v37 = vld [vmem:[%s8540_s24 + $0x2a8] sm:$0xff]  ;;  %v2948_v10 = vld [vmem:[%s8540_s24 + $0x300] sm:$0xff] }
 0x2fd   : > { %v3780_v8 = vld [vmem:[%s8540_s24 + $0x2c8] sm:$0xff]  ;;  %v2949_v11 = vld [vmem:[%s8540_s24 + $0x320] sm:$0xff] }
 0x2fe   : > { %6533 = vmatpush3.bf16.msra.mxu0 %v9623_v4  ;;  %6613 = vmatpush3.bf16.msra.mxu1 %v9623_v4  ;;  %v3781_v9 = vld [vmem:[%s8540_s24 + $0x2e8] sm:$0xff]  ;;  %v2952_v25 = vld [vmem:[%s8540_s24 + $0x380] sm:$0xff] }
 0x2ff   : > { %6534 = vmatprep.subr.bf16.mxu0 %v9631_v5  ;;  %6614 = vmatprep.subr.bf16.mxu1 %v9631_v5  ;;  %v3782_v12 = vld [vmem:[%s8540_s24 + $0x308] sm:$0xff]  ;;  %v3833_v14 = vpack.c.bf16 %v3781_v9, %v3780_v8  ;;  %v2953_v39 = vld [vmem:[%s8540_s24 + $0x3a0] sm:$0xff] }
 0x300   : > { %v3783_v13 = vld [vmem:[%s8540_s24 + $0x328] sm:$0xff]  ;;  %v2956_v33 = vld [vmem:[%s8540_s24 + $0x400] sm:$0xff] }
 0x301   : > { %v3784_v46 = vld [vmem:[%s8540_s24 + $0x348] sm:$0xff]  ;;  %v2957_v57 = vld [vmem:[%s8540_s24 + $0x420] sm:$0xff] }
 0x302   : > { %6535 = vmatpush3.bf16.msra.mxu0 %v9631_v5  ;;  %6615 = vmatpush3.bf16.msra.mxu1 %v9631_v5  ;;  %v3785_v60 = vld [vmem:[%s8540_s24 + $0x368] sm:$0xff]  ;;  %v2960_v63 = vld [vmem:[%s8540_s24 + $0x480] sm:$0xff] }
 0x303   : > { %6536 = vmatprep.subr.bf16.mxu0 %v9639_v6  ;;  %6616 = vmatprep.subr.bf16.mxu1 %v9639_v6  ;;  %v3786_v0 = vld [vmem:[%s8540_s24 + $0x388] sm:$0xff]  ;;  %v3835_v48 = vpack.c.bf16 %v3785_v60, %v3784_v46  ;;  %v2961_v49 = vld [vmem:[%s8540_s24 + $0x4a0] sm:$0xff] }
 0x304   : > { %v3787_v43 = vld [vmem:[%s8540_s24 + $0x3a8] sm:$0xff]  ;;  %v2968_v8 = vld [vmem:[%s8540_s24 + $0x580] sm:$0xff] }
 0x305   : > { %v3788_v53 = vld [vmem:[%s8540_s24 + $0x3c8] sm:$0xff]  ;;  %v2969_v9 = vld [vmem:[%s8540_s24 + $0x5a0] sm:$0xff] }
 0x306   : > { %6537 = vmatpush3.bf16.msra.mxu0 %v9639_v6  ;;  %6617 = vmatpush3.bf16.msra.mxu1 %v9639_v6  ;;  %v3789_v59 = vld [vmem:[%s8540_s24 + $0x3e8] sm:$0xff]  ;;  %v2972_v46 = vld [vmem:[%s8540_s24 + $0x600] sm:$0xff] }
 0x307   : > { %6682 = vmatprep.subr.bf16.mxu0 %v9581_v42  ;;  %6762 = vmatprep.subr.bf16.mxu1 %v9581_v42  ;;  %v3790_v27 = vld [vmem:[%s8540_s24 + $0x408] sm:$0xff]  ;;  %v3837_v51 = vpack.c.bf16 %v3789_v59, %v3788_v53  ;;  %v2973_v60 = vld [vmem:[%s8540_s24 + $0x620] sm:$0xff] }
 0x308   : > { %v3791_v40 = vld [vmem:[%s8540_s24 + $0x428] sm:$0xff]  ;;  %v2976_v53 = vld [vmem:[%s8540_s24 + $0x680] sm:$0xff] }
 0x309   : > { %6539 = vmatmul.mubr.bf16.vlgmr.msra.gmra.mrb[0].mxu0 %v2989_v15  ;;  %6619 = vmatmul.mubr.bf16.vlgmr.msra.gmra.mrb[0].mxu1 %v3823_v16  ;;  %v3000_v15 = vpack.c.bf16 %v2949_v11, %v2948_v10  ;;  %v3834_v16 = vpack.c.bf16 %v3783_v13, %v3782_v12  ;;  %v3792_v55 = vld [vmem:[%s8540_s24 + $0x448] sm:$0xff]  ;;  %v2977_v59 = vld [vmem:[%s8540_s24 + $0x6a0] sm:$0xff] }
 0x30a   : > { %6683 = vmatpush3.bf16.msra.mxu0 %v9581_v42  ;;  %6763 = vmatpush3.bf16.msra.mxu1 %v9581_v42  ;;  %v2942_v42 = vld [vmem:[%s8540_s24 + $0x240] sm:$0xff]  ;;  %v3793_v24 = vld [vmem:[%s8540_s24 + $0x468] sm:$0xff] }
 0x30b   : > { %6542 = vmatprep.mubr.bf16.mxu0 %v2990_v45  ;;  %6622 = vmatprep.mubr.bf16.mxu1 %v3824_v20  ;;  %v2950_v45 = vld [vmem:[%s8540_s24 + $0x340] sm:$0xff]  ;;  %v3794_v58 = vld [vmem:[%s8540_s24 + $0x488] sm:$0xff]  ;;  %v3839_v29 = vpack.c.bf16 %v3793_v24, %v3792_v55 }
 0x30c   : > { %6684 = vmatprep.subr.bf16.mxu0 %v9585_v30  ;;  %6764 = vmatprep.subr.bf16.mxu1 %v9585_v30  ;;  %v2951_v20 = vld [vmem:[%s8540_s24 + $0x360] sm:$0xff]  ;;  %v3795_v26 = vld [vmem:[%s8540_s24 + $0x4a8] sm:$0xff] }
 0x30d   : > { %v3001_v36 = vpack.c.bf16 %v2951_v20, %v2950_v45  ;;  %v3802_v10 = vld [vmem:[%s8540_s24 + $0x588] sm:$0xff]  ;;  %v2980_v55 = vld [vmem:[%s8540_s24 + $0x700] sm:$0xff] }
 0x30e   : > { %6685 = vmatpush3.bf16.msra.mxu0 %v9585_v30  ;;  %6765 = vmatpush3.bf16.msra.mxu1 %v9585_v30  ;;  %v2943_v30 = vld [vmem:[%s8540_s24 + $0x260] sm:$0xff]  ;;  %v3803_v11 = vld [vmem:[%s8540_s24 + $0x5a8] sm:$0xff] }
 0x30f   : > { %6686 = vmatprep.subr.bf16.mxu0 %v9599_v1  ;;  %6766 = vmatprep.subr.bf16.mxu1 %v9599_v1  ;;  %v3804_v45 = vld [vmem:[%s8540_s24 + $0x5c8] sm:$0xff]  ;;  %v2981_v24 = vld [vmem:[%s8540_s24 + $0x720] sm:$0xff] }
 0x310   : > { %v3805_v20 = vld [vmem:[%s8540_s24 + $0x5e8] sm:$0xff] }
 0x311   : > { %6543 = vmatmul.mubr.bf16.gmra.mrb[4].mxu0 %v2991_v47  ;;  %6623 = vmatmul.mubr.bf16.gmra.mrb[4].mxu1 %v3825_v28  ;;  %v3002_v47 = vpack.c.bf16 %v2953_v39, %v2952_v25  ;;  %v3836_v28 = vpack.c.bf16 %v3787_v43, %v3786_v0  ;;  %v3806_v25 = vld [vmem:[%s8540_s24 + $0x608] sm:$0xff]  ;;  %v3845_v43 = vpack.c.bf16 %v3805_v20, %v3804_v45  ;;  %v4408_v45 = vld [vmem:[%s8540_s24 + $0x90] sm:$0xff] }
 0x312   : > { %6546 = vmatprep.mubr.bf16.mxu0 %v2992_v44  ;;  %6626 = vmatprep.mubr.bf16.mxu1 %v3826_v50  ;;  %v2954_v44 = vld [vmem:[%s8540_s24 + $0x3c0] sm:$0xff]  ;;  %v3807_v39 = vld [vmem:[%s8540_s24 + $0x628] sm:$0xff]  ;;  %v4409_v20 = vld [vmem:[%s8540_s24 + $0xb0] sm:$0xff] }
 0x313   : > { %6687 = vmatpush3.bf16.msra.mxu0 %v9599_v1  ;;  %6767 = vmatpush3.bf16.msra.mxu1 %v9599_v1  ;;  %v2997_v1 = vpack.c.bf16 %v2943_v30, %v2942_v42  ;;  %v2955_v50 = vld [vmem:[%s8540_s24 + $0x3e0] sm:$0xff]  ;;  %v3796_v42 = vld [vmem:[%s8540_s24 + $0x4c8] sm:$0xff] }
 0x314   : > { %6688 = vmatprep.subr.bf16.mxu0 %v9607_v2  ;;  %6768 = vmatprep.subr.bf16.mxu1 %v9607_v2  ;;  %v3003_v56 = vpack.c.bf16 %v2955_v50, %v2954_v44  ;;  %v3797_v30 = vld [vmem:[%s8540_s24 + $0x4e8] sm:$0xff] }
 0x315   : > { %v3808_v44 = vld [vmem:[%s8540_s24 + $0x648] sm:$0xff] }
 0x316   : > { %v3809_v50 = vld [vmem:[%s8540_s24 + $0x668] sm:$0xff] }
 0x317   : > { %6689 = vmatpush3.bf16.msra.mxu0 %v9607_v2  ;;  %6769 = vmatpush3.bf16.msra.mxu1 %v9607_v2  ;;  %v3831_v2 = vpack.c.bf16 %v3777_v35, %v3776_v62  ;;  %v2964_v62 = vld [vmem:[%s8540_s24 + $0x500] sm:$0xff] }
 0x318   : > { %6690 = vmatprep.subr.bf16.mxu0 %v9615_v3  ;;  %6770 = vmatprep.subr.bf16.mxu1 %v9615_v3  ;;  %v2965_v35 = vld [vmem:[%s8540_s24 + $0x520] sm:$0xff] }
 0x319   : > { %6547 = vmatmul.mubr.bf16.gmra.mrb[8].mxu0 %v2993_v21  ;;  %6627 = vmatmul.mubr.bf16.gmra.mrb[8].mxu1 %v3827_v52  ;;  %v3004_v21 = vpack.c.bf16 %v2957_v57, %v2956_v33  ;;  %v3838_v52 = vpack.c.bf16 %v3791_v40, %v3790_v27  ;;  %v3810_v33 = vld [vmem:[%s8540_s24 + $0x688] sm:$0xff]  ;;  %v3847_v40 = vpack.c.bf16 %v3809_v50, %v3808_v44  ;;  %v4412_v44 = vld [vmem:[%s8540_s24 + $0x110] sm:$0xff] }
 0x31a   : > { %6550 = vmatprep.mubr.bf16.mxu0 %v2994_v22  ;;  %6630 = vmatprep.mubr.bf16.mxu1 %v3828_v41  ;;  %v2958_v22 = vld [vmem:[%s8540_s24 + $0x440] sm:$0xff]  ;;  %v3811_v57 = vld [vmem:[%s8540_s24 + $0x6a8] sm:$0xff]  ;;  %v4413_v50 = vld [vmem:[%s8540_s24 + $0x130] sm:$0xff] }
 0x31b   : > { %6691 = vmatpush3.bf16.msra.mxu0 %v9615_v3  ;;  %6771 = vmatpush3.bf16.msra.mxu1 %v9615_v3  ;;  %v2998_v3 = vpack.c.bf16 %v2945_v61, %v2944_v31  ;;  %v2959_v41 = vld [vmem:[%s8540_s24 + $0x460] sm:$0xff]  ;;  %v3798_v31 = vld [vmem:[%s8540_s24 + $0x508] sm:$0xff] }
 0x31c   : > { %6692 = vmatprep.subr.bf16.mxu0 %v9623_v4  ;;  %6772 = vmatprep.subr.bf16.mxu1 %v9623_v4  ;;  %v3005_v34 = vpack.c.bf16 %v2959_v41, %v2958_v22  ;;  %v3799_v61 = vld [vmem:[%s8540_s24 + $0x528] sm:$0xff] }
 0x31d   : > { %v3812_v22 = vld [vmem:[%s8540_s24 + $0x6c8] sm:$0xff] }
 0x31e   : > { %v3813_v41 = vld [vmem:[%s8540_s24 + $0x6e8] sm:$0xff] }
 0x31f   : > { %6693 = vmatpush3.bf16.msra.mxu0 %v9623_v4  ;;  %6773 = vmatpush3.bf16.msra.mxu1 %v9623_v4  ;;  %v3832_v4 = vpack.c.bf16 %v3779_v37, %v3778_v32  ;;  %v3841_v37 = vpack.c.bf16 %v3797_v30, %v3796_v42  ;;  %v2984_v42 = vld [vmem:[%s8540_s24 + $0x780] sm:$0xff] }
 0x320   : > { %6694 = vmatprep.subr.bf16.mxu0 %v9631_v5  ;;  %6774 = vmatprep.subr.bf16.mxu1 %v9631_v5  ;;  %v2985_v30 = vld [vmem:[%s8540_s24 + $0x7a0] sm:$0xff] }
 0x321   : > { %6551 = vmatmul.mubr.bf16.gmra.mrb[12].mxu0 %v2995_v19  ;;  %6631 = vmatmul.mubr.bf16.gmra.mrb[12].mxu1 %v3829_v38  ;;  %v3006_v19 = vpack.c.bf16 %v2961_v49, %v2960_v63  ;;  %v3840_v38 = vpack.c.bf16 %v3795_v26, %v3794_v58  ;;  %v3814_v63 = vld [vmem:[%s8540_s24 + $0x708] sm:$0xff]  ;;  %v3849_v26 = vpack.c.bf16 %v3813_v41, %v3812_v22  ;;  %v4416_v22 = vld [vmem:[%s8540_s24 + $0x190] sm:$0xff] }
 0x322   : > { %6554 = vmatprep.mubr.bf16.mxu0 %v2996_v54  ;;  %6634 = vmatprep.mubr.bf16.mxu1 %v3830_v23  ;;  %v2962_v54 = vld [vmem:[%s8540_s24 + $0x4c0] sm:$0xff]  ;;  %v3815_v49 = vld [vmem:[%s8540_s24 + $0x728] sm:$0xff]  ;;  %v4417_v41 = vld [vmem:[%s8540_s24 + $0x1b0] sm:$0xff] }
 0x323   : > { %6695 = vmatpush3.bf16.msra.mxu0 %v9631_v5  ;;  %6775 = vmatpush3.bf16.msra.mxu1 %v9631_v5  ;;  %v2946_v5 = vld [vmem:[%s8540_s24 + $0x2c0] sm:$0xff] }
 0x324   : > { %6696 = vmatprep.subr.bf16.mxu0 %v9639_v6  ;;  %6776 = vmatprep.subr.bf16.mxu1 %v9639_v6  ;;  %v2963_v23 = vld [vmem:[%s8540_s24 + $0x4e0] sm:$0xff] }
 0x325   : > { %v3007_v32 = vpack.c.bf16 %v2963_v23, %v2962_v54  ;;  %v3816_v54 = vld [vmem:[%s8540_s24 + $0x748] sm:$0xff] }
 0x326   : > { %v3817_v23 = vld [vmem:[%s8540_s24 + $0x768] sm:$0xff] }
 0x327   : > { %6697 = vmatpush3.bf16.msra.mxu0 %v9639_v6  ;;  %6777 = vmatpush3.bf16.msra.mxu1 %v9639_v6  ;;  %v2999_v6 = vpack.c.bf16 %v2947_v7, %v2946_v5  ;;  %v3800_v5 = vld [vmem:[%s8540_s24 + $0x548] sm:$0xff] }
 0x328   : > { %v3801_v7 = vld [vmem:[%s8540_s24 + $0x568] sm:$0xff] }
 0x329   : > { %6555 = vmatmul.mubr.bf16.gmra.mrb[16].mxu0 %v2997_v1  ;;  %6635 = vmatmul.mubr.bf16.gmra.mrb[16].mxu1 %v3831_v2  ;;  %v3008_v1 = vpack.c.bf16 %v2965_v35, %v2964_v62  ;;  %v3842_v2 = vpack.c.bf16 %v3799_v61, %v3798_v31  ;;  %v3843_v13 = vpack.c.bf16 %v3801_v7, %v3800_v5  ;;  %v3818_v62 = vld [vmem:[%s8540_s24 + $0x788] sm:$0xff]  ;;  %v4404_v5 = vld [vmem:[%s8540_s24 + $0x10] sm:$0xff] }
 0x32a   : > { %6558 = vmatprep.mubr.bf16.mxu0 %v2998_v3  ;;  %6638 = vmatprep.mubr.bf16.mxu1 %v3832_v4  ;;  %v2966_v3 = vld [vmem:[%s8540_s24 + $0x540] sm:$0xff]  ;;  %v3819_v35 = vld [vmem:[%s8540_s24 + $0x7a8] sm:$0xff]  ;;  %v3851_v61 = vpack.c.bf16 %v3817_v23, %v3816_v54  ;;  %v4405_v7 = vld [vmem:[%s8540_s24 + $0x30] sm:$0xff] }
 0x32b   : > { %v2967_v4 = vld [vmem:[%s8540_s24 + $0x560] sm:$0xff]  ;;  %v4420_v54 = vld [vmem:[%s8540_s24 + $0x210] sm:$0xff] }
 0x32c   : > { %v3009_v12 = vpack.c.bf16 %v2967_v4, %v2966_v3  ;;  %v3820_v3 = vld [vmem:[%s8540_s24 + $0x7c8] sm:$0xff]  ;;  %v4421_v23 = vld [vmem:[%s8540_s24 + $0x230] sm:$0xff] }
 0x32d   : > { %v3821_v4 = vld [vmem:[%s8540_s24 + $0x7e8] sm:$0xff] }
 0x331   : > { %6559 = vmatmul.mubr.bf16.gmra.mrb[20].mxu0 %v2999_v6  ;;  %6639 = vmatmul.mubr.bf16.gmra.mrb[20].mxu1 %v3833_v14  ;;  %v3010_v6 = vpack.c.bf16 %v2969_v9, %v2968_v8  ;;  %v3844_v14 = vpack.c.bf16 %v3803_v11, %v3802_v10  ;;  %v5050_v8 = vld [vmem:[%s8540_s24 + $0x18] sm:$0xff]  ;;  %v3853_v11 = vpack.c.bf16 %v3821_v4, %v3820_v3  ;;  %v4424_v3 = vld [vmem:[%s8540_s24 + $0x290] sm:$0xff] }
 0x332   : > { %6562 = vmatprep.mubr.bf16.mxu0 %v3000_v15  ;;  %6642 = vmatprep.mubr.bf16.mxu1 %v3834_v16  ;;  %v2970_v15 = vld [vmem:[%s8540_s24 + $0x5c0] sm:$0xff]  ;;  %v5051_v9 = vld [vmem:[%s8540_s24 + $0x38] sm:$0xff]  ;;  %v4425_v4 = vld [vmem:[%s8540_s24 + $0x2b0] sm:$0xff] }
 0x333   : > { %v2971_v16 = vld [vmem:[%s8540_s24 + $0x5e0] sm:$0xff] }
 0x334   : > { %v3011_v0 = vpack.c.bf16 %v2971_v16, %v2970_v15  ;;  %v5052_v15 = vld [vmem:[%s8540_s24 + $0x58] sm:$0xff] }
 0x335   : > { %v5053_v16 = vld [vmem:[%s8540_s24 + $0x78] sm:$0xff] }
 0x339   : > { %6563 = vmatmul.mubr.bf16.gmra.mrb[24].mxu0 %v3001_v36  ;;  %6643 = vmatmul.mubr.bf16.gmra.mrb[24].mxu1 %v3835_v48  ;;  %v3012_v36 = vpack.c.bf16 %v2973_v60, %v2972_v46  ;;  %v3846_v48 = vpack.c.bf16 %v3807_v39, %v3806_v25  ;;  %v5054_v46 = vld [vmem:[%s8540_s24 + $0x98] sm:$0xff]  ;;  %v5115_v39 = vpack.c.bf16 %v5053_v16, %v5052_v15  ;;  %v4428_v15 = vld [vmem:[%s8540_s24 + $0x310] sm:$0xff] }
 0x33a   : > { %6566 = vmatprep.mubr.bf16.mxu0 %v3002_v47  ;;  %6646 = vmatprep.mubr.bf16.mxu1 %v3836_v28  ;;  %v2974_v47 = vld [vmem:[%s8540_s24 + $0x640] sm:$0xff]  ;;  %v5055_v60 = vld [vmem:[%s8540_s24 + $0xb8] sm:$0xff]  ;;  %v4429_v16 = vld [vmem:[%s8540_s24 + $0x330] sm:$0xff] }
 0x33b   : > { %v2975_v28 = vld [vmem:[%s8540_s24 + $0x660] sm:$0xff] }
 0x33c   : > { %v3013_v27 = vpack.c.bf16 %v2975_v28, %v2974_v47  ;;  %v5056_v47 = vld [vmem:[%s8540_s24 + $0xd8] sm:$0xff] }
 0x33d   : > { %v5057_v28 = vld [vmem:[%s8540_s24 + $0xf8] sm:$0xff] }
 0x341   : > { %6567 = vmatmul.mubr.bf16.gmra.mrb[28].mxu0 %v3003_v56  ;;  %6647 = vmatmul.mubr.bf16.gmra.mrb[28].mxu1 %v3837_v51  ;;  %v3014_v56 = vpack.c.bf16 %v2977_v59, %v2976_v53  ;;  %v3848_v51 = vpack.c.bf16 %v3811_v57, %v3810_v33  ;;  %v5058_v53 = vld [vmem:[%s8540_s24 + $0x118] sm:$0xff]  ;;  %v5117_v57 = vpack.c.bf16 %v5057_v28, %v5056_v47  ;;  %v4432_v47 = vld [vmem:[%s8540_s24 + $0x390] sm:$0xff] }
 0x342   : > { %6570 = vmatprep.mubr.bf16.mxu0 %v3004_v21  ;;  %6650 = vmatprep.mubr.bf16.mxu1 %v3838_v52  ;;  %v2978_v21 = vld [vmem:[%s8540_s24 + $0x6c0] sm:$0xff]  ;;  %v5059_v59 = vld [vmem:[%s8540_s24 + $0x138] sm:$0xff]  ;;  %v4433_v28 = vld [vmem:[%s8540_s24 + $0x3b0] sm:$0xff] }
 0x343   : > { %v2979_v52 = vld [vmem:[%s8540_s24 + $0x6e0] sm:$0xff] }
 0x344   : > { %v3015_v58 = vpack.c.bf16 %v2979_v52, %v2978_v21  ;;  %v5060_v21 = vld [vmem:[%s8540_s24 + $0x158] sm:$0xff] }
 0x345   : > { %v5061_v52 = vld [vmem:[%s8540_s24 + $0x178] sm:$0xff] }
 0x349   : > { %6571 = vmatmul.mubr.bf16.gmra.mrb[32].mxu0 %v3005_v34  ;;  %6651 = vmatmul.mubr.bf16.gmra.mrb[32].mxu1 %v3839_v29  ;;  %v3016_v34 = vpack.c.bf16 %v2981_v24, %v2980_v55  ;;  %v3850_v29 = vpack.c.bf16 %v3815_v49, %v3814_v63  ;;  %v5062_v55 = vld [vmem:[%s8540_s24 + $0x198] sm:$0xff]  ;;  %v5119_v49 = vpack.c.bf16 %v5061_v52, %v5060_v21  ;;  %v4436_v52 = vld [vmem:[%s8540_s24 + $0x410] sm:$0xff] }
 0x34a   : > { %6574 = vmatprep.mubr.bf16.mxu0 %v3006_v19  ;;  %6654 = vmatprep.mubr.bf16.mxu1 %v3840_v38  ;;  %v2982_v19 = vld [vmem:[%s8540_s24 + $0x740] sm:$0xff]  ;;  %v5063_v24 = vld [vmem:[%s8540_s24 + $0x1b8] sm:$0xff] }
 0x34b   : > { %v2983_v38 = vld [vmem:[%s8540_s24 + $0x760] sm:$0xff]  ;;  %v5081_v21 = vld [vmem:[%s8540_s24 + $0x3f8] sm:$0xff] }
 0x34c   : > { %v3017_v31 = vpack.c.bf16 %v2983_v38, %v2982_v19  ;;  %v5064_v19 = vld [vmem:[%s8540_s24 + $0x1d8] sm:$0xff] }
 0x34d   : > { %v5065_v38 = vld [vmem:[%s8540_s24 + $0x1f8] sm:$0xff] }
 0x351   : > { %6575 = vmatmul.mubr.bf16.gmra.mrb[36].mxu0 %v3007_v32  ;;  %6655 = vmatmul.mubr.bf16.gmra.mrb[36].mxu1 %v3841_v37  ;;  %v3018_v32 = vpack.c.bf16 %v2985_v30, %v2984_v42  ;;  %v3852_v37 = vpack.c.bf16 %v3819_v35, %v3818_v62  ;;  %v5066_v42 = vld [vmem:[%s8540_s24 + $0x218] sm:$0xff]  ;;  %v5121_v35 = vpack.c.bf16 %v5065_v38, %v5064_v19 }
 0x352   : > { %6578 = vmatprep.mubr.bf16.mxu0 %v3008_v1  ;;  %6658 = vmatprep.mubr.bf16.mxu1 %v3842_v2  ;;  %v2986_v1 = vld [vmem:[%s8540_s24 + $0x7c0] sm:$0xff]  ;;  %v5067_v30 = vld [vmem:[%s8540_s24 + $0x238] sm:$0xff] }
 0x353   : > { %v2987_v2 = vld [vmem:[%s8540_s24 + $0x7e0] sm:$0xff]  ;;  %v9880_v19 = vld [vmem:[%s8540_s24 + $0x458] sm:$0xff] }
 0x354   : > { %v3019_v10 = vpack.c.bf16 %v2987_v2, %v2986_v1  ;;  %v5068_v1 = vld [vmem:[%s8540_s24 + $0x258] sm:$0xff] }
 0x355   : > { %v5069_v2 = vld [vmem:[%s8540_s24 + $0x278] sm:$0xff] }
 0x356   : > { %v9883_v38 = vld [vmem:[%s8540_s24 + $0x478] sm:$0xff] }
 0x359   : > { %6579 = vmatmul.mubr.bf16.gmra.mrb[40].mxu0 %v3009_v12  ;;  %6659 = vmatmul.mubr.bf16.gmra.mrb[40].mxu1 %v3843_v13  ;;  %v4468_v12 = vpack.c.bf16 %v4405_v7, %v4404_v5  ;;  %v5114_v13 = vpack.c.bf16 %v5051_v9, %v5050_v8  ;;  %v5070_v5 = vld [vmem:[%s8540_s24 + $0x298] sm:$0xff]  ;;  %v5123_v9 = vpack.c.bf16 %v5069_v2, %v5068_v1 }
 0x35a   : > { %6582 = vmatprep.mubr.bf16.mxu0 %v3010_v6  ;;  %6662 = vmatprep.mubr.bf16.mxu1 %v3844_v14  ;;  %v4406_v6 = vld [vmem:[%s8540_s24 + $0x50] sm:$0xff]  ;;  %v5071_v7 = vld [vmem:[%s8540_s24 + $0x2b8] sm:$0xff] }
 0x35b   : > { %v4407_v14 = vld [vmem:[%s8540_s24 + $0x70] sm:$0xff]  ;;  %v9916_v1 = vld [vmem:[%s8540_s24 + $0x518] sm:$0xff] }
 0x35c   : > { %v4469_v25 = vpack.c.bf16 %v4407_v14, %v4406_v6  ;;  %v5072_v6 = vld [vmem:[%s8540_s24 + $0x2d8] sm:$0xff] }
 0x35d   : > { %v5073_v14 = vld [vmem:[%s8540_s24 + $0x2f8] sm:$0xff] }
 0x35e   : > { %v9920_v2 = vld [vmem:[%s8540_s24 + $0x538] sm:$0xff] }
 0x361   : > { %6583 = vmatmul.mubr.bf16.gmra.mrb[44].mxu0 %v3011_v0  ;;  %6663 = vmatmul.mubr.bf16.gmra.mrb[44].mxu1 %v3845_v43  ;;  %v4470_v0 = vpack.c.bf16 %v4409_v20, %v4408_v45  ;;  %v5116_v43 = vpack.c.bf16 %v5055_v60, %v5054_v46  ;;  %v5074_v45 = vld [vmem:[%s8540_s24 + $0x318] sm:$0xff]  ;;  %v5125_v60 = vpack.c.bf16 %v5073_v14, %v5072_v6 }
 0x362   : > { %6586 = vmatprep.mubr.bf16.mxu0 %v3012_v36  ;;  %6666 = vmatprep.mubr.bf16.mxu1 %v3846_v48  ;;  %v4410_v36 = vld [vmem:[%s8540_s24 + $0xd0] sm:$0xff]  ;;  %v5075_v20 = vld [vmem:[%s8540_s24 + $0x338] sm:$0xff] }
 0x363   : > { %v4411_v48 = vld [vmem:[%s8540_s24 + $0xf0] sm:$0xff]  ;;  %v9947_v6 = vld [vmem:[%s8540_s24 + $0x598] sm:$0xff] }
 0x364   : > { %v4471_v33 = vpack.c.bf16 %v4411_v48, %v4410_v36  ;;  %v5076_v36 = vld [vmem:[%s8540_s24 + $0x358] sm:$0xff] }
 0x365   : > { %v5077_v48 = vld [vmem:[%s8540_s24 + $0x378] sm:$0xff] }
 0x366   : > { %v9950_v14 = vld [vmem:[%s8540_s24 + $0x5b8] sm:$0xff] }
 0x369   : > { %6587 = vmatmul.mubr.bf16.gmra.mrb[48].mxu0 %v3013_v27  ;;  %6667 = vmatmul.mubr.bf16.gmra.mrb[48].mxu1 %v3847_v40  ;;  %v4472_v27 = vpack.c.bf16 %v4413_v50, %v4412_v44  ;;  %v5118_v40 = vpack.c.bf16 %v5059_v59, %v5058_v53  ;;  %v5078_v44 = vld [vmem:[%s8540_s24 + $0x398] sm:$0xff]  ;;  %v5127_v59 = vpack.c.bf16 %v5077_v48, %v5076_v36 }
 0x36a   : > { %6590 = vmatprep.mubr.bf16.mxu0 %v3014_v56  ;;  %6670 = vmatprep.mubr.bf16.mxu1 %v3848_v51  ;;  %v4414_v56 = vld [vmem:[%s8540_s24 + $0x150] sm:$0xff]  ;;  %v5079_v50 = vld [vmem:[%s8540_s24 + $0x3b8] sm:$0xff] }
 0x36b   : > { %v4415_v51 = vld [vmem:[%s8540_s24 + $0x170] sm:$0xff]  ;;  %v9978_v48 = vld [vmem:[%s8540_s24 + $0x5f8] sm:$0xff] }
 0x36c   : > { %v4473_v63 = vpack.c.bf16 %v4415_v51, %v4414_v56  ;;  %v2729_v56 = vlaneseq  ;;  %v5080_v51 = vld [vmem:[%s8540_s24 + $0x3d8] sm:$0xff] }
 0x36d   : > { %v10102_v36 = vld [vmem:[%s8540_s24 + $0x738] sm:$0xff] }
 0x36e   : > { %12594 = vst [vmem:[#allocation40_spill] sm:$0xff] %v10102_v36 }
 0x371   : > { %6591 = vmatmul.mubr.bf16.gmra.mrb[52].mxu0 %v3015_v58  ;;  %6671 = vmatmul.mubr.bf16.gmra.mrb[52].mxu1 %v3849_v26  ;;  %v4474_v58 = vpack.c.bf16 %v4417_v41, %v4416_v22  ;;  %v5120_v26 = vpack.c.bf16 %v5063_v24, %v5062_v55  ;;  %v4437_v22 = vld [vmem:[%s8540_s24 + $0x430] sm:$0xff]  ;;  %v5082_v41 = vld [vmem:[%s8540_s24 + $0x418] sm:$0xff] }
 0x372   : > { %6594 = vmatprep.mubr.bf16.mxu0 %v3016_v34  ;;  %6674 = vmatprep.mubr.bf16.mxu1 %v3850_v29  ;;  %v4418_v34 = vld [vmem:[%s8540_s24 + $0x1d0] sm:$0xff]  ;;  %v5083_v55 = vld [vmem:[%s8540_s24 + $0x438] sm:$0xff] }
 0x373   : > { %v4419_v29 = vld [vmem:[%s8540_s24 + $0x1f0] sm:$0xff] }
 0x374   : > { %v4475_v62 = vpack.c.bf16 %v4419_v29, %v4418_v34  ;;  %v4484_v34 = vpack.c.bf16 %v4437_v22, %v4436_v52  ;;  %v5130_v29 = vpack.c.bf16 %v5083_v55, %v5082_v41  ;;  %v10020_v52 = vld [vmem:[%s8540_s24 + $0x678] sm:$0xff] }
 0x375   : > { %v10064_v55 = vld [vmem:[%s8540_s24 + $0x6f8] sm:$0xff] }
 0x376   : > { %12585 = vst [vmem:[#allocation31_spill] sm:$0xff] %v10064_v55  ;;  %v10136_v55 = vld [vmem:[%s8540_s24 + $0x790] sm:$0xff] }
 0x379   : > { %6595 = vmatmul.mubr.bf16.gmra.mrb[56].mxu0 %v3017_v31  ;;  %6675 = vmatmul.mubr.bf16.gmra.mrb[56].mxu1 %v3851_v61  ;;  %v4476_v31 = vpack.c.bf16 %v4421_v23, %v4420_v54  ;;  %v5122_v61 = vpack.c.bf16 %v5067_v30, %v5066_v42  ;;  %v9886_v54 = vld [vmem:[%s8540_s24 + $0x490] sm:$0xff]  ;;  %v9892_v42 = vld [vmem:[%s8540_s24 + $0x498] sm:$0xff] }
 0x37a   : > { %6598 = vmatprep.mubr.bf16.mxu0 %v3018_v32  ;;  %6678 = vmatprep.mubr.bf16.mxu1 %v3852_v37  ;;  %v4422_v32 = vld [vmem:[%s8540_s24 + $0x250] sm:$0xff]  ;;  %v9895_v30 = vld [vmem:[%s8540_s24 + $0x4b8] sm:$0xff] }
 0x37b   : > { %v4423_v37 = vld [vmem:[%s8540_s24 + $0x270] sm:$0xff] }
 0x37c   : > { %v4477_v8 = vpack.c.bf16 %v4423_v37, %v4422_v32  ;;  %v9889_v23 = vld [vmem:[%s8540_s24 + $0x4b0] sm:$0xff] }
 0x37d   : > { %v9910_v32 = vld [vmem:[%s8540_s24 + $0x510] sm:$0xff] }
 0x37e   : > { %v9913_v37 = vld [vmem:[%s8540_s24 + $0x530] sm:$0xff] }
 0x381   : > { %6599 = vmatmul.mubr.bf16.gmra.mrb[60].mxu0 %v3019_v10  ;;  %6679 = vmatmul.mubr.bf16.gmra.mrb[60].mxu1 %v3853_v11  ;;  %v4478_v10 = vpack.c.bf16 %v4425_v4, %v4424_v3  ;;  %v5124_v11 = vpack.c.bf16 %v5071_v7, %v5070_v5  ;;  %v9923_v3 = vld [vmem:[%s8540_s24 + $0x550] sm:$0xff]  ;;  %v9929_v5 = vld [vmem:[%s8540_s24 + $0x558] sm:$0xff] }
 0x382   : > { %6698 = vmatprep.mubr.bf16.mxu0 %v4468_v12  ;;  %6778 = vmatprep.mubr.bf16.mxu1 %v5114_v13  ;;  %v4426_v12 = vld [vmem:[%s8540_s24 + $0x2d0] sm:$0xff]  ;;  %v9932_v7 = vld [vmem:[%s8540_s24 + $0x578] sm:$0xff] }
 0x383   : > { %v4427_v13 = vld [vmem:[%s8540_s24 + $0x2f0] sm:$0xff] }
 0x384   : > { %v4479_v46 = vpack.c.bf16 %v4427_v13, %v4426_v12  ;;  %v9926_v4 = vld [vmem:[%s8540_s24 + $0x570] sm:$0xff]  ;;  %v9941_v12 = vstv %s5866_s21 }
 0x385   : > { %v9944_v13 = vld [vmem:[%s8540_s24 + $0x5b0] sm:$0xff] }
 0x389   : > { %6699 = vmatmul.mubr.bf16.vlgmr.msra.gmra.mrb[64].mxu0 %v4469_v25  ;;  %6779 = vmatmul.mubr.bf16.vlgmr.msra.gmra.mrb[64].mxu1 %v5115_v39  ;;  %v4480_v25 = vpack.c.bf16 %v4429_v16, %v4428_v15  ;;  %v5126_v39 = vpack.c.bf16 %v5075_v20, %v5074_v45  ;;  %v5131_v15 = vpack.c.bf16 %v9883_v38, %v9880_v19  ;;  %v10043_v38 = vld [vmem:[%s8540_s24 + $0x698] sm:$0xff]  ;;  %v10058_v19 = vld [vmem:[%s8540_s24 + $0x6f0] sm:$0xff] }
 0x38a   : > { %6702 = vmatprep.mubr.bf16.mxu0 %v4470_v0  ;;  %6782 = vmatprep.mubr.bf16.mxu1 %v5116_v43  ;;  %v4430_v0 = vld [vmem:[%s8540_s24 + $0x350] sm:$0xff]  ;;  %v4486_v16 = vpack.c.bf16 %v9889_v23, %v9886_v54  ;;  %v5132_v45 = vpack.c.bf16 %v9895_v30, %v9892_v42  ;;  %12581 = vst [vmem:[#allocation27_spill] sm:$0xff] %v10043_v38  ;;  %v10046_v54 = vld [vmem:[%s8540_s24 + $0x6b8] sm:$0xff]  ;;  %12583 = vst [vmem:[#allocation29_spill] sm:$0xff] %v10058_v19 }
 0x38b   : > { %v4431_v43 = vld [vmem:[%s8540_s24 + $0x370] sm:$0xff]  ;;  %v10122_v20 = vld [vmem:[%s8540_s24 + $0x778] sm:$0xff]  ;;  %v12606_v38 = vpack.c.bf16 %v9913_v37, %v9910_v32 }
 0x38c   : > { %v4481_v53 = vpack.c.bf16 %v4431_v43, %v4430_v0  ;;  %v10049_v23 = vld [vmem:[%s8540_s24 + $0x6d0] sm:$0xff]  ;;  %v10142_v19 = vld [vmem:[%s8540_s24 + $0x798] sm:$0xff] }
 0x38d   : > { %12582 = vst [vmem:[#allocation28_spill] sm:$0xff] %v10049_v23  ;;  %v10105_v43 = vld [vmem:[%s8540_s24 + $0x750] sm:$0xff] }
 0x38e   : > { %12595 = vst [vmem:[#allocation41_spill] sm:$0xff] %v10105_v43  ;;  %v10139_v23 = vld [vmem:[%s8540_s24 + $0x7b0] sm:$0xff] }
 0x391   : > { %6703 = vmatmul.mubr.bf16.gmra.mrb[68].mxu0 %v4471_v33  ;;  %6783 = vmatmul.mubr.bf16.gmra.mrb[68].mxu1 %v5117_v57  ;;  %v4482_v33 = vpack.c.bf16 %v4433_v28, %v4432_v47  ;;  %v5128_v57 = vpack.c.bf16 %v5079_v50, %v5078_v44  ;;  %v9981_v47 = vld [vmem:[%s8540_s24 + $0x610] sm:$0xff] }
 0x392   : > { %6706 = vmatprep.mubr.bf16.mxu0 %v4472_v27  ;;  %6786 = vmatprep.mubr.bf16.mxu1 %v5118_v40  ;;  %v4434_v27 = vld [vmem:[%s8540_s24 + $0x3d0] sm:$0xff] }
 0x393   : > { %v4435_v40 = vld [vmem:[%s8540_s24 + $0x3f0] sm:$0xff] }
 0x394   : > { %v4483_v24 = vpack.c.bf16 %v4435_v40, %v4434_v27  ;;  %v9984_v28 = vld [vmem:[%s8540_s24 + $0x630] sm:$0xff] }
 0x395   : > { %v10004_v27 = vld [vmem:[%s8540_s24 + $0x650] sm:$0xff] }
 0x399   : > { %6707 = vmatmul.mubr.bf16.gmra.mrb[72].mxu0 %v4473_v63  ;;  %6787 = vmatmul.mubr.bf16.gmra.mrb[72].mxu1 %v5119_v49  ;;  %v5129_v63 = vpack.c.bf16 %v5081_v21, %v5080_v51  ;;  %v9872_v49 = vld [vmem:[%s8540_s24 + $0x450] sm:$0xff]  ;;  %v10017_v21 = vld [vmem:[%s8540_s24 + $0x658] sm:$0xff] }
 0x39a   : > { %6710 = vmatprep.mubr.bf16.mxu0 %v4474_v58  ;;  %6790 = vmatprep.mubr.bf16.mxu1 %v5120_v26  ;;  %v9875_v58 = vld [vmem:[%s8540_s24 + $0x470] sm:$0xff]  ;;  %v9877_v26 = vshrl.u32 %v2729_v56, 7 }
 0x39b   : > { %v10014_v51 = vld [vmem:[%s8540_s24 + $0x670] sm:$0xff] }
 0x39c   : > { %v2733_v40 = vadd.s32 24, %v9877_v26  ;;  %v10024_v22 = vadd.s32 %v9941_v12, %v9877_v26  ;;  %v2731_v41 = vadd.s32 8, %v9877_v26  ;;  %v2735_v42 = vadd.s32 40, %v9877_v26  ;;  %v10086_v56 = vld [vmem:[%s8540_s24 + $0x730] sm:$0xff] }
 0x39d   : > { %v2739_v30 = vadd.s32 72, %v9877_v26  ;;  %12590 = vst [vmem:[#allocation36_spill] sm:$0xff] %v10086_v56  ;;  %v2742_v0 = vadd.s32 96, %v9877_v26  ;;  %v2746_v56 = vadd.s32 128, %v9877_v26 }
 0x39e   : > { %12580 = vst [vmem:[#allocation26_spill] sm:$0xff] %v10024_v22  ;;  %vm2860_vm4 = vcmp.lt.s32.totalorder %v10024_v22, 1152 }
 0x39f   : > { %v10179_v43 = vadd.s32 %v9941_v12, %v2742_v0  ;;  %v2750_v0 = vadd.s32 160, %v9877_v26 }
 0x3a1   : > { %6711 = vmatmul.mubr.bf16.gmra.mrb[76].mxu0 %v4475_v62  ;;  %6791 = vmatmul.mubr.bf16.gmra.mrb[76].mxu1 %v5121_v35  ;;  %v9898_v62 = vld [vmem:[%s8540_s24 + $0x4d0] sm:$0xff]  ;;  %12605 = vst [vmem:[#allocation49_spill] sm:$0xff] %v10179_v43  ;;  %vm12427_vm0 = vcmp.lt.s32.totalorder %v10179_v43, 1152 }
 0x3a2   : > { %6714 = vmatprep.mubr.bf16.mxu0 %v4476_v31  ;;  %6794 = vmatprep.mubr.bf16.mxu1 %v5122_v61  ;;  %v9901_v35 = vld [vmem:[%s8540_s24 + $0x4f0] sm:$0xff]  ;;  %v9904_v31 = vld [vmem:[%s8540_s24 + $0x4d8] sm:$0xff] }
 0x3a3   : > { %v9907_v61 = vld [vmem:[%s8540_s24 + $0x4f8] sm:$0xff] }
 0x3a4   : > { %v12603_v36 = vpack.c.bf16 %v9907_v61, %v9904_v31  ;;  %v2758_v61 = vadd.s32 224, %v9877_v26  ;;  %v2759_v31 = vadd.s32 232, %v9877_v26 }
 0x3a9   : > { %6715 = vmatmul.mubr.bf16.gmra.mrb[80].mxu0 %v4477_v8  ;;  %6795 = vmatmul.mubr.bf16.gmra.mrb[80].mxu1 %v5123_v9  ;;  %v2732_v8 = vadd.s32 16, %v9877_v26  ;;  %v3023_v9 = vsub.s32 0, %v9877_v26 }
 0x3aa   : > { %6718 = vmatprep.mubr.bf16.mxu0 %v4478_v10  ;;  %6798 = vmatprep.mubr.bf16.mxu1 %v5124_v11  ;;  %v9937_v10 = vld [vmem:[%s8540_s24 + $0x590] sm:$0xff]  ;;  %v4485_v11 = vpack.c.bf16 %v9875_v58, %v9872_v49  ;;  %v2734_v58 = vadd.s32 32, %v9877_v26 }
 0x3ab   : > { %v9989_v50 = vadd.s32 %v9941_v12, %v2732_v8  ;;  %v10034_v49 = vld [vmem:[%s8540_s24 + $0x6b0] sm:$0xff]  ;;  %v2741_v8 = vadd.s32 88, %v9877_v26 }
 0x3ac   : > { %v10089_v44 = vadd.s32 %v9941_v12, %v2734_v58  ;;  %v10108_v58 = vadd.s32 %v9941_v12, %v2735_v42 }
 0x3ad   : > { %12579 = vst [vmem:[#allocation25_spill] sm:$0xff] %v9989_v50  ;;  %v10128_v42 = vadd.s32 %v9941_v12, %v2741_v8  ;;  %v10167_v8 = vld [vmem:[%s8540_s24 + $0x7f8] sm:$0xff]  ;;  %vm2862_vm3 = vcmp.lt.s32.totalorder %v9989_v50, 1152 }
 0x3ae   : > { %12591 = vst [vmem:[#allocation37_spill] sm:$0xff] %v10089_v44  ;;  %12596 = vst [vmem:[#allocation42_spill] sm:$0xff] %v10108_v58  ;;  %v2747_v58 = vadd.s32 136, %v9877_v26  ;;  %v10164_v44 = vld [vmem:[%s8540_s24 + $0x7d8] sm:$0xff] }
 0x3af   : > { %12600 = vst [vmem:[#allocation46_spill] sm:$0xff] %v10128_v42  ;;  %v10153_v42 = vld [vmem:[%s8540_s24 + $0x7d0] sm:$0xff] }
 0x3b1   : > { %6719 = vmatmul.mubr.bf16.gmra.mrb[84].mxu0 %v4479_v46  ;;  %6799 = vmatmul.mubr.bf16.gmra.mrb[84].mxu1 %v5125_v60  ;;  %v9961_v46 = vld [vmem:[%s8540_s24 + $0x5d0] sm:$0xff] }
 0x3b2   : > { %6722 = vmatprep.mubr.bf16.mxu0 %v4480_v25  ;;  %6802 = vmatprep.mubr.bf16.mxu1 %v5126_v39  ;;  %v9964_v60 = vld [vmem:[%s8540_s24 + $0x5f0] sm:$0xff]  ;;  %v9967_v25 = vld [vmem:[%s8540_s24 + $0x5d8] sm:$0xff] }
 0x3b3   : > { %v10119_v39 = vld [vmem:[%s8540_s24 + $0x758] sm:$0xff] }
 0x3b9   : > { %6723 = vmatmul.mubr.bf16.gmra.mrb[88].mxu0 %v4481_v53  ;;  %6803 = vmatmul.mubr.bf16.gmra.mrb[88].mxu1 %v5127_v59  ;;  %v9992_v53 = vrot.slane %v8597_v17, %v3023_v9  ;;  %v9995_v59 = vrot.slane %v8599_v18, %v3023_v9  ;;  %v2740_v9 = vadd.s32 80, %v9877_v26  ;;  %v10073_v18 = vadd.s32 %v9941_v12, %v2731_v41 }
 0x3ba   : > { %6726 = vmatprep.mubr.bf16.mxu0 %v4482_v33  ;;  %6806 = vmatprep.mubr.bf16.mxu1 %v5128_v57  ;;  %v9998_v33 = vld [vmem:[%s8540_s24 + $0x618] sm:$0xff] }
 0x3bb   : > { %v10001_v57 = vld [vmem:[%s8540_s24 + $0x638] sm:$0xff]  ;;  %12587 = vst [vmem:[#allocation33_spill] sm:$0xff] %v10073_v18  ;;  %vm2861_vm5 = vcmp.lt.s32.totalorder %v10073_v18, 1152 }
 0x3c1   : > { %6727 = vmatmul.mubr.bf16.gmra.mrb[92].mxu0 %v4483_v24  ;;  %6807 = vmatmul.mubr.bf16.gmra.mrb[92].mxu1 %v5129_v63  ;;  %v2736_v24 = vadd.s32 48, %v9877_v26  ;;  %v10031_v63 = vld [vmem:[%s8540_s24 + $0x690] sm:$0xff] }
 0x3c2   : > { %6730 = vmatprep.mubr.bf16.mxu0 %v4484_v34  ;;  %6810 = vmatprep.mubr.bf16.mxu1 %v5130_v29  ;;  %v2737_v34 = vadd.s32 56, %v9877_v26  ;;  %v10061_v29 = vld [vmem:[%s8540_s24 + $0x6d8] sm:$0xff] }
 0x3c3   : > { %12584 = vst [vmem:[#allocation30_spill] sm:$0xff] %v10061_v29  ;;  %v10076_v17 = vadd.s32 %v9941_v12, %v2736_v24  ;;  %v2744_v24 = vadd.s32 112, %v9877_v26 }
 0x3c4   : > { %v10092_v41 = vadd.s32 %v9941_v12, %v2737_v34  ;;  %v10111_v34 = vadd.s32 %v9941_v12, %v2740_v9  ;;  %v10131_v9 = vadd.s32 %v9941_v12, %v2739_v30  ;;  %v2748_v30 = vadd.s32 144, %v9877_v26 }
 0x3c5   : > { %12588 = vst [vmem:[#allocation34_spill] sm:$0xff] %v10076_v17  ;;  %v2752_v17 = vadd.s32 176, %v9877_v26 }
 0x3c6   : > { %12592 = vst [vmem:[#allocation38_spill] sm:$0xff] %v10092_v41  ;;  %12597 = vst [vmem:[#allocation43_spill] sm:$0xff] %v10111_v34  ;;  %v10156_v34 = vld [vmem:[%s8540_s24 + $0x7f0] sm:$0xff]  ;;  %v2749_v41 = vadd.s32 152, %v9877_v26  ;;  %v10204_v37 = vadd.s32 %v9941_v12, %v2748_v30  ;;  %v2756_v30 = vadd.s32 208, %v9877_v26 }
 0x3c7   : > { %12601 = vst [vmem:[#allocation47_spill] sm:$0xff] %v10131_v9  ;;  %v10150_v9 = vld [vmem:[%s8540_s24 + $0x7b8] sm:$0xff] }
 0x3c8   : > { %12610 = vst [vmem:[#allocation52_spill] sm:$0xff] %v10204_v37 }
 0x3c9   : > { %6731 = vmatmul.mubr.bf16.gmra.mrb[96].mxu0 %v4485_v11  ;;  %6811 = vmatmul.mubr.bf16.gmra.mrb[96].mxu1 %v5131_v15  ;;  %v10067_v11 = vadd.s32 %v9941_v12, %v2733_v40  ;;  %v2738_v15 = vadd.s32 64, %v9877_v26  ;;  %v10083_v40 = vld [vmem:[%s8540_s24 + $0x710] sm:$0xff] }
 0x3ca   : > { %6734 = vmatprep.mubr.bf16.mxu0 %v4486_v16  ;;  %6814 = vmatprep.mubr.bf16.mxu1 %v5132_v45  ;;  %12589 = vst [vmem:[#allocation35_spill] sm:$0xff] %v10083_v40  ;;  %v10099_v45 = vld [vmem:[%s8540_s24 + $0x718] sm:$0xff]  ;;  %v10116_v16 = vld [vmem:[%s8540_s24 + $0x770] sm:$0xff]  ;;  %v10176_v40 = vadd.s32 %v9941_v12, %v2744_v24  ;;  %v2753_v24 = vadd.s32 184, %v9877_v26 }
 0x3cb   : > { %12586 = vst [vmem:[#allocation32_spill] sm:$0xff] %v10067_v11  ;;  %12593 = vst [vmem:[#allocation39_spill] sm:$0xff] %v10099_v45  ;;  %v10125_v29 = vadd.s32 %v9941_v12, %v2738_v15  ;;  %v2745_v15 = vadd.s32 120, %v9877_v26  ;;  %v12602_v45 = vpack.c.bf16 %v9901_v35, %v9898_v62  ;;  %v12607_v62 = vpack.c.bf16 %v9920_v2, %v9916_v1 }
 0x3cc   : > { %12598 = vst [vmem:[#allocation44_spill] sm:$0xff] %v10116_v16  ;;  %12604 = vst [vmem:[#allocation48_spill] sm:$0xff] %v10176_v40  ;;  %v10209_v2 = vadd.s32 %v9941_v12, %v2746_v56  ;;  %v10225_v56 = vadd.s32 %v9941_v12, %v2750_v0  ;;  %v2755_v1 = vadd.s32 200, %v9877_v26  ;;  %v2764_v35 = vadd.s32 272, %v9877_v26 }
 0x3cd   : > { %12599 = vst [vmem:[#allocation45_spill] sm:$0xff] %v10125_v29  ;;  %v2743_v29 = vadd.s32 104, %v9877_v26  ;;  %v10235_v16 = vadd.s32 %v9941_v12, %v2753_v24  ;;  %v2762_v0 = vadd.s32 256, %v9877_v26  ;;  %v10250_v24 = vadd.s32 %v9941_v12, %v2756_v30 }
 0x3ce   : > { %12611 = vst [vmem:[#allocation53_spill] sm:$0xff] %v10209_v2  ;;  %12615 = vst [vmem:[#allocation57_spill] sm:$0xff] %v10225_v56  ;;  %v2763_v56 = vadd.s32 264, %v9877_v26  ;;  %v12622_v2 = vpack.c.bf16 %v9944_v13, %v9937_v10  ;;  %v10277_v10 = vadd.s32 %v9941_v12, %v2759_v31  ;;  %v10280_v13 = vadd.s32 %v9941_v12, %v2764_v35 }
 0x3cf   : > { %v10201_v32 = vadd.s32 %v9941_v12, %v2743_v29  ;;  %v10219_v29 = vadd.s32 %v9941_v12, %v2752_v17  ;;  %v2761_v17 = vadd.s32 248, %v9877_v26  ;;  %12616 = vst [vmem:[#allocation58_spill] sm:$0xff] %v10235_v16  ;;  %12620 = vst [vmem:[#allocation60_spill] sm:$0xff] %v10250_v24  ;;  %vm2863_vm6 = vcmp.lt.s32.totalorder %v10067_v11, 1152 }
 0x3d0   : > { %12629 = vst [vmem:[#allocation67_spill] sm:$0xff] %v10277_v10  ;;  %12630 = vst [vmem:[#allocation68_spill] sm:$0xff] %v10280_v13  ;;  %v2776_v10 = vadd.s32 368, %v9877_v26  ;;  %vm12425_vm15 = vcmp.lt.s32.totalorder %v10176_v40, 1152 }
 0x3d1   : > { %6735 = vmatmul.mubr.bf16.gmra.mrb[100].mxu0 %v12602_v45  ;;  %6815 = vmatmul.mubr.bf16.gmra.mrb[100].mxu1 %v12603_v36  ;;  %v10198_v36 = vadd.s32 %v9941_v12, %v2745_v15  ;;  %12609 = vst [vmem:[#allocation51_spill] sm:$0xff] %v10201_v32  ;;  %v10215_v45 = vadd.s32 %v9941_v12, %v2747_v58  ;;  %12614 = vst [vmem:[#allocation56_spill] sm:$0xff] %v10219_v29  ;;  %v2751_v15 = vadd.s32 168, %v9877_v26 }
 0x3d2   : > { %6738 = vmatprep.mubr.bf16.mxu0 %v12606_v38  ;;  %6818 = vmatprep.mubr.bf16.mxu1 %v12607_v62  ;;  %v10212_v38 = vadd.s32 %v9941_v12, %v2749_v41  ;;  %v2754_v62 = vadd.s32 192, %v9877_v26  ;;  %v2757_v41 = vadd.s32 216, %v9877_v26  ;;  %v2760_v58 = vadd.s32 240, %v9877_v26 }
 0x3d3   : > { %12608 = vst [vmem:[#allocation50_spill] sm:$0xff] %v10198_v36  ;;  %12613 = vst [vmem:[#allocation55_spill] sm:$0xff] %v10215_v45  ;;  %v2765_v29 = vadd.s32 280, %v9877_v26  ;;  %v12617_v45 = vpack.c.bf16 %v9926_v4, %v9923_v3  ;;  %v10247_v37 = vadd.s32 %v9941_v12, %v2751_v15  ;;  %v12623_v3 = vpack.c.bf16 %v9950_v14, %v9947_v6 }
 0x3d4   : > { %12612 = vst [vmem:[#allocation54_spill] sm:$0xff] %v10212_v38  ;;  %v12618_v38 = vpack.c.bf16 %v9932_v7, %v9929_v5  ;;  %v10253_v16 = vadd.s32 %v9941_v12, %v2754_v62  ;;  %v10262_v4 = vadd.s32 %v9941_v12, %v2757_v41  ;;  %v10265_v5 = vadd.s32 %v9941_v12, %v2755_v1 }
 0x3d5   : > { %12619 = vst [vmem:[#allocation59_spill] sm:$0xff] %v10247_v37  ;;  %v10268_v7 = vadd.s32 %v9941_v12, %v2760_v58  ;;  %v10283_v1 = vadd.s32 %v9941_v12, %v2762_v0  ;;  %v2768_v15 = vadd.s32 304, %v9877_v26  ;;  %v2766_v41 = vadd.s32 288, %v9877_v26 }
 0x3d6   : > { %12621 = vst [vmem:[#allocation61_spill] sm:$0xff] %v10253_v16  ;;  %12624 = vst [vmem:[#allocation62_spill] sm:$0xff] %v10262_v4  ;;  %v2769_v58 = vadd.s32 312, %v9877_v26  ;;  %vm12428_vm1 = vcmp.lt.s32.totalorder %v10198_v36, 1152  ;;  %vm12429_vm2 = vcmp.lt.s32.totalorder %v10201_v32, 1152 }
 0x3d7   : > { %12625 = vst [vmem:[#allocation63_spill] sm:$0xff] %v10265_v5  ;;  %12626 = vst [vmem:[#allocation64_spill] sm:$0xff] %v10268_v7  ;;  %v10314_v7 = vadd.s32 %v9941_v12, %v2768_v15  ;;  %v10347_v15 = vadd.s32 %v9941_v12, %v2776_v10  ;;  %v2775_v10 = vadd.s32 360, %v9877_v26 }
 0x3d8   : > { %12631 = vst [vmem:[#allocation69_spill] sm:$0xff] %v10283_v1  ;;  %v2773_v1 = vadd.s32 344, %v9877_v26 }
 0x3d9   : > { %6739 = vmatmul.mubr.bf16.gmra.mrb[104].mxu0 %v12617_v45  ;;  %6819 = vmatmul.mubr.bf16.gmra.mrb[104].mxu1 %v12618_v38  ;;  %v10271_v38 = vadd.s32 %v9941_v12, %v2758_v61  ;;  %v10274_v45 = vadd.s32 %v9941_v12, %v2761_v17  ;;  %v10289_v61 = vadd.s32 %v9941_v12, %v2763_v56  ;;  %v2767_v56 = vadd.s32 296, %v9877_v26 }
 0x3da   : > { %6742 = vmatprep.mubr.bf16.mxu0 %v12622_v2  ;;  %6822 = vmatprep.mubr.bf16.mxu1 %v12623_v3  ;;  %v10286_v2 = vadd.s32 %v9941_v12, %v2765_v29  ;;  %12636 = vst [vmem:[#allocation72_spill] sm:$0xff] %v10314_v7  ;;  %12646 = vst [vmem:[#allocation80_spill] sm:$0xff] %v10347_v15 }
 0x3db   : > { %12627 = vst [vmem:[#allocation65_spill] sm:$0xff] %v10271_v38  ;;  %12628 = vst [vmem:[#allocation66_spill] sm:$0xff] %v10274_v45 }
 0x3dc   : > { %v6540_v6 = vpop.f32.mrb[0].mxu0  ;;  %v6620_v14 = vpop.f32.mrb[0].mxu1  ;;  %12632 = vst [vmem:[#allocation70_spill] sm:$0xff] %v10286_v2  ;;  %12633 = vst [vmem:[#allocation71_spill] sm:$0xff] %v10289_v61  ;;  %v2772_v2 = vadd.s32 336, %v9877_v26  ;;  %v2770_v61 = vadd.s32 320, %v9877_v26 }
 0x3dd   : > { %v3117_v30 = vadd.f32 %v6540_v6, %v9992_v53  ;;  %v3897_v31 = vadd.f32 %v6620_v14, %v9992_v53  ;;  %v3108_v62 = vpop.f32.mrb[1].mxu0  ;;  %v3888_v35 = vpop.f32.mrb[1].mxu1 }
 0x3de   : > { %v3109_v17 = vadd.f32 %v3108_v62, %v9992_v53  ;;  %v3889_v29 = vadd.f32 %v3888_v35, %v9992_v53  ;;  %v6541_v0 = vpop.f32.mrb[2].mxu0  ;;  %v6621_v3 = vpop.f32.mrb[2].mxu1  ;;  %v2771_v35 = vadd.s32 328, %v9877_v26 }
 0x3df   : > { %7486 = vtanh.f32 %v3117_v30  ;;  %v3120_v6 = vadd.f32 %v6541_v0, %v9992_v53  ;;  %v3111_v14 = vpop.f32.mrb[3].mxu0  ;;  %v3891_v13 = vpop.f32.mrb[3].mxu1  ;;  %v3900_v62 = vadd.f32 %v6621_v3, %v9992_v53  ;;  %v12634_v30 = vpack.c.bf16 %v9964_v60, %v9961_v46 }
 0x3e0   : > { %7488 = vtanh.f32 %v3897_v31  ;;  %v3112_v45 = vadd.f32 %v3111_v14, %v9992_v53  ;;  %v12635_v0 = vpack.c.bf16 %v9978_v48, %v9967_v25  ;;  %v10317_v31 = vadd.s32 %v9941_v12, %v2766_v41 }
 0x3e1   : > { %7490 = vtanh.f32 %v3109_v17  ;;  %6743 = vmatmul.mubr.bf16.gmra.mrb[108].mxu0 %v12634_v30  ;;  %v3892_v3 = vadd.f32 %v3891_v13, %v9992_v53  ;;  %v12638_v17 = vpack.c.bf16 %v9984_v28, %v9981_v47  ;;  %v12639_v46 = vpack.c.bf16 %v10001_v57, %v9998_v33 }
 0x3e2   : > { %6823 = vmatmul.mubr.bf16.gmra.mrb[108].mxu1 %v12635_v0  ;;  %12637 = vst [vmem:[#allocation73_spill] sm:$0xff] %v10317_v31  ;;  %7492 = vtanh.f32 %v3889_v29  ;;  %v10327_v60 = vadd.s32 %v9941_v12, %v2769_v58  ;;  %v10330_v25 = vadd.s32 %v9941_v12, %v2767_v56  ;;  %v10334_v48 = vadd.s32 %v9941_v12, %v2772_v2 }
 0x3e3   : > { %6746 = vmatprep.mubr.bf16.mxu0 %v12638_v17  ;;  %6826 = vmatprep.mubr.bf16.mxu1 %v12639_v46  ;;  %7494 = vtanh.f32 %v3120_v6  ;;  %v10337_v13 = vadd.s32 %v9941_v12, %v2770_v61  ;;  %v10340_v47 = vadd.s32 %v9941_v12, %v2773_v1  ;;  %v10344_v57 = vadd.s32 %v9941_v12, %v2771_v35 }
 0x3e4   : > { %12640 = vst [vmem:[#allocation74_spill] sm:$0xff] %v10327_v60  ;;  %12641 = vst [vmem:[#allocation75_spill] sm:$0xff] %v10330_v25  ;;  %7496 = vtanh.f32 %v3900_v62  ;;  %v6544_v28 = vpop.f32.mrb[4].mxu0  ;;  %v6624_v33 = vpop.f32.mrb[4].mxu1  ;;  %v2774_v2 = vadd.s32 352, %v9877_v26  ;;  %v2777_v29 = vadd.s32 376, %v9877_v26 }
 0x3e5   : > { %12642 = vst [vmem:[#allocation76_spill] sm:$0xff] %v10334_v48  ;;  %12643 = vst [vmem:[#allocation77_spill] sm:$0xff] %v10337_v13  ;;  %7498 = vtanh.f32 %v3112_v45  ;;  %v3133_v61 = vadd.f32 %v6544_v28, %v9992_v53  ;;  %v3913_v41 = vadd.f32 %v6624_v33, %v9992_v53  ;;  %v3124_v1 = vpop.f32.mrb[5].mxu0  ;;  %v3904_v58 = vpop.f32.mrb[5].mxu1  ;;  %v2780_v0 = vadd.s32 400, %v9877_v26  ;;  %v12672_v48 = vld [vmem:[#allocation40_spill] sm:$0xff] }
 0x3e6   : > { %12644 = vst [vmem:[#allocation78_spill] sm:$0xff] %v10340_v47  ;;  %12645 = vst [vmem:[#allocation79_spill] sm:$0xff] %v10344_v57  ;;  %7500 = vtanh.f32 %v3892_v3  ;;  %v3125_v56 = vadd.f32 %v3124_v1, %v9992_v53  ;;  %v3905_v6 = vadd.f32 %v3904_v58, %v9992_v53  ;;  %v6545_v14 = vpop.f32.mrb[6].mxu0  ;;  %v6625_v62 = vpop.f32.mrb[6].mxu1  ;;  %v2778_v17 = vadd.s32 384, %v9877_v26  ;;  %v12679_v60 = vld [vmem:[#allocation44_spill] sm:$0xff] }
 0x3e7   : > { %7502 = vtanh.f32 %v3133_v61  ;;  %v3136_v45 = vadd.f32 %v6545_v14, %v9992_v53  ;;  %v3127_v35 = vpop.f32.mrb[7].mxu0  ;;  %v3907_v30 = vpop.f32.mrb[7].mxu1  ;;  %v3916_v3 = vadd.f32 %v6625_v62, %v9992_v53  ;;  %v2781_v46 = vadd.s32 408, %v9877_v26 }
 0x3e8   : > { %7504 = vtanh.f32 %v3913_v41  ;;  %v2779_v28 = vadd.s32 392, %v9877_v26  ;;  %v3128_v61 = vadd.f32 %v3127_v35, %v9992_v53  ;;  %v12647_v1 = vpack.c.bf16 %v10014_v51, %v10004_v27  ;;  %v12652_v51 = vld [vmem:[#allocation27_spill] sm:$0xff]  ;;  %v12655_v35 = vld [vmem:[#allocation34_spill] sm:$0xff] }
 0x3e9   : > { %v7487_v33 = vpop.eup %7486  ;;  %7506 = vtanh.f32 %v3125_v56  ;;  %v12648_v58 = vpack.c.bf16 %v10020_v52, %v10017_v21  ;;  %v10372_v41 = vadd.s32 %v9941_v12, %v2774_v2  ;;  %v10375_v14 = vadd.s32 %v9941_v12, %v2777_v29 }
 0x3ea   : > { %6747 = vmatmul.mubr.bf16.gmra.mrb[112].mxu0 %v12647_v1  ;;  %v7489_v62 = vpop.eup %7488  ;;  %v3435_v15 = vmul.f32 %v7487_v33, %v9995_v59  ;;  %7508 = vtanh.f32 %v3905_v6  ;;  %v3908_v56 = vadd.f32 %v3907_v30, %v9992_v53  ;;  %v12651_v27 = vpack.c.bf16 %v10034_v49, %v10031_v63  ;;  %v12656_v33 = vld [vmem:[#allocation37_spill] sm:$0xff] }
 0x3eb   : > { %6827 = vmatmul.mubr.bf16.gmra.mrb[112].mxu1 %v12648_v58  ;;  %12649 = vst [vmem:[#allocation81_spill] sm:$0xff] %v10372_v41  ;;  %12650 = vst [vmem:[#allocation82_spill] sm:$0xff] %v10375_v14  ;;  %v12653_v21 = vpack.c.bf16 %v10046_v54, %v12652_v51  ;;  %v10386_v52 = vadd.s32 %v9941_v12, %v2775_v10  ;;  %v7491_v2 = vpop.eup %7490  ;;  %v4209_v29 = vmul.f32 %v7489_v62, %v9995_v59  ;;  %v12664_v41 = vld [vmem:[#allocation28_spill] sm:$0xff] }
 0x3ec   : > { %6750 = vmatprep.mubr.bf16.mxu0 %v12651_v27  ;;  %vm2866_vm7 = vcmp.lt.s32.totalorder %v12655_v35, 1152  ;;  %vm2864_vm8 = vcmp.lt.s32.totalorder %v12656_v33, 1152  ;;  %7510 = vtanh.f32 %v3136_v45  ;;  %v10392_v6 = vadd.s32 %v9941_v12, %v2780_v0  ;;  %v7493_v49 = vpop.eup %7492  ;;  %v6548_v10 = vpop.f32.mrb[8].mxu0 }
 0x3ed   : > { %6830 = vmatprep.mubr.bf16.mxu1 %v12653_v21  ;;  %12654 = vst [vmem:[#allocation27_spill] sm:$0xff] %v10386_v52  ;;  %v10395_v63 = vadd.s32 %v9941_v12, %v2778_v17  ;;  %v3433_v54 = vmul.f32 %v7491_v2, %v9995_v59  ;;  %7512 = vtanh.f32 %v3916_v3  ;;  %v6628_v30 = vpop.f32.mrb[8].mxu1  ;;  %v10399_v1 = vadd.s32 %v9941_v12, %v2781_v46  ;;  %v7495_v62 = vpop.eup %7494  ;;  %v12663_v52 = vld [vmem:[#allocation29_spill] sm:$0xff] }
 0x3ee   : > { %12657 = vst [vmem:[#allocation83_spill] sm:$0xff] %v10392_v6  ;;  %v10402_v58 = vadd.s32 %v9941_v12, %v2779_v28  ;;  %v4207_v45 = vmul.f32 %v7493_v49, %v9995_v59  ;;  %7514 = vtanh.f32 %v3128_v61  ;;  %v3149_v0 = vadd.f32 %v6548_v10, %v9992_v53  ;;  %v3140_v17 = vpop.f32.mrb[9].mxu0  ;;  %v3920_v27 = vpop.f32.mrb[9].mxu1  ;;  %v12661_v6 = vld [vmem:[#allocation42_spill] sm:$0xff] }
 0x3ef   : > { %12658 = vst [vmem:[#allocation84_spill] sm:$0xff] %v10395_v63  ;;  %12659 = vst [vmem:[#allocation85_spill] sm:$0xff] %v10399_v1  ;;  %v10407_v51 = vadd.s32 432, %v9877_v26  ;;  %v7497_v3 = vpop.eup %7496  ;;  %v3627_v21 = vsel %vm2862_vm3, %v3435_v15, 0.0  ;;  %v4273_v46 = vsel %vm2862_vm3, %v4209_v29, 0.0  ;;  %7516 = vtanh.f32 %v3908_v56  ;;  %v6549_v2 = vpop.f32.mrb[10].mxu0 }
 0x3f0   : > { %12660 = vst [vmem:[#allocation86_spill] sm:$0xff] %v10402_v58  ;;  %v3929_v28 = vadd.f32 %v6628_v30, %v9992_v53  ;;  %v6629_v49 = vpop.f32.mrb[10].mxu1  ;;  %v7499_v61 = vpop.eup %7498  ;;  %v3625_v10 = vsel %vm2860_vm4, %v3433_v54, 0.0  ;;  %v3436_v1 = vmul.f32 %v7495_v62, %v9995_v59  ;;  %vm2865_vm9 = vcmp.lt.s32.totalorder %v12661_v6, 1152  ;;  %v12662_v30 = vld [vmem:[#allocation38_spill] sm:$0xff] }
 0x3f1   : > { %7518 = vtanh.f32 %v3149_v0  ;;  %v3141_v58 = vadd.f32 %v3140_v17, %v9992_v53  ;;  %v3143_v15 = vpop.f32.mrb[11].mxu0  ;;  %v3923_v63 = vpop.f32.mrb[11].mxu1  ;;  %v4210_v56 = vmul.f32 %v7497_v3, %v9995_v59  ;;  %v3434_v29 = vmul.f32 %v7499_v61, %v9995_v59  ;;  %v12666_v3 = vld [vmem:[#allocation31_spill] sm:$0xff]  ;;  %v12667_v61 = vld [vmem:[#allocation30_spill] sm:$0xff] }
 0x3f2   : > { %v7501_v50 = vpop.eup %7500  ;;  %vm2867_vm10 = vcmp.lt.s32.totalorder %v12662_v30, 1152  ;;  %7520 = vtanh.f32 %v3929_v28  ;;  %v3921_v14 = vadd.f32 %v3920_v27, %v9992_v53  ;;  %v4271_v62 = vsel %vm2860_vm4, %v4207_v45, 0.0  ;;  %v12670_v45 = vld [vmem:[#allocation35_spill] sm:$0xff] }
 0x3f3   : > { %v7503_v54 = vpop.eup %7502  ;;  %v4208_v0 = vmul.f32 %v7501_v50, %v9995_v59  ;;  %7522 = vtanh.f32 %v3141_v58  ;;  %v3152_v17 = vadd.f32 %v6549_v2, %v9992_v53  ;;  %v12665_v47 = vpack.c.bf16 %v12663_v52, %v12664_v41  ;;  %v12669_v58 = vld [vmem:[#allocation36_spill] sm:$0xff]  ;;  %v12673_v41 = vld [vmem:[#allocation39_spill] sm:$0xff] }
 0x3f4   : > { %v12668_v57 = vpack.c.bf16 %v12666_v3, %v12667_v61  ;;  %v7505_v28 = vpop.eup %7504  ;;  %v3626_v27 = vsel %vm2861_vm5, %v3434_v29, 0.0  ;;  %v3439_v22 = vmul.f32 %v7503_v54, %v9995_v59  ;;  %7524 = vtanh.f32 %v3921_v14  ;;  %v12675_v54 = vld [vmem:[#allocation43_spill] sm:$0xff]  ;;  %v12676_v14 = vld [vmem:[#allocation45_spill] sm:$0xff] }
 0x3f5   : > { %6751 = vmatmul.mubr.bf16.gmra.mrb[116].mxu0 %v12665_v47  ;;  %v3932_v50 = vadd.f32 %v6629_v49, %v9992_v53  ;;  %v12671_v2 = vpack.c.bf16 %v12669_v58, %v12670_v45  ;;  %v12674_v47 = vpack.c.bf16 %v12672_v48, %v12673_v41  ;;  %v7507_v52 = vpop.eup %7506  ;;  %v3689_v3 = vadd.f32 %v3626_v27, %v3625_v10  ;;  %v6552_v45 = vpop.f32.mrb[12].mxu0 }
 0x3f6   : > { %6831 = vmatmul.mubr.bf16.gmra.mrb[116].mxu1 %v12668_v57  ;;  %v3628_v57 = vsel %vm2863_vm6, %v3436_v1, 0.0  ;;  %v4272_v29 = vsel %vm2861_vm5, %v4208_v0, 0.0  ;;  %vm12430_vm11 = vcmp.lt.s32.totalorder %v12675_v54, 1152  ;;  %vm12426_vm12 = vcmp.lt.s32.totalorder %v12676_v14, 1152  ;;  %v7509_v49 = vpop.eup %7508 }
 0x3f7   : > { %6754 = vmatprep.mubr.bf16.mxu0 %v12671_v2  ;;  %6834 = vmatprep.mubr.bf16.mxu1 %v12674_v47  ;;  %7526 = vtanh.f32 %v3152_v17  ;;  %v4274_v61 = vsel %vm2863_vm6, %v4210_v56, 0.0  ;;  %v4335_v58 = vadd.f32 %v4272_v29, %v4271_v62  ;;  %v3437_v48 = vmul.f32 %v7507_v52, %v9995_v59  ;;  %v6632_v2 = vpop.f32.mrb[12].mxu1  ;;  %v7511_v1 = vpop.eup %7510 }
 0x3f8   : > { %7528 = vtanh.f32 %v3932_v50  ;;  %v3690_v10 = vadd.f32 %v3689_v3, %v3627_v21  ;;  %v4213_v27 = vmul.f32 %v7505_v28, %v9995_v59  ;;  %v4211_v0 = vmul.f32 %v7509_v49, %v9995_v59  ;;  %v3156_v47 = vpop.f32.mrb[13].mxu0  ;;  %v3936_v17 = vpop.f32.mrb[13].mxu1 }
 0x3f9   : > { %v3144_v41 = vadd.f32 %v3143_v15, %v9992_v53  ;;  %v7513_v18 = vpop.eup %7512  ;;  %v4336_v13 = vadd.f32 %v4335_v58, %v4273_v46  ;;  %v3631_v56 = vsel %vm2866_vm7, %v3439_v22, 0.0  ;;  %v3629_v62 = vsel %vm2864_vm8, %v3437_v48, 0.0  ;;  %v10460_v52 = vpop.f32.mrb[14].mxu0 }
 0x3fa   : > { %v3924_v50 = vadd.f32 %v3923_v63, %v9992_v53  ;;  %v10462_v21 = vpop.f32.mrb[14].mxu1  ;;  %v7515_v28 = vpop.eup %7514  ;;  %v3691_v3 = vadd.f32 %v3690_v10, %v3628_v57  ;;  %v4275_v15 = vsel %vm2864_vm8, %v4211_v0, 0.0  ;;  %v3440_v29 = vmul.f32 %v7511_v1, %v9995_v59  ;;  %v12677_v1 = vld [vmem:[#allocation46_spill] sm:$0xff] }
 0x3fb   : > { %7530 = vtanh.f32 %v3144_v41  ;;  %v10467_v46 = vpop.f32.mrb[15].mxu0  ;;  %v10469_v22 = vpop.f32.mrb[15].mxu1  ;;  %v4337_v58 = vadd.f32 %v4336_v13, %v4274_v61  ;;  %v4214_v63 = vmul.f32 %v7513_v18, %v9995_v59  ;;  %v3438_v48 = vmul.f32 %v7515_v28, %v9995_v59  ;;  %v12678_v41 = vld [vmem:[#allocation47_spill] sm:$0xff]  ;;  %v12680_v13 = vld [vmem:[#allocation41_spill] sm:$0xff] }
 0x3fc   : > { %v7517_v49 = vpop.eup %7516  ;;  %7532 = vtanh.f32 %v3924_v50  ;;  %v4277_v57 = vsel %vm2866_vm7, %v4213_v27, 0.0  ;;  %v3692_v10 = vadd.f32 %v3691_v3, %v3629_v62  ;;  %vm12424_vm13 = vcmp.lt.s32.totalorder %v12677_v1, 1152  ;;  %v12712_v1 = vld [vmem:[#allocation84_spill] sm:$0xff] }
 0x3fd   : > { %v7519_v11 = vpop.eup %7518  ;;  %v4212_v0 = vmul.f32 %v7517_v49, %v9995_v59  ;;  %vm12423_vm14 = vcmp.lt.s32.totalorder %v12678_v41, 1152  ;;  %v3165_v33 = vadd.f32 %v6552_v45, %v9992_v53  ;;  %v12681_v61 = vpack.c.bf16 %v12679_v60, %v12680_v13 }
 0x3fe   : > { %v12682_v18 = vpack.c.bf16 %v10122_v20, %v10119_v39  ;;  %v7521_v50 = vpop.eup %7520  ;;  %v4338_v28 = vadd.f32 %v4337_v58, %v4275_v15  ;;  %v3630_v27 = vsel %vm2865_vm9, %v3438_v48, 0.0  ;;  %v3443_v62 = vmul.f32 %v7519_v11, %v9995_v59 }
 0x3ff   : > { %6755 = vmatmul.mubr.bf16.gmra.mrb[120].mxu0 %v12681_v61  ;;  %v3945_v3 = vadd.f32 %v6632_v2, %v9992_v53  ;;  %v12683_v45 = vpack.c.bf16 %v10139_v23, %v10136_v55  ;;  %v12684_v60 = vpack.c.bf16 %v10150_v9, %v10142_v19  ;;  %v7523_v49 = vpop.eup %7522  ;;  %v3632_v20 = vsel %vm2867_vm10, %v3440_v29, 0.0  ;;  %v6556_v23 = vpop.f32.mrb[16].mxu0 }
 0x400   : > { %6835 = vmatmul.mubr.bf16.gmra.mrb[120].mxu1 %v12682_v18  ;;  %v3693_v39 = vadd.f32 %v3692_v10, %v3630_v27  ;;  %v4276_v15 = vsel %vm2865_vm9, %v4212_v0, 0.0  ;;  %7534 = vtanh.f32 %v3165_v33  ;;  %v7525_v11 = vpop.eup %7524  ;;  %v4278_v2 = vsel %vm2867_vm10, %v4214_v63, 0.0  ;;  %v6636_v19 = vpop.f32.mrb[16].mxu1 }
 0x401   : > { %6758 = vmatprep.mubr.bf16.mxu0 %v12683_v45  ;;  %6838 = vmatprep.mubr.bf16.mxu1 %v12684_v60  ;;  %v4339_v58 = vadd.f32 %v4338_v28, %v4276_v15  ;;  %v3441_v55 = vmul.f32 %v7523_v49, %v9995_v59  ;;  %7536 = vtanh.f32 %v3945_v3  ;;  %v7527_v9 = vpop.eup %7526  ;;  %v4217_v13 = vmul.f32 %v7521_v50, %v9995_v59  ;;  %v3172_v0 = vpop.f32.mrb[17].mxu0 }
 0x402   : > { %v3694_v48 = vadd.f32 %v3693_v39, %v3631_v56  ;;  %v4215_v29 = vmul.f32 %v7525_v11, %v9995_v59  ;;  %v3157_v10 = vadd.f32 %v3156_v47, %v9992_v53  ;;  %v3952_v33 = vpop.f32.mrb[17].mxu1  ;;  %v7529_v61 = vpop.eup %7528  ;;  %v3635_v63 = vsel %vm12430_vm11, %v3443_v62, 0.0 }
 0x403   : > { %v4340_v18 = vadd.f32 %v4339_v58, %v4277_v57  ;;  %v3633_v28 = vsel %vm12426_vm12, %v3441_v55, 0.0  ;;  %v3937_v56 = vadd.f32 %v3936_v17, %v9992_v53  ;;  %v6557_v27 = vpop.f32.mrb[18].mxu0  ;;  %v6637_v50 = vpop.f32.mrb[18].mxu1  ;;  %v3444_v45 = vmul.f32 %v7527_v9, %v9995_v59 }
 0x404   : > { %v3695_v3 = vadd.f32 %v3694_v48, %v3632_v20  ;;  %v4279_v47 = vsel %vm12426_vm12, %v4215_v29, 0.0  ;;  %7538 = vtanh.f32 %v3157_v10  ;;  %v3175_v57 = vpop.f32.mrb[19].mxu0  ;;  %v3955_v60 = vpop.f32.mrb[19].mxu1  ;;  %v4218_v62 = vmul.f32 %v7529_v61, %v9995_v59 }
 0x405   : > { %v4341_v49 = vadd.f32 %v4340_v18, %v4278_v2  ;;  %7540 = vtanh.f32 %v3937_v56  ;;  %v3168_v39 = vadd.f32 %v10460_v52, %v9992_v53  ;;  %v7531_v15 = vpop.eup %7530  ;;  %v4281_v17 = vsel %vm12430_vm11, %v4217_v13, 0.0  ;;  %v6560_v29 = vpop.f32.mrb[20].mxu0 }
 0x406   : > { %v3696_v20 = vadd.f32 %v3695_v3, %v3633_v28  ;;  %v3948_v11 = vadd.f32 %v10462_v21, %v9992_v53  ;;  %v3160_v58 = vadd.f32 %v10467_v46, %v9992_v53  ;;  %v12685_v2 = vpack.c.bf16 %v10156_v34, %v10153_v42  ;;  %v7533_v55 = vpop.eup %7532  ;;  %v6640_v10 = vpop.f32.mrb[20].mxu1 }
 0x407   : > { %v12686_v52 = vpack.c.bf16 %v10167_v8, %v10164_v44  ;;  %v4342_v9 = vadd.f32 %v4341_v49, %v4279_v47  ;;  %v3442_v48 = vmul.f32 %v7531_v15, %v9995_v59  ;;  %7542 = vtanh.f32 %v3168_v39  ;;  %v3968_v28 = vpop.f32.mrb[21].mxu1 }
 0x408   : > { %6759 = vmatmul.mubr.bf16.gmra.mrb[124].mxu0 %v12685_v2  ;;  %v3940_v13 = vadd.f32 %v10469_v22, %v9992_v53  ;;  %v4216_v21 = vmul.f32 %v7533_v55, %v9995_v59  ;;  %7544 = vtanh.f32 %v3948_v11  ;;  %v3181_v46 = vadd.f32 %v6556_v23, %v9992_v53  ;;  %v6641_v49 = vpop.f32.mrb[22].mxu1 }
 0x409   : > { %6839 = vmatmul.mubr.bf16.gmra.mrb[124].mxu1 %v12686_v52  ;;  %v3961_v34 = vadd.f32 %v6636_v19, %v9992_v53  ;;  %v3636_v42 = vsel %vm12424_vm13, %v3444_v45, 0.0  ;;  %v3634_v44 = vsel %vm12423_vm14, %v3442_v48, 0.0  ;;  %7546 = vtanh.f32 %v3160_v58  ;;  %v3188_v19 = vpop.f32.mrb[21].mxu0  ;;  %v3971_v11 = vpop.f32.mrb[23].mxu1 }
 0x40a   : > { %v3173_v8 = vadd.f32 %v3172_v0, %v9992_v53  ;;  %v7535_v61 = vpop.eup %7534  ;;  %v3697_v22 = vadd.f32 %v3696_v20, %v3634_v44  ;;  %v4280_v18 = vsel %vm12423_vm14, %v4216_v21, 0.0  ;;  %7548 = vtanh.f32 %v3940_v13  ;;  %v6561_v45 = vpop.f32.mrb[22].mxu0  ;;  %v12687_v21 = vld [vmem:[#allocation53_spill] sm:$0xff] }
 0x40b   : > { %v3953_v23 = vadd.f32 %v3952_v33, %v9992_v53  ;;  %v7537_v56 = vpop.eup %7536  ;;  %v4343_v3 = vadd.f32 %v4342_v9, %v4280_v18  ;;  %v3447_v47 = vmul.f32 %v7535_v61, %v9995_v59  ;;  %7550 = vtanh.f32 %v3181_v46  ;;  %v3191_v33 = vpop.f32.mrb[23].mxu0 }
 0x40c   : > { %v3184_v0 = vadd.f32 %v6557_v27, %v9992_v53  ;;  %v3698_v39 = vadd.f32 %v3697_v22, %v3635_v63  ;;  %v4221_v15 = vmul.f32 %v7537_v56, %v9995_v59  ;;  %7552 = vtanh.f32 %v3961_v34  ;;  %v6644_v61 = vpop.f32.mrb[24].mxu1 }
 0x40d   : > { %v3964_v20 = vadd.f32 %v6637_v50, %v9992_v53  ;;  %v4282_v58 = vsel %vm12424_vm13, %v4218_v62, 0.0  ;;  %v4344_v2 = vadd.f32 %v4343_v3, %v4281_v17  ;;  %7554 = vtanh.f32 %v3173_v8  ;;  %v10577_v3 = vpop.f32.mrb[25].mxu1 }
 0x40e   : > { %v3176_v52 = vadd.f32 %v3175_v57, %v9992_v53  ;;  %v7539_v55 = vpop.eup %7538  ;;  %v10555_v27 = vsel %vm12425_vm15, %v3447_v47, 0.0  ;;  %v3699_v63 = vadd.f32 %v3698_v39, %v3636_v42  ;;  %7556 = vtanh.f32 %v3953_v23  ;;  %v12688_v42 = vld [vmem:[#allocation52_spill] sm:$0xff]  ;;  %v12689_v39 = vld [vmem:[#allocation54_spill] sm:$0xff] }
 0x40f   : > { %v3956_v9 = vadd.f32 %v3955_v60, %v9992_v53  ;;  %v7541_v48 = vpop.eup %7540  ;;  %v3445_v50 = vmul.f32 %v7539_v55, %v9995_v59  ;;  %v4345_v13 = vadd.f32 %v4344_v2, %v4282_v58  ;;  %vm2876_vm14 = vcmp.lt.s32.totalorder %v12687_v21, 1152  ;;  %v10585_v58 = vpop.f32.mrb[26].mxu1 }
 0x410   : > { %7558 = vtanh.f32 %v3184_v0  ;;  %v3197_v62 = vadd.f32 %v6560_v29, %v9992_v53  ;;  %v10563_v57 = vsel %vm12425_vm15, %v4221_v15, 0.0  ;;  %v4219_v17 = vmul.f32 %v7541_v48, %v9995_v59  ;;  %v6564_v29 = vpop.f32.mrb[24].mxu0  ;;  %v10592_v48 = vpop.f32.mrb[27].mxu1 }
 0x411   : > { %7560 = vtanh.f32 %v3964_v20  ;;  %v3977_v46 = vadd.f32 %v6640_v10, %v9992_v53  ;;  %v7543_v34 = vpop.eup %7542  ;;  %v3637_v60 = vsel %vm12427_vm0, %v3445_v50, 0.0  ;;  %vm12465_vm13 = vcmp.lt.s32.totalorder %v12688_v42, 1152  ;;  %v10575_v56 = vpop.f32.mrb[25].mxu0 }
 0x412   : > { %7562 = vtanh.f32 %v3176_v52  ;;  %v3189_v44 = vadd.f32 %v3188_v19, %v9992_v53  ;;  %v3969_v8 = vadd.f32 %v3968_v28, %v9992_v53  ;;  %v7545_v22 = vpop.eup %7544  ;;  %v3700_v18 = vadd.f32 %v3699_v63, %v3637_v60  ;;  %v12690_v28 = vld [vmem:[#allocation55_spill] sm:$0xff]  ;;  %v10583_v20 = vpop.f32.mrb[26].mxu0 }
 0x413   : > { %v4283_v23 = vsel %vm12427_vm0, %v4219_v17, 0.0  ;;  %v3448_v10 = vmul.f32 %v7543_v34, %v9995_v59  ;;  %7564 = vtanh.f32 %v3956_v9  ;;  %v7547_v47 = vpop.eup %7546  ;;  %v4222_v19 = vmul.f32 %v7545_v22, %v9995_v59  ;;  %v10590_v9 = vpop.f32.mrb[27].mxu0 }
 0x414   : > { %v4346_v0 = vadd.f32 %v4345_v13, %v4283_v23  ;;  %vm12437_vm15 = vcmp.lt.s32.totalorder %v12689_v39, 1152  ;;  %vm12440_vm12 = vcmp.lt.s32.totalorder %v12690_v28, 1152  ;;  %7566 = vtanh.f32 %v3197_v62  ;;  %v7549_v2 = vpop.eup %7548  ;;  %v12700_v39 = vld [vmem:[#allocation70_spill] sm:$0xff] }
 0x415   : > { %v3200_v15 = vadd.f32 %v6561_v45, %v9992_v53  ;;  %v3446_v52 = vmul.f32 %v7547_v47, %v9995_v59  ;;  %7568 = vtanh.f32 %v3977_v46  ;;  %v3980_v55 = vadd.f32 %v6641_v49, %v9992_v53  ;;  %v7551_v50 = vpop.eup %7550 }
 0x416   : > { %v3192_v63 = vadd.f32 %v3191_v33, %v9992_v53  ;;  %v3640_v45 = vsel %vm12428_vm1, %v3448_v10, 0.0  ;;  %v4220_v13 = vmul.f32 %v7549_v2, %v9995_v59  ;;  %7570 = vtanh.f32 %v3189_v44  ;;  %v7553_v17 = vpop.eup %7552  ;;  %v12691_v44 = vld [vmem:[#allocation57_spill] sm:$0xff] }
 0x417   : > { %v3972_v62 = vadd.f32 %v3971_v11, %v9992_v53  ;;  %v4286_v46 = vsel %vm12428_vm1, %v4222_v19, 0.0  ;;  %v3638_v49 = vsel %vm12429_vm2, %v3446_v52, 0.0  ;;  %7572 = vtanh.f32 %v3969_v8  ;;  %v7555_v34 = vpop.eup %7554  ;;  %v12692_v52 = vld [vmem:[#allocation56_spill] sm:$0xff] }
 0x418   : > { %v3213_v33 = vadd.f32 %v6564_v29, %v9992_v53  ;;  %v3701_v60 = vadd.f32 %v3700_v18, %v3638_v49  ;;  %v4284_v22 = vsel %vm12429_vm2, %v4220_v13, 0.0  ;;  %v3451_v23 = vmul.f32 %v7551_v50, %v9995_v59  ;;  %v7557_v11 = vpop.eup %7556  ;;  %v10613_v50 = vpop.f32.mrb[28].mxu0 }
 0x419   : > { %vm12439_vm0 = vcmp.lt.s32.totalorder %v12691_v44, 1152  ;;  %7574 = vtanh.f32 %v3200_v15  ;;  %v4347_v10 = vadd.f32 %v4346_v0, %v4284_v22  ;;  %v3449_v47 = vmul.f32 %v7555_v34, %v9995_v59  ;;  %v10615_v15 = vpop.f32.mrb[28].mxu1  ;;  %v12693_v22 = vld [vmem:[#allocation58_spill] sm:$0xff] }
 0x41a   : > { %7576 = vtanh.f32 %v3980_v55  ;;  %v3993_v19 = vadd.f32 %v6644_v61, %v9992_v53  ;;  %v7559_v8 = vpop.eup %7558  ;;  %v3702_v29 = vadd.f32 %v3701_v60, %v10555_v27  ;;  %v4225_v18 = vmul.f32 %v7553_v17, %v9995_v59  ;;  %v10621_v27 = vpop.f32.mrb[29].mxu0 }
 0x41b   : > { %v4223_v2 = vmul.f32 %v7557_v11, %v9995_v59  ;;  %vm12442_vm1 = vcmp.lt.s32.totalorder %v12692_v52, 1152  ;;  %7578 = vtanh.f32 %v3192_v63  ;;  %v7561_v0 = vpop.eup %7560  ;;  %v4348_v13 = vadd.f32 %v4347_v10, %v10563_v57  ;;  %v10623_v17 = vpop.f32.mrb[29].mxu1 }
 0x41c   : > { %v3641_v61 = vsel %vm2876_vm14, %v3449_v47, 0.0  ;;  %v3452_v55 = vmul.f32 %v7559_v8, %v9995_v59  ;;  %7580 = vtanh.f32 %v3972_v62  ;;  %v7563_v49 = vpop.eup %7562  ;;  %v3703_v34 = vadd.f32 %v3702_v29, %v3640_v45  ;;  %v10630_v57 = vpop.f32.mrb[30].mxu0 }
 0x41d   : > { %v4287_v63 = vsel %vm2876_vm14, %v4223_v2, 0.0  ;;  %v4226_v60 = vmul.f32 %v7561_v0, %v9995_v59  ;;  %vm12443_vm2 = vcmp.lt.s32.totalorder %v12693_v22, 1152  ;;  %vm12445_vm11 = vcmp.lt.s32.totalorder %v10247_v37, 1152  ;;  %v10632_v11 = vpop.f32.mrb[30].mxu1  ;;  %v7565_v62 = vpop.eup %7564  ;;  %v12697_v37 = vld [vmem:[#allocation69_spill] sm:$0xff] }
 0x41e   : > { %7582 = vtanh.f32 %v3213_v33  ;;  %v3643_v10 = vsel %vm12465_vm13, %v3451_v23, 0.0  ;;  %v4349_v47 = vadd.f32 %v4348_v13, %v4286_v46  ;;  %v3450_v45 = vmul.f32 %v7563_v49, %v9995_v59  ;;  %v10637_v8 = vpop.f32.mrb[31].mxu0  ;;  %v10639_v29 = vpop.f32.mrb[31].mxu1 }
 0x41f   : > { %7584 = vtanh.f32 %v3993_v19  ;;  %v7567_v2 = vpop.eup %7566  ;;  %v4289_v33 = vsel %vm12465_vm13, %v4225_v18, 0.0  ;;  %v3704_v0 = vadd.f32 %v3703_v34, %v3641_v61  ;;  %v4224_v21 = vmul.f32 %v7565_v62, %v9995_v59 }
 0x420   : > { %v3205_v36 = vadd.f32 %v10575_v56, %v9992_v53  ;;  %v7569_v32 = vpop.eup %7568  ;;  %v4350_v23 = vadd.f32 %v4349_v47, %v4287_v63  ;;  %v3644_v46 = vsel %vm12437_vm15, %v3452_v55, 0.0  ;;  %v3642_v19 = vsel %vm12440_vm12, %v3450_v45, 0.0 }
 0x421   : > { %v3985_v13 = vadd.f32 %v10577_v3, %v9992_v53  ;;  %v7571_v49 = vpop.eup %7570  ;;  %v4290_v18 = vsel %vm12437_vm15, %v4226_v60, 0.0  ;;  %v3705_v61 = vadd.f32 %v3704_v0, %v3642_v19  ;;  %v4288_v34 = vsel %vm12440_vm12, %v4224_v21, 0.0  ;;  %v10663_v21 = vpop.f32.mrb[32].mxu0 }
 0x422   : > { %7586 = vtanh.f32 %v3205_v36  ;;  %v7573_v56 = vpop.eup %7572  ;;  %v4351_v63 = vadd.f32 %v4350_v23, %v4288_v34  ;;  %v3455_v62 = vmul.f32 %v7567_v2, %v9995_v59  ;;  %v3453_v55 = vmul.f32 %v7571_v49, %v9995_v59  ;;  %v10665_v36 = vpop.f32.mrb[32].mxu1 }
 0x423   : > { %7588 = vtanh.f32 %v3985_v13  ;;  %v7575_v47 = vpop.eup %7574  ;;  %v3706_v45 = vadd.f32 %v3705_v61, %v3643_v10  ;;  %v4229_v3 = vmul.f32 %v7569_v32, %v9995_v59  ;;  %v4227_v42 = vmul.f32 %v7573_v56, %v9995_v59  ;;  %v10672_v19 = vpop.f32.mrb[33].mxu0 }
 0x424   : > { %vm12444_vm15 = vcmp.lt.s32.totalorder %v10253_v16, 1152  ;;  %v3216_v60 = vadd.f32 %v10583_v20, %v9992_v53  ;;  %v7577_v0 = vpop.eup %7576  ;;  %v4352_v2 = vadd.f32 %v4351_v63, %v4289_v33  ;;  %v3645_v23 = vsel %vm12439_vm0, %v3453_v55, 0.0  ;;  %v10674_v13 = vpop.f32.mrb[33].mxu1 }
 0x425   : > { %v3456_v10 = vmul.f32 %v7575_v47, %v9995_v59  ;;  %v3996_v32 = vadd.f32 %v10585_v58, %v9992_v53  ;;  %v7579_v49 = vpop.eup %7578  ;;  %v3707_v20 = vadd.f32 %v3706_v45, %v3644_v46  ;;  %v4291_v61 = vsel %vm12439_vm0, %v4227_v42, 0.0  ;;  %v10679_v33 = vpop.f32.mrb[34].mxu0 }
 0x426   : > { %v4230_v34 = vmul.f32 %v7577_v0, %v9995_v59  ;;  %7590 = vtanh.f32 %v3216_v60  ;;  %v10681_v56 = vpop.f32.mrb[34].mxu1  ;;  %v7581_v63 = vpop.eup %7580  ;;  %v3647_v58 = vsel %vm12442_vm1, %v3455_v62, 0.0  ;;  %v4353_v55 = vadd.f32 %v4352_v2, %v4290_v18 }
 0x427   : > { %v3454_v47 = vmul.f32 %v7579_v49, %v9995_v59  ;;  %7592 = vtanh.f32 %v3996_v32  ;;  %v10686_v28 = vpop.f32.mrb[35].mxu0  ;;  %v10688_v46 = vpop.f32.mrb[35].mxu1  ;;  %v4293_v45 = vsel %vm12442_vm1, %v4229_v3, 0.0  ;;  %v3708_v60 = vadd.f32 %v3707_v20, %v3645_v23 }
 0x428   : > { %v7583_v42 = vpop.eup %7582  ;;  %v4228_v0 = vmul.f32 %v7581_v63, %v9995_v59  ;;  %vm12446_vm0 = vcmp.lt.s32.totalorder %v10250_v24, 1152  ;;  %v3208_v62 = vadd.f32 %v10590_v9, %v9992_v53  ;;  %v4354_v2 = vadd.f32 %v4353_v55, %v4291_v61 }
 0x429   : > { %v7585_v18 = vpop.eup %7584  ;;  %v3648_v32 = vsel %vm12443_vm2, %v3456_v10, 0.0  ;;  %v3646_v49 = vsel %vm12445_vm11, %v3454_v47, 0.0  ;;  %vm12456_vm12 = vcmp.lt.s32.totalorder %v10262_v4, 1152  ;;  %v3988_v3 = vadd.f32 %v10592_v48, %v9992_v53 }
 0x42a   : > { %v4294_v23 = vsel %vm12443_vm2, %v4230_v34, 0.0  ;;  %v3709_v20 = vadd.f32 %v3708_v60, %v3646_v49  ;;  %v4292_v9 = vsel %vm12445_vm11, %v4228_v0, 0.0  ;;  %7594 = vtanh.f32 %v3208_v62  ;;  %v10716_v60 = vpop.f32.mrb[36].mxu0  ;;  %v10718_v0 = vpop.f32.mrb[36].mxu1 }
 0x42b   : > { %v4355_v61 = vadd.f32 %v4354_v2, %v4292_v9  ;;  %v3459_v63 = vmul.f32 %v7583_v42, %v9995_v59  ;;  %7596 = vtanh.f32 %v3988_v3  ;;  %v3229_v10 = vadd.f32 %v10613_v50, %v9992_v53  ;;  %v10725_v2 = vpop.f32.mrb[37].mxu1 }
 0x42c   : > { %v7587_v55 = vpop.eup %7586  ;;  %v3710_v47 = vadd.f32 %v3709_v20, %v3647_v58  ;;  %v4233_v52 = vmul.f32 %v7585_v18, %v9995_v59  ;;  %vm12460_vm1 = vcmp.lt.s32.totalorder %v10265_v5, 1152  ;;  %v4009_v48 = vadd.f32 %v10615_v15, %v9992_v53  ;;  %v10723_v18 = vpop.f32.mrb[37].mxu0 }
 0x42d   : > { %v3221_v34 = vadd.f32 %v10621_v27, %v9992_v53  ;;  %v7589_v42 = vpop.eup %7588  ;;  %v4356_v62 = vadd.f32 %v4355_v61, %v4293_v45  ;;  %v3457_v50 = vmul.f32 %v7587_v55, %v9995_v59  ;;  %7598 = vtanh.f32 %v3229_v10  ;;  %v10730_v3 = vpop.f32.mrb[38].mxu0 }
 0x42e   : > { %v4001_v58 = vadd.f32 %v10623_v17, %v9992_v53  ;;  %v3711_v15 = vadd.f32 %v3710_v47, %v3648_v32  ;;  %v4231_v49 = vmul.f32 %v7589_v42, %v9995_v59  ;;  %7600 = vtanh.f32 %v4009_v48  ;;  %v10732_v45 = vpop.f32.mrb[38].mxu1  ;;  %v10738_v61 = vpop.f32.mrb[39].mxu0 }
 0x42f   : > { %v3232_v27 = vadd.f32 %v10630_v57, %v9992_v53  ;;  %v3649_v20 = vsel %vm12444_vm15, %v3457_v50, 0.0  ;;  %v4357_v9 = vadd.f32 %v4356_v62, %v4294_v23  ;;  %7602 = vtanh.f32 %v3221_v34  ;;  %v10740_v32 = vpop.f32.mrb[39].mxu1 }
 0x430   : > { %v4012_v17 = vadd.f32 %v10632_v11, %v9992_v53  ;;  %v7591_v10 = vpop.eup %7590  ;;  %v3712_v55 = vadd.f32 %v3711_v15, %v3649_v20  ;;  %v4295_v57 = vsel %vm12444_vm15, %v4231_v49, 0.0  ;;  %7604 = vtanh.f32 %v4001_v58  ;;  %v12694_v58 = vld [vmem:[#allocation64_spill] sm:$0xff]  ;;  %v10771_v20 = vpop.f32.mrb[40].mxu1 }
 0x431   : > { %v3224_v47 = vadd.f32 %v10637_v8, %v9992_v53  ;;  %v7593_v48 = vpop.eup %7592  ;;  %v4358_v42 = vadd.f32 %v4357_v9, %v4295_v57  ;;  %v3460_v23 = vmul.f32 %v7591_v10, %v9995_v59  ;;  %vm12461_vm2 = vcmp.lt.s32.totalorder %v10271_v38, 1152  ;;  %v12695_v10 = vld [vmem:[#allocation66_spill] sm:$0xff] }
 0x432   : > { %7606 = vtanh.f32 %v3232_v27  ;;  %v4004_v11 = vadd.f32 %v10639_v29, %v9992_v53  ;;  %v4234_v34 = vmul.f32 %v7593_v48, %v9995_v59  ;;  %v3245_v62 = vadd.f32 %v10663_v21, %v9992_v53 }
 0x433   : > { %7608 = vtanh.f32 %v4012_v17  ;;  %v4025_v50 = vadd.f32 %v10665_v36, %v9992_v53  ;;  %v3651_v8 = vsel %vm12446_vm0, %v3459_v63, 0.0  ;;  %vm12466_vm15 = vcmp.lt.s32.totalorder %v12694_v58, 1152  ;;  %v10769_v63 = vpop.f32.mrb[40].mxu0 }
 0x434   : > { %7610 = vtanh.f32 %v3224_v47  ;;  %v3237_v15 = vadd.f32 %v10672_v19, %v9992_v53  ;;  %v10761_v29 = vadd.s32 416, %v9877_v26  ;;  %v7595_v49 = vpop.eup %7594  ;;  %v4297_v27 = vsel %vm12446_vm0, %v4233_v52, 0.0  ;;  %v12696_v52 = vld [vmem:[#allocation67_spill] sm:$0xff]  ;;  %v10780_v47 = vpop.f32.mrb[41].mxu0 }
 0x435   : > { %v3652_v21 = vsel %vm12456_vm12, %v3460_v23, 0.0  ;;  %7612 = vtanh.f32 %v4004_v11  ;;  %v4017_v36 = vadd.f32 %v10674_v13, %v9992_v53  ;;  %v7597_v9 = vpop.eup %7596  ;;  %v4298_v19 = vsel %vm12456_vm12, %v4234_v34, 0.0  ;;  %v10782_v13 = vpop.f32.mrb[41].mxu1 }
 0x436   : > { %v3458_v17 = vmul.f32 %v7595_v49, %v9995_v59  ;;  %vm12473_vm11 = vcmp.lt.s32.totalorder %v12695_v10, 1152  ;;  %vm12491_vm0 = vcmp.lt.s32.totalorder %v12696_v52, 1152  ;;  %7614 = vtanh.f32 %v3245_v62  ;;  %v10789_v34 = vpop.f32.mrb[42].mxu0  ;;  %v10791_v49 = vpop.f32.mrb[42].mxu1  ;;  %v12711_v52 = vld [vmem:[#allocation82_spill] sm:$0xff] }
 0x437   : > { %v3248_v57 = vadd.f32 %v10679_v33, %v9992_v53  ;;  %v4232_v48 = vmul.f32 %v7597_v9, %v9995_v59  ;;  %7616 = vtanh.f32 %v4025_v50  ;;  %v4028_v23 = vadd.f32 %v10681_v56, %v9992_v53  ;;  %v7599_v62 = vpop.eup %7598  ;;  %v10799_v9 = vpop.f32.mrb[43].mxu0 }
 0x438   : > { %v3240_v11 = vadd.f32 %v10686_v28, %v9992_v53  ;;  %v3650_v33 = vsel %vm12460_vm1, %v3458_v17, 0.0  ;;  %7618 = vtanh.f32 %v3237_v15  ;;  %v4020_v4 = vadd.f32 %v10688_v46, %v9992_v53  ;;  %v10801_v56 = vpop.f32.mrb[43].mxu1  ;;  %v7601_v28 = vpop.eup %7600 }
 0x439   : > { %v3261_v50 = vadd.f32 %v10716_v60, %v9992_v53  ;;  %v3713_v24 = vadd.f32 %v3712_v55, %v3650_v33  ;;  %v4296_v16 = vsel %vm12460_vm1, %v4232_v48, 0.0  ;;  %7620 = vtanh.f32 %v4017_v36  ;;  %v7603_v15 = vpop.eup %7602 }
 0x43a   : > { %v4041_v17 = vadd.f32 %v10718_v0, %v9992_v53  ;;  %v4359_v22 = vadd.f32 %v4358_v42, %v4296_v16  ;;  %vm12472_vm12 = vcmp.lt.s32.totalorder %v12697_v37, 1152  ;;  %7622 = vtanh.f32 %v3248_v57  ;;  %v7605_v44 = vpop.eup %7604 }
 0x43b   : > { %v3253_v46 = vadd.f32 %v10723_v18, %v9992_v53  ;;  %v4033_v60 = vadd.f32 %v10725_v2, %v9992_v53  ;;  %v3714_v55 = vadd.f32 %v3713_v24, %v3651_v8  ;;  %v3463_v33 = vmul.f32 %v7599_v62, %v9995_v59  ;;  %v10819_v24 = vpop.f32.mrb[44].mxu0  ;;  %v10821_v8 = vpop.f32.mrb[44].mxu1 }
 0x43c   : > { %v3461_v36 = vmul.f32 %v7603_v15, %v9995_v59  ;;  %7624 = vtanh.f32 %v4028_v23  ;;  %v7607_v48 = vpop.eup %7606  ;;  %v4360_v0 = vadd.f32 %v4359_v22, %v4297_v27  ;;  %v4237_v16 = vmul.f32 %v7601_v28, %v9995_v59  ;;  %v10831_v28 = vpop.f32.mrb[45].mxu1 }
 0x43d   : > { %v4235_v42 = vmul.f32 %v7605_v44, %v9995_v59  ;;  %7626 = vtanh.f32 %v3240_v11  ;;  %v7609_v57 = vpop.eup %7608  ;;  %v3715_v5 = vadd.f32 %v3714_v55, %v3652_v21  ;;  %v3464_v2 = vmul.f32 %v7607_v48, %v9995_v59  ;;  %v12698_v11 = vld [vmem:[#allocation71_spill] sm:$0xff]  ;;  %v10829_v21 = vpop.f32.mrb[45].mxu0  ;;  %v12699_v48 = vld [vmem:[#allocation68_spill] sm:$0xff] }
 0x43e   : > { %v3653_v18 = vsel %vm12461_vm2, %v3461_v36, 0.0  ;;  %7628 = vtanh.f32 %v4020_v4  ;;  %v7611_v23 = vpop.eup %7610  ;;  %v4361_v27 = vadd.f32 %v4360_v0, %v4298_v19  ;;  %v4238_v44 = vmul.f32 %v7609_v57, %v9995_v59  ;;  %v10837_v19 = vpop.f32.mrb[46].mxu0 }
 0x43f   : > { %v4299_v22 = vsel %vm12461_vm2, %v4235_v42, 0.0  ;;  %vm12481_vm1 = vcmp.lt.s32.totalorder %v12698_v11, 1152  ;;  %v3264_v62 = vadd.f32 %v10730_v3, %v9992_v53  ;;  %v7613_v4 = vpop.eup %7612  ;;  %v3655_v15 = vsel %vm12466_vm15, %v3463_v33, 0.0  ;;  %v10839_v0 = vpop.f32.mrb[46].mxu1 }
 0x440   : > { %v3716_v55 = vadd.f32 %v3715_v5, %v3653_v18  ;;  %v3462_v36 = vmul.f32 %v7611_v23, %v9995_v59  ;;  %vm12476_vm2 = vcmp.lt.s32.totalorder %v12699_v48, 1152  ;;  %7630 = vtanh.f32 %v3261_v50  ;;  %v7615_v42 = vpop.eup %7614  ;;  %v10845_v5 = vpop.f32.mrb[47].mxu0 }
 0x441   : > { %v4301_v3 = vsel %vm12466_vm15, %v4237_v16, 0.0  ;;  %v4362_v57 = vadd.f32 %v4361_v27, %v4299_v22  ;;  %v4236_v38 = vmul.f32 %v7613_v4, %v9995_v59  ;;  %vm12482_vm13 = vcmp.lt.s32.totalorder %v12700_v39, 1152  ;;  %v10847_v33 = vpop.f32.mrb[47].mxu1  ;;  %v7617_v18 = vpop.eup %7616 }
 0x442   : > { %7632 = vtanh.f32 %v3253_v46  ;;  %v3656_v50 = vsel %vm12473_vm11, %v3464_v2, 0.0  ;;  %v3654_v23 = vsel %vm12491_vm0, %v3462_v36, 0.0  ;;  %v4044_v16 = vadd.f32 %v10732_v45, %v9992_v53  ;;  %v7619_v22 = vpop.eup %7618 }
 0x443   : > { %7634 = vtanh.f32 %v4033_v60  ;;  %v4302_v27 = vsel %vm12473_vm11, %v4238_v44, 0.0  ;;  %v3717_v46 = vadd.f32 %v3716_v55, %v3654_v23  ;;  %v4300_v4 = vsel %vm12491_vm0, %v4236_v38, 0.0  ;;  %v7621_v58 = vpop.eup %7620 }
 0x444   : > { %7636 = vtanh.f32 %v4041_v17  ;;  %vm12478_vm15 = vcmp.lt.s32.totalorder %v10317_v31, 1152  ;;  %v4363_v2 = vadd.f32 %v4362_v57, %v4300_v4  ;;  %v3467_v40 = vmul.f32 %v7615_v42, %v9995_v59  ;;  %v7623_v36 = vpop.eup %7622  ;;  %v10870_v57 = vpop.f32.mrb[48].mxu0 }
 0x445   : > { %v3465_v60 = vmul.f32 %v7619_v22, %v9995_v59  ;;  %7638 = vtanh.f32 %v3264_v62  ;;  %v3718_v45 = vadd.f32 %v3717_v46, %v3655_v15  ;;  %v4241_v43 = vmul.f32 %v7617_v18, %v9995_v59  ;;  %v10872_v62 = vpop.f32.mrb[48].mxu1 }
 0x446   : > { %v4239_v44 = vmul.f32 %v7621_v58, %v9995_v59  ;;  %v3256_v55 = vadd.f32 %v10738_v61, %v9992_v53  ;;  %v7625_v38 = vpop.eup %7624  ;;  %v4364_v17 = vadd.f32 %v4363_v2, %v4301_v3  ;;  %7640 = vtanh.f32 %v4044_v16  ;;  %v10877_v3 = vpop.f32.mrb[49].mxu0 }
 0x447   : > { %v3657_v23 = vsel %vm12472_vm12, %v3465_v60, 0.0  ;;  %v4036_v42 = vadd.f32 %v10740_v32, %v9992_v53  ;;  %v7627_v15 = vpop.eup %7626  ;;  %v3719_v18 = vadd.f32 %v3718_v45, %v3656_v50  ;;  %v3468_v61 = vmul.f32 %v7623_v36, %v9995_v59  ;;  %v10879_v22 = vpop.f32.mrb[49].mxu1 }
 0x448   : > { %v4303_v58 = vsel %vm12472_vm12, %v4239_v44, 0.0  ;;  %7642 = vtanh.f32 %v3256_v55  ;;  %v7629_v16 = vpop.eup %7628  ;;  %v4365_v46 = vadd.f32 %v4364_v17, %v4302_v27  ;;  %v4242_v32 = vmul.f32 %v7625_v38, %v9995_v59  ;;  %v10883_v2 = vpop.f32.mrb[50].mxu0 }
 0x449   : > { %v3466_v4 = vmul.f32 %v7627_v15, %v9995_v59  ;;  %7644 = vtanh.f32 %v4036_v42  ;;  %v10885_v50 = vpop.f32.mrb[50].mxu1  ;;  %v3720_v60 = vadd.f32 %v3719_v18, %v3657_v23  ;;  %v4240_v45 = vmul.f32 %v7629_v16, %v9995_v59  ;;  %v10891_v44 = vpop.f32.mrb[51].mxu0 }
 0x44a   : > { %vm12485_vm12 = vcmp.lt.s32.totalorder %v10330_v25, 1152  ;;  %v3277_v36 = vadd.f32 %v10769_v63, %v9992_v53  ;;  %v10893_v27 = vpop.f32.mrb[51].mxu1  ;;  %v10897_v55 = vadd.s32 %v9941_v12, %v10407_v51  ;;  %v7631_v38 = vpop.eup %7630  ;;  %v4366_v17 = vadd.f32 %v4365_v46, %v4303_v58 }
 0x44b   : > { %v3658_v23 = vsel %vm12481_vm1, %v3466_v4, 0.0  ;;  %v4057_v42 = vadd.f32 %v10771_v20, %v9992_v53  ;;  %v10905_v15 = vadd.s32 %v9941_v12, %v10761_v29  ;;  %v3659_v18 = vsel %vm12476_vm2, %v3467_v40, 0.0 }
 0x44c   : > { %12701 = vst [vmem:[#allocation29_spill] sm:$0xff] %v10897_v55  ;;  %v7633_v63 = vpop.eup %7632  ;;  %v4305_v51 = vsel %vm12476_vm2, %v4241_v43, 0.0  ;;  %v3721_v16 = vadd.f32 %v3720_v60, %v3658_v23  ;;  %v4304_v58 = vsel %vm12481_vm1, %v4240_v45, 0.0  ;;  %vm12488_vm11 = vcmp.lt.s32.totalorder %v10314_v7, 1152  ;;  %v12703_v60 = vld [vmem:[#allocation74_spill] sm:$0xff]  ;;  %v12708_v7 = vld [vmem:[#allocation81_spill] sm:$0xff] }
 0x44d   : > { %12702 = vst [vmem:[#allocation28_spill] sm:$0xff] %v10905_v15  ;;  %v7635_v46 = vpop.eup %7634  ;;  %v3660_v20 = vsel %vm12482_vm13, %v3468_v61, 0.0  ;;  %v4306_v29 = vsel %vm12482_vm13, %v4242_v32, 0.0  ;;  %v4367_v4 = vadd.f32 %v4366_v17, %v4304_v58  ;;  %v3469_v37 = vmul.f32 %v7633_v63, %v9995_v59  ;;  %v10927_v17 = vpop.f32.mrb[52].mxu0 }
 0x44e   : > { %v7637_v40 = vpop.eup %7636  ;;  %v3722_v10 = vadd.f32 %v3721_v16, %v3659_v18  ;;  %v4243_v43 = vmul.f32 %v7635_v46, %v9995_v59  ;;  %vm12489_vm2 = vcmp.lt.s32.totalorder %v12703_v60, 1152  ;;  %7646 = vtanh.f32 %v3277_v36  ;;  %v10929_v63 = vpop.f32.mrb[52].mxu1  ;;  %v12710_v60 = vld [vmem:[#allocation27_spill] sm:$0xff] }
 0x44f   : > { %v3269_v45 = vadd.f32 %v10780_v47, %v9992_v53  ;;  %v7639_v23 = vpop.eup %7638  ;;  %v4368_v11 = vadd.f32 %v4367_v4, %v4305_v51  ;;  %v3661_v61 = vsel %vm12478_vm15, %v3469_v37, 0.0  ;;  %7648 = vtanh.f32 %v4057_v42  ;;  %v10934_v47 = vpop.f32.mrb[53].mxu0 }
 0x450   : > { %v4049_v32 = vadd.f32 %v10782_v13, %v9992_v53  ;;  %v3471_v18 = vmul.f32 %v7631_v38, %v9995_v59  ;;  %v3723_v16 = vadd.f32 %v3722_v10, %v3660_v20  ;;  %v4307_v36 = vsel %vm12478_vm15, %v4243_v43, 0.0  ;;  %v10936_v51 = vpop.f32.mrb[53].mxu1  ;;  %v7641_v37 = vpop.eup %7640  ;;  %v12704_v43 = vld [vmem:[#allocation77_spill] sm:$0xff] }
 0x451   : > { %7650 = vtanh.f32 %v3269_v45  ;;  %v4245_v42 = vmul.f32 %v7637_v40, %v9995_v59  ;;  %v4369_v58 = vadd.f32 %v4368_v11, %v4306_v29  ;;  %v3280_v13 = vadd.f32 %v10789_v34, %v9992_v53  ;;  %v10941_v46 = vpop.f32.mrb[54].mxu0  ;;  %v10943_v38 = vpop.f32.mrb[54].mxu1 }
 0x452   : > { %7652 = vtanh.f32 %v4049_v32  ;;  %v7643_v10 = vpop.eup %7642  ;;  %v3724_v20 = vadd.f32 %v3723_v16, %v3661_v61  ;;  %v3472_v4 = vmul.f32 %v7639_v23, %v9995_v59  ;;  %vm12496_vm15 = vcmp.lt.s32.totalorder %v12704_v43, 1152  ;;  %v10951_v29 = vpop.f32.mrb[55].mxu0 }
 0x453   : > { %v4060_v45 = vadd.f32 %v10791_v49, %v9992_v53  ;;  %v3272_v11 = vadd.f32 %v10799_v9, %v9992_v53  ;;  %v10953_v40 = vpop.f32.mrb[55].mxu1  ;;  %v7645_v34 = vpop.eup %7644  ;;  %v4370_v32 = vadd.f32 %v4369_v58, %v4307_v36  ;;  %v3470_v31 = vmul.f32 %v7643_v10, %v9995_v59  ;;  %v12705_v58 = vld [vmem:[#allocation76_spill] sm:$0xff] }
 0x454   : > { %7654 = vtanh.f32 %v3280_v13  ;;  %v4052_v23 = vadd.f32 %v10801_v56, %v9992_v53  ;;  %v4244_v61 = vmul.f32 %v7645_v34, %v9995_v59  ;;  %v3293_v49 = vadd.f32 %v10819_v24, %v9992_v53 }
 0x455   : > { %7656 = vtanh.f32 %v4060_v45  ;;  %v4073_v9 = vadd.f32 %v10821_v8, %v9992_v53  ;;  %v4246_v16 = vmul.f32 %v7641_v37, %v9995_v59  ;;  %v3662_v36 = vsel %vm12485_vm12, %v3470_v31, 0.0  ;;  %v12706_v45 = vld [vmem:[#allocation79_spill] sm:$0xff] }
 0x456   : > { %vm12500_vm1 = vcmp.lt.s32.totalorder %v12705_v58, 1152  ;;  %7658 = vtanh.f32 %v3272_v11  ;;  %v3285_v56 = vadd.f32 %v10829_v21, %v9992_v53  ;;  %v3725_v13 = vadd.f32 %v3724_v20, %v3662_v36  ;;  %v10978_v11 = vpop.f32.mrb[56].mxu0  ;;  %v10980_v21 = vpop.f32.mrb[56].mxu1 }
 0x457   : > { %v4308_v10 = vsel %vm12485_vm12, %v4244_v61, 0.0  ;;  %7660 = vtanh.f32 %v4052_v23  ;;  %v4065_v24 = vadd.f32 %v10831_v28, %v9992_v53  ;;  %v3663_v8 = vsel %vm12488_vm11, %v3471_v18, 0.0  ;;  %v10986_v18 = vpop.f32.mrb[57].mxu0 }
 0x458   : > { %v4371_v37 = vadd.f32 %v4370_v32, %v4308_v10  ;;  %vm12505_vm13 = vcmp.lt.s32.totalorder %v12706_v45, 1152  ;;  %7662 = vtanh.f32 %v3293_v49  ;;  %v3296_v31 = vadd.f32 %v10837_v19, %v9992_v53  ;;  %v7647_v20 = vpop.eup %7646  ;;  %v10988_v32 = vpop.f32.mrb[57].mxu1 }
 0x459   : > { %v4309_v34 = vsel %vm12488_vm11, %v4245_v42, 0.0  ;;  %v3726_v23 = vadd.f32 %v3725_v13, %v3663_v8  ;;  %7664 = vtanh.f32 %v4073_v9  ;;  %v4076_v28 = vadd.f32 %v10839_v0, %v9992_v53  ;;  %v7649_v61 = vpop.eup %7648  ;;  %v10994_v10 = vpop.f32.mrb[58].mxu0 }
 0x45a   : > { %v3664_v19 = vsel %vm12489_vm2, %v3472_v4, 0.0  ;;  %v4372_v49 = vadd.f32 %v4371_v37, %v4309_v34  ;;  %7666 = vtanh.f32 %v3285_v56  ;;  %v3288_v36 = vadd.f32 %v10845_v5, %v9992_v53  ;;  %v10996_v42 = vpop.f32.mrb[58].mxu1  ;;  %v11002_v25 = vpop.f32.mrb[59].mxu0  ;;  %v12707_v34 = vld [vmem:[#allocation78_spill] sm:$0xff] }
 0x45b   : > { %v7651_v9 = vpop.eup %7650  ;;  %v4310_v0 = vsel %vm12489_vm2, %v4246_v16, 0.0  ;;  %v3727_v13 = vadd.f32 %v3726_v23, %v3664_v19  ;;  %7668 = vtanh.f32 %v4065_v24  ;;  %v4068_v8 = vadd.f32 %v10847_v33, %v9992_v53  ;;  %v11004_v4 = vpop.f32.mrb[59].mxu1 }
 0x45c   : > { %v7653_v56 = vpop.eup %7652  ;;  %v3473_v5 = vmul.f32 %v7651_v9, %v9995_v59  ;;  %v4373_v37 = vadd.f32 %v4372_v49, %v4310_v0  ;;  %vm12506_vm12 = vcmp.lt.s32.totalorder %v12707_v34, 1152  ;;  %vm12507_vm11 = vcmp.lt.s32.totalorder %v12708_v7, 1152 }
 0x45d   : > { %7670 = vtanh.f32 %v3296_v31  ;;  %v3309_v16 = vadd.f32 %v10870_v57, %v9992_v53  ;;  %v3475_v24 = vmul.f32 %v7647_v20, %v9995_v59  ;;  %v4247_v33 = vmul.f32 %v7653_v56, %v9995_v59  ;;  %v12709_v56 = vld [vmem:[#allocation80_spill] sm:$0xff] }
 0x45e   : > { %7672 = vtanh.f32 %v4076_v28  ;;  %v4089_v23 = vadd.f32 %v10872_v62, %v9992_v53  ;;  %v7655_v19 = vpop.eup %7654  ;;  %v4249_v9 = vmul.f32 %v7649_v61, %v9995_v59  ;;  %v3665_v49 = vsel %vm12496_vm15, %v3473_v5, 0.0  ;;  %v11033_v5 = vpop.f32.mrb[60].mxu1 }
 0x45f   : > { %7674 = vtanh.f32 %v3288_v36  ;;  %v3301_v31 = vadd.f32 %v10877_v3, %v9992_v53  ;;  %v7657_v0 = vpop.eup %7656  ;;  %v3728_v57 = vadd.f32 %v3727_v13, %v3665_v49  ;;  %v4311_v20 = vsel %vm12496_vm15, %v4247_v33, 0.0  ;;  %v11031_v13 = vpop.f32.mrb[60].mxu0 }
 0x460   : > { %vm2906_vm2 = vcmp.lt.s32.totalorder %v12709_v56, 1152  ;;  %7676 = vtanh.f32 %v4068_v8  ;;  %v4081_v62 = vadd.f32 %v10879_v22, %v9992_v53  ;;  %v7659_v28 = vpop.eup %7658  ;;  %v4374_v61 = vadd.f32 %v4373_v37, %v4311_v20 }
 0x461   : > { %vm12530_vm0 = vcmp.lt.s32.totalorder %v12710_v60, 1152  ;;  %7678 = vtanh.f32 %v3309_v16  ;;  %v3312_v36 = vadd.f32 %v10883_v2, %v9992_v53  ;;  %v11029_v3 = vadd.s32 440, %v9877_v26  ;;  %v7661_v33 = vpop.eup %7660  ;;  %v11040_v16 = vpop.f32.mrb[61].mxu0 }
 0x462   : > { %v3667_v8 = vsel %vm12500_vm1, %v3475_v24, 0.0  ;;  %v3474_v22 = vmul.f32 %v7659_v28, %v9995_v59  ;;  %7680 = vtanh.f32 %v4089_v23  ;;  %v4092_v37 = vadd.f32 %v10885_v50, %v9992_v53  ;;  %v11042_v2 = vpop.f32.mrb[61].mxu1  ;;  %v7663_v49 = vpop.eup %7662 }
 0x463   : > { %v4313_v20 = vsel %vm12500_vm1, %v4249_v9, 0.0  ;;  %v4248_v43 = vmul.f32 %v7661_v33, %v9995_v59  ;;  %7682 = vtanh.f32 %v3301_v31  ;;  %v3304_v24 = vadd.f32 %v10891_v44, %v9992_v53  ;;  %v11049_v39 = vpop.f32.mrb[62].mxu0  ;;  %v11051_v23 = vpop.f32.mrb[62].mxu1 }
 0x464   : > { %v7665_v28 = vpop.eup %7664  ;;  %v3476_v50 = vmul.f32 %v7655_v19, %v9995_v59  ;;  %v3666_v48 = vsel %vm12505_vm13, %v3474_v22, 0.0  ;;  %vm12513_vm15 = vcmp.lt.s32.totalorder %v12711_v52, 1152  ;;  %7684 = vtanh.f32 %v4081_v62  ;;  %v11059_v31 = vpop.f32.mrb[63].mxu0 }
 0x465   : > { %v4084_v9 = vadd.f32 %v10893_v27, %v9992_v53  ;;  %v11061_v33 = vpop.f32.mrb[63].mxu1  ;;  %v7667_v44 = vpop.eup %7666  ;;  %v4250_v58 = vmul.f32 %v7657_v0, %v9995_v59  ;;  %v3729_v41 = vadd.f32 %v3728_v57, %v3666_v48  ;;  %v4312_v19 = vsel %vm12505_vm13, %v4248_v43, 0.0 }
 0x466   : > { %vm12514_vm1 = vcmp.lt.s32.totalorder %v12712_v1, 1152  ;;  %7686 = vtanh.f32 %v3312_v36  ;;  %v7669_v22 = vpop.eup %7668  ;;  %v4375_v14 = vadd.f32 %v4374_v61, %v4312_v19  ;;  %v3477_v62 = vmul.f32 %v7667_v44, %v9995_v59 }
 0x467   : > { %7688 = vtanh.f32 %v4092_v37  ;;  %v3325_v27 = vadd.f32 %v10927_v17, %v9992_v53  ;;  %v7671_v54 = vpop.eup %7670  ;;  %v3730_v30 = vadd.f32 %v3729_v41, %v3667_v8  ;;  %v3479_v6 = vmul.f32 %v7663_v49, %v9995_v59  ;;  %v12713_v8 = vld [vmem:[#allocation86_spill] sm:$0xff] }
 0x468   : > { %v4251_v48 = vmul.f32 %v7669_v22, %v9995_v59  ;;  %7690 = vtanh.f32 %v3304_v24  ;;  %v7673_v0 = vpop.eup %7672  ;;  %v3668_v43 = vsel %vm12506_vm12, %v3476_v50, 0.0  ;;  %v4376_v57 = vadd.f32 %v4375_v14, %v4313_v20  ;;  %v11083_v24 = vpop.f32.mrb[64].mxu0 }
 0x469   : > { %v3669_v61 = vsel %vm12507_vm11, %v3477_v62, 0.0  ;;  %7692 = vtanh.f32 %v4084_v9  ;;  %v7675_v36 = vpop.eup %7674  ;;  %v4314_v17 = vsel %vm12506_vm12, %v4250_v58, 0.0  ;;  %v3731_v37 = vadd.f32 %v3730_v30, %v3668_v43  ;;  %v11085_v14 = vpop.f32.mrb[64].mxu1  ;;  %v12714_v58 = vld [vmem:[#allocation83_spill] sm:$0xff] }
 0x46a   : > { %v4315_v41 = vsel %vm12507_vm11, %v4251_v48, 0.0  ;;  %vm12517_vm13 = vcmp.lt.s32.totalorder %v12713_v8, 1152  ;;  %v4105_v49 = vadd.f32 %v10929_v63, %v9992_v53  ;;  %v7677_v20 = vpop.eup %7676  ;;  %v4253_v50 = vmul.f32 %v7665_v28, %v9995_v59  ;;  %v11090_v30 = vpop.f32.mrb[65].mxu0  ;;  %v12715_v28 = vld [vmem:[#allocation85_spill] sm:$0xff] }
 0x46b   : > { %v4377_v9 = vadd.f32 %v4376_v57, %v4314_v17  ;;  %v3478_v44 = vmul.f32 %v7675_v36, %v9995_v59  ;;  %vm12529_vm12 = vcmp.lt.s32.totalorder %v12714_v58, 1152  ;;  %7694 = vtanh.f32 %v3325_v27  ;;  %v11092_v19 = vpop.f32.mrb[65].mxu1  ;;  %v7679_v22 = vpop.eup %7678 }
 0x46c   : > { %v3671_v63 = vsel %vm2906_vm2, %v3479_v6, 0.0  ;;  %v3732_v62 = vadd.f32 %v3731_v37, %v3669_v61  ;;  %v3480_v48 = vmul.f32 %v7671_v54, %v9995_v59  ;;  %v4252_v43 = vmul.f32 %v7677_v20, %v9995_v59  ;;  %v11099_v57 = vpop.f32.mrb[66].mxu0  ;;  %v11101_v36 = vpop.f32.mrb[66].mxu1 }
 0x46d   : > { %vm12520_vm11 = vcmp.lt.s32.totalorder %v12715_v28, 1152  ;;  %v7681_v27 = vpop.eup %7680  ;;  %v4378_v17 = vadd.f32 %v4377_v9, %v4315_v41  ;;  %v4254_v7 = vmul.f32 %v7673_v0, %v9995_v59  ;;  %v3670_v45 = vsel %vm12530_vm0, %v3478_v44, 0.0  ;;  %v11108_v61 = vpop.f32.mrb[67].mxu0 }
 0x46e   : > { %v3317_v6 = vadd.f32 %v10934_v47, %v9992_v53  ;;  %v11110_v54 = vpop.f32.mrb[67].mxu1  ;;  %v7683_v37 = vpop.eup %7682  ;;  %v3733_v20 = vadd.f32 %v3732_v62, %v3670_v45  ;;  %v4316_v34 = vsel %vm12530_vm0, %v4252_v43, 0.0  ;;  %7696 = vtanh.f32 %v4105_v49 }
 0x46f   : > { %12716 = vst [vmem:[#allocation31_spill] sm:$0xff] %v11110_v54  ;;  %v4097_v41 = vadd.f32 %v10936_v51, %v9992_v53  ;;  %v7685_v0 = vpop.eup %7684  ;;  %v4317_v9 = vsel %vm2906_vm2, %v4253_v50, 0.0  ;;  %v4379_v44 = vadd.f32 %v4378_v17, %v4316_v34  ;;  %v3481_v47 = vmul.f32 %v7683_v37, %v9995_v59  ;;  %v11132_v37 = vpop.f32.mrb[68].mxu0 }
 0x470   : > { %7698 = vtanh.f32 %v3317_v6  ;;  %v7687_v35 = vpop.eup %7686  ;;  %v3672_v54 = vsel %vm12513_vm15, %v3480_v48, 0.0  ;;  %v3734_v45 = vadd.f32 %v3733_v20, %v3671_v63  ;;  %v4255_v62 = vmul.f32 %v7685_v0, %v9995_v59  ;;  %v11134_v20 = vpop.f32.mrb[68].mxu1 }
 0x471   : > { %7700 = vtanh.f32 %v4097_v41  ;;  %v7689_v49 = vpop.eup %7688  ;;  %v4318_v51 = vsel %vm12513_vm15, %v4254_v7, 0.0  ;;  %v4380_v43 = vadd.f32 %v4379_v44, %v4317_v9  ;;  %v3483_v60 = vmul.f32 %v7679_v22, %v9995_v59 }
 0x472   : > { %v3673_v34 = vsel %vm12514_vm1, %v3481_v47, 0.0  ;;  %v7691_v50 = vpop.eup %7690  ;;  %v4257_v17 = vmul.f32 %v7681_v27, %v9995_v59  ;;  %v3735_v6 = vadd.f32 %v3734_v45, %v3672_v54  ;;  %v4319_v63 = vsel %vm12514_vm1, %v4255_v62, 0.0  ;;  %v11139_v27 = vpop.f32.mrb[69].mxu0 }
 0x473   : > { %v3328_v48 = vadd.f32 %v10941_v46, %v9992_v53  ;;  %v7693_v7 = vpop.eup %7692  ;;  %v4381_v41 = vadd.f32 %v4380_v43, %v4318_v51  ;;  %v3484_v22 = vmul.f32 %v7687_v35, %v9995_v59  ;;  %v3482_v0 = vmul.f32 %v7691_v50, %v9995_v59  ;;  %v11141_v54 = vpop.f32.mrb[69].mxu1 }
 0x474   : > { %vm12519_vm15 = vcmp.lt.s32.totalorder %v10905_v15, 1152  ;;  %v3736_v9 = vadd.f32 %v3735_v6, %v3673_v34  ;;  %v4258_v44 = vmul.f32 %v7689_v49, %v9995_v59  ;;  %v4256_v46 = vmul.f32 %v7693_v7, %v9995_v59  ;;  %v11145_v47 = vpop.f32.mrb[70].mxu0  ;;  %v11147_v45 = vpop.f32.mrb[70].mxu1 }
 0x475   : > { %7702 = vtanh.f32 %v3328_v48  ;;  %v7695_v62 = vpop.eup %7694  ;;  %v4382_v35 = vadd.f32 %v4381_v41, %v4319_v63  ;;  %v3674_v51 = vsel %vm12517_vm13, %v3482_v0, 0.0  ;;  %vm12521_vm1 = vcmp.lt.s32.totalorder %v10897_v55, 1152  ;;  %v11158_v34 = vpop.f32.mrb[71].mxu0 }
 0x476   : > { %v11154_v43 = vadd.s32 %v9941_v12, %v11029_v3  ;;  %v4108_v49 = vadd.f32 %v10943_v38, %v9992_v53  ;;  %v11160_v50 = vpop.f32.mrb[71].mxu1  ;;  %v3675_v6 = vsel %vm12529_vm12, %v3483_v60, 0.0  ;;  %v4321_v63 = vsel %vm12529_vm12, %v4257_v17, 0.0 }
 0x477   : > { %v3737_v48 = vadd.f32 %v3736_v9, %v3674_v51  ;;  %v4320_v7 = vsel %vm12517_vm13, %v4256_v46, 0.0  ;;  %v3676_v3 = vsel %vm12520_vm11, %v3484_v22, 0.0  ;;  %v3320_v38 = vadd.f32 %v10951_v29, %v9992_v53 }
 0x478   : > { %12717 = vst [vmem:[#allocation30_spill] sm:$0xff] %v11154_v43  ;;  %v4383_v41 = vadd.f32 %v4382_v35, %v4320_v7  ;;  %7704 = vtanh.f32 %v4108_v49  ;;  %v7697_v0 = vpop.eup %7696  ;;  %v4322_v1 = vsel %vm12520_vm11, %v4258_v44, 0.0  ;;  %v3487_v58 = vmul.f32 %v7695_v62, %v9995_v59  ;;  %v11183_v49 = vpop.f32.mrb[72].mxu0 }
 0x479   : > { %v3738_v60 = vadd.f32 %v3737_v48, %v3675_v6  ;;  %v4100_v17 = vadd.f32 %v10953_v40, %v9992_v53  ;;  %vm12535_vm13 = vcmp.lt.s32.totalorder %v11154_v43, 1152  ;;  %v2783_v22 = vadd.s32 424, %v9877_v26  ;;  %v11185_v40 = vpop.f32.mrb[72].mxu1  ;;  %v11189_v7 = vpop.f32.mrb[73].mxu0 }
 0x47a   : > { %v7699_v9 = vpop.eup %7698  ;;  %v4384_v46 = vadd.f32 %v4383_v41, %v4321_v63  ;;  %7706 = vtanh.f32 %v3320_v38  ;;  %v3341_v29 = vadd.f32 %v10978_v11, %v9992_v53  ;;  %v2788_v62 = vadd.s32 464, %v9877_v26  ;;  %v11191_v11 = vpop.f32.mrb[73].mxu1 }
 0x47b   : > { %v7701_v35 = vpop.eup %7700  ;;  %v3485_v51 = vmul.f32 %v7699_v9, %v9995_v59  ;;  %v3739_v44 = vadd.f32 %v3738_v60, %v3676_v3  ;;  %7708 = vtanh.f32 %v4100_v17  ;;  %v4261_v6 = vmul.f32 %v7697_v0, %v9995_v59  ;;  %v11200_v0 = vpop.f32.mrb[74].mxu0 }
 0x47c   : > { %v4259_v63 = vmul.f32 %v7701_v35, %v9995_v59  ;;  %v4385_v48 = vadd.f32 %v4384_v46, %v4322_v1  ;;  %7710 = vtanh.f32 %v3341_v29  ;;  %v4121_v41 = vadd.f32 %v10980_v21, %v9992_v53  ;;  %v11202_v17 = vpop.f32.mrb[74].mxu1  ;;  %v11211_v21 = vpop.f32.mrb[75].mxu0 }
 0x47d   : > { %v3677_v3 = vsel %vm12519_vm15, %v3485_v51, 0.0  ;;  %v2786_v38 = vadd.s32 448, %v9877_v26  ;;  %v3333_v60 = vadd.f32 %v10986_v18, %v9992_v53  ;;  %v11207_v46 = vadd.s32 %v9941_v12, %v2783_v22  ;;  %v11213_v35 = vpop.f32.mrb[75].mxu1 }
 0x47e   : > { %v3740_v1 = vadd.f32 %v3739_v44, %v3677_v3  ;;  %v4323_v9 = vsel %vm12519_vm15, %v4259_v63, 0.0  ;;  %v4113_v29 = vadd.f32 %v10988_v32, %v9992_v53  ;;  %v11216_v28 = vadd.s32 %v9941_v12, %v2788_v62 }
 0x47f   : > { %12718 = vst [vmem:[#allocation36_spill] sm:$0xff] %v11207_v46  ;;  %v7703_v51 = vpop.eup %7702  ;;  %v4386_v18 = vadd.f32 %v4385_v48, %v4323_v9  ;;  %7712 = vtanh.f32 %v4121_v41  ;;  %v2789_v44 = vadd.s32 472, %v9877_v26  ;;  %v11220_v63 = vadd.s32 %v9941_v12, %v2786_v38 }
 0x480   : > { %12719 = vst [vmem:[#allocation35_spill] sm:$0xff] %v11216_v28  ;;  %7714 = vtanh.f32 %v3333_v60  ;;  %v3344_v22 = vadd.f32 %v10994_v10, %v9992_v53  ;;  %v4124_v32 = vadd.f32 %v10996_v42, %v9992_v53  ;;  %v3679_v3 = vsel %vm12521_vm1, %v3487_v58, 0.0  ;;  %v11241_v58 = vpop.f32.mrb[76].mxu0 }
 0x481   : > { %12720 = vst [vmem:[#allocation40_spill] sm:$0xff] %v11220_v63  ;;  %v4325_v62 = vsel %vm12521_vm1, %v4261_v6, 0.0  ;;  %v3488_v48 = vmul.f32 %v7703_v51, %v9995_v59  ;;  %7716 = vtanh.f32 %v4113_v29  ;;  %v2787_v38 = vadd.s32 456, %v9877_v26  ;;  %v11243_v6 = vpop.f32.mrb[76].mxu1  ;;  %v11250_v29 = vpop.f32.mrb[77].mxu0 }
 0x482   : > { %v7705_v41 = vpop.eup %7704  ;;  %7718 = vtanh.f32 %v3344_v22  ;;  %v3336_v60 = vadd.f32 %v11002_v25, %v9992_v53  ;;  %v4116_v10 = vadd.f32 %v11004_v4, %v9992_v53  ;;  %vm12537_vm15 = vcmp.lt.s32.totalorder %v11207_v46, 1152  ;;  %v11252_v51 = vpop.f32.mrb[77].mxu1 }
 0x483   : > { %vm2918_vm11 = vcmp.lt.s32.totalorder %v11216_v28, 1152  ;;  %v11239_v42 = vadd.s32 %v9941_v12, %v2789_v44  ;;  %7720 = vtanh.f32 %v4124_v32  ;;  %vm12536_vm1 = vcmp.lt.s32.totalorder %v11220_v63, 1152  ;;  %v11260_v15 = vpop.f32.mrb[78].mxu1 }
 0x484   : > { %v7707_v9 = vpop.eup %7706  ;;  %7722 = vtanh.f32 %v3336_v60  ;;  %v3357_v25 = vadd.f32 %v11031_v13, %v9992_v53  ;;  %v4137_v4 = vadd.f32 %v11033_v5, %v9992_v53  ;;  %v3680_v22 = vsel %vm12535_vm13, %v3488_v48, 0.0  ;;  %v11258_v60 = vpop.f32.mrb[78].mxu0  ;;  %12723 = vst [vmem:[#allocation41_spill] sm:$0xff] %v11260_v15 }
 0x485   : > { %12721 = vst [vmem:[#allocation39_spill] sm:$0xff] %v11239_v42  ;;  %v7709_v44 = vpop.eup %7708  ;;  %v4262_v32 = vmul.f32 %v7705_v41, %v9995_v59  ;;  %v3486_v55 = vmul.f32 %v7707_v9, %v9995_v59  ;;  %7724 = vtanh.f32 %v4116_v10  ;;  %12722 = vst [vmem:[#allocation44_spill] sm:$0xff] %v11258_v60  ;;  %v11264_v8 = vadd.s32 %v9941_v12, %v2787_v38  ;;  %v11267_v56 = vpop.f32.mrb[79].mxu0 }
 0x486   : > { %v7711_v13 = vpop.eup %7710  ;;  %v4260_v5 = vmul.f32 %v7709_v44, %v9995_v59  ;;  %v2792_v52 = vadd.s32 496, %v9877_v26  ;;  %7726 = vtanh.f32 %v3357_v25  ;;  %12725 = vst [vmem:[#allocation88_spill] sm:$0xff] %v11267_v56  ;;  %v11269_v48 = vpop.f32.mrb[79].mxu1  ;;  %vm2919_vm12 = vcmp.lt.s32.totalorder %v11239_v42, 1152 }
 0x487   : > { %12724 = vst [vmem:[#allocation87_spill] sm:$0xff] %v11264_v8  ;;  %12726 = vst [vmem:[#allocation89_spill] sm:$0xff] %v11269_v48  ;;  %v3678_v41 = vsel %vm12537_vm15, %v3486_v55, 0.0  ;;  %7728 = vtanh.f32 %v4137_v4  ;;  %v3349_v10 = vadd.f32 %v11040_v16, %v9992_v53  ;;  %v3491_v44 = vmul.f32 %v7711_v13, %v9995_v59 }
 0x488   : > { %v3741_v9 = vadd.f32 %v3740_v1, %v3678_v41  ;;  %v4324_v38 = vsel %vm12537_vm15, %v4260_v5, 0.0  ;;  %v2790_v25 = vadd.s32 480, %v9877_v26  ;;  %v4326_v48 = vsel %vm12535_vm13, %v4262_v32, 0.0  ;;  %v11292_v32 = vpop.f32.mrb[80].mxu0 }
 0x489   : > { %v7713_v56 = vpop.eup %7712  ;;  %v4387_v15 = vadd.f32 %v4386_v18, %v4324_v38  ;;  %7730 = vtanh.f32 %v3349_v10  ;;  %v4129_v55 = vadd.f32 %v11042_v2, %v9992_v53  ;;  %vm2917_vm0 = vcmp.lt.s32.totalorder %v11264_v8, 1152  ;;  %v11294_v2 = vpop.f32.mrb[80].mxu1 }
 0x48a   : > { %v7715_v4 = vpop.eup %7714  ;;  %v3742_v60 = vadd.f32 %v3741_v9, %v3679_v3  ;;  %v11286_v16 = vadd.s32 %v9941_v12, %v2792_v52  ;;  %v2793_v1 = vadd.s32 504, %v9877_v26  ;;  %v3360_v18 = vadd.f32 %v11049_v39, %v9992_v53 }
 0x48b   : > { %v7717_v13 = vpop.eup %7716  ;;  %v4388_v5 = vadd.f32 %v4387_v15, %v4325_v62  ;;  %v3489_v41 = vmul.f32 %v7715_v4, %v9995_v59  ;;  %7732 = vtanh.f32 %v4129_v55  ;;  %v3683_v10 = vsel %vm2918_vm11, %v3491_v44, 0.0  ;;  %v11302_v15 = vpop.f32.mrb[81].mxu0 }
 0x48c   : > { %12727 = vst [vmem:[#allocation90_spill] sm:$0xff] %v11286_v16  ;;  %v7719_v3 = vpop.eup %7718  ;;  %v3743_v52 = vadd.f32 %v3742_v60, %v3680_v22  ;;  %v4263_v9 = vmul.f32 %v7717_v13, %v9995_v59  ;;  %v11300_v38 = vadd.s32 %v9941_v12, %v2790_v25  ;;  %12729 = vst [vmem:[#allocation92_spill] sm:$0xff] %v11302_v15  ;;  %v11304_v62 = vpop.f32.mrb[81].mxu1  ;;  %7734 = vtanh.f32 %v3360_v18 }
 0x48d   : > { %12730 = vst [vmem:[#allocation93_spill] sm:$0xff] %v11304_v62  ;;  %v7721_v55 = vpop.eup %7720  ;;  %v4265_v39 = vmul.f32 %v7713_v56, %v9995_v59  ;;  %v3681_v4 = vsel %vm12536_vm1, %v3489_v41, 0.0  ;;  %v4389_v43 = vadd.f32 %v4388_v5, %v4326_v48  ;;  %v11309_v46 = vpop.f32.mrb[82].mxu0  ;;  %v3492_v13 = vmul.f32 %v7719_v3, %v9995_v59 }
 0x48e   : > { %12728 = vst [vmem:[#allocation91_spill] sm:$0xff] %v11300_v38  ;;  %v11311_v22 = vpop.f32.mrb[82].mxu1  ;;  %v7723_v60 = vpop.eup %7722  ;;  %v3744_v44 = vadd.f32 %v3743_v52, %v3681_v4  ;;  %v4327_v25 = vsel %vm12536_vm1, %v4263_v9, 0.0  ;;  %v11317_v62 = vadd.s32 %v9941_v12, %v2793_v1  ;;  %v4266_v41 = vmul.f32 %v7721_v55, %v9995_v59 }
 0x48f   : > { %v11319_v56 = vpop.f32.mrb[83].mxu0  ;;  %v11321_v15 = vpop.f32.mrb[83].mxu1  ;;  %v4390_v5 = vadd.f32 %v4389_v43, %v4327_v25  ;;  %v3490_v18 = vmul.f32 %v7723_v60, %v9995_v59  ;;  %vm2922_vm13 = vcmp.lt.s32.totalorder %v11286_v16, 1152  ;;  %v4140_v52 = vadd.f32 %v11051_v23, %v9992_v53 }
 0x490   : > { %12731 = vst [vmem:[#allocation94_spill] sm:$0xff] %v11317_v62  ;;  %v7725_v48 = vpop.eup %7724  ;;  %vm12544_vm1 = vcmp.lt.s32.totalorder %v11300_v38, 1152  ;;  %v2791_v1 = vadd.s32 488, %v9877_v26  ;;  %v3352_v4 = vadd.f32 %v11059_v31, %v9992_v53  ;;  %v4329_v55 = vsel %vm2918_vm11, %v4265_v39, 0.0 }
 0x491   : > { %v7727_v9 = vpop.eup %7726  ;;  %v4264_v3 = vmul.f32 %v7725_v48, %v9995_v59  ;;  %v3682_v60 = vsel %vm2917_vm0, %v3490_v18, 0.0  ;;  %7736 = vtanh.f32 %v4140_v52  ;;  %v4132_v23 = vadd.f32 %v11061_v33, %v9992_v53  ;;  %v11347_v52 = vpop.f32.mrb[84].mxu0 }
 0x492   : > { %v7729_v43 = vpop.eup %7728  ;;  %v3684_v25 = vsel %vm2919_vm12, %v3492_v13, 0.0  ;;  %v3745_v48 = vadd.f32 %v3744_v44, %v3682_v60  ;;  %vm2923_vm15 = vcmp.lt.s32.totalorder %v11317_v62, 1152  ;;  %v4330_v39 = vsel %vm2919_vm12, %v4266_v41, 0.0  ;;  %v11349_v33 = vpop.f32.mrb[84].mxu1 }
 0x493   : > { %v4328_v26 = vsel %vm2917_vm0, %v4264_v3, 0.0  ;;  %v7731_v31 = vpop.eup %7730  ;;  %v3495_v18 = vmul.f32 %v7727_v9, %v9995_v59  ;;  %7738 = vtanh.f32 %v3352_v4  ;;  %v4269_v44 = vmul.f32 %v7729_v43, %v9995_v59  ;;  %v11356_v60 = vpop.f32.mrb[85].mxu0 }
 0x494   : > { %v4391_v28 = vadd.f32 %v4390_v5, %v4328_v26  ;;  %v3746_v63 = vadd.f32 %v3745_v48, %v3683_v10  ;;  %v3493_v13 = vmul.f32 %v7731_v31, %v9995_v59  ;;  %v11354_v3 = vadd.s32 %v9941_v12, %v2791_v1  ;;  %v11358_v42 = vpop.f32.mrb[85].mxu1  ;;  %v11364_v4 = vpop.f32.mrb[86].mxu0 }
 0x495   : > { %v7733_v5 = vpop.eup %7732  ;;  %7740 = vtanh.f32 %v4132_v23  ;;  %v4543_v9 = vadd.f32 %v11083_v24, %v9992_v53  ;;  %v5189_v10 = vadd.f32 %v11085_v14, %v9992_v53  ;;  %v11366_v43 = vpop.f32.mrb[86].mxu1  ;;  %v5181_v14 = vadd.f32 %v11092_v19, %v9992_v53 }
 0x496   : > { %12732 = vst [vmem:[#allocation95_spill] sm:$0xff] %v11354_v3  ;;  %v4392_v41 = vadd.f32 %v4391_v28, %v4329_v55  ;;  %v3685_v12 = vsel %vm12544_vm1, %v3493_v13, 0.0  ;;  %v3747_v1 = vadd.f32 %v3746_v63, %v3684_v25  ;;  %v4267_v48 = vmul.f32 %v7733_v5, %v9995_v59  ;;  %v11373_v55 = vpop.f32.mrb[87].mxu0  ;;  %v11375_v23 = vpop.f32.mrb[87].mxu1 }
 0x497   : > { %v4535_v28 = vadd.f32 %v11090_v30, %v9992_v53  ;;  %v7735_v24 = vpop.eup %7734  ;;  %7742 = vtanh.f32 %v4543_v9  ;;  %v4546_v31 = vadd.f32 %v11099_v57, %v9992_v53  ;;  %v5192_v5 = vadd.f32 %v11101_v36, %v9992_v53 }
 0x498   : > { %v4393_v26 = vadd.f32 %v4392_v41, %v4330_v39  ;;  %v3748_v13 = vadd.f32 %v3747_v1, %v3685_v12  ;;  %v4331_v63 = vsel %vm12544_vm1, %v4267_v48, 0.0  ;;  %v3496_v25 = vmul.f32 %v7735_v24, %v9995_v59  ;;  %v12733_v41 = vld [vmem:[#allocation31_spill] sm:$0xff] }
 0x499   : > { %7744 = vtanh.f32 %v5189_v10  ;;  %v4538_v39 = vadd.f32 %v11108_v61, %v9992_v53  ;;  %v3687_v19 = vsel %vm2922_vm13, %v3495_v18, 0.0  ;;  %v11392_v57 = vsel %vm2922_vm13, %v4269_v44, 0.0  ;;  %v11401_v61 = vpop.f32.mrb[88].mxu0  ;;  %v11403_v18 = vpop.f32.mrb[88].mxu1 }
 0x49a   : > { %v4394_v30 = vadd.f32 %v4393_v26, %v4331_v63  ;;  %7746 = vtanh.f32 %v4535_v28  ;;  %v5184_v9 = vadd.f32 %v12733_v41, %v9992_v53  ;;  %v3688_v12 = vsel %vm2923_vm15, %v3496_v25, 0.0  ;;  %v11410_v28 = vpop.f32.mrb[89].mxu0  ;;  %v11412_v24 = vpop.f32.mrb[89].mxu1 }
 0x49b   : > { %7748 = vtanh.f32 %v5181_v14  ;;  %v7737_v10 = vpop.eup %7736  ;;  %vm2921_vm1 = vcmp.lt.s32.totalorder %v11354_v3, 1152  ;;  %v4559_v36 = vadd.f32 %v11132_v37, %v9992_v53  ;;  %v5205_v1 = vadd.f32 %v11134_v20, %v9992_v53  ;;  %v11420_v63 = vpop.f32.mrb[90].mxu0 }
 0x49c   : > { %7750 = vtanh.f32 %v4546_v31  ;;  %v4270_v44 = vmul.f32 %v7737_v10, %v9995_v59  ;;  %v4551_v48 = vadd.f32 %v11139_v27, %v9992_v53  ;;  %v5197_v37 = vadd.f32 %v11141_v54, %v9992_v53  ;;  %v11422_v20 = vpop.f32.mrb[90].mxu1  ;;  %v11429_v54 = vpop.f32.mrb[91].mxu0 }
 0x49d   : > { %7752 = vtanh.f32 %v5192_v5  ;;  %v7739_v26 = vpop.eup %7738  ;;  %v4562_v14 = vadd.f32 %v11145_v47, %v9992_v53  ;;  %v5208_v31 = vadd.f32 %v11147_v45, %v9992_v53  ;;  %v4554_v25 = vadd.f32 %v11158_v34, %v9992_v53 }
 0x49e   : > { %7754 = vtanh.f32 %v4538_v39  ;;  %v3494_v27 = vmul.f32 %v7739_v26, %v9995_v59  ;;  %v5200_v5 = vadd.f32 %v11160_v50, %v9992_v53  ;;  %v11431_v39 = vpop.f32.mrb[91].mxu1  ;;  %v4334_v45 = vsel %vm2923_vm15, %v4270_v44, 0.0 }
 0x49f   : > { %7756 = vtanh.f32 %v5184_v9  ;;  %v7741_v47 = vpop.eup %7740  ;;  %v11437_v41 = vadd.f32 %v11183_v49, %v9992_v53  ;;  %v11441_v9 = vadd.f32 %v11185_v40, %v9992_v53  ;;  %v11448_v10 = vadd.f32 %v11189_v7, %v9992_v53 }
 0x4a0   : > { %7758 = vtanh.f32 %v4559_v36  ;;  %v3686_v34 = vsel %vm2921_vm1, %v3494_v27, 0.0  ;;  %v4268_v50 = vmul.f32 %v7741_v47, %v9995_v59  ;;  %v11452_v49 = vadd.f32 %v11191_v11, %v9992_v53 }
 0x4a1   : > { %7760 = vtanh.f32 %v5205_v1  ;;  %v7743_v44 = vpop.eup %7742  ;;  %v3749_v36 = vadd.f32 %v3748_v13, %v3686_v34  ;;  %v11456_v40 = vadd.f32 %v11200_v0, %v9992_v53  ;;  %v11463_v7 = vadd.f32 %v11202_v17, %v9992_v53  ;;  %v11466_v34 = vpop.f32.mrb[92].mxu0 }
 0x4a2   : > { %7762 = vtanh.f32 %v4551_v48  ;;  %v4332_v27 = vsel %vm2921_vm1, %v4268_v50, 0.0  ;;  %v4855_v1 = vmul.f32 %v7743_v44, %v9995_v59  ;;  %12734 = vst [vmem:[#allocation31_spill] sm:$0xff] %v11466_v34  ;;  %v11468_v0 = vpop.f32.mrb[92].mxu1  ;;  %v11477_v17 = vadd.f32 %v11213_v35, %v9992_v53 }
 0x4a3   : > { %v7745_v26 = vpop.eup %7744  ;;  %7764 = vtanh.f32 %v5197_v37  ;;  %v3750_v48 = vadd.f32 %v3749_v36, %v3687_v19  ;;  %v4395_v47 = vadd.f32 %v4394_v30, %v4332_v27  ;;  %12735 = vst [vmem:[#allocation96_spill] sm:$0xff] %v11468_v0  ;;  %v11473_v37 = vadd.f32 %v11211_v21, %v9992_v53  ;;  %v11479_v30 = vpop.f32.mrb[93].mxu0 }
 0x4a4   : > { %v7747_v13 = vpop.eup %7746  ;;  %v5501_v11 = vmul.f32 %v7745_v26, %v9995_v59  ;;  %7766 = vtanh.f32 %v4562_v14  ;;  %12736 = vst [vmem:[#allocation97_spill] sm:$0xff] %v11479_v30  ;;  %v11481_v19 = vpop.f32.mrb[93].mxu1  ;;  %v4919_v16 = vsel %vm2862_vm3, %v4855_v1, 0.0 }
 0x4a5   : > { %v7749_v62 = vpop.eup %7748  ;;  %v4853_v50 = vmul.f32 %v7747_v13, %v9995_v59  ;;  %7768 = vtanh.f32 %v5208_v31  ;;  %12737 = vst [vmem:[#allocation98_spill] sm:$0xff] %v11481_v19  ;;  %v3751_v44 = vadd.f32 %v3750_v48, %v3688_v12  ;;  %v4396_v36 = vadd.f32 %v4395_v47, %v11392_v57  ;;  %v11489_v21 = vpop.f32.mrb[94].mxu0 }
 0x4a6   : > { %v7751_v14 = vpop.eup %7750  ;;  %v5499_v26 = vmul.f32 %v7749_v62, %v9995_v59  ;;  %v11487_v31 = vadd.f32 %v11241_v58, %v9992_v53  ;;  %12738 = vst [vmem:[#allocation99_spill] sm:$0xff] %v11489_v21  ;;  %v11491_v27 = vpop.f32.mrb[94].mxu1  ;;  %7770 = vtanh.f32 %v4554_v25  ;;  %v11498_v57 = vadd.f32 %v11243_v6, %v9992_v53 }
 0x4a7   : > { %12739 = vst [vmem:[#allocation100_spill] sm:$0xff] %v11491_v27  ;;  %v7753_v35 = vpop.eup %7752  ;;  %v4856_v3 = vmul.f32 %v7751_v14, %v9995_v59  ;;  %v11500_v62 = vpop.f32.mrb[95].mxu0  ;;  %v3752_v48 = vrot.slane %v3751_v44, 4  ;;  %v4397_v47 = vadd.f32 %v4396_v36, %v4334_v45  ;;  %v5565_v38 = vsel %vm2862_vm3, %v5501_v11, 0.0 }
 0x4a8   : > { %12741 = vst [vmem:[#allocation25_spill] sm:$0xff] %v11500_v62  ;;  %v11502_v12 = vpop.f32.mrb[95].mxu1  ;;  %v7755_v58 = vpop.eup %7754  ;;  %v4917_v1 = vsel %vm2860_vm4, %v4853_v50, 0.0  ;;  %v5502_v25 = vmul.f32 %v7753_v35, %v9995_v59  ;;  %7772 = vtanh.f32 %v5200_v5  ;;  %v11512_v6 = vadd.f32 %v11250_v29, %v9992_v53 }
 0x4a9   : > { %12742 = vst [vmem:[#allocation101_spill] sm:$0xff] %v11502_v12  ;;  %v7757_v27 = vpop.eup %7756  ;;  %v4854_v14 = vmul.f32 %v7755_v58, %v9995_v59  ;;  %v3753_v62 = vadd.f32 %v3752_v48, %v3751_v44  ;;  %v4398_v21 = vrot.slane %v4397_v47, 4  ;;  %v5563_v45 = vsel %vm2860_vm4, %v5499_v26, 0.0  ;;  %v11528_v48 = vpop.f32.mrb[96].mxu0 }
 0x4aa   : > { %v7759_v12 = vpop.eup %7758  ;;  %v5500_v11 = vmul.f32 %v7757_v27, %v9995_v59  ;;  %vm5697_vm3 = vcmask 1040384   ;;  %v4920_v35 = vsel %vm2863_vm6, %v4856_v3, 0.0  ;;  %7774 = vtanh.f32 %v11437_v41  ;;  %12746 = vst [vmem:[#allocation26_spill] sm:$0xff] %v11528_v48  ;;  %v11530_v19 = vpop.f32.mrb[96].mxu1 }
 0x4ab   : > { %v7761_v36 = vpop.eup %7760  ;;  %v4918_v5 = vsel %vm2861_vm5, %v4854_v14, 0.0  ;;  %v11524_v29 = vadd.f32 %v11252_v51, %v9992_v53  ;;  %v3754_v58 = vrot.slane %v3753_v62, 2  ;;  %v4399_v8 = vadd.f32 %v4398_v21, %v4397_v47  ;;  %12747 = vst [vmem:[#allocation32_spill] sm:$0xff] %v11530_v19  ;;  %v11536_v0 = vpop.f32.mrb[97].mxu0 }
 0x4ac   : > { %v7763_v44 = vpop.eup %7762  ;;  %v4981_v26 = vadd.f32 %v4918_v5, %v4917_v1  ;;  %v5564_v27 = vsel %vm2861_vm5, %v5500_v11, 0.0  ;;  %v5566_v14 = vsel %vm2863_vm6, %v5502_v25, 0.0  ;;  %v4859_v30 = vmul.f32 %v7759_v12, %v9995_v59  ;;  %12748 = vst [vmem:[#allocation33_spill] sm:$0xff] %v11536_v0  ;;  %v11538_v21 = vpop.f32.mrb[97].mxu1 }
 0x4ad   : > { %v7765_v3 = vpop.eup %7764  ;;  %v5627_v41 = vadd.f32 %v5564_v27, %v5563_v45  ;;  %v4857_v51 = vmul.f32 %v7763_v44, %v9995_v59  ;;  %12749 = vst [vmem:[#allocation102_spill] sm:$0xff] %v11538_v21  ;;  %v3755_v1 = vadd.f32 %v3754_v58, %v3753_v62  ;;  %v4400_v11 = vrot.slane %v4399_v8, 2  ;;  %v11541_v19 = vpop.f32.mrb[98].mxu0  ;;  %v12753_v27 = vld [vmem:[#allocation44_spill] sm:$0xff] }
 0x4ae   : > { %v7767_v47 = vpop.eup %7766  ;;  %v4982_v13 = vadd.f32 %v4981_v26, %v4919_v16  ;;  %v5503_v5 = vmul.f32 %v7765_v3, %v9995_v59  ;;  %12750 = vst [vmem:[#allocation103_spill] sm:$0xff] %v11541_v19  ;;  %v11543_v48 = vpop.f32.mrb[98].mxu1  ;;  %v5505_v12 = vmul.f32 %v7761_v36, %v9995_v59  ;;  %v11550_v21 = vadd.f32 %v12753_v27, %v9992_v53 }
 0x4af   : > { %12751 = vst [vmem:[#allocation104_spill] sm:$0xff] %v11543_v48  ;;  %v7769_v25 = vpop.eup %7768  ;;  %v5628_v45 = vadd.f32 %v5627_v41, %v5565_v38  ;;  %v4921_v44 = vsel %vm2864_vm8, %v4857_v51, 0.0  ;;  %v11552_v62 = vpop.f32.mrb[99].mxu0  ;;  %v3756_v58 = vrot.slane %v3755_v1, 1  ;;  %v4401_v26 = vadd.f32 %v4400_v11, %v4399_v8 }
 0x4b0   : > { %12754 = vst [vmem:[#allocation37_spill] sm:$0xff] %v11552_v62  ;;  %v11554_v16 = vpop.f32.mrb[99].mxu1  ;;  %v4983_v3 = vadd.f32 %v4982_v13, %v4920_v35  ;;  %v5567_v48 = vsel %vm2864_vm8, %v5503_v5, 0.0  ;;  %v7771_v38 = vpop.eup %7770  ;;  %v4860_v36 = vmul.f32 %v7767_v47, %v9995_v59  ;;  %v5506_v51 = vmul.f32 %v7769_v25, %v9995_v59 }
 0x4b1   : > { %12755 = vst [vmem:[#allocation44_spill] sm:$0xff] %v11554_v16  ;;  %v5629_v41 = vadd.f32 %v5628_v45, %v5566_v14  ;;  %7776 = vtanh.f32 %v11441_v9  ;;  %v3757_v27 = vadd.f32 %v3756_v58, %v3755_v1  ;;  %v4402_v19 = vrot.slane %v4401_v26, 1  ;;  %v11571_v1 = vpop.f32.mrb[100].mxu0  ;;  %v11573_v5 = vpop.f32.mrb[100].mxu1 }
 0x4b2   : > { %v4984_v0 = vadd.f32 %v4983_v3, %v4921_v44  ;;  %v4858_v62 = vmul.f32 %v7771_v38, %v9995_v59  ;;  %v7773_v16 = vpop.eup %7772  ;;  %v4923_v35 = vsel %vm2866_vm7, %v4859_v30, 0.0  ;;  %v5569_v8 = vsel %vm2866_vm7, %v5505_v12, 0.0  ;;  %v11582_v45 = vpop.f32.mrb[101].mxu1  ;;  %v12761_v38 = vld [vmem:[#allocation88_spill] sm:$0xff] }
 0x4b3   : > { %v5630_v11 = vadd.f32 %v5629_v41, %v5567_v48  ;;  %7778 = vtanh.f32 %v11448_v10  ;;  %v4403_v14 = vadd.f32 %v4402_v19, %v4401_v26  ;;  %v5504_v9 = vmul.f32 %v7773_v16, %v9995_v59  ;;  %v11580_v19 = vpop.f32.mrb[101].mxu0  ;;  %v12760_v16 = vld [vmem:[#allocation41_spill] sm:$0xff] }
 0x4b4   : > { %v4922_v13 = vsel %vm2865_vm9, %v4858_v62, 0.0  ;;  %7780 = vtanh.f32 %v11452_v49  ;;  %v7775_v25 = vpop.eup %7774  ;;  %v4924_v34 = vsel %vm2867_vm10, %v4860_v36, 0.0  ;;  %v5570_v48 = vsel %vm2867_vm10, %v5506_v51, 0.0  ;;  %v11591_v44 = vpop.f32.mrb[102].mxu0  ;;  %v12762_v41 = vld [vmem:[#allocation89_spill] sm:$0xff] }
 0x4b5   : > { %v4985_v10 = vadd.f32 %v4984_v0, %v4922_v13  ;;  %7782 = vtanh.f32 %v11456_v40  ;;  %v11585_v49 = vsel %vm5697_vm3, %v3757_v27, %v4403_v14  ;;  %v5568_v12 = vsel %vm2865_vm9, %v5504_v9, 0.0  ;;  %v11593_v62 = vpop.f32.mrb[102].mxu1  ;;  %v11598_v26 = vpop.f32.mrb[103].mxu0  ;;  %v12765_v14 = vld [vmem:[#allocation92_spill] sm:$0xff]  ;;  %v12766_v13 = vld [vmem:[#allocation93_spill] sm:$0xff] }
 0x4b6   : > { %12759 = vst [vmem:[#allocation34_spill] sm:$0xff] %v11585_v49  ;;  %v4863_v50 = vmul.f32 %v7775_v25, %v9995_v59  ;;  %7784 = vtanh.f32 %v11463_v7  ;;  %v5631_v40 = vadd.f32 %v5630_v11, %v5568_v12  ;;  %v5240_v58 = vadd.f32 %v12760_v16, %v9992_v53  ;;  %v11600_v3 = vpop.f32.mrb[103].mxu1 }
 0x4b7   : > { %v4986_v0 = vadd.f32 %v4985_v10, %v4923_v35  ;;  %7786 = vtanh.f32 %v11473_v37  ;;  %v4586_v7 = vadd.f32 %v12761_v38, %v9992_v53  ;;  %v5232_v36 = vadd.f32 %v12762_v41, %v9992_v53  ;;  %v12763_v37 = vld [vmem:[#allocation43_spill] sm:$0xff]  ;;  %v12768_v38 = vld [vmem:[#allocation45_spill] sm:$0xff] }
 0x4b8   : > { %7788 = vtanh.f32 %v11477_v17  ;;  %v4607_v51 = vadd.f32 %v11292_v32, %v9992_v53  ;;  %v5632_v27 = vadd.f32 %v5631_v40, %v5569_v8  ;;  %vm12764_vm4 = vcmp.lt.s32.totalorder %v12763_v37, 1152 }
 0x4b9   : > { %v11611_v35 = vsel %vm12764_vm4, %v4863_v50, 0.0  ;;  %v4987_v11 = vadd.f32 %v4986_v0, %v4924_v34  ;;  %7790 = vtanh.f32 %v11487_v31  ;;  %v5253_v17 = vadd.f32 %v11294_v2, %v9992_v53  ;;  %v11640_v34 = vpop.f32.mrb[104].mxu1  ;;  %vm12767_vm5 = vmmov %vm12764_vm4 }
 0x4ba   : > { %7792 = vtanh.f32 %v11498_v57  ;;  %v4599_v47 = vadd.f32 %v12765_v14, %v9992_v53  ;;  %v5245_v9 = vadd.f32 %v12766_v13, %v9992_v53  ;;  %v5633_v8 = vadd.f32 %v5632_v27, %v5570_v48  ;;  %v11657_v48 = vpop.f32.mrb[105].mxu1 }
 0x4bb   : > { %v7777_v32 = vpop.eup %7776  ;;  %7794 = vtanh.f32 %v11512_v6  ;;  %v4610_v25 = vadd.f32 %v11309_v46, %v9992_v53  ;;  %v11626_v31 = vadd.f32 %v11311_v22, %v9992_v53  ;;  %v11632_v2 = vadd.f32 %v11319_v56, %v9992_v53  ;;  %v11638_v6 = vpop.f32.mrb[104].mxu0 }
 0x4bc   : > { %v5509_v57 = vmul.f32 %v7777_v32, %v9995_v59  ;;  %7796 = vtanh.f32 %v11524_v29  ;;  %v11636_v30 = vadd.f32 %v11321_v15, %v9992_v53  ;;  %v11645_v22 = vadd.f32 %v11347_v52, %v9992_v53  ;;  %v11655_v15 = vpop.f32.mrb[105].mxu0 }
 0x4bd   : > { %v7779_v46 = vpop.eup %7778  ;;  %7798 = vtanh.f32 %v11550_v21  ;;  %v11649_v29 = vadd.f32 %v11349_v33, %v9992_v53  ;;  %v11653_v56 = vadd.f32 %v11356_v60, %v9992_v53  ;;  %v11662_v52 = vadd.f32 %v11358_v42, %v9992_v53  ;;  %v11668_v21 = vpop.f32.mrb[106].mxu0 }
 0x4be   : > { %v7781_v10 = vpop.eup %7780  ;;  %v4861_v12 = vmul.f32 %v7779_v46, %v9995_v59  ;;  %7800 = vtanh.f32 %v5240_v58  ;;  %v11666_v33 = vadd.f32 %v11364_v4, %v9992_v53  ;;  %v11670_v60 = vpop.f32.mrb[106].mxu1  ;;  %v5573_v0 = vsel %vm12767_vm5, %v5509_v57, 0.0 }
 0x4bf   : > { %v7783_v50 = vpop.eup %7782  ;;  %v5507_v40 = vmul.f32 %v7781_v10, %v9995_v59  ;;  %7802 = vtanh.f32 %v4586_v7  ;;  %v11677_v16 = vadd.f32 %v11366_v43, %v9992_v53  ;;  %v11679_v42 = vpop.f32.mrb[107].mxu0  ;;  %vm12769_vm6 = vcmp.lt.s32.totalorder %v12768_v38, 1152 }
 0x4c0   : > { %v11681_v58 = vpop.f32.mrb[107].mxu1  ;;  %v7785_v4 = vpop.eup %7784  ;;  %v4925_v41 = vsel %vm12769_vm6, %v4861_v12, 0.0  ;;  %v4864_v27 = vmul.f32 %v7783_v50, %v9995_v59  ;;  %7804 = vtanh.f32 %v5232_v36  ;;  %v11688_v37 = vadd.f32 %v11373_v55, %v9992_v53  ;;  %vm12770_vm7 = vmmov %vm12769_vm6  ;;  %v12771_v12 = vld [vmem:[#allocation46_spill] sm:$0xff]  ;;  %v12774_v50 = vld [vmem:[#allocation47_spill] sm:$0xff] }
 0x4c1   : > { %v7787_v7 = vpop.eup %7786  ;;  %v4988_v14 = vadd.f32 %v4987_v11, %v4925_v41  ;;  %v5571_v43 = vsel %vm12770_vm7, %v5507_v40, 0.0  ;;  %v5510_v13 = vmul.f32 %v7785_v4, %v9995_v59  ;;  %7806 = vtanh.f32 %v4607_v51  ;;  %v11715_v4 = vpop.f32.mrb[108].mxu1 }
 0x4c2   : > { %v7789_v32 = vpop.eup %7788  ;;  %v5634_v57 = vadd.f32 %v5633_v8, %v5571_v43  ;;  %v4862_v46 = vmul.f32 %v7787_v7, %v9995_v59  ;;  %7808 = vtanh.f32 %v5253_v17  ;;  %v11696_v36 = vadd.f32 %v11375_v23, %v9992_v53  ;;  %v11722_v7 = vpop.f32.mrb[109].mxu1 }
 0x4c3   : > { %v7791_v10 = vpop.eup %7790  ;;  %v5508_v55 = vmul.f32 %v7789_v32, %v9995_v59  ;;  %7810 = vtanh.f32 %v4599_v47  ;;  %v11701_v11 = vadd.f32 %v11401_v61, %v9992_v53  ;;  %v11705_v51 = vadd.f32 %v11403_v18, %v9992_v53  ;;  %v11713_v47 = vpop.f32.mrb[108].mxu0 }
 0x4c4   : > { %v7793_v8 = vpop.eup %7792  ;;  %vm12772_vm8 = vcmp.lt.s32.totalorder %v12771_v12, 1152  ;;  %vm12775_vm10 = vcmp.lt.s32.totalorder %v12774_v50, 1152  ;;  %7812 = vtanh.f32 %v5245_v9  ;;  %v4867_v41 = vmul.f32 %v7791_v10, %v9995_v59 }
 0x4c5   : > { %v4928_v17 = vsel %vm12772_vm8, %v4864_v27, 0.0  ;;  %vm12773_vm9 = vmmov %vm12772_vm8  ;;  %v4926_v40 = vsel %vm12775_vm10, %v4862_v46, 0.0  ;;  %v7795_v61 = vpop.eup %7794  ;;  %7814 = vtanh.f32 %v4610_v25  ;;  %v11720_v27 = vpop.f32.mrb[109].mxu0  ;;  %v11728_v32 = vadd.f32 %v11410_v28, %v9992_v53 }
 0x4c6   : > { %v5574_v23 = vsel %vm12773_vm9, %v5510_v13, 0.0  ;;  %v4989_v38 = vadd.f32 %v4988_v14, %v4926_v40  ;;  %vm12776_vm3 = vmmov %vm12775_vm10  ;;  %v7797_v43 = vpop.eup %7796  ;;  %v4865_v9 = vmul.f32 %v7795_v61, %v9995_v59  ;;  %7816 = vtanh.f32 %v11626_v31  ;;  %v11730_v14 = vpop.f32.mrb[110].mxu0  ;;  %v12778_v40 = vld [vmem:[#allocation49_spill] sm:$0xff] }
 0x4c7   : > { %v5572_v18 = vsel %vm12776_vm3, %v5508_v55, 0.0  ;;  %v11732_v46 = vpop.f32.mrb[110].mxu1  ;;  %v7799_v10 = vpop.eup %7798  ;;  %v5513_v55 = vmul.f32 %v7793_v8, %v9995_v59  ;;  %v5511_v12 = vmul.f32 %v7797_v43, %v9995_v59  ;;  %7818 = vtanh.f32 %v11632_v2 }
 0x4c8   : > { %v5635_v13 = vadd.f32 %v5634_v57, %v5572_v18  ;;  %v4990_v25 = vadd.f32 %v4989_v38, %v11611_v35  ;;  %v11738_v57 = vpop.f32.mrb[111].mxu0  ;;  %v11740_v31 = vpop.f32.mrb[111].mxu1  ;;  %vm12779_vm4 = vcmp.lt.s32.totalorder %v12778_v40, 1152  ;;  %7820 = vtanh.f32 %v11636_v30  ;;  %v12780_v38 = vld [vmem:[#allocation48_spill] sm:$0xff] }
 0x4c9   : > { %12777 = vst [vmem:[#allocation42_spill] sm:$0xff] %v11740_v31  ;;  %v7801_v50 = vpop.eup %7800  ;;  %v4929_v61 = vsel %vm12779_vm4, %v4865_v9, 0.0  ;;  %v11747_v35 = vadd.f32 %v11412_v24, %v9992_v53  ;;  %vm12781_vm5 = vcmp.lt.s32.totalorder %v12780_v38, 1152  ;;  %vm12782_vm6 = vmmov %vm12779_vm4  ;;  %7822 = vtanh.f32 %v11645_v22  ;;  %v12787_v38 = vld [vmem:[#allocation50_spill] sm:$0xff] }
 0x4ca   : > { %v5636_v28 = vadd.f32 %v5635_v13, %v5573_v0  ;;  %v7803_v8 = vpop.eup %7802  ;;  %v4931_v18 = vsel %vm12781_vm5, %v4867_v41, 0.0  ;;  %v4991_v2 = vadd.f32 %v4990_v25, %v4928_v17  ;;  %v5575_v43 = vsel %vm12782_vm6, %v5511_v12, 0.0  ;;  %vm12783_vm7 = vmmov %vm12781_vm5  ;;  %v11765_v12 = vpop.f32.mrb[112].mxu0 }
 0x4cb   : > { %v7805_v0 = vpop.eup %7804  ;;  %v4868_v9 = vmul.f32 %v7799_v10, %v9995_v59  ;;  %v4866_v30 = vmul.f32 %v7803_v8, %v9995_v59  ;;  %7824 = vtanh.f32 %v11649_v29  ;;  %v5577_v49 = vsel %vm12783_vm7, %v5513_v55, 0.0  ;;  %v11767_v29 = vpop.f32.mrb[112].mxu1 }
 0x4cc   : > { %v5637_v13 = vadd.f32 %v5636_v28, %v5574_v23  ;;  %v7807_v24 = vpop.eup %7806  ;;  %v4992_v31 = vadd.f32 %v4991_v2, %v4929_v61  ;;  %v5512_v17 = vmul.f32 %v7805_v0, %v9995_v59  ;;  %7826 = vtanh.f32 %v11653_v56  ;;  %v12784_v23 = vld [vmem:[#allocation51_spill] sm:$0xff]  ;;  %v11773_v61 = vpop.f32.mrb[113].mxu0 }
 0x4cd   : > { %v7809_v41 = vpop.eup %7808  ;;  %v5514_v22 = vmul.f32 %v7801_v50, %v9995_v59  ;;  %vm12785_vm8 = vcmp.lt.s32.totalorder %v12784_v23, 1152  ;;  %7828 = vtanh.f32 %v11662_v52  ;;  %v4871_v56 = vmul.f32 %v7807_v24, %v9995_v59  ;;  %v11775_v50 = vpop.f32.mrb[113].mxu1 }
 0x4ce   : > { %v5638_v25 = vadd.f32 %v5637_v13, %v5575_v43  ;;  %v4930_v10 = vsel %vm12785_vm8, %v4866_v30, 0.0  ;;  %v7811_v28 = vpop.eup %7810  ;;  %vm12786_vm9 = vmmov %vm12785_vm8  ;;  %7830 = vtanh.f32 %v11666_v33  ;;  %vm12788_vm10 = vcmp.lt.s32.totalorder %v12787_v38, 1152  ;;  %v11783_v0 = vpop.f32.mrb[114].mxu1 }
 0x4cf   : > { %v4993_v55 = vadd.f32 %v4992_v31, %v4930_v10  ;;  %v5576_v40 = vsel %vm12786_vm9, %v5512_v17, 0.0  ;;  %v7813_v8 = vpop.eup %7812  ;;  %v4932_v52 = vsel %vm12788_vm10, %v4868_v9, 0.0  ;;  %v4869_v43 = vmul.f32 %v7811_v28, %v9995_v59  ;;  %v11781_v31 = vpop.f32.mrb[114].mxu0  ;;  %vm12791_vm3 = vmmov %vm12788_vm10 }
 0x4d0   : > { %v5639_v2 = vadd.f32 %v5638_v25, %v5576_v40  ;;  %7832 = vtanh.f32 %v11677_v16  ;;  %v7815_v13 = vpop.eup %7814  ;;  %v5517_v33 = vmul.f32 %v7809_v41, %v9995_v59  ;;  %v5515_v24 = vmul.f32 %v7813_v8, %v9995_v59  ;;  %v11788_v17 = vpop.f32.mrb[115].mxu0 }
 0x4d1   : > { %v4994_v30 = vadd.f32 %v4993_v55, %v4931_v18  ;;  %7834 = vtanh.f32 %v11688_v37  ;;  %v11790_v9 = vpop.f32.mrb[115].mxu1  ;;  %v7817_v25 = vpop.eup %7816  ;;  %v4933_v16 = vsel %vm2876_vm14, %v4869_v43, 0.0  ;;  %v4872_v28 = vmul.f32 %v7815_v13, %v9995_v59  ;;  %v12792_v55 = vld [vmem:[#allocation52_spill] sm:$0xff] }
 0x4d2   : > { %12789 = vst [vmem:[#allocation38_spill] sm:$0xff] %v11790_v9  ;;  %v5640_v23 = vadd.f32 %v5639_v2, %v5577_v49  ;;  %7836 = vtanh.f32 %v11696_v36  ;;  %v7819_v18 = vpop.eup %7818  ;;  %v5578_v41 = vsel %vm12791_vm3, %v5514_v22, 0.0  ;;  %vm12793_vm4 = vcmp.lt.s32.totalorder %v12792_v55, 1152  ;;  %v11816_v10 = vpop.f32.mrb[116].mxu1 }
 0x4d3   : > { %v4935_v37 = vsel %vm12793_vm4, %v4871_v56, 0.0  ;;  %v4995_v40 = vadd.f32 %v4994_v30, %v4932_v52  ;;  %v5579_v8 = vsel %vm2876_vm14, %v5515_v24, 0.0  ;;  %v7821_v9 = vpop.eup %7820  ;;  %v5518_v2 = vmul.f32 %v7817_v25, %v9995_v59  ;;  %vm12794_vm5 = vmmov %vm12793_vm4  ;;  %v12795_v30 = vld [vmem:[#allocation54_spill] sm:$0xff] }
 0x4d4   : > { %v5641_v49 = vadd.f32 %v5640_v23, %v5578_v41  ;;  %v4870_v43 = vmul.f32 %v7819_v18, %v9995_v59  ;;  %7838 = vtanh.f32 %v11701_v11  ;;  %v7823_v36 = vpop.eup %7822  ;;  %v5581_v38 = vsel %vm12794_vm5, %v5517_v33, 0.0  ;;  %v12797_v23 = vld [vmem:[#allocation55_spill] sm:$0xff]  ;;  %v11814_v11 = vpop.f32.mrb[116].mxu0 }
 0x4d5   : > { %v4996_v22 = vadd.f32 %v4995_v40, %v4933_v16  ;;  %v5516_v13 = vmul.f32 %v7821_v9, %v9995_v59  ;;  %7840 = vtanh.f32 %v11728_v32  ;;  %v7825_v56 = vpop.eup %7824  ;;  %vm12796_vm14 = vcmp.lt.s32.totalorder %v12795_v30, 1152  ;;  %v11825_v18 = vpop.f32.mrb[117].mxu1 }
 0x4d6   : > { %v5642_v52 = vadd.f32 %v5641_v49, %v5579_v8  ;;  %v4936_v24 = vsel %vm12796_vm14, %v4872_v28, 0.0  ;;  %vm12798_vm6 = vcmp.lt.s32.totalorder %v12797_v23, 1152  ;;  %7842 = vtanh.f32 %v11747_v35  ;;  %v7827_v33 = vpop.eup %7826  ;;  %v11823_v28 = vpop.f32.mrb[117].mxu0  ;;  %vm12800_vm8 = vmmov %vm12796_vm14 }
 0x4d7   : > { %v4934_v25 = vsel %vm12798_vm6, %v4870_v43, 0.0  ;;  %vm12799_vm7 = vmmov %vm12798_vm6  ;;  %7844 = vtanh.f32 %v11705_v51  ;;  %v4642_v32 = vadd.f32 %v11420_v63, %v9992_v53  ;;  %v7829_v41 = vpop.eup %7828  ;;  %v5582_v35 = vsel %vm12800_vm8, %v5518_v2, 0.0  ;;  %v11832_v49 = vpop.f32.mrb[118].mxu0 }
 0x4d8   : > { %v4997_v16 = vadd.f32 %v4996_v22, %v4934_v25  ;;  %v5580_v9 = vsel %vm12799_vm7, %v5516_v13, 0.0  ;;  %v4873_v40 = vmul.f32 %v7827_v33, %v9995_v59  ;;  %v5288_v8 = vadd.f32 %v11422_v20, %v9992_v53  ;;  %v11834_v51 = vpop.f32.mrb[118].mxu1  ;;  %v7831_v43 = vpop.eup %7830  ;;  %v12802_v20 = vld [vmem:[#allocation57_spill] sm:$0xff] }
 0x4d9   : > { %v5643_v55 = vadd.f32 %v5642_v52, %v5580_v9  ;;  %12801 = vst [vmem:[#allocation41_spill] sm:$0xff] %v11834_v51  ;;  %v4875_v22 = vmul.f32 %v7823_v36, %v9995_v59  ;;  %v5519_v13 = vmul.f32 %v7829_v41, %v9995_v59  ;;  %7846 = vtanh.f32 %v4642_v32  ;;  %v11838_v23 = vpop.f32.mrb[119].mxu0  ;;  %v11840_v2 = vpop.f32.mrb[119].mxu1 }
 0x4da   : > { %v4998_v63 = vadd.f32 %v4997_v16, %v4935_v37  ;;  %v7833_v52 = vpop.eup %7832  ;;  %v5521_v25 = vmul.f32 %v7825_v56, %v9995_v59  ;;  %vm12803_vm9 = vcmp.lt.s32.totalorder %v12802_v20, 1152  ;;  %7848 = vtanh.f32 %v5288_v8  ;;  %v11863_v20 = vpop.f32.mrb[120].mxu1 }
 0x4db   : > { %v5644_v30 = vadd.f32 %v5643_v55, %v5581_v38  ;;  %v4937_v33 = vsel %vm12803_vm9, %v4873_v40, 0.0  ;;  %v7835_v9 = vpop.eup %7834  ;;  %vm12804_vm10 = vmmov %vm12803_vm9  ;;  %v4876_v36 = vmul.f32 %v7831_v43, %v9995_v59  ;;  %v4634_v16 = vadd.f32 %v11429_v54, %v9992_v53  ;;  %v12805_v40 = vld [vmem:[#allocation56_spill] sm:$0xff]  ;;  %12811 = vst [vmem:[#allocation89_spill] sm:$0xff] %v11863_v20 }
 0x4dc   : > { %v4999_v51 = vadd.f32 %v4998_v63, %v4936_v24  ;;  %v5583_v37 = vsel %vm12804_vm10, %v5519_v13, 0.0  ;;  %v7837_v32 = vpop.eup %7836  ;;  %v5522_v38 = vmul.f32 %v7833_v52, %v9995_v59  ;;  %v4874_v56 = vmul.f32 %v7835_v9, %v9995_v59  ;;  %v12812_v9 = vld [vmem:[#allocation58_spill] sm:$0xff] }
 0x4dd   : > { %v5645_v41 = vadd.f32 %v5644_v30, %v5582_v35  ;;  %v5280_v55 = vadd.f32 %v11431_v39, %v9992_v53  ;;  %vm12806_vm3 = vcmp.lt.s32.totalorder %v12805_v40, 1152  ;;  %v5520_v63 = vmul.f32 %v7837_v32, %v9995_v59  ;;  %v12808_v35 = vld [vmem:[#allocation59_spill] sm:$0xff]  ;;  %v11861_v30 = vpop.f32.mrb[120].mxu0  ;;  %v11873_v32 = vpop.f32.mrb[121].mxu1 }
 0x4de   : > { %v4939_v24 = vsel %vm12806_vm3, %v4875_v22, 0.0  ;;  %v5000_v8 = vadd.f32 %v4999_v51, %v4937_v33  ;;  %7850 = vtanh.f32 %v4634_v16  ;;  %v7839_v43 = vpop.eup %7838  ;;  %vm12807_vm4 = vmmov %vm12806_vm3  ;;  %vm12809_vm5 = vcmp.lt.s32.totalorder %v12808_v35, 1152  ;;  %12810 = vst [vmem:[#allocation88_spill] sm:$0xff] %v11861_v30  ;;  %v12815_v16 = vld [vmem:[#allocation31_spill] sm:$0xff] }
 0x4df   : > { %v5585_v54 = vsel %vm12807_vm4, %v5521_v25, 0.0  ;;  %v5646_v13 = vadd.f32 %v5645_v41, %v5583_v37  ;;  %v4938_v52 = vsel %vm12809_vm5, %v4874_v56, 0.0  ;;  %7852 = vtanh.f32 %v5280_v55  ;;  %v7841_v39 = vpop.eup %7840  ;;  %vm12814_vm6 = vmmov %vm12809_vm5  ;;  %v11871_v37 = vpop.f32.mrb[121].mxu0  ;;  %12817 = vst [vmem:[#allocation92_spill] sm:$0xff] %v11873_v32 }
 0x4e0   : > { %vm12813_vm14 = vcmp.lt.s32.totalorder %v12812_v9, 1152  ;;  %v5001_v22 = vadd.f32 %v5000_v8, %v4938_v52  ;;  %v5584_v33 = vsel %vm12814_vm6, %v5520_v63, 0.0  ;;  %v4655_v25 = vadd.f32 %v12815_v16, %v9992_v53  ;;  %12816 = vst [vmem:[#allocation43_spill] sm:$0xff] %v11871_v37  ;;  %v7843_v41 = vpop.eup %7842  ;;  %v11880_v52 = vpop.f32.mrb[122].mxu0 }
 0x4e1   : > { %v4940_v51 = vsel %vm12813_vm14, %v4876_v36, 0.0  ;;  %vm12818_vm7 = vmmov %vm12813_vm14  ;;  %v5647_v55 = vadd.f32 %v5646_v13, %v5584_v33  ;;  %v4877_v40 = vmul.f32 %v7841_v39, %v9995_v59  ;;  %v12819_v36 = vld [vmem:[#allocation96_spill] sm:$0xff]  ;;  %12820 = vst [vmem:[#allocation93_spill] sm:$0xff] %v11880_v52  ;;  %v11882_v63 = vpop.f32.mrb[122].mxu1  ;;  %v7845_v35 = vpop.eup %7844  ;;  %v4879_v37 = vmul.f32 %v7839_v43, %v9995_v59  ;;  %v12824_v39 = vld [vmem:[#allocation61_spill] sm:$0xff] }
 0x4e2   : > { %v5586_v56 = vsel %vm12818_vm7, %v5522_v38, 0.0  ;;  %v5301_v8 = vadd.f32 %v12819_v36, %v9992_v53  ;;  %12821 = vst [vmem:[#allocation45_spill] sm:$0xff] %v11882_v63  ;;  %v5002_v16 = vadd.f32 %v5001_v22, %v4939_v24  ;;  %v5523_v32 = vmul.f32 %v7843_v41, %v9995_v59  ;;  %v11886_v20 = vpop.f32.mrb[123].mxu0  ;;  %v11888_v38 = vpop.f32.mrb[123].mxu1  ;;  %v12826_v33 = vld [vmem:[#allocation97_spill] sm:$0xff]  ;;  %v12828_v43 = vld [vmem:[#allocation98_spill] sm:$0xff] }
 0x4e3   : > { %7854 = vtanh.f32 %v4655_v25  ;;  %12822 = vst [vmem:[#allocation46_spill] sm:$0xff] %v11886_v20  ;;  %12823 = vst [vmem:[#allocation47_spill] sm:$0xff] %v11888_v38  ;;  %v5648_v13 = vadd.f32 %v5647_v55, %v5585_v54  ;;  %vm12825_vm8 = vcmp.lt.s32.totalorder %v12824_v39, 1152  ;;  %v4647_v36 = vadd.f32 %v12826_v33, %v9992_v53  ;;  %v7847_v63 = vpop.eup %7846  ;;  %v12829_v25 = vld [vmem:[#allocation99_spill] sm:$0xff] }
 0x4e4   : > { %v4941_v9 = vsel %vm12825_vm8, %v4877_v40, 0.0  ;;  %7856 = vtanh.f32 %v5301_v8  ;;  %v5003_v52 = vadd.f32 %v5002_v16, %v4940_v51  ;;  %vm12827_vm9 = vmmov %vm12825_vm8  ;;  %v5293_v22 = vadd.f32 %v12828_v43, %v9992_v53  ;;  %v7849_v38 = vpop.eup %7848  ;;  %v12830_v40 = vld [vmem:[#allocation100_spill] sm:$0xff] }
 0x4e5   : > { %v5587_v24 = vsel %vm12827_vm9, %v5523_v32, 0.0  ;;  %v4658_v41 = vadd.f32 %v12829_v25, %v9992_v53  ;;  %v5525_v54 = vmul.f32 %v7845_v35, %v9995_v59  ;;  %v5649_v55 = vadd.f32 %v5648_v13, %v5586_v56  ;;  %v12831_v32 = vld [vmem:[#allocation25_spill] sm:$0xff]  ;;  %v11909_v35 = vpop.f32.mrb[124].mxu0  ;;  %v11911_v56 = vpop.f32.mrb[124].mxu1 }
 0x4e6   : > { %7858 = vtanh.f32 %v4647_v36  ;;  %v5304_v8 = vadd.f32 %v12830_v40, %v9992_v53  ;;  %v5004_v33 = vadd.f32 %v5003_v52, %v4941_v9  ;;  %v4880_v51 = vmul.f32 %v7847_v63, %v9995_v59  ;;  %v12832_v25 = vld [vmem:[#allocation101_spill] sm:$0xff]  ;;  %12833 = vst [vmem:[#allocation49_spill] sm:$0xff] %v11909_v35  ;;  %12834 = vst [vmem:[#allocation48_spill] sm:$0xff] %v11911_v56  ;;  %v12835_v36 = vld [vmem:[#allocation60_spill] sm:$0xff] }
 0x4e7   : > { %7860 = vtanh.f32 %v5293_v22  ;;  %v4650_v16 = vadd.f32 %v12831_v32, %v9992_v53  ;;  %v5650_v39 = vadd.f32 %v5649_v55, %v5587_v24  ;;  %v5526_v43 = vmul.f32 %v7849_v38, %v9995_v59  ;;  %v12837_v63 = vld [vmem:[#allocation26_spill] sm:$0xff]  ;;  %v12838_v24 = vld [vmem:[#allocation32_spill] sm:$0xff]  ;;  %v11919_v38 = vpop.f32.mrb[125].mxu0 }
 0x4e8   : > { %7862 = vtanh.f32 %v4658_v41  ;;  %v5296_v20 = vadd.f32 %v12832_v25, %v9992_v53  ;;  %v7851_v13 = vpop.eup %7850  ;;  %vm12836_vm10 = vcmp.lt.s32.totalorder %v12835_v36, 1152  ;;  %v4671_v9 = vadd.f32 %v12837_v63, %v9992_v53  ;;  %12839 = vst [vmem:[#allocation51_spill] sm:$0xff] %v11919_v38  ;;  %v11921_v41 = vpop.f32.mrb[125].mxu1  ;;  %v12845_v56 = vld [vmem:[#allocation62_spill] sm:$0xff] }
 0x4e9   : > { %v4943_v52 = vsel %vm12836_vm10, %v4879_v37, 0.0  ;;  %7864 = vtanh.f32 %v5304_v8  ;;  %v5317_v22 = vadd.f32 %v12838_v24, %v9992_v53  ;;  %12840 = vst [vmem:[#allocation50_spill] sm:$0xff] %v11921_v41  ;;  %v7853_v55 = vpop.eup %7852  ;;  %vm12841_vm3 = vmmov %vm12836_vm10  ;;  %v4878_v32 = vmul.f32 %v7851_v13, %v9995_v59  ;;  %v12842_v37 = vld [vmem:[#allocation33_spill] sm:$0xff]  ;;  %v11928_v25 = vpop.f32.mrb[126].mxu0  ;;  %v12847_v41 = vld [vmem:[#allocation102_spill] sm:$0xff] }
 0x4ea   : > { %v5589_v40 = vsel %vm12841_vm3, %v5525_v54, 0.0  ;;  %7866 = vtanh.f32 %v4650_v16  ;;  %v4663_v8 = vadd.f32 %v12842_v37, %v9992_v53  ;;  %12843 = vst [vmem:[#allocation53_spill] sm:$0xff] %v11928_v25  ;;  %v11930_v63 = vpop.f32.mrb[126].mxu1  ;;  %vm12846_vm4 = vcmp.lt.s32.totalorder %v12845_v56, 1152  ;;  %v11937_v54 = vpop.f32.mrb[127].mxu0  ;;  %v12851_v37 = vld [vmem:[#allocation63_spill] sm:$0xff] }
 0x4eb   : > { %12844 = vst [vmem:[#allocation52_spill] sm:$0xff] %v11930_v63  ;;  %v4944_v24 = vsel %vm12846_vm4, %v4880_v51, 0.0  ;;  %v5524_v38 = vmul.f32 %v7853_v55, %v9995_v59  ;;  %7868 = vtanh.f32 %v5296_v20  ;;  %v5309_v36 = vadd.f32 %v12847_v41, %v9992_v53  ;;  %12848 = vst [vmem:[#allocation54_spill] sm:$0xff] %v11937_v54  ;;  %v11939_v13 = vpop.f32.mrb[127].mxu1  ;;  %v12853_v63 = vld [vmem:[#allocation103_spill] sm:$0xff]  ;;  %v12855_v41 = vld [vmem:[#allocation104_spill] sm:$0xff] }
 0x4ec   : > { %12849 = vst [vmem:[#allocation55_spill] sm:$0xff] %v11939_v13  ;;  %vm12850_vm5 = vmmov %vm12846_vm4  ;;  %vm12852_vm14 = vcmp.lt.s32.totalorder %v12851_v37, 1152  ;;  %7870 = vtanh.f32 %v4671_v9  ;;  %v4674_v51 = vadd.f32 %v12853_v63, %v9992_v53  ;;  %v5320_v54 = vadd.f32 %v12855_v41, %v9992_v53  ;;  %v12856_v56 = vld [vmem:[#allocation37_spill] sm:$0xff]  ;;  %v12857_v63 = vld [vmem:[#allocation44_spill] sm:$0xff] }
 0x4ed   : > { %v5590_v16 = vsel %vm12850_vm5, %v5526_v43, 0.0  ;;  %v4942_v25 = vsel %vm12852_vm14, %v4878_v32, 0.0  ;;  %v7855_v35 = vpop.eup %7854  ;;  %vm12854_vm6 = vmmov %vm12852_vm14  ;;  %7872 = vtanh.f32 %v5317_v22  ;;  %v4666_v9 = vadd.f32 %v12856_v56, %v9992_v53 }
 0x4ee   : > { %v5005_v55 = vadd.f32 %v5004_v33, %v4942_v25  ;;  %v5588_v20 = vsel %vm12854_vm6, %v5524_v38, 0.0  ;;  %v7857_v13 = vpop.eup %7856  ;;  %v4883_v43 = vmul.f32 %v7855_v35, %v9995_v59  ;;  %7874 = vtanh.f32 %v4663_v8 }
 0x4ef   : > { %v5651_v30 = vadd.f32 %v5650_v39, %v5588_v20  ;;  %7876 = vtanh.f32 %v5309_v36  ;;  %v5312_v33 = vadd.f32 %v12857_v63, %v9992_v53  ;;  %v4687_v38 = vadd.f32 %v11571_v1, %v9992_v53 }
 0x4f0   : > { %v5006_v32 = vadd.f32 %v5005_v55, %v4943_v52  ;;  %v7859_v22 = vpop.eup %7858  ;;  %v5529_v37 = vmul.f32 %v7857_v13, %v9995_v59  ;;  %7878 = vtanh.f32 %v4674_v51  ;;  %v5333_v39 = vadd.f32 %v11573_v5, %v9992_v53  ;;  %v12858_v55 = vld [vmem:[#allocation64_spill] sm:$0xff]  ;;  %v12860_v51 = vld [vmem:[#allocation65_spill] sm:$0xff] }
 0x4f1   : > { %v5652_v25 = vadd.f32 %v5651_v30, %v5589_v40  ;;  %v7861_v35 = vpop.eup %7860  ;;  %v4881_v8 = vmul.f32 %v7859_v22, %v9995_v59  ;;  %7880 = vtanh.f32 %v5320_v54  ;;  %v4679_v52 = vadd.f32 %v11580_v19, %v9992_v53 }
 0x4f2   : > { %v5007_v20 = vadd.f32 %v5006_v32, %v4944_v24  ;;  %v7863_v36 = vpop.eup %7862  ;;  %vm12859_vm7 = vcmp.lt.s32.totalorder %v12858_v55, 1152  ;;  %v5527_v30 = vmul.f32 %v7861_v35, %v9995_v59  ;;  %7882 = vtanh.f32 %v4666_v9  ;;  %v12864_v35 = vld [vmem:[#allocation67_spill] sm:$0xff] }
 0x4f3   : > { %v4947_v1 = vsel %vm12859_vm7, %v4883_v43, 0.0  ;;  %v5653_v40 = vadd.f32 %v5652_v25, %v5590_v16  ;;  %v7865_v13 = vpop.eup %7864  ;;  %vm12861_vm8 = vcmp.lt.s32.totalorder %v12860_v51, 1152  ;;  %7884 = vtanh.f32 %v5312_v33  ;;  %vm12863_vm10 = vmmov %vm12859_vm7 }
 0x4f4   : > { %v4945_v5 = vsel %vm12861_vm8, %v4881_v8, 0.0  ;;  %v5325_v24 = vadd.f32 %v11582_v45, %v9992_v53  ;;  %v4690_v54 = vadd.f32 %v11591_v44, %v9992_v53  ;;  %v7867_v19 = vpop.eup %7866  ;;  %vm12862_vm9 = vmmov %vm12861_vm8  ;;  %v4884_v56 = vmul.f32 %v7863_v36, %v9995_v59 }
 0x4f5   : > { %v5008_v41 = vadd.f32 %v5007_v20, %v4945_v5  ;;  %v5591_v43 = vsel %vm12862_vm9, %v5527_v30, 0.0  ;;  %7886 = vtanh.f32 %v4687_v38  ;;  %v7869_v16 = vpop.eup %7868  ;;  %v4882_v32 = vmul.f32 %v7867_v19, %v9995_v59  ;;  %v12866_v20 = vld [vmem:[#allocation66_spill] sm:$0xff] }
 0x4f6   : > { %v5654_v9 = vadd.f32 %v5653_v40, %v5591_v43  ;;  %7888 = vtanh.f32 %v5333_v39  ;;  %v5336_v63 = vadd.f32 %v11593_v62, %v9992_v53  ;;  %v7871_v45 = vpop.eup %7870  ;;  %v5593_v44 = vsel %vm12863_vm10, %v5529_v37, 0.0 }
 0x4f7   : > { %v5528_v33 = vmul.f32 %v7869_v16, %v9995_v59  ;;  %7890 = vtanh.f32 %v4679_v52  ;;  %v4682_v22 = vadd.f32 %v11598_v26, %v9992_v53  ;;  %v7873_v25 = vpop.eup %7872  ;;  %v5530_v38 = vmul.f32 %v7865_v13, %v9995_v59 }
 0x4f8   : > { %vm12865_vm3 = vcmp.lt.s32.totalorder %v12864_v35, 1152  ;;  %7892 = vtanh.f32 %v5325_v24  ;;  %v5328_v62 = vadd.f32 %v11600_v3, %v9992_v53  ;;  %v7875_v39 = vpop.eup %7874  ;;  %vm12867_vm4 = vcmp.lt.s32.totalorder %v12866_v20, 1152 }
 0x4f9   : > { %v4946_v8 = vsel %vm12865_vm3, %v4882_v32, 0.0  ;;  %v4948_v37 = vsel %vm12867_vm4, %v4884_v56, 0.0  ;;  %vm12868_vm5 = vmmov %vm12865_vm3  ;;  %7894 = vtanh.f32 %v4690_v54  ;;  %v7877_v26 = vpop.eup %7876  ;;  %v4887_v30 = vmul.f32 %v7871_v45, %v9995_v59  ;;  %v12873_v45 = vld [vmem:[#allocation68_spill] sm:$0xff] }
 0x4fa   : > { %v5009_v36 = vadd.f32 %v5008_v41, %v4946_v8  ;;  %v5592_v52 = vsel %vm12868_vm5, %v5528_v33, 0.0  ;;  %v4885_v40 = vmul.f32 %v7875_v39, %v9995_v59  ;;  %7896 = vtanh.f32 %v5336_v63  ;;  %v7879_v13 = vpop.eup %7878  ;;  %v12869_v41 = vld [vmem:[#allocation69_spill] sm:$0xff]  ;;  %vm12871_vm6 = vmmov %vm12867_vm4 }
 0x4fb   : > { %v5655_v55 = vadd.f32 %v5654_v9, %v5592_v52  ;;  %v5533_v3 = vmul.f32 %v7873_v25, %v9995_v59  ;;  %v5531_v5 = vmul.f32 %v7877_v26, %v9995_v59  ;;  %7898 = vtanh.f32 %v4682_v22  ;;  %v7881_v24 = vpop.eup %7880  ;;  %v12878_v52 = vld [vmem:[#allocation71_spill] sm:$0xff] }
 0x4fc   : > { %v5010_v51 = vadd.f32 %v5009_v36, %v4947_v1  ;;  %vm12870_vm14 = vcmp.lt.s32.totalorder %v12869_v41, 1152  ;;  %v4888_v54 = vmul.f32 %v7879_v13, %v9995_v59  ;;  %7900 = vtanh.f32 %v5328_v62  ;;  %v7883_v56 = vpop.eup %7882 }
 0x4fd   : > { %v5656_v19 = vadd.f32 %v5655_v55, %v5593_v44  ;;  %v4949_v43 = vsel %vm12870_vm14, %v4885_v40, 0.0  ;;  %v5594_v16 = vsel %vm12871_vm6, %v5530_v38, 0.0  ;;  %vm12872_vm7 = vmmov %vm12870_vm14  ;;  %v4703_v32 = vadd.f32 %v11638_v6, %v9992_v53  ;;  %v7885_v63 = vpop.eup %7884 }
 0x4fe   : > { %v5011_v9 = vadd.f32 %v5010_v51, %v4948_v37  ;;  %v5595_v1 = vsel %vm12872_vm7, %v5531_v5, 0.0  ;;  %vm12874_vm8 = vcmp.lt.s32.totalorder %v12873_v45, 1152  ;;  %v4886_v22 = vmul.f32 %v7883_v56, %v9995_v59  ;;  %v12876_v37 = vld [vmem:[#allocation70_spill] sm:$0xff] }
 0x4ff   : > { %v4951_v44 = vsel %vm12874_vm8, %v4887_v30, 0.0  ;;  %v5657_v33 = vadd.f32 %v5656_v19, %v5594_v16  ;;  %v5349_v25 = vadd.f32 %v11640_v34, %v9992_v53  ;;  %v7887_v35 = vpop.eup %7886  ;;  %vm12875_vm9 = vmmov %vm12874_vm8  ;;  %v5534_v62 = vmul.f32 %v7881_v24, %v9995_v59 }
 0x500   : > { %v5597_v38 = vsel %vm12875_vm9, %v5533_v3, 0.0  ;;  %v5012_v8 = vadd.f32 %v5011_v9, %v4949_v43  ;;  %v5532_v39 = vmul.f32 %v7885_v63, %v9995_v59  ;;  %v7889_v6 = vpop.eup %7888  ;;  %vm12877_vm10 = vcmp.lt.s32.totalorder %v12876_v37, 1152  ;;  %v12882_v9 = vld [vmem:[#allocation73_spill] sm:$0xff]  ;;  %v12884_v63 = vld [vmem:[#allocation72_spill] sm:$0xff]  ;;  %v12887_v37 = vld [vmem:[#allocation75_spill] sm:$0xff] }
 0x501   : > { %v5658_v20 = vadd.f32 %v5657_v33, %v5595_v1  ;;  %v4952_v36 = vsel %vm12877_vm10, %v4888_v54, 0.0  ;;  %vm12879_vm3 = vcmp.lt.s32.totalorder %v12878_v52, 1152  ;;  %7902 = vtanh.f32 %v4703_v32  ;;  %v7891_v55 = vpop.eup %7890  ;;  %vm12881_vm5 = vmmov %vm12877_vm10 }
 0x502   : > { %v4950_v26 = vsel %vm12879_vm3, %v4886_v22, 0.0  ;;  %vm12880_vm4 = vmmov %vm12879_vm3  ;;  %v4891_v40 = vmul.f32 %v7887_v35, %v9995_v59  ;;  %v4695_v13 = vadd.f32 %v11655_v15, %v9992_v53  ;;  %v7893_v51 = vpop.eup %7892  ;;  %v4889_v5 = vmul.f32 %v7891_v55, %v9995_v59 }
 0x503   : > { %v5013_v34 = vadd.f32 %v5012_v8, %v4950_v26  ;;  %v5596_v30 = vsel %vm12880_vm4, %v5532_v39, 0.0  ;;  %7904 = vtanh.f32 %v5349_v25  ;;  %v5341_v24 = vadd.f32 %v11657_v48, %v9992_v53  ;;  %v7895_v19 = vpop.eup %7894 }
 0x504   : > { %v5659_v3 = vadd.f32 %v5658_v20, %v5596_v30  ;;  %v5598_v41 = vsel %vm12881_vm5, %v5534_v62, 0.0  ;;  %v5535_v54 = vmul.f32 %v7893_v51, %v9995_v59  ;;  %7906 = vtanh.f32 %v4695_v13  ;;  %v7897_v56 = vpop.eup %7896 }
 0x505   : > { %v5014_v43 = vadd.f32 %v5013_v34, %v4951_v44  ;;  %v5537_v15 = vmul.f32 %v7889_v6, %v9995_v59  ;;  %vm12883_vm14 = vcmp.lt.s32.totalorder %v12882_v9, 1152  ;;  %7908 = vtanh.f32 %v5341_v24  ;;  %v7899_v32 = vpop.eup %7898 }
 0x506   : > { %v5660_v16 = vadd.f32 %v5659_v3, %v5597_v38  ;;  %v4953_v1 = vsel %vm12883_vm14, %v4889_v5, 0.0  ;;  %vm12885_vm6 = vcmp.lt.s32.totalorder %v12884_v63, 1152  ;;  %vm12886_vm7 = vmmov %vm12883_vm14  ;;  %v4706_v44 = vadd.f32 %v11668_v21, %v9992_v53  ;;  %v7901_v22 = vpop.eup %7900 }
 0x507   : > { %v4955_v48 = vsel %vm12885_vm6, %v4891_v40, 0.0  ;;  %v5015_v45 = vadd.f32 %v5014_v43, %v4952_v36  ;;  %v5599_v33 = vsel %vm12886_vm7, %v5535_v54, 0.0  ;;  %v4892_v35 = vmul.f32 %v7895_v19, %v9995_v59  ;;  %vm12890_vm10 = vmmov %vm12885_vm6 }
 0x508   : > { %v5661_v25 = vadd.f32 %v5660_v16, %v5598_v41  ;;  %v4890_v38 = vmul.f32 %v7899_v32, %v9995_v59  ;;  %v5352_v8 = vadd.f32 %v11670_v60, %v9992_v53  ;;  %v5538_v39 = vmul.f32 %v7897_v56, %v9995_v59 }
 0x509   : > { %v5016_v62 = vadd.f32 %v5015_v45, %v4953_v1  ;;  %v5536_v6 = vmul.f32 %v7901_v22, %v9995_v59  ;;  %7910 = vtanh.f32 %v4706_v44  ;;  %vm12888_vm8 = vcmp.lt.s32.totalorder %v12887_v37, 1152  ;;  %v12894_v1 = vld [vmem:[#allocation42_spill] sm:$0xff] }
 0x50a   : > { %v5662_v20 = vadd.f32 %v5661_v25, %v5599_v33  ;;  %v4954_v36 = vsel %vm12888_vm8, %v4890_v38, 0.0  ;;  %7912 = vtanh.f32 %v5352_v8  ;;  %v4698_v21 = vadd.f32 %v11679_v42, %v9992_v53  ;;  %vm12889_vm9 = vmmov %vm12888_vm8  ;;  %v12891_v42 = vld [vmem:[#allocation74_spill] sm:$0xff] }
 0x50b   : > { %v5017_v52 = vadd.f32 %v5016_v62, %v4954_v36  ;;  %v5600_v26 = vsel %vm12889_vm9, %v5536_v6, 0.0  ;;  %v5344_v60 = vadd.f32 %v11681_v58, %v9992_v53  ;;  %v4719_v55 = vadd.f32 %v11713_v47, %v9992_v53  ;;  %v7903_v34 = vpop.eup %7902  ;;  %v12901_v36 = vld [vmem:[#allocation78_spill] sm:$0xff] }
 0x50c   : > { %v5601_v30 = vsel %vm12890_vm10, %v5537_v15, 0.0  ;;  %v5663_v40 = vadd.f32 %v5662_v20, %v5600_v26  ;;  %7914 = vtanh.f32 %v4698_v21  ;;  %v5365_v13 = vadd.f32 %v11715_v4, %v9992_v53 }
 0x50d   : > { %vm12892_vm3 = vcmp.lt.s32.totalorder %v12891_v42, 1152  ;;  %v5018_v3 = vadd.f32 %v5017_v52, %v4955_v48  ;;  %7916 = vtanh.f32 %v5344_v60  ;;  %v4711_v58 = vadd.f32 %v11720_v27, %v9992_v53  ;;  %v7905_v5 = vpop.eup %7904 }
 0x50e   : > { %v4956_v51 = vsel %vm12892_vm3, %v4892_v35, 0.0  ;;  %vm12893_vm4 = vmmov %vm12892_vm3  ;;  %v5664_v24 = vadd.f32 %v5663_v40, %v5601_v30  ;;  %7918 = vtanh.f32 %v4719_v55  ;;  %v5357_v19 = vadd.f32 %v11722_v7, %v9992_v53  ;;  %v7907_v41 = vpop.eup %7906  ;;  %v12903_v55 = vld [vmem:[#allocation38_spill] sm:$0xff]  ;;  %v12905_v40 = vld [vmem:[#allocation79_spill] sm:$0xff] }
 0x50f   : > { %v5602_v47 = vsel %vm12893_vm4, %v5538_v39, 0.0  ;;  %v4895_v4 = vmul.f32 %v7903_v34, %v9995_v59  ;;  %v5019_v43 = vadd.f32 %v5018_v3, %v4956_v51  ;;  %7920 = vtanh.f32 %v5365_v13  ;;  %v7909_v56 = vpop.eup %7908  ;;  %v12898_v39 = vld [vmem:[#allocation76_spill] sm:$0xff] }
 0x510   : > { %v4722_v54 = vadd.f32 %v11730_v14, %v9992_v53  ;;  %v4893_v27 = vmul.f32 %v7907_v41, %v9995_v59  ;;  %v5665_v16 = vadd.f32 %v5664_v24, %v5602_v47  ;;  %7922 = vtanh.f32 %v4711_v58  ;;  %v12895_v14 = vld [vmem:[#allocation77_spill] sm:$0xff] }
 0x511   : > { %v5368_v15 = vadd.f32 %v11732_v46, %v9992_v53  ;;  %v5539_v9 = vmul.f32 %v7909_v56, %v9995_v59  ;;  %7924 = vtanh.f32 %v5357_v19  ;;  %v4714_v7 = vadd.f32 %v11738_v57, %v9992_v53 }
 0x512   : > { %v5360_v32 = vadd.f32 %v12894_v1, %v9992_v53  ;;  %v5541_v63 = vmul.f32 %v7905_v5, %v9995_v59  ;;  %vm12896_vm5 = vcmp.lt.s32.totalorder %v12895_v14, 1152  ;;  %7926 = vtanh.f32 %v4722_v54 }
 0x513   : > { %v4957_v48 = vsel %vm12896_vm5, %v4893_v27, 0.0  ;;  %v4735_v45 = vadd.f32 %v11765_v12, %v9992_v53  ;;  %v7911_v33 = vpop.eup %7910  ;;  %vm12897_vm14 = vmmov %vm12896_vm5  ;;  %7928 = vtanh.f32 %v5368_v15  ;;  %v5381_v57 = vadd.f32 %v11767_v29, %v9992_v53 }
 0x514   : > { %v5020_v46 = vadd.f32 %v5019_v43, %v4957_v48  ;;  %v5603_v44 = vsel %vm12897_vm14, %v5539_v9, 0.0  ;;  %v7913_v22 = vpop.eup %7912  ;;  %v4896_v35 = vmul.f32 %v7911_v33, %v9995_v59  ;;  %7930 = vtanh.f32 %v4714_v7 }
 0x515   : > { %v5666_v25 = vadd.f32 %v5665_v16, %v5603_v44  ;;  %v4727_v38 = vadd.f32 %v11773_v61, %v9992_v53  ;;  %v5542_v8 = vmul.f32 %v7913_v22, %v9995_v59  ;;  %7932 = vtanh.f32 %v5360_v32 }
 0x516   : > { %v5373_v12 = vadd.f32 %v11775_v50, %v9992_v53  ;;  %v7915_v62 = vpop.eup %7914  ;;  %vm12899_vm6 = vcmp.lt.s32.totalorder %v12898_v39, 1152  ;;  %7934 = vtanh.f32 %v4735_v45  ;;  %v4738_v20 = vadd.f32 %v11781_v31, %v9992_v53 }
 0x517   : > { %v4959_v6 = vsel %vm12899_vm6, %v4895_v4, 0.0  ;;  %vm12900_vm7 = vmmov %vm12899_vm6  ;;  %v7917_v37 = vpop.eup %7916  ;;  %vm12902_vm8 = vcmp.lt.s32.totalorder %v12901_v36, 1152  ;;  %v4894_v21 = vmul.f32 %v7915_v62, %v9995_v59  ;;  %7936 = vtanh.f32 %v5381_v57  ;;  %v12917_v36 = vld [vmem:[#allocation41_spill] sm:$0xff] }
 0x518   : > { %v5605_v29 = vsel %vm12900_vm7, %v5541_v63, 0.0  ;;  %v4960_v61 = vsel %vm12902_vm8, %v4896_v35, 0.0  ;;  %v5384_v50 = vadd.f32 %v11783_v0, %v9992_v53  ;;  %v7919_v52 = vpop.eup %7918  ;;  %v5540_v26 = vmul.f32 %v7917_v37, %v9995_v59  ;;  %vm12904_vm9 = vmmov %vm12902_vm8 }
 0x519   : > { %7938 = vtanh.f32 %v4727_v38  ;;  %v4730_v60 = vadd.f32 %v11788_v17, %v9992_v53  ;;  %v5376_v31 = vadd.f32 %v12903_v55, %v9992_v53  ;;  %v7921_v34 = vpop.eup %7920  ;;  %v5606_v30 = vsel %vm12904_vm9, %v5542_v8, 0.0  ;;  %v12914_v8 = vld [vmem:[#allocation82_spill] sm:$0xff] }
 0x51a   : > { %vm12906_vm10 = vcmp.lt.s32.totalorder %v12905_v40, 1152  ;;  %7940 = vtanh.f32 %v5373_v12  ;;  %v4751_v0 = vadd.f32 %v11814_v11, %v9992_v53  ;;  %v7923_v42 = vpop.eup %7922  ;;  %v4743_v17 = vadd.f32 %v11823_v28, %v9992_v53  ;;  %v12908_v28 = vld [vmem:[#allocation81_spill] sm:$0xff] }
 0x51b   : > { %v4958_v13 = vsel %vm12906_vm10, %v4894_v21, 0.0  ;;  %vm12907_vm3 = vmmov %vm12906_vm10  ;;  %7942 = vtanh.f32 %v4738_v20  ;;  %v7925_v58 = vpop.eup %7924  ;;  %v4899_v47 = vmul.f32 %v7919_v52, %v9995_v59  ;;  %v4897_v24 = vmul.f32 %v7923_v42, %v9995_v59 }
 0x51c   : > { %v5021_v51 = vadd.f32 %v5020_v46, %v4958_v13  ;;  %v5604_v3 = vsel %vm12907_vm3, %v5540_v26, 0.0  ;;  %7944 = vtanh.f32 %v5384_v50  ;;  %v7927_v19 = vpop.eup %7926  ;;  %v5543_v11 = vmul.f32 %v7925_v58, %v9995_v59 }
 0x51d   : > { %v5667_v5 = vadd.f32 %v5666_v25, %v5604_v3  ;;  %7946 = vtanh.f32 %v4730_v60  ;;  %v5389_v4 = vadd.f32 %v11825_v18, %v9992_v53  ;;  %v7929_v43 = vpop.eup %7928  ;;  %v5545_v56 = vmul.f32 %v7921_v34, %v9995_v59  ;;  %v12912_v25 = vld [vmem:[#allocation27_spill] sm:$0xff]  ;;  %v12919_v34 = vld [vmem:[#allocation84_spill] sm:$0xff] }
 0x51e   : > { %v5022_v41 = vadd.f32 %v5021_v51, %v4959_v6  ;;  %vm12909_vm4 = vcmp.lt.s32.totalorder %v12908_v28, 1152  ;;  %7948 = vtanh.f32 %v5376_v31  ;;  %v7931_v16 = vpop.eup %7930  ;;  %v4900_v7 = vmul.f32 %v7927_v19, %v9995_v59 }
 0x51f   : > { %v5668_v54 = vadd.f32 %v5667_v5, %v5605_v29  ;;  %v4961_v27 = vsel %vm12909_vm4, %v4897_v24, 0.0  ;;  %vm12910_vm5 = vmmov %vm12909_vm4  ;;  %v5397_v1 = vadd.f32 %v11816_v10, %v9992_v53  ;;  %v7933_v32 = vpop.eup %7932  ;;  %v4963_v63 = vsel %vm2906_vm2, %v4899_v47, 0.0 }
 0x520   : > { %v5023_v15 = vadd.f32 %v5022_v41, %v4960_v61  ;;  %v5607_v9 = vsel %vm12910_vm5, %v5543_v11, 0.0  ;;  %v4898_v48 = vmul.f32 %v7931_v16, %v9995_v59  ;;  %7950 = vtanh.f32 %v4751_v0  ;;  %v7935_v45 = vpop.eup %7934  ;;  %v12922_v11 = vld [vmem:[#allocation83_spill] sm:$0xff]  ;;  %v12928_v16 = vld [vmem:[#allocation88_spill] sm:$0xff] }
 0x521   : > { %v5669_v14 = vadd.f32 %v5668_v54, %v5606_v30  ;;  %v5546_v46 = vmul.f32 %v7929_v43, %v9995_v59  ;;  %v5544_v44 = vmul.f32 %v7933_v32, %v9995_v59  ;;  %7952 = vtanh.f32 %v4743_v17  ;;  %v7937_v57 = vpop.eup %7936 }
 0x522   : > { %v5024_v33 = vadd.f32 %v5023_v15, %v4961_v27  ;;  %v5609_v22 = vsel %vm2906_vm2, %v5545_v56, 0.0  ;;  %vm12913_vm14 = vcmp.lt.s32.totalorder %v12912_v25, 1152  ;;  %7954 = vtanh.f32 %v5389_v4 }
 0x523   : > { %v5670_v10 = vadd.f32 %v5669_v14, %v5607_v9  ;;  %v4962_v35 = vsel %vm12913_vm14, %v4898_v48, 0.0  ;;  %v7939_v38 = vpop.eup %7938  ;;  %vm12915_vm6 = vcmp.lt.s32.totalorder %v12914_v8, 1152  ;;  %vm12916_vm7 = vmmov %vm12913_vm14  ;;  %v4754_v6 = vadd.f32 %v11832_v49, %v9992_v53  ;;  %v12937_v8 = vld [vmem:[#allocation92_spill] sm:$0xff] }
 0x524   : > { %v4964_v12 = vsel %vm12915_vm6, %v4900_v7, 0.0  ;;  %v5025_v62 = vadd.f32 %v5024_v33, %v4962_v35  ;;  %v5608_v39 = vsel %vm12916_vm7, %v5544_v44, 0.0  ;;  %v7941_v29 = vpop.eup %7940  ;;  %v4901_v37 = vmul.f32 %v7939_v38, %v9995_v59  ;;  %vm12918_vm2 = vmmov %vm12915_vm6  ;;  %v12929_v7 = vld [vmem:[#allocation85_spill] sm:$0xff] }
 0x525   : > { %v5671_v20 = vadd.f32 %v5670_v10, %v5608_v39  ;;  %7956 = vtanh.f32 %v5397_v1  ;;  %v5400_v61 = vadd.f32 %v12917_v36, %v9992_v53  ;;  %v7943_v21 = vpop.eup %7942  ;;  %v5610_v50 = vsel %vm12918_vm2, %v5546_v46, 0.0  ;;  %v12935_v10 = vld [vmem:[#allocation43_spill] sm:$0xff] }
 0x526   : > { %v5026_v52 = vadd.f32 %v5025_v62, %v4963_v63  ;;  %v4903_v26 = vmul.f32 %v7935_v45, %v9995_v59  ;;  %v5547_v60 = vmul.f32 %v7941_v29, %v9995_v59  ;;  %v7945_v55 = vpop.eup %7944  ;;  %v5549_v49 = vmul.f32 %v7937_v57, %v9995_v59  ;;  %v12931_v63 = vld [vmem:[#allocation89_spill] sm:$0xff]  ;;  %v12933_v57 = vld [vmem:[#allocation28_spill] sm:$0xff] }
 0x527   : > { %v5672_v31 = vadd.f32 %v5671_v20, %v5609_v22  ;;  %vm12920_vm8 = vcmp.lt.s32.totalorder %v12919_v34, 1152  ;;  %7958 = vtanh.f32 %v4754_v6  ;;  %v7947_v40 = vpop.eup %7946  ;;  %v4904_v42 = vmul.f32 %v7943_v21, %v9995_v59  ;;  %v12938_v62 = vld [vmem:[#allocation93_spill] sm:$0xff] }
 0x528   : > { %v4965_v30 = vsel %vm12920_vm8, %v4901_v37, 0.0  ;;  %v5027_v13 = vadd.f32 %v5026_v52, %v4964_v12  ;;  %vm12921_vm9 = vmmov %vm12920_vm8  ;;  %v4746_v51 = vadd.f32 %v11838_v23, %v9992_v53  ;;  %v7949_v3 = vpop.eup %7948  ;;  %v4902_v58 = vmul.f32 %v7947_v40, %v9995_v59  ;;  %v12924_v23 = vld [vmem:[#allocation86_spill] sm:$0xff]  ;;  %v12939_v20 = vld [vmem:[#allocation45_spill] sm:$0xff] }
 0x529   : > { %v5611_v0 = vsel %vm12921_vm9, %v5547_v60, 0.0  ;;  %v5673_v17 = vadd.f32 %v5672_v31, %v5610_v50  ;;  %7960 = vtanh.f32 %v5400_v61  ;;  %v5392_v5 = vadd.f32 %v11840_v2, %v9992_v53  ;;  %v12940_v61 = vld [vmem:[#allocation46_spill] sm:$0xff] }
 0x52a   : > { %v5028_v47 = vadd.f32 %v5027_v13, %v4965_v30  ;;  %v5550_v24 = vmul.f32 %v7945_v55, %v9995_v59  ;;  %v5548_v19 = vmul.f32 %v7949_v3, %v9995_v59  ;;  %7962 = vtanh.f32 %v4746_v51  ;;  %v7951_v41 = vpop.eup %7950  ;;  %v12943_v30 = vld [vmem:[#allocation48_spill] sm:$0xff]  ;;  %v12944_v51 = vld [vmem:[#allocation51_spill] sm:$0xff] }
 0x52b   : > { %vm12923_vm10 = vcmp.lt.s32.totalorder %v12922_v11, 1152  ;;  %v5674_v43 = vadd.f32 %v5673_v17, %v5611_v0  ;;  %vm12925_vm3 = vcmp.lt.s32.totalorder %v12924_v23, 1152  ;;  %7964 = vtanh.f32 %v5392_v5  ;;  %v7953_v56 = vpop.eup %7952  ;;  %v12945_v5 = vld [vmem:[#allocation50_spill] sm:$0xff]  ;;  %v12948_v11 = vld [vmem:[#allocation53_spill] sm:$0xff] }
 0x52c   : > { %v4967_v4 = vsel %vm12923_vm10, %v4903_v26, 0.0  ;;  %v4966_v54 = vsel %vm12925_vm3, %v4902_v58, 0.0  ;;  %vm12926_vm4 = vmmov %vm12923_vm10  ;;  %v4767_v15 = vadd.f32 %v12928_v16, %v9992_v53  ;;  %v7955_v9 = vpop.eup %7954  ;;  %vm12930_vm14 = vcmp.lt.s32.totalorder %v12929_v7, 1152  ;;  %v12941_v26 = vld [vmem:[#allocation47_spill] sm:$0xff] }
 0x52d   : > { %v5613_v28 = vsel %vm12926_vm4, %v5549_v49, 0.0  ;;  %v5029_v2 = vadd.f32 %v5028_v47, %v4966_v54  ;;  %vm12927_vm5 = vmmov %vm12925_vm3  ;;  %v4968_v1 = vsel %vm12930_vm14, %v4904_v42, 0.0  ;;  %v4905_v18 = vmul.f32 %v7953_v56, %v9995_v59  ;;  %v12942_v49 = vld [vmem:[#allocation49_spill] sm:$0xff]  ;;  %v12950_v56 = vld [vmem:[#allocation52_spill] sm:$0xff] }
 0x52e   : > { %v5612_v27 = vsel %vm12927_vm5, %v5548_v19, 0.0  ;;  %v5413_v14 = vadd.f32 %v12931_v63, %v9992_v53  ;;  %vm12932_vm6 = vmmov %vm12930_vm14  ;;  %v5551_v33 = vmul.f32 %v7955_v9, %v9995_v59  ;;  %7966 = vtanh.f32 %v4767_v15  ;;  %v12946_v19 = vld [vmem:[#allocation36_spill] sm:$0xff]  ;;  %v12953_v9 = vld [vmem:[#allocation54_spill] sm:$0xff] }
 0x52f   : > { %v5675_v32 = vadd.f32 %v5674_v43, %v5612_v27  ;;  %v5614_v48 = vsel %vm12932_vm6, %v5550_v24, 0.0  ;;  %v5030_v45 = vadd.f32 %v5029_v2, %v4967_v4  ;;  %v7957_v46 = vpop.eup %7956  ;;  %vm12934_vm7 = vcmp.lt.s32.totalorder %v12933_v57, 1152  ;;  %v12951_v27 = vld [vmem:[#allocation29_spill] sm:$0xff] }
 0x530   : > { %v4969_v22 = vsel %vm12934_vm7, %v4905_v18, 0.0  ;;  %7968 = vtanh.f32 %v5413_v14  ;;  %v4759_v25 = vadd.f32 %v12935_v10, %v9992_v53  ;;  %vm12936_vm2 = vmmov %vm12934_vm7  ;;  %v5405_v12 = vadd.f32 %v12937_v8, %v9992_v53  ;;  %v12955_v18 = vld [vmem:[#allocation55_spill] sm:$0xff] }
 0x531   : > { %v5676_v44 = vadd.f32 %v5675_v32, %v5613_v28  ;;  %v5031_v35 = vadd.f32 %v5030_v45, %v4968_v1  ;;  %v5615_v38 = vsel %vm12936_vm2, %v5551_v33, 0.0  ;;  %v4770_v39 = vadd.f32 %v12938_v62, %v9992_v53  ;;  %v7959_v6 = vpop.eup %7958 }
 0x532   : > { %7970 = vtanh.f32 %v4759_v25  ;;  %v5416_v37 = vadd.f32 %v12939_v20, %v9992_v53  ;;  %v4762_v21 = vadd.f32 %v12940_v61, %v9992_v53  ;;  %v5408_v60 = vadd.f32 %v12941_v26, %v9992_v53 }
 0x533   : > { %v5677_v29 = vadd.f32 %v5676_v44, %v5614_v48  ;;  %v5032_v36 = vadd.f32 %v5031_v35, %v4969_v22  ;;  %7972 = vtanh.f32 %v5405_v12  ;;  %v7961_v50 = vpop.eup %7960  ;;  %v4907_v31 = vmul.f32 %v7951_v41, %v9995_v59  ;;  %v12956_v48 = vld [vmem:[#allocation30_spill] sm:$0xff] }
 0x534   : > { %7974 = vtanh.f32 %v4770_v39  ;;  %v7963_v55 = vpop.eup %7962  ;;  %v4783_v34 = vadd.f32 %v12942_v49, %v9992_v53  ;;  %v5429_v40 = vadd.f32 %v12943_v30, %v9992_v53  ;;  %v5553_v0 = vmul.f32 %v7957_v46, %v9995_v59 }
 0x535   : > { %v5678_v52 = vadd.f32 %v5677_v29, %v5615_v38  ;;  %7976 = vtanh.f32 %v5416_v37  ;;  %v7965_v13 = vpop.eup %7964  ;;  %v4906_v42 = vmul.f32 %v7963_v55, %v9995_v59  ;;  %v4775_v3 = vadd.f32 %v12944_v51, %v9992_v53  ;;  %v12959_v38 = vld [vmem:[#allocation40_spill] sm:$0xff] }
 0x536   : > { %7978 = vtanh.f32 %v4762_v21  ;;  %v4908_v17 = vmul.f32 %v7959_v6, %v9995_v59  ;;  %v5552_v58 = vmul.f32 %v7965_v13, %v9995_v59  ;;  %v5421_v47 = vadd.f32 %v12945_v5, %v9992_v53 }
 0x537   : > { %7980 = vtanh.f32 %v5408_v60  ;;  %v5554_v24 = vmul.f32 %v7961_v50, %v9995_v59  ;;  %vm12947_vm8 = vcmp.lt.s32.totalorder %v12946_v19, 1152  ;;  %v4786_v4 = vadd.f32 %v12948_v11, %v9992_v53 }
 0x538   : > { %v4970_v41 = vsel %vm12947_vm8, %v4906_v42, 0.0  ;;  %7982 = vtanh.f32 %v4783_v34  ;;  %v7967_v43 = vpop.eup %7966  ;;  %vm12949_vm9 = vmmov %vm12947_vm8  ;;  %v5432_v28 = vadd.f32 %v12950_v56, %v9992_v53  ;;  %vm12952_vm10 = vcmp.lt.s32.totalorder %v12951_v27, 1152 }
 0x539   : > { %v5033_v23 = vadd.f32 %v5032_v36, %v4970_v41  ;;  %v5616_v54 = vsel %vm12949_vm9, %v5552_v58, 0.0  ;;  %7984 = vtanh.f32 %v5429_v40  ;;  %v4971_v16 = vsel %vm12952_vm10, %v4907_v31, 0.0  ;;  %vm12954_vm3 = vmmov %vm12952_vm10  ;;  %v12965_v41 = vld [vmem:[#allocation91_spill] sm:$0xff] }
 0x53a   : > { %v7969_v2 = vpop.eup %7968  ;;  %v5679_v15 = vadd.f32 %v5678_v52, %v5616_v54  ;;  %7986 = vtanh.f32 %v4775_v3  ;;  %v4778_v7 = vadd.f32 %v12953_v9, %v9992_v53  ;;  %v5617_v1 = vsel %vm12954_vm3, %v5553_v0, 0.0 }
 0x53b   : > { %v5034_v32 = vadd.f32 %v5033_v23, %v4971_v16  ;;  %7988 = vtanh.f32 %v5421_v47  ;;  %v5424_v63 = vadd.f32 %v12955_v18, %v9992_v53  ;;  %vm12957_vm4 = vcmp.lt.s32.totalorder %v12956_v48, 1152 }
 0x53c   : > { %v7971_v14 = vpop.eup %7970  ;;  %v4972_v45 = vsel %vm12957_vm4, %v4908_v17, 0.0  ;;  %v5680_v33 = vadd.f32 %v5679_v15, %v5617_v1  ;;  %7990 = vtanh.f32 %v4786_v4  ;;  %vm12958_vm5 = vmmov %vm12957_vm4  ;;  %vm12960_vm14 = vcmp.lt.s32.totalorder %v12959_v38, 1152 }
 0x53d   : > { %v7973_v46 = vpop.eup %7972  ;;  %v5618_v44 = vsel %vm12958_vm5, %v5554_v24, 0.0  ;;  %v4909_v57 = vmul.f32 %v7971_v14, %v9995_v59  ;;  %v5035_v22 = vadd.f32 %v5034_v32, %v4972_v45  ;;  %7992 = vtanh.f32 %v5432_v28  ;;  %vm12961_vm6 = vmmov %vm12960_vm14 }
 0x53e   : > { %v7975_v10 = vpop.eup %7974  ;;  %v5555_v25 = vmul.f32 %v7973_v46, %v9995_v59  ;;  %v5681_v35 = vadd.f32 %v5680_v33, %v5618_v44  ;;  %7994 = vtanh.f32 %v4778_v7  ;;  %v4911_v29 = vmul.f32 %v7967_v43, %v9995_v59 }
 0x53f   : > { %v7977_v53 = vpop.eup %7976  ;;  %v4973_v8 = vsel %vm12960_vm14, %v4909_v57, 0.0  ;;  %7996 = vtanh.f32 %v5424_v63  ;;  %v5557_v61 = vmul.f32 %v7969_v2, %v9995_v59  ;;  %v4912_v52 = vmul.f32 %v7975_v10, %v9995_v59 }
 0x540   : > { %v7979_v12 = vpop.eup %7978  ;;  %v5036_v62 = vadd.f32 %v5035_v22, %v4973_v8  ;;  %v5619_v39 = vsel %vm12961_vm6, %v5555_v25, 0.0  ;;  %v5558_v31 = vmul.f32 %v7977_v53, %v9995_v59  ;;  %v4975_v13 = vsel %vm2918_vm11, %v4911_v29, 0.0 }
 0x541   : > { %v7981_v6 = vpop.eup %7980  ;;  %v5682_v20 = vadd.f32 %v5681_v35, %v5619_v39  ;;  %v4910_v37 = vmul.f32 %v7979_v12, %v9995_v59  ;;  %v5621_v3 = vsel %vm2918_vm11, %v5557_v61, 0.0  ;;  %v4976_v24 = vsel %vm2919_vm12, %v4912_v52, 0.0  ;;  %v12971_v52 = vld [vmem:[#allocation34_spill] sm:$0xff] }
 0x542   : > { %v7983_v36 = vpop.eup %7982  ;;  %v5556_v21 = vmul.f32 %v7981_v6, %v9995_v59  ;;  %v5622_v43 = vsel %vm2919_vm12, %v5558_v31, 0.0  ;;  %vm5699_vm11 = vcmask 1041408   ;;  %vm5701_vm12 = vcmask 1042432  }
 0x543   : > { %v7985_v50 = vpop.eup %7984  ;;  %v4974_v60 = vsel %vm2917_vm0, %v4910_v37, 0.0  ;;  %v4915_v28 = vmul.f32 %v7983_v36, %v9995_v59 }
 0x544   : > { %v7987_v55 = vpop.eup %7986  ;;  %v5037_v49 = vadd.f32 %v5036_v62, %v4974_v60  ;;  %v5620_v34 = vsel %vm2917_vm0, %v5556_v21, 0.0  ;;  %vm12966_vm0 = vcmp.lt.s32.totalorder %v12965_v41, 1152  ;;  %v5561_v16 = vmul.f32 %v7985_v50, %v9995_v59  ;;  %v5696_v50 = vld [vmem:[%s8561_s29] sm:$0xf] }
 0x545   : > { %v7989_v30 = vpop.eup %7988  ;;  %v5683_v0 = vadd.f32 %v5682_v20, %v5620_v34  ;;  %v4913_v42 = vmul.f32 %v7987_v55, %v9995_v59  ;;  %vm12967_vm7 = vmmov %vm12966_vm0  ;;  %v4979_v33 = vsel %vm2922_vm13, %v4915_v28, 0.0 }
 0x546   : > { %v7991_v51 = vpop.eup %7990  ;;  %v5038_v17 = vadd.f32 %v5037_v49, %v4975_v13  ;;  %v5559_v58 = vmul.f32 %v7989_v30, %v9995_v59  ;;  %v5625_v44 = vsel %vm2922_vm13, %v5561_v16, 0.0 }
 0x547   : > { %v7993_v5 = vpop.eup %7992  ;;  %v5684_v19 = vadd.f32 %v5683_v0, %v5621_v3  ;;  %v4977_v11 = vsel %vm12966_vm0, %v4913_v42, 0.0  ;;  %v4916_v1 = vmul.f32 %v7991_v51, %v9995_v59 }
 0x548   : > { %v7995_v4 = vpop.eup %7994  ;;  %v5039_v23 = vadd.f32 %v5038_v17, %v4976_v24  ;;  %v5623_v54 = vsel %vm12967_vm7, %v5559_v58, 0.0  ;;  %v5562_v63 = vmul.f32 %v7993_v5, %v9995_v59 }
 0x549   : > { %v7997_v56 = vpop.eup %7996  ;;  %v5685_v2 = vadd.f32 %v5684_v19, %v5622_v43  ;;  %v4914_v27 = vmul.f32 %v7995_v4, %v9995_v59  ;;  %v4980_v10 = vsel %vm2923_vm15, %v4916_v1, 0.0 }
 0x54a   : > { %v5040_v15 = vadd.f32 %v5039_v23, %v4977_v11  ;;  %v5560_v9 = vmul.f32 %v7997_v56, %v9995_v59  ;;  %v5626_v35 = vsel %vm2923_vm15, %v5562_v63, 0.0 }
 0x54b   : > { %v5686_v7 = vadd.f32 %v5685_v2, %v5623_v54  ;;  %v4978_v18 = vsel %vm2921_vm1, %v4914_v27, 0.0 }
 0x54c   : > { %v5041_v14 = vadd.f32 %v5040_v15, %v4978_v18  ;;  %v5624_v48 = vsel %vm2921_vm1, %v5560_v9, 0.0 }
 0x54d   : > { %v5687_v46 = vadd.f32 %v5686_v7, %v5624_v48 }
 0x54e   : > { %v5042_v57 = vadd.f32 %v5041_v14, %v4979_v33 }
 0x54f   : > { %v5688_v25 = vadd.f32 %v5687_v46, %v5625_v44 }
 0x550   : > { %v5043_v59 = vadd.f32 %v5042_v57, %v4980_v10 }
 0x551   : > { %v5689_v53 = vadd.f32 %v5688_v25, %v5626_v35 }
 0x552   : > { %v5044_v38 = vrot.slane %v5043_v59, 4 }
 0x553   : > { %v5690_v8 = vrot.slane %v5689_v53, 4 }
 0x554   : > { %v5045_v12 = vadd.f32 %v5044_v38, %v5043_v59 }
 0x555   : > { %v5691_v62 = vadd.f32 %v5690_v8, %v5689_v53 }
 0x556   : > { %v5046_v39 = vrot.slane %v5045_v12, 2 }
 0x557   : > { %v5692_v6 = vrot.slane %v5691_v62, 2 }
 0x558   : > { %v5047_v29 = vadd.f32 %v5046_v39, %v5045_v12 }
 0x559   : > { %v5693_v20 = vadd.f32 %v5692_v6, %v5691_v62 }
 0x55a   : > { %v5048_v37 = vrot.slane %v5047_v29, 1 }
 0x55b   : > { %v5694_v36 = vrot.slane %v5693_v20, 1 }
 0x55c   : > { %v5049_v61 = vadd.f32 %v5048_v37, %v5047_v29 }
 0x55d   : > { %v5695_v21 = vadd.f32 %v5694_v36, %v5693_v20 }
 0x55e   : > { %v5700_v26 = vsel %vm5699_vm11, %v12971_v52, %v5049_v61 }
 0x55f   : > { %v5702_v60 = vsel %vm5701_vm12, %v5700_v26, %v5695_v21 }
 0x560   : > { %v5703_v55 = vadd.f32 %v5702_v60, %v5696_v50 }
 0x562   : > { %5704 = vst [vmem:[%s8561_s29] sm:$0xf] %v5703_v55 }
 0x563 PF: > { %s12972_s9 = sld [smem:[#allocation23_spill]]  ;;  %s5876_s6 = sshll.u32 %s8228_s22, 6 }
 0x564   : > { %s12973_s4 = sld [smem:[#allocation105_spill]]  ;;  %s5719_s15 = sshll.u32 %s8561_s29, 4  ;;  %s5720_s15 = int_to_ptr.vmem [resolvable:$true] %s5719_s15 }
 0x565   : > { %s5706_s8 = scalar_lea.sflag [#allocation4], %s285_s10  ;;  %s8110_s11 = scalar_lea.vmem %s5720_s15, 64 }
 0x566   : > { %p8111_p9 = scmp.ne.s32.totalorder %s5720_s15, %s8110_s11  ;;  %s8251_s14 = smov [#allocation10]  }
 0x567   : > { %s8114_s28 = sshll.u32 %s8251_s14, 4  ;;  %s8115_s28 = int_to_ptr.vmem [resolvable:$false] %s8114_s28 }
 0x568   : > { %s8116_s7 = scalar_lea.vmem %s8115_s28, 128  ;;  %p8117_p13 = scmp.lt.s32.totalorder %s5720_s15, %s8115_s28 }
 0x569   : > { %p12974_p2 = scmp.ne.s32.totalorder %s12972_s9, 0  ;;  %p8118_p11 = scmp.lt.s32.totalorder %s8116_s7, %s8110_s11 }
 0x56a   : > { %s12290_s17 = scalar_lea.hbm %s12973_s4, %s5876_s6 }
 0x56b   : > { %p8112_p3 = pnand %p8111_p9, %p12974_p2  ;;  %p8119_p4 = por %p8118_p11, %p8117_p13 }
 0x56d   : > { %p8113_p1 = pneg %p8112_p3 }
 0x56f   : > { %p8120_p10 = pnand %p8119_p4, %p8113_p1 }
 0x571   : > { %8123 = shalt.err (!%p8120_p10)
}
 0x572   : > { %s8124_s22 = scalar_lea.hbm %s12290_s17, 64  ;;  %s8128_s18 = scalar_lea.hbm %s12973_s4, 128 }
 0x573   : > { %p8125_p12 = scmp.ne.s32.totalorder %s12290_s17, %s8124_s22  ;;  %p8129_p8 = scmp.lt.u32.totalorder %s12290_s17, %s12973_s4 }
 0x574   : > { %p8130_p5 = scmp.lt.u32.totalorder %s8128_s18, %s8124_s22  ;;  %p8132_p9 = scmp.lt.u32.totalorder %s8124_s22, %s12290_s17 }
 0x575   : > { %p8126_p6 = pnand %p8125_p12, %p12974_p2 }
 0x576   : > { %p8131_p7 = por %p8130_p5, %p8129_p8 }
 0x577   : > { %p8127_p0 = pneg %p8126_p6 }
 0x578   : > { %p8133_p3 = por %p8132_p9, %p8131_p7 }
 0x57a   : > { %p8134_p1 = pnand %p8133_p3, %p8127_p0 }
 0x57c   : > { %8137 = shalt.err (!%p8134_p1)
}
 0x57d   : > { %6855 = dma.vmem_to_hbm [thread:$0]  (%p12974_p2), %s5720_s15, 64, %s12290_s17, %s5706_s8  }
 0x57e PF: > { %s12975_s27 = sld [smem:[#allocation15_spill]]  ;;  %s12976_s12 = sld [smem:[#allocation24_spill]] }
 0x57f   : > { %p6877_p13 = scmp.ge.s32.totalorder %s8240_s25, 2 }
 0x584   : > { %s5731_s23 = sand.u32 1, %s12975_s27   ;;  %p12977_p11 = scmp.ne.s32.totalorder %s12976_s12, 0 }
 0x585   : > { %s5732_s29 = scalar_lea.sflag [#allocation4], %s5731_s23 }
 0x586   : > { %p6868_p4 = pnand %p6877_p13, %p12977_p11 }
 0x588   : > { %8195 = dma.done.wait (!%p6868_p4), %s5732_s29, 64  }
 0x589   : > { %8197 = vsyncadd (!%p6868_p4), %s5732_s29, 4294967232  ;;  %s22_s25 = sadd.s32 1, %s8240_s25   ;;  %s12978_s21 = sld [smem:[#allocation16_spill]] }
 0x58a   : > { %p19_p10 = scmp.ge.s32.totalorder %s22_s25, 6   ;;  %s12979_s17 = sld [smem:[#allocation21_spill]] }
 0x58b   : > { %s12980_s9 = sld [smem:[#allocation22_spill]]  ;;  %s12981_s6 = sld [smem:[#allocation17_spill]] }
 0x58c   : > { %s12982_s22 = sld [smem:[#allocation18_spill]]  ;;  %s12983_s23 = sld [smem:[#allocation19_spill]] }
 0x58d   : > { %s12984_s24 = sld [smem:[#allocation20_spill]]  ;;  %s12985_s15 = smov %s8204_s16 }
 0x58e   : > { %s12987_s18 = smov %s8216_s19  ;;  %s12988_s19 = smov %s8220_s20 }
 0x58f   : > { %s12986_s16 = smov %s12978_s21  ;;  %21 = sbr.rel (!%p19_p10) target bundleno = 13 (0xd), region = 105 }
 0x591   : > { %s12989_s20 = smov %s12980_s9  ;;  %s12990_s21 = smov %s12981_s6 }
 0x596   :  { %5737 = vsyncpa [#allocation3], 1 }
 0x597   :  { %5739 = vsyncpa [#allocation3 + $0x1], 1 }
 0x598   :  { %5740 = vsyncpa [#allocation6], 1 }
 0x599   :  { %5741 = vsyncpa [#allocation9], 1 }
 0x59a   :  { %5742 = vsyncpa [#allocation4], 1 }
 0x59b   :  { %5744 = vsyncpa [#allocation4 + $0x1], 1 }

</bundles_post_ra>
